<compile_context>
chip_gen: v7x
topology: tpu7x:2x2x1
jax: 0.10.0
libtpu: 0.0.40
codegen_flags: <defaults>
</compile_context>

<pallas_src>
import functools
import math

import jax
import jax.numpy as jnp
from jax.experimental import pallas as pl
from jax.experimental.pallas import tpu as pltpu


# ------------------------------ tiling helpers -------------------------------

def _sublane_align(dtype):
    """Sublane alignment for the second-to-last dim (bf16 packs 16 rows/vreg)."""
    return max(8, 32 // jnp.dtype(dtype).itemsize)


def _fit_tile(dim, pref, align):
    """Largest divisor of `dim` that is <= pref and a multiple of `align`;
    falls back to the full dimension."""
    if dim <= pref:
        return dim
    t = (pref // align) * align
    while t >= align:
        if dim % t == 0:
            return t
        t -= align
    return dim


def _choose_tm(m, dtype, cap=256):
    """Row tile: prefer >= 2 blocks (feeds both v7x TensorCores), cap at 256."""
    align = _sublane_align(dtype)
    pref = min(cap, max(align, m // 2))
    return _fit_tile(m, pref, align)


def _choose_tk(k, pref=512):
    """Reduction tile: prefer >= 2 K steps so weight DMAs double-buffer."""
    pref = min(pref, max(128, k // 2))
    return _fit_tile(k, pref, 128)


def _apply_activation(y, activation):
    if activation == "gelu":
        # tanh-approx GELU; within ~1e-3 of exact erf-GELU.
        # TODO(synk): switch to exact erf-GELU if/when lax.erf lowers in Mosaic.
        c = math.sqrt(2.0 / math.pi)
        y = 0.5 * y * (1.0 + jnp.tanh(c * (y + 0.044715 * y * y * y)))
    elif activation == "tanh":
        y = jnp.tanh(y)
    return y


# --------------------------- tiled linear (+act) -----------------------------

def _matmul_bias_kernel(x_ref, w_ref, b_ref, o_ref, acc_ref, *, activation):
    @pl.when(pl.program_id(2) == 0)
    def _():
        acc_ref[...] = jnp.zeros_like(acc_ref)

    acc_ref[...] += jnp.dot(x_ref[...], w_ref[...],
                            preferred_element_type=jnp.float32)

    @pl.when(pl.program_id(2) == pl.num_programs(2) - 1)
    def _():
        y = acc_ref[...] + b_ref[...].astype(jnp.float32)
        y = _apply_activation(y, activation)
        o_ref[...] = y.astype(o_ref.dtype)


def linear(x, w, b, activation="none"):
    """y = activation(x @ w + b); x: [M, K] bf16, w: [K, N] bf16, b: [N]."""
    M, K = x.shape
    N = w.shape[1]
    tm = _choose_tm(M, x.dtype)
    tn = _fit_tile(N, 256, 128)
    tk = _choose_tk(K)
    grid = (M // tm, N // tn, K // tk)
    itemsize = x.dtype.itemsize
    return pl.pallas_call(
        functools.partial(_matmul_bias_kernel, activation=activation),
        out_shape=jax.ShapeDtypeStruct((M, N), x.dtype),
        grid=grid,
        in_specs=[
            pl.BlockSpec((tm, tk), lambda i, j, k: (i, k)),
            pl.BlockSpec((tk, tn), lambda i, j, k: (k, j)),
            pl.BlockSpec((1, tn), lambda i, j, k: (0, j)),
        ],
        out_specs=pl.BlockSpec((tm, tn), lambda i, j, k: (i, j)),
        scratch_shapes=[pltpu.VMEM((tm, tn), jnp.float32)],
        compiler_params=pltpu.CompilerParams(
            dimension_semantics=("parallel", "parallel", "arbitrary")),
        cost_estimate=pl.CostEstimate(
            flops=2 * M * N * K,
            transcendentals=M * N if activation != "none" else 0,
            bytes_accessed=(M * K + K * N + M * N + N) * itemsize),
    )(x, w, b.reshape(1, N))


# ---------------- fused QKV projection with head-friendly outputs ------------

def _qkv_kernel(x_ref, w_ref, b_ref, q_ref, k_ref, v_ref, acc_ref):
    @pl.when(pl.program_id(1) == 0)
    def _():
        acc_ref[...] = jnp.zeros_like(acc_ref)

    acc_ref[...] += jnp.dot(x_ref[...], w_ref[...],
                            preferred_element_type=jnp.float32)

    @pl.when(pl.program_id(1) == pl.num_programs(1) - 1)
    def _():
        y = acc_ref[...] + b_ref[...].astype(jnp.float32)
        H = q_ref.shape[-1]
        q_ref[...] = y[:, 0 * H:1 * H].astype(q_ref.dtype)
        k_ref[...] = y[:, 1 * H:2 * H].astype(k_ref.dtype)
        v_ref[...] = y[:, 2 * H:3 * H].astype(v_ref.dtype)


def linear_qkv(x, w, b):
    """Fused QKV projection: returns (q, k, v), each [M, H] and lane-dense."""
    M, K = x.shape
    N3 = w.shape[1]
    H = N3 // 3
    tm = _choose_tm(M, x.dtype)
    tk = _choose_tk(K)
    grid = (M // tm, K // tk)
    itemsize = x.dtype.itemsize
    return pl.pallas_call(
        _qkv_kernel,
        out_shape=tuple(jax.ShapeDtypeStruct((M, H), x.dtype) for _ in range(3)),
        grid=grid,
        in_specs=[
            pl.BlockSpec((tm, tk), lambda i, k: (i, k)),
            pl.BlockSpec((tk, N3), lambda i, k: (k, 0)),
            pl.BlockSpec((1, N3), lambda i, k: (0, 0)),
        ],
        out_specs=tuple(pl.BlockSpec((tm, H), lambda i, k: (i, 0))
                        for _ in range(3)),
        scratch_shapes=[pltpu.VMEM((tm, N3), jnp.float32)],
        compiler_params=pltpu.CompilerParams(
            dimension_semantics=("parallel", "arbitrary")),
        cost_estimate=pl.CostEstimate(
            flops=2 * M * N3 * K, transcendentals=0,
            bytes_accessed=(M * K + K * N3 + M * N3 + N3) * itemsize),
    )(x, w, b.reshape(1, N3))


# ------------- tiled linear fused with residual-add + LayerNorm --------------

def _matmul_add_ln_kernel(x_ref, w_ref, b_ref, res_ref, g_ref, beta_ref,
                          o_ref, acc_ref, *, eps):
    @pl.when(pl.program_id(1) == 0)
    def _():
        acc_ref[...] = jnp.zeros_like(acc_ref)

    acc_ref[...] += jnp.dot(x_ref[...], w_ref[...],
                            preferred_element_type=jnp.float32)

    @pl.when(pl.program_id(1) == pl.num_programs(1) - 1)
    def _():
        y = (acc_ref[...] + b_ref[...].astype(jnp.float32)
             + res_ref[...].astype(jnp.float32))
        mean = jnp.mean(y, axis=-1, keepdims=True)
        var = jnp.mean(jnp.square(y - mean), axis=-1, keepdims=True)
        y = (y - mean) * jax.lax.rsqrt(var + eps)
        y = y * g_ref[...].astype(jnp.float32) + beta_ref[...].astype(jnp.float32)
        o_ref[...] = y.astype(o_ref.dtype)


def linear_add_layernorm(x, w, b, residual, gamma, beta, eps=1e-12):
    """LayerNorm((x @ w + b) + residual); LN over the full output width N."""
    M, K = x.shape
    N = w.shape[1]
    tm = _choose_tm(M, x.dtype)
    tk = _choose_tk(K)
    grid = (M // tm, K // tk)
    itemsize = x.dtype.itemsize
    return pl.pallas_call(
        functools.partial(_matmul_add_ln_kernel, eps=eps),
        out_shape=jax.ShapeDtypeStruct((M, N), x.dtype),
        grid=grid,
        in_specs=[
            pl.BlockSpec((tm, tk), lambda i, k: (i, k)),
            pl.BlockSpec((tk, N), lambda i, k: (k, 0)),
            pl.BlockSpec((1, N), lambda i, k: (0, 0)),
            pl.BlockSpec((tm, N), lambda i, k: (i, 0)),
            pl.BlockSpec((1, N), lambda i, k: (0, 0)),
            pl.BlockSpec((1, N), lambda i, k: (0, 0)),
        ],
        out_specs=pl.BlockSpec((tm, N), lambda i, k: (i, 0)),
        scratch_shapes=[pltpu.VMEM((tm, N), jnp.float32)],
        compiler_params=pltpu.CompilerParams(
            dimension_semantics=("parallel", "arbitrary")),
        cost_estimate=pl.CostEstimate(
            flops=2 * M * N * K, transcendentals=0,
            bytes_accessed=(M * K + K * N + 2 * M * N) * itemsize),
    )(x, w, b.reshape(1, N), residual, gamma.reshape(1, N), beta.reshape(1, N))


# ------------------------------ plain LayerNorm -------------------------------

def _layernorm_kernel(x_ref, g_ref, b_ref, o_ref, *, eps):
    x = x_ref[...].astype(jnp.float32)
    mean = jnp.mean(x, axis=-1, keepdims=True)
    var = jnp.mean(jnp.square(x - mean), axis=-1, keepdims=True)
    y = (x - mean) * jax.lax.rsqrt(var + eps)
    y = y * g_ref[...].astype(jnp.float32) + b_ref[...].astype(jnp.float32)
    o_ref[...] = y.astype(o_ref.dtype)


def layernorm(x, gamma, beta, eps=1e-12, out_dtype=None):
    M, H = x.shape
    out_dtype = x.dtype if out_dtype is None else out_dtype
    tm = _choose_tm(M, x.dtype, cap=512)
    return pl.pallas_call(
        functools.partial(_layernorm_kernel, eps=eps),
        out_shape=jax.ShapeDtypeStruct((M, H), out_dtype),
        grid=(M // tm,),
        in_specs=[
            pl.BlockSpec((tm, H), lambda i: (i, 0)),
            pl.BlockSpec((1, H), lambda i: (0, 0)),
            pl.BlockSpec((1, H), lambda i: (0, 0)),
        ],
        out_specs=pl.BlockSpec((tm, H), lambda i: (i, 0)),
        compiler_params=pltpu.CompilerParams(
            dimension_semantics=("parallel",)),
    )(x, gamma.reshape(1, H), beta.reshape(1, H))


# ----------------------- single-pass multi-head attention ---------------------

def _attention_kernel(q_ref, k_ref, v_ref, bias_ref, o_ref, *, num_heads, scale):
    """q_ref: (tq, H), k_ref/v_ref: (S, H), bias_ref: (1, S), o_ref: (tq, H).

    All heads are handled in one grid step; K/V for the whole sequence live in
    one block so the softmax is single-pass (no online-softmax bookkeeping).
    """
    bias = bias_ref[...].astype(jnp.float32)                     # (1, S)
    dh = q_ref.shape[-1] // num_heads
    ctx = []
    for h in range(num_heads):                                   # static unroll
        lo, hi = h * dh, (h + 1) * dh
        qh = q_ref[:, lo:hi]                                     # (tq, dh) bf16
        kh = k_ref[:, lo:hi]                                     # (S,  dh) bf16
        vh = v_ref[:, lo:hi]                                     # (S,  dh) bf16
        s = jax.lax.dot_general(qh, kh, (((1,), (1,)), ((), ())),
                                preferred_element_type=jnp.float32)  # (tq, S)
        s = s * scale + bias                                     # scale in f32
        m = jnp.max(s, axis=-1, keepdims=True)
        p = jnp.exp(s - m)
        denom = jnp.sum(p, axis=-1, keepdims=True)
        c = jnp.dot(p.astype(vh.dtype), vh,
                    preferred_element_type=jnp.float32)          # (tq, dh)
        ctx.append(c * pl.reciprocal(denom, approx=True))
    o_ref[...] = jnp.concatenate(ctx, axis=-1).astype(o_ref.dtype)  # lane-dense


def attention(q, k, v, mask_bias, *, num_heads, scale):
    """q,k,v: [B, S, H] bf16 (heads packed in the last dim); mask_bias: [B,1,S]."""
    B, S, H = q.shape
    assert H % num_heads == 0
    tq = _fit_tile(S, 256, _sublane_align(q.dtype))
    # TODO(synk): add an online-softmax (flash) path with a kv grid axis for
    # very long sequences; full-sequence K/V blocks are fine at BERT scales.
    grid = (B, S // tq)
    return pl.pallas_call(
        functools.partial(_attention_kernel, num_heads=num_heads, scale=scale),
        out_shape=jax.ShapeDtypeStruct((B, S, H), q.dtype),
        grid=grid,
        in_specs=[
            pl.BlockSpec((None, tq, H), lambda b, qi: (b, qi, 0)),
            pl.BlockSpec((None, S, H), lambda b, qi: (b, 0, 0)),
            pl.BlockSpec((None, S, H), lambda b, qi: (b, 0, 0)),
            pl.BlockSpec((None, 1, S), lambda b, qi: (b, 0, 0)),
        ],
        out_specs=pl.BlockSpec((None, tq, H), lambda b, qi: (b, qi, 0)),
        compiler_params=pltpu.CompilerParams(
            dimension_semantics=("parallel", "parallel")),
    )(q, k, v, mask_bias)


# --------------------------- parameter initialization -------------------------

def init_params(key, *, vocab, max_pos, type_vocab, hidden, ffn, layers):
    def nrm(k, shape, scale=0.02):
        return scale * jax.random.normal(k, shape, dtype=jnp.float32)

    keys = iter(jax.random.split(key, 16 + layers * 16))
    p = {
        "word_emb": nrm(next(keys), (vocab, hidden)),
        "pos_emb": nrm(next(keys), (max_pos, hidden)),
        "type_emb": nrm(next(keys), (type_vocab, hidden)),
        "emb_ln_g": 1.0 + 0.1 * jax.random.normal(next(keys), (hidden,), jnp.float32),
        "emb_ln_b": nrm(next(keys), (hidden,)),
        "pool_w": nrm(next(keys), (hidden, hidden)),
        "pool_b": nrm(next(keys), (hidden,)),
        "layers": [],
    }
    for _ in range(layers):
        wq, wk, wv = (nrm(next(keys), (hidden, hidden)) for _ in range(3))
        lp = {
            "wqkv": jnp.concatenate([wq, wk, wv], axis=1),      # fused QKV
            "bqkv": nrm(next(keys), (3 * hidden,)),
            "wo": nrm(next(keys), (hidden, hidden)),
            "bo": nrm(next(keys), (hidden,)),
            "ln1_g": 1.0 + 0.1 * jax.random.normal(next(keys), (hidden,), jnp.float32),
            "ln1_b": nrm(next(keys), (hidden,)),
            "w1": nrm(next(keys), (hidden, ffn)),
            "b1": nrm(next(keys), (ffn,)),
            "w2": nrm(next(keys), (ffn, hidden)),
            "b2": nrm(next(keys), (hidden,)),
            "ln2_g": 1.0 + 0.1 * jax.random.normal(next(keys), (hidden,), jnp.float32),
            "ln2_b": nrm(next(keys), (hidden,)),
        }
        p["layers"].append(lp)
    return p


# -------------------------------- model forward --------------------------------

def bert_forward(params, input_ids, token_type_ids, attention_mask, *, num_heads):
    B, S = input_ids.shape
    H = params["word_emb"].shape[1]
    DH = H // num_heads
    scale = 1.0 / math.sqrt(DH)            # Python float -> static kernel arg

    # embeddings (gather is glue); sum + LN statistics in f32, bf16 output
    positions = jnp.arange(S)
    emb = (params["word_emb"][input_ids].astype(jnp.float32)
           + params["pos_emb"][positions][None, :, :].astype(jnp.float32)
           + params["type_emb"][token_type_ids].astype(jnp.float32))
    x = layernorm(emb.reshape(B * S, H), params["emb_ln_g"], params["emb_ln_b"],
                  out_dtype=jnp.bfloat16)

    # HF additive mask convention, kept compact as [B, 1, S]; the [B,NH,S,S]
    # broadcast happens inside the attention kernel.
    mask_bias = ((1.0 - attention_mask.astype(jnp.float32)) * -10000.0)[:, None, :]

    for lp in params["layers"]:
        # fused QKV projection -> three lane-dense [B*S, H] tensors (no slices)
        q2, k2, v2 = linear_qkv(x, lp["wqkv"], lp["bqkv"])
        q = q2.reshape(B, S, H)             # free reshapes, no transposes
        k = k2.reshape(B, S, H)
        v = v2.reshape(B, S, H)

        ctx = attention(q, k, v, mask_bias, num_heads=num_heads, scale=scale)
        ctx = ctx.reshape(B * S, H)

        # attention output projection fused with residual-add + LayerNorm
        x = linear_add_layernorm(ctx, lp["wo"], lp["bo"], x,
                                 lp["ln1_g"], lp["ln1_b"])

        # feed-forward: up-proj + GELU, then down-proj fused with add + LN
        h = linear(x, lp["w1"], lp["b1"], activation="gelu")
        x = linear_add_layernorm(h, lp["w2"], lp["b2"], x,
                                 lp["ln2_g"], lp["ln2_b"])

    last_hidden_state = x.reshape(B, S, H)
    cls = last_hidden_state[:, 0, :]                            # Model.encode()
    # pooler: M = B rows -> pure-jnp (a Pallas launch would be pure overhead)
    pooled = jnp.tanh(
        jnp.dot(cls, params["pool_w"], preferred_element_type=jnp.float32)
        + params["pool_b"].astype(jnp.float32))
    pooler_output = pooled.astype(last_hidden_state.dtype)
    return last_hidden_state, pooler_output


# ---------------------------- pure-JAX f32 reference ----------------------------

def bert_forward_reference(params, input_ids, token_type_ids, attention_mask,
                           *, num_heads):
    B, S = input_ids.shape
    H = params["word_emb"].shape[1]
    DH = H // num_heads
    scale = 1.0 / math.sqrt(DH)

    def ln(x, g, b, eps=1e-12):
        mu = jnp.mean(x, axis=-1, keepdims=True)
        var = jnp.mean(jnp.square(x - mu), axis=-1, keepdims=True)
        return (x - mu) * jax.lax.rsqrt(var + eps) * g + b

    def gelu(x):
        c = math.sqrt(2.0 / math.pi)
        return 0.5 * x * (1.0 + jnp.tanh(c * (x + 0.044715 * x ** 3)))

    emb = (params["word_emb"][input_ids]
           + params["pos_emb"][jnp.arange(S)][None, :, :]
           + params["type_emb"][token_type_ids])
    x = ln(emb, params["emb_ln_g"], params["emb_ln_b"])
    bias = ((1.0 - attention_mask.astype(jnp.float32)) * -10000.0)[:, None, None, :]

    for lp in params["layers"]:
        qkv = x @ lp["wqkv"] + lp["bqkv"]
        q, k, v = jnp.split(qkv, 3, axis=-1)
        q = q.reshape(B, S, num_heads, DH).transpose(0, 2, 1, 3)
        k = k.reshape(B, S, num_heads, DH).transpose(0, 2, 1, 3)
        v = v.reshape(B, S, num_heads, DH).transpose(0, 2, 1, 3)
        s = jnp.einsum("bhqd,bhkd->bhqk", q, k) * scale + bias
        p = jax.nn.softmax(s, axis=-1)
        ctx = jnp.einsum("bhqk,bhkd->bhqd", p, v)
        ctx = ctx.transpose(0, 2, 1, 3).reshape(B, S, H)
        x = ln(x + ctx @ lp["wo"] + lp["bo"], lp["ln1_g"], lp["ln1_b"])
        h = gelu(x @ lp["w1"] + lp["b1"])
        x = ln(x + h @ lp["w2"] + lp["b2"], lp["ln2_g"], lp["ln2_b"])

    pooled = jnp.tanh(x[:, 0, :] @ params["pool_w"] + params["pool_b"])
    return x, pooled


# ------------------------------------- main -------------------------------------

if __name__ == "__main__":
    # small BERT-like config (TPU-tile-friendly: H, S multiples of 128)
    VOCAB, MAX_POS, TYPE_VOCAB = 512, 512, 2
    HIDDEN, HEADS, FFN, LAYERS = 128, 4, 512, 2
    B, S = 2, 128

    key = jax.random.PRNGKey(0)
    k_param, k_ids = jax.random.split(key, 2)

    params_f32 = init_params(k_param, vocab=VOCAB, max_pos=MAX_POS,
                             type_vocab=TYPE_VOCAB, hidden=HIDDEN,
                             ffn=FFN, layers=LAYERS)
    # Kernel path runs in bf16 (MXU-native, halves HBM/VMEM traffic); the
    # reference uses the identical bf16-rounded values in f32 so only the
    # compute-path precision differs.
    params_bf16 = jax.tree_util.tree_map(lambda a: a.astype(jnp.bfloat16),
                                         params_f32)
    params_ref = jax.tree_util.tree_map(lambda a: a.astype(jnp.float32),
                                        params_bf16)

    input_ids = jax.random.randint(k_ids, (B, S), 0, VOCAB, dtype=jnp.int32)
    token_type_ids = jnp.tile((jnp.arange(S)[None, :] >= S // 2).astype(jnp.int32),
                              (B, 1))
    lengths = jnp.array([[S], [S - 32]], dtype=jnp.int32)
    attention_mask = (jnp.arange(S)[None, :] < lengths).astype(jnp.int32)

    fwd = jax.jit(functools.partial(bert_forward, num_heads=HEADS))
    last_hidden, pooled = fwd(params_bf16, input_ids, token_type_ids,
                              attention_mask)
    jax.block_until_ready((last_hidden, pooled))

    assert last_hidden.shape == (B, S, HIDDEN)
    assert pooled.shape == (B, HIDDEN)

    # loose numerical sanity check (bf16 kernel path vs f32 reference)
    ref_last, ref_pooled = bert_forward_reference(
        params_ref, input_ids, token_type_ids, attention_mask, num_heads=HEADS)
    d_last = float(jnp.max(jnp.abs(last_hidden.astype(jnp.float32) - ref_last)))
    d_pool = float(jnp.max(jnp.abs(pooled.astype(jnp.float32) - ref_pooled)))
    assert d_last < 0.3 and d_pool < 0.3, (d_last, d_pool)

    print("KERNEL_OK")
</pallas_src>

<mosaic_0001>
module attributes {stable_mosaic.version = 11 : i64} {
  func.func @_layernorm_kernel(%arg0: i32, %arg1: memref<128x128xf32, #tpu.memory_space<vmem>>, %arg2: memref<1x128xbf16, #tpu.memory_space<vmem>>, %arg3: memref<1x128xbf16, #tpu.memory_space<vmem>>, %arg4: memref<128x128xbf16, #tpu.memory_space<vmem>>) attributes {dimension_semantics = [#tpu.dimension_semantics<parallel>], iteration_bounds = array<i64: 2>, scalar_prefetch = 0 : i64, scratch_operands = 0 : i64, tpu.core_type = #tpu.core_type<tc>, window_params = [{transform_indices = @transform_0, window_bounds = array<i64: 128, 128>}, {pipeline_mode = #tpu.pipeline_mode<synchronous>, transform_indices = @transform_1, window_bounds = array<i64: 1, 128>}, {pipeline_mode = #tpu.pipeline_mode<synchronous>, transform_indices = @transform_2, window_bounds = array<i64: 1, 128>}, {transform_indices = @transform_3, window_bounds = array<i64: 128, 128>}]} {
    %c0 = arith.constant 0 : index
    %c0_0 = arith.constant 0 : index
    %0 = vector.load %arg1[%c0, %c0_0] : memref<128x128xf32, #tpu.memory_space<vmem>>, vector<128x128xf32>
    %cst = arith.constant dense<0.000000e+00> : vector<128xf32>
    %1 = vector.multi_reduction <add>, %0, %cst [1] : vector<128x128xf32> to vector<128xf32>
    %2 = vector.shape_cast %1 : vector<128xf32> to vector<128x1xf32>
    %cst_1 = arith.constant 1.280000e+02 : f32
    %3 = vector.broadcast %cst_1 : f32 to vector<128x1xf32>
    %4 = arith.divf %2, %3 : vector<128x1xf32>
    %5 = vector.broadcast %4 : vector<128x1xf32> to vector<128x128xf32>
    %6 = arith.subf %0, %5 : vector<128x128xf32>
    %7 = arith.mulf %6, %6 : vector<128x128xf32>
    %cst_2 = arith.constant dense<0.000000e+00> : vector<128xf32>
    %8 = vector.multi_reduction <add>, %7, %cst_2 [1] : vector<128x128xf32> to vector<128xf32>
    %9 = vector.shape_cast %8 : vector<128xf32> to vector<128x1xf32>
    %cst_3 = arith.constant 1.280000e+02 : f32
    %10 = vector.broadcast %cst_3 : f32 to vector<128x1xf32>
    %11 = arith.divf %9, %10 : vector<128x1xf32>
    %12 = vector.broadcast %4 : vector<128x1xf32> to vector<128x128xf32>
    %13 = arith.subf %0, %12 : vector<128x128xf32>
    %cst_4 = arith.constant 9.99999996E-13 : f32
    %14 = vector.broadcast %cst_4 : f32 to vector<128x1xf32>
    %15 = arith.addf %11, %14 : vector<128x1xf32>
    %16 = math.rsqrt %15 : vector<128x1xf32>
    %17 = vector.broadcast %16 : vector<128x1xf32> to vector<128x128xf32>
    %18 = arith.mulf %13, %17 : vector<128x128xf32>
    %c0_5 = arith.constant 0 : index
    %c0_6 = arith.constant 0 : index
    %19 = vector.load %arg2[%c0_5, %c0_6] : memref<1x128xbf16, #tpu.memory_space<vmem>>, vector<1x128xbf16>
    %20 = arith.extf %19 : vector<1x128xbf16> to vector<1x128xf32>
    %21 = vector.broadcast %20 : vector<1x128xf32> to vector<128x128xf32>
    %22 = arith.mulf %18, %21 : vector<128x128xf32>
    %c0_7 = arith.constant 0 : index
    %c0_8 = arith.constant 0 : index
    %23 = vector.load %arg3[%c0_7, %c0_8] : memref<1x128xbf16, #tpu.memory_space<vmem>>, vector<1x128xbf16>
    %24 = arith.extf %23 : vector<1x128xbf16> to vector<1x128xf32>
    %25 = vector.broadcast %24 : vector<1x128xf32> to vector<128x128xf32>
    %26 = arith.addf %22, %25 : vector<128x128xf32>
    %27 = arith.truncf %26 : vector<128x128xf32> to vector<128x128xbf16>
    %c0_9 = arith.constant 0 : index
    %c0_10 = arith.constant 0 : index
    %28 = vector.load %arg4[%c0_9, %c0_10] : memref<128x128xbf16, #tpu.memory_space<vmem>>, vector<128x128xbf16>
    tpu.vector_store %arg4[%c0_9, %c0_10], %27 {strides = array<i32>} : memref<128x128xbf16, #tpu.memory_space<vmem>>, vector<128x128xbf16>,
    return
  }
  func.func @transform_0(%arg0: i32) -> (i32, i32) {
    %c0_i32 = arith.constant 0 : i32
    %c0_i32_0 = arith.constant 0 : i32
    return %arg0, %c0_i32 : i32, i32
  }
  func.func @transform_1(%arg0: i32) -> (i32, i32) {
    %c0_i32 = arith.constant 0 : i32
    %c0_i32_0 = arith.constant 0 : i32
    %c0_i32_1 = arith.constant 0 : i32
    return %c0_i32, %c0_i32_0 : i32, i32
  }
  func.func @transform_2(%arg0: i32) -> (i32, i32) {
    %c0_i32 = arith.constant 0 : i32
    %c0_i32_0 = arith.constant 0 : i32
    %c0_i32_1 = arith.constant 0 : i32
    return %c0_i32, %c0_i32_0 : i32, i32
  }
  func.func @transform_3(%arg0: i32) -> (i32, i32) {
    %c0_i32 = arith.constant 0 : i32
    %c0_i32_0 = arith.constant 0 : i32
    return %arg0, %c0_i32 : i32, i32
  }
}

module attributes {stable_mosaic.version = 11 : i64} {
  func.func @_qkv_kernel(%arg0: i32, %arg1: i32, %arg2: memref<128x128xbf16, #tpu.memory_space<vmem>>, %arg3: memref<128x384xbf16, #tpu.memory_space<vmem>>, %arg4: memref<1x384xbf16, #tpu.memory_space<vmem>>, %arg5: memref<128x128xbf16, #tpu.memory_space<vmem>>, %arg6: memref<128x128xbf16, #tpu.memory_space<vmem>>, %arg7: memref<128x128xbf16, #tpu.memory_space<vmem>>, %arg8: memref<128x384xf32, #tpu.memory_space<vmem>>) attributes {dimension_semantics = [#tpu.dimension_semantics<parallel>, #tpu.dimension_semantics<arbitrary>], iteration_bounds = array<i64: 2, 1>, scalar_prefetch = 0 : i64, scratch_operands = 1 : i64, tpu.core_type = #tpu.core_type<tc>, window_params = [{transform_indices = @transform_0, window_bounds = array<i64: 128, 128>}, {transform_indices = @transform_1, window_bounds = array<i64: 128, 384>}, {pipeline_mode = #tpu.pipeline_mode<synchronous>, transform_indices = @transform_2, window_bounds = array<i64: 1, 384>}, {transform_indices = @transform_3, window_bounds = array<i64: 128, 128>}, {transform_indices = @transform_4, window_bounds = array<i64: 128, 128>}, {transform_indices = @transform_5, window_bounds = array<i64: 128, 128>}]} {
    %c0_i32 = arith.constant 0 : i32
    %0 = arith.cmpi eq, %arg1, %c0_i32 : i32
    %1 = arith.extui %0 : i1 to i32
    %c0_i32_0 = arith.constant 0 : i32
    %2 = arith.cmpi ne, %1, %c0_i32_0 : i32
    scf.if %2 {
      %cst_10 = arith.constant 0.000000e+00 : f32
      %12 = vector.broadcast %cst_10 : f32 to vector<128x384xf32>
      %c0_11 = arith.constant 0 : index
      %c0_12 = arith.constant 0 : index
      %13 = vector.load %arg8[%c0_11, %c0_12] : memref<128x384xf32, #tpu.memory_space<vmem>>, vector<128x384xf32>
      tpu.vector_store %arg8[%c0_11, %c0_12], %12 {strides = array<i32>} : memref<128x384xf32, #tpu.memory_space<vmem>>, vector<128x384xf32>,
    } else {
    }
    %c0 = arith.constant 0 : index
    %c0_1 = arith.constant 0 : index
    %3 = vector.load %arg8[%c0, %c0_1] : memref<128x384xf32, #tpu.memory_space<vmem>>, vector<128x384xf32>
    %c0_2 = arith.constant 0 : index
    %c0_3 = arith.constant 0 : index
    %4 = vector.load %arg2[%c0_2, %c0_3] : memref<128x128xbf16, #tpu.memory_space<vmem>>, vector<128x128xbf16>
    %c0_4 = arith.constant 0 : index
    %c0_5 = arith.constant 0 : index
    %5 = vector.load %arg3[%c0_4, %c0_5] : memref<128x384xbf16, #tpu.memory_space<vmem>>, vector<128x384xbf16>
    %cst = arith.constant dense<0.000000e+00> : vector<128x384xf32>
    %6 = tpu.matmul %4, %5, %cst {dimension_numbers = #tpu.dot_dimension_numbers<[1], [0], [0], [1], [0, 0, 1, 1], [], []>} : vector<128x128xbf16>, vector<128x384xbf16>, vector<128x384xf32> -> vector<128x384xf32>
    %7 = arith.addf %3, %6 : vector<128x384xf32>
    %c0_6 = arith.constant 0 : index
    %c0_7 = arith.constant 0 : index
    %8 = vector.load %arg8[%c0_6, %c0_7] : memref<128x384xf32, #tpu.memory_space<vmem>>, vector<128x384xf32>
    tpu.vector_store %arg8[%c0_6, %c0_7], %7 {strides = array<i32>} : memref<128x384xf32, #tpu.memory_space<vmem>>, vector<128x384xf32>,
    %c0_i32_8 = arith.constant 0 : i32
    %9 = arith.cmpi eq, %arg1, %c0_i32_8 : i32
    %10 = arith.extui %9 : i1 to i32
    %c0_i32_9 = arith.constant 0 : i32
    %11 = arith.cmpi ne, %10, %c0_i32_9 : i32
    scf.if %11 {
      %c0_10 = arith.constant 0 : index
      %c0_11 = arith.constant 0 : index
      %12 = vector.load %arg8[%c0_10, %c0_11] : memref<128x384xf32, #tpu.memory_space<vmem>>, vector<128x384xf32>
      %c0_12 = arith.constant 0 : index
      %c0_13 = arith.constant 0 : index
      %13 = vector.load %arg4[%c0_12, %c0_13] : memref<1x384xbf16, #tpu.memory_space<vmem>>, vector<1x384xbf16>
      %14 = arith.extf %13 : vector<1x384xbf16> to vector<1x384xf32>
      %15 = vector.broadcast %14 : vector<1x384xf32> to vector<128x384xf32>
      %16 = arith.addf %12, %15 : vector<128x384xf32>
      %17 = vector.extract_strided_slice %16 {offsets = [0, 0], sizes = [128, 128], strides = [1, 1]} : vector<128x384xf32> to vector<128x128xf32>
      %18 = arith.truncf %17 : vector<128x128xf32> to vector<128x128xbf16>
      %c0_14 = arith.constant 0 : index
      %c0_15 = arith.constant 0 : index
      %19 = vector.load %arg5[%c0_14, %c0_15] : memref<128x128xbf16, #tpu.memory_space<vmem>>, vector<128x128xbf16>
      tpu.vector_store %arg5[%c0_14, %c0_15], %18 {strides = array<i32>} : memref<128x128xbf16, #tpu.memory_space<vmem>>, vector<128x128xbf16>,
      %20 = vector.extract_strided_slice %16 {offsets = [0, 128], sizes = [128, 128], strides = [1, 1]} : vector<128x384xf32> to vector<128x128xf32>
      %21 = arith.truncf %20 : vector<128x128xf32> to vector<128x128xbf16>
      %c0_16 = arith.constant 0 : index
      %c0_17 = arith.constant 0 : index
      %22 = vector.load %arg6[%c0_16, %c0_17] : memref<128x128xbf16, #tpu.memory_space<vmem>>, vector<128x128xbf16>
      tpu.vector_store %arg6[%c0_16, %c0_17], %21 {strides = array<i32>} : memref<128x128xbf16, #tpu.memory_space<vmem>>, vector<128x128xbf16>,
      %23 = vector.extract_strided_slice %16 {offsets = [0, 256], sizes = [128, 128], strides = [1, 1]} : vector<128x384xf32> to vector<128x128xf32>
      %24 = arith.truncf %23 : vector<128x128xf32> to vector<128x128xbf16>
      %c0_18 = arith.constant 0 : index
      %c0_19 = arith.constant 0 : index
      %25 = vector.load %arg7[%c0_18, %c0_19] : memref<128x128xbf16, #tpu.memory_space<vmem>>, vector<128x128xbf16>
      tpu.vector_store %arg7[%c0_18, %c0_19], %24 {strides = array<i32>} : memref<128x128xbf16, #tpu.memory_space<vmem>>, vector<128x128xbf16>,
    } else {
    }
    return
  }
  func.func @transform_0(%arg0: i32, %arg1: i32) -> (i32, i32) {
    %c0_i32 = arith.constant 0 : i32
    return %arg0, %arg1 : i32, i32
  }
  func.func @transform_1(%arg0: i32, %arg1: i32) -> (i32, i32) {
    %c0_i32 = arith.constant 0 : i32
    %c0_i32_0 = arith.constant 0 : i32
    return %arg1, %c0_i32 : i32, i32
  }
  func.func @transform_2(%arg0: i32, %arg1: i32) -> (i32, i32) {
    %c0_i32 = arith.constant 0 : i32
    %c0_i32_0 = arith.constant 0 : i32
    %c0_i32_1 = arith.constant 0 : i32
    return %c0_i32, %c0_i32_0 : i32, i32
  }
  func.func @transform_3(%arg0: i32, %arg1: i32) -> (i32, i32) {
    %c0_i32 = arith.constant 0 : i32
    %c0_i32_0 = arith.constant 0 : i32
    return %arg0, %c0_i32 : i32, i32
  }
  func.func @transform_4(%arg0: i32, %arg1: i32) -> (i32, i32) {
    %c0_i32 = arith.constant 0 : i32
    %c0_i32_0 = arith.constant 0 : i32
    return %arg0, %c0_i32 : i32, i32
  }
  func.func @transform_5(%arg0: i32, %arg1: i32) -> (i32, i32) {
    %c0_i32 = arith.constant 0 : i32
    %c0_i32_0 = arith.constant 0 : i32
    return %arg0, %c0_i32 : i32, i32
  }
}

module attributes {stable_mosaic.version = 11 : i64} {
  func.func @_attention_kernel(%arg0: i32, %arg1: i32, %arg2: memref<1x128x128xbf16, #tpu.memory_space<vmem>>, %arg3: memref<1x128x128xbf16, #tpu.memory_space<vmem>>, %arg4: memref<1x128x128xbf16, #tpu.memory_space<vmem>>, %arg5: memref<1x1x128xf32, #tpu.memory_space<vmem>>, %arg6: memref<1x128x128xbf16, #tpu.memory_space<vmem>>) attributes {dimension_semantics = [#tpu.dimension_semantics<parallel>, #tpu.dimension_semantics<parallel>], iteration_bounds = array<i64: 2, 1>, scalar_prefetch = 0 : i64, scratch_operands = 0 : i64, tpu.core_type = #tpu.core_type<tc>, window_params = [{transform_indices = @transform_0, window_bounds = array<i64: 1, 128, 128>}, {transform_indices = @transform_1, window_bounds = array<i64: 1, 128, 128>}, {transform_indices = @transform_2, window_bounds = array<i64: 1, 128, 128>}, {transform_indices = @transform_3, window_bounds = array<i64: 1, 1, 128>}, {transform_indices = @transform_4, window_bounds = array<i64: 1, 128, 128>}]} {
    %c0 = arith.constant 0 : index
    %c0_0 = arith.constant 0 : index
    %c0_1 = arith.constant 0 : index
    %0 = vector.load %arg5[%c0, %c0_0, %c0_1] : memref<1x1x128xf32, #tpu.memory_space<vmem>>, vector<1x1x128xf32>
    %1 = vector.shape_cast %0 : vector<1x1x128xf32> to vector<1x128xf32>
    %c0_2 = arith.constant 0 : index
    %c0_3 = arith.constant 0 : index
    %c0_4 = arith.constant 0 : index
    %2 = vector.load %arg2[%c0_2, %c0_3, %c0_4] : memref<1x128x128xbf16, #tpu.memory_space<vmem>>, vector<1x128x32xbf16>
    %3 = vector.shape_cast %2 : vector<1x128x32xbf16> to vector<128x32xbf16>
    %c0_5 = arith.constant 0 : index
    %c0_6 = arith.constant 0 : index
    %c0_7 = arith.constant 0 : index
    %4 = vector.load %arg3[%c0_5, %c0_6, %c0_7] : memref<1x128x128xbf16, #tpu.memory_space<vmem>>, vector<1x128x32xbf16>
    %5 = vector.shape_cast %4 : vector<1x128x32xbf16> to vector<128x32xbf16>
    %c0_8 = arith.constant 0 : index
    %c0_9 = arith.constant 0 : index
    %c0_10 = arith.constant 0 : index
    %6 = vector.load %arg4[%c0_8, %c0_9, %c0_10] : memref<1x128x128xbf16, #tpu.memory_space<vmem>>, vector<1x128x32xbf16>
    %7 = vector.shape_cast %6 : vector<1x128x32xbf16> to vector<128x32xbf16>
    %cst = arith.constant dense<0.000000e+00> : vector<128x128xf32>
    %8 = tpu.matmul %3, %5, %cst {dimension_numbers = #tpu.dot_dimension_numbers<[1], [1], [0], [0], [0, 0, 1, 0], [], []>} : vector<128x32xbf16>, vector<128x32xbf16>, vector<128x128xf32> -> vector<128x128xf32>
    %cst_11 = arith.constant 0.176776692 : f32
    %9 = vector.broadcast %cst_11 : f32 to vector<128x128xf32>
    %10 = arith.mulf %8, %9 : vector<128x128xf32>
    %11 = vector.broadcast %1 : vector<1x128xf32> to vector<128x128xf32>
    %12 = arith.addf %10, %11 : vector<128x128xf32>
    %cst_12 = arith.constant dense<0xFF800000> : vector<128xf32>
    %13 = vector.multi_reduction <maximumf>, %12, %cst_12 [1] : vector<128x128xf32> to vector<128xf32>
    %14 = vector.shape_cast %13 : vector<128xf32> to vector<128x1xf32>
    %15 = vector.broadcast %14 : vector<128x1xf32> to vector<128x128xf32>
    %16 = arith.subf %12, %15 : vector<128x128xf32>
    %17 = math.exp %16 : vector<128x128xf32>
    %cst_13 = arith.constant dense<0.000000e+00> : vector<128xf32>
    %18 = vector.multi_reduction <add>, %17, %cst_13 [1] : vector<128x128xf32> to vector<128xf32>
    %19 = vector.shape_cast %18 : vector<128xf32> to vector<128x1xf32>
    %20 = arith.truncf %17 : vector<128x128xf32> to vector<128x128xbf16>
    %cst_14 = arith.constant dense<0.000000e+00> : vector<128x32xf32>
    %21 = tpu.matmul %20, %7, %cst_14 {dimension_numbers = #tpu.dot_dimension_numbers<[1], [0], [0], [1], [0, 0, 1, 1], [], []>} : vector<128x128xbf16>, vector<128x32xbf16>, vector<128x32xf32> -> vector<128x32xf32>
    %22 = tpu.reciprocal %19 {approx = true} : vector<128x1xf32> -> vector<128x1xf32>
    %23 = vector.broadcast %22 : vector<128x1xf32> to vector<128x32xf32>
    %24 = arith.mulf %21, %23 : vector<128x32xf32>
    %c0_15 = arith.constant 0 : index
    %c0_16 = arith.constant 0 : index
    %c32 = arith.constant 32 : index
    %25 = vector.load %arg2[%c0_15, %c0_16, %c32] : memref<1x128x128xbf16, #tpu.memory_space<vmem>>, vector<1x128x32xbf16>
    %26 = vector.shape_cast %25 : vector<1x128x32xbf16> to vector<128x32xbf16>
    %c0_17 = arith.constant 0 : index
    %c0_18 = arith.constant 0 : index
    %c32_19 = arith.constant 32 : index
    %27 = vector.load %arg3[%c0_17, %c0_18, %c32_19] : memref<1x128x128xbf16, #tpu.memory_space<vmem>>, vector<1x128x32xbf16>
    %28 = vector.shape_cast %27 : vector<1x128x32xbf16> to vector<128x32xbf16>
    %c0_20 = arith.constant 0 : index
    %c0_21 = arith.constant 0 : index
    %c32_22 = arith.constant 32 : index
    %29 = vector.load %arg4[%c0_20, %c0_21, %c32_22] : memref<1x128x128xbf16, #tpu.memory_space<vmem>>, vector<1x128x32xbf16>
    %30 = vector.shape_cast %29 : vector<1x128x32xbf16> to vector<128x32xbf16>
    %cst_23 = arith.constant dense<0.000000e+00> : vector<128x128xf32>
    %31 = tpu.matmul %26, %28, %cst_23 {dimension_numbers = #tpu.dot_dimension_numbers<[1], [1], [0], [0], [0, 0, 1, 0], [], []>} : vector<128x32xbf16>, vector<128x32xbf16>, vector<128x128xf32> -> vector<128x128xf32>
    %cst_24 = arith.constant 0.176776692 : f32
    %32 = vector.broadcast %cst_24 : f32 to vector<128x128xf32>
    %33 = arith.mulf %31, %32 : vector<128x128xf32>
    %34 = vector.broadcast %1 : vector<1x128xf32> to vector<128x128xf32>
    %35 = arith.addf %33, %34 : vector<128x128xf32>
    %cst_25 = arith.constant dense<0xFF800000> : vector<128xf32>
    %36 = vector.multi_reduction <maximumf>, %35, %cst_25 [1] : vector<128x128xf32> to vector<128xf32>
    %37 = vector.shape_cast %36 : vector<128xf32> to vector<128x1xf32>
    %38 = vector.broadcast %37 : vector<128x1xf32> to vector<128x128xf32>
    %39 = arith.subf %35, %38 : vector<128x128xf32>
    %40 = math.exp %39 : vector<128x128xf32>
    %cst_26 = arith.constant dense<0.000000e+00> : vector<128xf32>
    %41 = vector.multi_reduction <add>, %40, %cst_26 [1] : vector<128x128xf32> to vector<128xf32>
    %42 = vector.shape_cast %41 : vector<128xf32> to vector<128x1xf32>
    %43 = arith.truncf %40 : vector<128x128xf32> to vector<128x128xbf16>
    %cst_27 = arith.constant dense<0.000000e+00> : vector<128x32xf32>
    %44 = tpu.matmul %43, %30, %cst_27 {dimension_numbers = #tpu.dot_dimension_numbers<[1], [0], [0], [1], [0, 0, 1, 1], [], []>} : vector<128x128xbf16>, vector<128x32xbf16>, vector<128x32xf32> -> vector<128x32xf32>
    %45 = tpu.reciprocal %42 {approx = true} : vector<128x1xf32> -> vector<128x1xf32>
    %46 = vector.broadcast %45 : vector<128x1xf32> to vector<128x32xf32>
    %47 = arith.mulf %44, %46 : vector<128x32xf32>
    %c0_28 = arith.constant 0 : index
    %c0_29 = arith.constant 0 : index
    %c64 = arith.constant 64 : index
    %48 = vector.load %arg2[%c0_28, %c0_29, %c64] : memref<1x128x128xbf16, #tpu.memory_space<vmem>>, vector<1x128x32xbf16>
    %49 = vector.shape_cast %48 : vector<1x128x32xbf16> to vector<128x32xbf16>
    %c0_30 = arith.constant 0 : index
    %c0_31 = arith.constant 0 : index
    %c64_32 = arith.constant 64 : index
    %50 = vector.load %arg3[%c0_30, %c0_31, %c64_32] : memref<1x128x128xbf16, #tpu.memory_space<vmem>>, vector<1x128x32xbf16>
    %51 = vector.shape_cast %50 : vector<1x128x32xbf16> to vector<128x32xbf16>
    %c0_33 = arith.constant 0 : index
    %c0_34 = arith.constant 0 : index
    %c64_35 = arith.constant 64 : index
    %52 = vector.load %arg4[%c0_33, %c0_34, %c64_35] : memref<1x128x128xbf16, #tpu.memory_space<vmem>>, vector<1x128x32xbf16>
    %53 = vector.shape_cast %52 : vector<1x128x32xbf16> to vector<128x32xbf16>
    %cst_36 = arith.constant dense<0.000000e+00> : vector<128x128xf32>
    %54 = tpu.matmul %49, %51, %cst_36 {dimension_numbers = #tpu.dot_dimension_numbers<[1], [1], [0], [0], [0, 0, 1, 0], [], []>} : vector<128x32xbf16>, vector<128x32xbf16>, vector<128x128xf32> -> vector<128x128xf32>
    %cst_37 = arith.constant 0.176776692 : f32
    %55 = vector.broadcast %cst_37 : f32 to vector<128x128xf32>
    %56 = arith.mulf %54, %55 : vector<128x128xf32>
    %57 = vector.broadcast %1 : vector<1x128xf32> to vector<128x128xf32>
    %58 = arith.addf %56, %57 : vector<128x128xf32>
    %cst_38 = arith.constant dense<0xFF800000> : vector<128xf32>
    %59 = vector.multi_reduction <maximumf>, %58, %cst_38 [1] : vector<128x128xf32> to vector<128xf32>
    %60 = vector.shape_cast %59 : vector<128xf32> to vector<128x1xf32>
    %61 = vector.broadcast %60 : vector<128x1xf32> to vector<128x128xf32>
    %62 = arith.subf %58, %61 : vector<128x128xf32>
    %63 = math.exp %62 : vector<128x128xf32>
    %cst_39 = arith.constant dense<0.000000e+00> : vector<128xf32>
    %64 = vector.multi_reduction <add>, %63, %cst_39 [1] : vector<128x128xf32> to vector<128xf32>
    %65 = vector.shape_cast %64 : vector<128xf32> to vector<128x1xf32>
    %66 = arith.truncf %63 : vector<128x128xf32> to vector<128x128xbf16>
    %cst_40 = arith.constant dense<0.000000e+00> : vector<128x32xf32>
    %67 = tpu.matmul %66, %53, %cst_40 {dimension_numbers = #tpu.dot_dimension_numbers<[1], [0], [0], [1], [0, 0, 1, 1], [], []>} : vector<128x128xbf16>, vector<128x32xbf16>, vector<128x32xf32> -> vector<128x32xf32>
    %68 = tpu.reciprocal %65 {approx = true} : vector<128x1xf32> -> vector<128x1xf32>
    %69 = vector.broadcast %68 : vector<128x1xf32> to vector<128x32xf32>
    %70 = arith.mulf %67, %69 : vector<128x32xf32>
    %c0_41 = arith.constant 0 : index
    %c0_42 = arith.constant 0 : index
    %c96 = arith.constant 96 : index
    %71 = vector.load %arg2[%c0_41, %c0_42, %c96] : memref<1x128x128xbf16, #tpu.memory_space<vmem>>, vector<1x128x32xbf16>
    %72 = vector.shape_cast %71 : vector<1x128x32xbf16> to vector<128x32xbf16>
    %c0_43 = arith.constant 0 : index
    %c0_44 = arith.constant 0 : index
    %c96_45 = arith.constant 96 : index
    %73 = vector.load %arg3[%c0_43, %c0_44, %c96_45] : memref<1x128x128xbf16, #tpu.memory_space<vmem>>, vector<1x128x32xbf16>
    %74 = vector.shape_cast %73 : vector<1x128x32xbf16> to vector<128x32xbf16>
    %c0_46 = arith.constant 0 : index
    %c0_47 = arith.constant 0 : index
    %c96_48 = arith.constant 96 : index
    %75 = vector.load %arg4[%c0_46, %c0_47, %c96_48] : memref<1x128x128xbf16, #tpu.memory_space<vmem>>, vector<1x128x32xbf16>
    %76 = vector.shape_cast %75 : vector<1x128x32xbf16> to vector<128x32xbf16>
    %cst_49 = arith.constant dense<0.000000e+00> : vector<128x128xf32>
    %77 = tpu.matmul %72, %74, %cst_49 {dimension_numbers = #tpu.dot_dimension_numbers<[1], [1], [0], [0], [0, 0, 1, 0], [], []>} : vector<128x32xbf16>, vector<128x32xbf16>, vector<128x128xf32> -> vector<128x128xf32>
    %cst_50 = arith.constant 0.176776692 : f32
    %78 = vector.broadcast %cst_50 : f32 to vector<128x128xf32>
    %79 = arith.mulf %77, %78 : vector<128x128xf32>
    %80 = vector.broadcast %1 : vector<1x128xf32> to vector<128x128xf32>
    %81 = arith.addf %79, %80 : vector<128x128xf32>
    %cst_51 = arith.constant dense<0xFF800000> : vector<128xf32>
    %82 = vector.multi_reduction <maximumf>, %81, %cst_51 [1] : vector<128x128xf32> to vector<128xf32>
    %83 = vector.shape_cast %82 : vector<128xf32> to vector<128x1xf32>
    %84 = vector.broadcast %83 : vector<128x1xf32> to vector<128x128xf32>
    %85 = arith.subf %81, %84 : vector<128x128xf32>
    %86 = math.exp %85 : vector<128x128xf32>
    %cst_52 = arith.constant dense<0.000000e+00> : vector<128xf32>
    %87 = vector.multi_reduction <add>, %86, %cst_52 [1] : vector<128x128xf32> to vector<128xf32>
    %88 = vector.shape_cast %87 : vector<128xf32> to vector<128x1xf32>
    %89 = arith.truncf %86 : vector<128x128xf32> to vector<128x128xbf16>
    %cst_53 = arith.constant dense<0.000000e+00> : vector<128x32xf32>
    %90 = tpu.matmul %89, %76, %cst_53 {dimension_numbers = #tpu.dot_dimension_numbers<[1], [0], [0], [1], [0, 0, 1, 1], [], []>} : vector<128x128xbf16>, vector<128x32xbf16>, vector<128x32xf32> -> vector<128x32xf32>
    %91 = tpu.reciprocal %88 {approx = true} : vector<128x1xf32> -> vector<128x1xf32>
    %92 = vector.broadcast %91 : vector<128x1xf32> to vector<128x32xf32>
    %93 = arith.mulf %90, %92 : vector<128x32xf32>
    %94 = tpu.concatenate %24, %47, %70, %93 in 1 : vector<128x32xf32>, vector<128x32xf32>, vector<128x32xf32>, vector<128x32xf32> -> vector<128x128xf32>
    %95 = arith.truncf %94 : vector<128x128xf32> to vector<128x128xbf16>
    %c0_54 = arith.constant 0 : index
    %c0_55 = arith.constant 0 : index
    %c0_56 = arith.constant 0 : index
    %96 = vector.load %arg6[%c0_54, %c0_55, %c0_56] : memref<1x128x128xbf16, #tpu.memory_space<vmem>>, vector<1x128x128xbf16>
    %97 = vector.shape_cast %96 : vector<1x128x128xbf16> to vector<128x128xbf16>
    %98 = vector.shape_cast %95 : vector<128x128xbf16> to vector<1x128x128xbf16>
    tpu.vector_store %arg6[%c0_54, %c0_55, %c0_56], %98 {strides = array<i32>} : memref<1x128x128xbf16, #tpu.memory_space<vmem>>, vector<1x128x128xbf16>,
    return
  }
  func.func @transform_0(%arg0: i32, %arg1: i32) -> (i32, i32, i32) {
    %c0_i32 = arith.constant 0 : i32
    %c0_i32_0 = arith.constant 0 : i32
    return %arg0, %arg1, %c0_i32 : i32, i32, i32
  }
  func.func @transform_1(%arg0: i32, %arg1: i32) -> (i32, i32, i32) {
    %c0_i32 = arith.constant 0 : i32
    %c0_i32_0 = arith.constant 0 : i32
    %c0_i32_1 = arith.constant 0 : i32
    return %arg0, %c0_i32, %c0_i32_0 : i32, i32, i32
  }
  func.func @transform_2(%arg0: i32, %arg1: i32) -> (i32, i32, i32) {
    %c0_i32 = arith.constant 0 : i32
    %c0_i32_0 = arith.constant 0 : i32
    %c0_i32_1 = arith.constant 0 : i32
    return %arg0, %c0_i32, %c0_i32_0 : i32, i32, i32
  }
  func.func @transform_3(%arg0: i32, %arg1: i32) -> (i32, i32, i32) {
    %c0_i32 = arith.constant 0 : i32
    %c0_i32_0 = arith.constant 0 : i32
    %c0_i32_1 = arith.constant 0 : i32
    return %arg0, %c0_i32, %c0_i32_0 : i32, i32, i32
  }
  func.func @transform_4(%arg0: i32, %arg1: i32) -> (i32, i32, i32) {
    %c0_i32 = arith.constant 0 : i32
    %c0_i32_0 = arith.constant 0 : i32
    return %arg0, %arg1, %c0_i32 : i32, i32, i32
  }
}

module attributes {stable_mosaic.version = 11 : i64} {
  func.func @_matmul_add_ln_kernel(%arg0: i32, %arg1: i32, %arg2: memref<128x128xbf16, #tpu.memory_space<vmem>>, %arg3: memref<128x128xbf16, #tpu.memory_space<vmem>>, %arg4: memref<1x128xbf16, #tpu.memory_space<vmem>>, %arg5: memref<128x128xbf16, #tpu.memory_space<vmem>>, %arg6: memref<1x128xbf16, #tpu.memory_space<vmem>>, %arg7: memref<1x128xbf16, #tpu.memory_space<vmem>>, %arg8: memref<128x128xbf16, #tpu.memory_space<vmem>>, %arg9: memref<128x128xf32, #tpu.memory_space<vmem>>) attributes {dimension_semantics = [#tpu.dimension_semantics<parallel>, #tpu.dimension_semantics<arbitrary>], iteration_bounds = array<i64: 2, 1>, scalar_prefetch = 0 : i64, scratch_operands = 1 : i64, tpu.core_type = #tpu.core_type<tc>, window_params = [{transform_indices = @transform_0, window_bounds = array<i64: 128, 128>}, {transform_indices = @transform_1, window_bounds = array<i64: 128, 128>}, {pipeline_mode = #tpu.pipeline_mode<synchronous>, transform_indices = @transform_2, window_bounds = array<i64: 1, 128>}, {transform_indices = @transform_3, window_bounds = array<i64: 128, 128>}, {pipeline_mode = #tpu.pipeline_mode<synchronous>, transform_indices = @transform_4, window_bounds = array<i64: 1, 128>}, {pipeline_mode = #tpu.pipeline_mode<synchronous>, transform_indices = @transform_5, window_bounds = array<i64: 1, 128>}, {transform_indices = @transform_6, window_bounds = array<i64: 128, 128>}]} {
    %c0_i32 = arith.constant 0 : i32
    %0 = arith.cmpi eq, %arg1, %c0_i32 : i32
    %1 = arith.extui %0 : i1 to i32
    %c0_i32_0 = arith.constant 0 : i32
    %2 = arith.cmpi ne, %1, %c0_i32_0 : i32
    scf.if %2 {
      %cst_10 = arith.constant 0.000000e+00 : f32
      %12 = vector.broadcast %cst_10 : f32 to vector<128x128xf32>
      %c0_11 = arith.constant 0 : index
      %c0_12 = arith.constant 0 : index
      %13 = vector.load %arg9[%c0_11, %c0_12] : memref<128x128xf32, #tpu.memory_space<vmem>>, vector<128x128xf32>
      tpu.vector_store %arg9[%c0_11, %c0_12], %12 {strides = array<i32>} : memref<128x128xf32, #tpu.memory_space<vmem>>, vector<128x128xf32>,
    } else {
    }
    %c0 = arith.constant 0 : index
    %c0_1 = arith.constant 0 : index
    %3 = vector.load %arg9[%c0, %c0_1] : memref<128x128xf32, #tpu.memory_space<vmem>>, vector<128x128xf32>
    %c0_2 = arith.constant 0 : index
    %c0_3 = arith.constant 0 : index
    %4 = vector.load %arg2[%c0_2, %c0_3] : memref<128x128xbf16, #tpu.memory_space<vmem>>, vector<128x128xbf16>
    %c0_4 = arith.constant 0 : index
    %c0_5 = arith.constant 0 : index
    %5 = vector.load %arg3[%c0_4, %c0_5] : memref<128x128xbf16, #tpu.memory_space<vmem>>, vector<128x128xbf16>
    %cst = arith.constant dense<0.000000e+00> : vector<128x128xf32>
    %6 = tpu.matmul %4, %5, %cst {dimension_numbers = #tpu.dot_dimension_numbers<[1], [0], [0], [1], [0, 0, 1, 1], [], []>} : vector<128x128xbf16>, vector<128x128xbf16>, vector<128x128xf32> -> vector<128x128xf32>
    %7 = arith.addf %3, %6 : vector<128x128xf32>
    %c0_6 = arith.constant 0 : index
    %c0_7 = arith.constant 0 : index
    %8 = vector.load %arg9[%c0_6, %c0_7] : memref<128x128xf32, #tpu.memory_space<vmem>>, vector<128x128xf32>
    tpu.vector_store %arg9[%c0_6, %c0_7], %7 {strides = array<i32>} : memref<128x128xf32, #tpu.memory_space<vmem>>, vector<128x128xf32>,
    %c0_i32_8 = arith.constant 0 : i32
    %9 = arith.cmpi eq, %arg1, %c0_i32_8 : i32
    %10 = arith.extui %9 : i1 to i32
    %c0_i32_9 = arith.constant 0 : i32
    %11 = arith.cmpi ne, %10, %c0_i32_9 : i32
    scf.if %11 {
      %c0_10 = arith.constant 0 : index
      %c0_11 = arith.constant 0 : index
      %12 = vector.load %arg9[%c0_10, %c0_11] : memref<128x128xf32, #tpu.memory_space<vmem>>, vector<128x128xf32>
      %c0_12 = arith.constant 0 : index
      %c0_13 = arith.constant 0 : index
      %13 = vector.load %arg4[%c0_12, %c0_13] : memref<1x128xbf16, #tpu.memory_space<vmem>>, vector<1x128xbf16>
      %14 = arith.extf %13 : vector<1x128xbf16> to vector<1x128xf32>
      %15 = vector.broadcast %14 : vector<1x128xf32> to vector<128x128xf32>
      %16 = arith.addf %12, %15 : vector<128x128xf32>
      %c0_14 = arith.constant 0 : index
      %c0_15 = arith.constant 0 : index
      %17 = vector.load %arg5[%c0_14, %c0_15] : memref<128x128xbf16, #tpu.memory_space<vmem>>, vector<128x128xbf16>
      %18 = arith.extf %17 : vector<128x128xbf16> to vector<128x128xf32>
      %19 = arith.addf %16, %18 : vector<128x128xf32>
      %cst_16 = arith.constant dense<0.000000e+00> : vector<128xf32>
      %20 = vector.multi_reduction <add>, %19, %cst_16 [1] : vector<128x128xf32> to vector<128xf32>
      %21 = vector.shape_cast %20 : vector<128xf32> to vector<128x1xf32>
      %cst_17 = arith.constant 1.280000e+02 : f32
      %22 = vector.broadcast %cst_17 : f32 to vector<128x1xf32>
      %23 = arith.divf %21, %22 : vector<128x1xf32>
      %24 = vector.broadcast %23 : vector<128x1xf32> to vector<128x128xf32>
      %25 = arith.subf %19, %24 : vector<128x128xf32>
      %26 = arith.mulf %25, %25 : vector<128x128xf32>
      %cst_18 = arith.constant dense<0.000000e+00> : vector<128xf32>
      %27 = vector.multi_reduction <add>, %26, %cst_18 [1] : vector<128x128xf32> to vector<128xf32>
      %28 = vector.shape_cast %27 : vector<128xf32> to vector<128x1xf32>
      %cst_19 = arith.constant 1.280000e+02 : f32
      %29 = vector.broadcast %cst_19 : f32 to vector<128x1xf32>
      %30 = arith.divf %28, %29 : vector<128x1xf32>
      %31 = vector.broadcast %23 : vector<128x1xf32> to vector<128x128xf32>
      %32 = arith.subf %19, %31 : vector<128x128xf32>
      %cst_20 = arith.constant 9.99999996E-13 : f32
      %33 = vector.broadcast %cst_20 : f32 to vector<128x1xf32>
      %34 = arith.addf %30, %33 : vector<128x1xf32>
      %35 = math.rsqrt %34 : vector<128x1xf32>
      %36 = vector.broadcast %35 : vector<128x1xf32> to vector<128x128xf32>
      %37 = arith.mulf %32, %36 : vector<128x128xf32>
      %c0_21 = arith.constant 0 : index
      %c0_22 = arith.constant 0 : index
      %38 = vector.load %arg6[%c0_21, %c0_22] : memref<1x128xbf16, #tpu.memory_space<vmem>>, vector<1x128xbf16>
      %39 = arith.extf %38 : vector<1x128xbf16> to vector<1x128xf32>
      %40 = vector.broadcast %39 : vector<1x128xf32> to vector<128x128xf32>
      %41 = arith.mulf %37, %40 : vector<128x128xf32>
      %c0_23 = arith.constant 0 : index
      %c0_24 = arith.constant 0 : index
      %42 = vector.load %arg7[%c0_23, %c0_24] : memref<1x128xbf16, #tpu.memory_space<vmem>>, vector<1x128xbf16>
      %43 = arith.extf %42 : vector<1x128xbf16> to vector<1x128xf32>
      %44 = vector.broadcast %43 : vector<1x128xf32> to vector<128x128xf32>
      %45 = arith.addf %41, %44 : vector<128x128xf32>
      %46 = arith.truncf %45 : vector<128x128xf32> to vector<128x128xbf16>
      %c0_25 = arith.constant 0 : index
      %c0_26 = arith.constant 0 : index
      %47 = vector.load %arg8[%c0_25, %c0_26] : memref<128x128xbf16, #tpu.memory_space<vmem>>, vector<128x128xbf16>
      tpu.vector_store %arg8[%c0_25, %c0_26], %46 {strides = array<i32>} : memref<128x128xbf16, #tpu.memory_space<vmem>>, vector<128x128xbf16>,
    } else {
    }
    return
  }
  func.func @transform_0(%arg0: i32, %arg1: i32) -> (i32, i32) {
    %c0_i32 = arith.constant 0 : i32
    return %arg0, %arg1 : i32, i32
  }
  func.func @transform_1(%arg0: i32, %arg1: i32) -> (i32, i32) {
    %c0_i32 = arith.constant 0 : i32
    %c0_i32_0 = arith.constant 0 : i32
    return %arg1, %c0_i32 : i32, i32
  }
  func.func @transform_2(%arg0: i32, %arg1: i32) -> (i32, i32) {
    %c0_i32 = arith.constant 0 : i32
    %c0_i32_0 = arith.constant 0 : i32
    %c0_i32_1 = arith.constant 0 : i32
    return %c0_i32, %c0_i32_0 : i32, i32
  }
  func.func @transform_3(%arg0: i32, %arg1: i32) -> (i32, i32) {
    %c0_i32 = arith.constant 0 : i32
    %c0_i32_0 = arith.constant 0 : i32
    return %arg0, %c0_i32 : i32, i32
  }
  func.func @transform_4(%arg0: i32, %arg1: i32) -> (i32, i32) {
    %c0_i32 = arith.constant 0 : i32
    %c0_i32_0 = arith.constant 0 : i32
    %c0_i32_1 = arith.constant 0 : i32
    return %c0_i32, %c0_i32_0 : i32, i32
  }
  func.func @transform_5(%arg0: i32, %arg1: i32) -> (i32, i32) {
    %c0_i32 = arith.constant 0 : i32
    %c0_i32_0 = arith.constant 0 : i32
    %c0_i32_1 = arith.constant 0 : i32
    return %c0_i32, %c0_i32_0 : i32, i32
  }
  func.func @transform_6(%arg0: i32, %arg1: i32) -> (i32, i32) {
    %c0_i32 = arith.constant 0 : i32
    %c0_i32_0 = arith.constant 0 : i32
    return %arg0, %c0_i32 : i32, i32
  }
}

module attributes {stable_mosaic.version = 11 : i64} {
  func.func @_matmul_bias_kernel(%arg0: i32, %arg1: i32, %arg2: i32, %arg3: memref<128x128xbf16, #tpu.memory_space<vmem>>, %arg4: memref<128x256xbf16, #tpu.memory_space<vmem>>, %arg5: memref<1x256xbf16, #tpu.memory_space<vmem>>, %arg6: memref<128x256xbf16, #tpu.memory_space<vmem>>, %arg7: memref<128x256xf32, #tpu.memory_space<vmem>>) attributes {dimension_semantics = [#tpu.dimension_semantics<parallel>, #tpu.dimension_semantics<parallel>, #tpu.dimension_semantics<arbitrary>], iteration_bounds = array<i64: 2, 2, 1>, scalar_prefetch = 0 : i64, scratch_operands = 1 : i64, tpu.core_type = #tpu.core_type<tc>, window_params = [{transform_indices = @transform_0, window_bounds = array<i64: 128, 128>}, {transform_indices = @transform_1, window_bounds = array<i64: 128, 256>}, {transform_indices = @transform_2, window_bounds = array<i64: 1, 256>}, {transform_indices = @transform_3, window_bounds = array<i64: 128, 256>}]} {
    %c0_i32 = arith.constant 0 : i32
    %0 = arith.cmpi eq, %arg2, %c0_i32 : i32
    %1 = arith.extui %0 : i1 to i32
    %c0_i32_0 = arith.constant 0 : i32
    %2 = arith.cmpi ne, %1, %c0_i32_0 : i32
    scf.if %2 {
      %cst_10 = arith.constant 0.000000e+00 : f32
      %12 = vector.broadcast %cst_10 : f32 to vector<128x256xf32>
      %c0_11 = arith.constant 0 : index
      %c0_12 = arith.constant 0 : index
      %13 = vector.load %arg7[%c0_11, %c0_12] : memref<128x256xf32, #tpu.memory_space<vmem>>, vector<128x256xf32>
      tpu.vector_store %arg7[%c0_11, %c0_12], %12 {strides = array<i32>} : memref<128x256xf32, #tpu.memory_space<vmem>>, vector<128x256xf32>,
    } else {
    }
    %c0 = arith.constant 0 : index
    %c0_1 = arith.constant 0 : index
    %3 = vector.load %arg7[%c0, %c0_1] : memref<128x256xf32, #tpu.memory_space<vmem>>, vector<128x256xf32>
    %c0_2 = arith.constant 0 : index
    %c0_3 = arith.constant 0 : index
    %4 = vector.load %arg3[%c0_2, %c0_3] : memref<128x128xbf16, #tpu.memory_space<vmem>>, vector<128x128xbf16>
    %c0_4 = arith.constant 0 : index
    %c0_5 = arith.constant 0 : index
    %5 = vector.load %arg4[%c0_4, %c0_5] : memref<128x256xbf16, #tpu.memory_space<vmem>>, vector<128x256xbf16>
    %cst = arith.constant dense<0.000000e+00> : vector<128x256xf32>
    %6 = tpu.matmul %4, %5, %cst {dimension_numbers = #tpu.dot_dimension_numbers<[1], [0], [0], [1], [0, 0, 1, 1], [], []>} : vector<128x128xbf16>, vector<128x256xbf16>, vector<128x256xf32> -> vector<128x256xf32>
    %7 = arith.addf %3, %6 : vector<128x256xf32>
    %c0_6 = arith.constant 0 : index
    %c0_7 = arith.constant 0 : index
    %8 = vector.load %arg7[%c0_6, %c0_7] : memref<128x256xf32, #tpu.memory_space<vmem>>, vector<128x256xf32>
    tpu.vector_store %arg7[%c0_6, %c0_7], %7 {strides = array<i32>} : memref<128x256xf32, #tpu.memory_space<vmem>>, vector<128x256xf32>,
    %c0_i32_8 = arith.constant 0 : i32
    %9 = arith.cmpi eq, %arg2, %c0_i32_8 : i32
    %10 = arith.extui %9 : i1 to i32
    %c0_i32_9 = arith.constant 0 : i32
    %11 = arith.cmpi ne, %10, %c0_i32_9 : i32
    scf.if %11 {
      %c0_10 = arith.constant 0 : index
      %c0_11 = arith.constant 0 : index
      %12 = vector.load %arg7[%c0_10, %c0_11] : memref<128x256xf32, #tpu.memory_space<vmem>>, vector<128x256xf32>
      %c0_12 = arith.constant 0 : index
      %c0_13 = arith.constant 0 : index
      %13 = vector.load %arg5[%c0_12, %c0_13] : memref<1x256xbf16, #tpu.memory_space<vmem>>, vector<1x256xbf16>
      %14 = arith.extf %13 : vector<1x256xbf16> to vector<1x256xf32>
      %15 = vector.broadcast %14 : vector<1x256xf32> to vector<128x256xf32>
      %16 = arith.addf %12, %15 : vector<128x256xf32>
      %cst_14 = arith.constant 5.000000e-01 : f32
      %17 = vector.broadcast %cst_14 : f32 to vector<128x256xf32>
      %18 = arith.mulf %17, %16 : vector<128x256xf32>
      %cst_15 = arith.constant 4.471500e-02 : f32
      %19 = vector.broadcast %cst_15 : f32 to vector<128x256xf32>
      %20 = arith.mulf %19, %16 : vector<128x256xf32>
      %21 = arith.mulf %20, %16 : vector<128x256xf32>
      %22 = arith.mulf %21, %16 : vector<128x256xf32>
      %23 = arith.addf %16, %22 : vector<128x256xf32>
      %cst_16 = arith.constant 0.797884583 : f32
      %24 = vector.broadcast %cst_16 : f32 to vector<128x256xf32>
      %25 = arith.mulf %24, %23 : vector<128x256xf32>
      %26 = math.tanh %25 : vector<128x256xf32>
      %cst_17 = arith.constant 1.000000e+00 : f32
      %27 = vector.broadcast %cst_17 : f32 to vector<128x256xf32>
      %28 = arith.addf %27, %26 : vector<128x256xf32>
      %29 = arith.mulf %18, %28 : vector<128x256xf32>
      %30 = arith.truncf %29 : vector<128x256xf32> to vector<128x256xbf16>
      %c0_18 = arith.constant 0 : index
      %c0_19 = arith.constant 0 : index
      %31 = vector.load %arg6[%c0_18, %c0_19] : memref<128x256xbf16, #tpu.memory_space<vmem>>, vector<128x256xbf16>
      tpu.vector_store %arg6[%c0_18, %c0_19], %30 {strides = array<i32>} : memref<128x256xbf16, #tpu.memory_space<vmem>>, vector<128x256xbf16>,
    } else {
    }
    return
  }
  func.func @transform_0(%arg0: i32, %arg1: i32, %arg2: i32) -> (i32, i32) {
    %c0_i32 = arith.constant 0 : i32
    return %arg0, %arg2 : i32, i32
  }
  func.func @transform_1(%arg0: i32, %arg1: i32, %arg2: i32) -> (i32, i32) {
    %c0_i32 = arith.constant 0 : i32
    return %arg2, %arg1 : i32, i32
  }
  func.func @transform_2(%arg0: i32, %arg1: i32, %arg2: i32) -> (i32, i32) {
    %c0_i32 = arith.constant 0 : i32
    %c0_i32_0 = arith.constant 0 : i32
    return %c0_i32, %arg1 : i32, i32
  }
  func.func @transform_3(%arg0: i32, %arg1: i32, %arg2: i32) -> (i32, i32) {
    %c0_i32 = arith.constant 0 : i32
    return %arg0, %arg1 : i32, i32
  }
}

module attributes {stable_mosaic.version = 11 : i64} {
  func.func @_matmul_add_ln_kernel(%arg0: i32, %arg1: i32, %arg2: memref<128x256xbf16, #tpu.memory_space<vmem>>, %arg3: memref<256x128xbf16, #tpu.memory_space<vmem>>, %arg4: memref<1x128xbf16, #tpu.memory_space<vmem>>, %arg5: memref<128x128xbf16, #tpu.memory_space<vmem>>, %arg6: memref<1x128xbf16, #tpu.memory_space<vmem>>, %arg7: memref<1x128xbf16, #tpu.memory_space<vmem>>, %arg8: memref<128x128xbf16, #tpu.memory_space<vmem>>, %arg9: memref<128x128xf32, #tpu.memory_space<vmem>>) attributes {dimension_semantics = [#tpu.dimension_semantics<parallel>, #tpu.dimension_semantics<arbitrary>], iteration_bounds = array<i64: 2, 2>, scalar_prefetch = 0 : i64, scratch_operands = 1 : i64, tpu.core_type = #tpu.core_type<tc>, window_params = [{transform_indices = @transform_0, window_bounds = array<i64: 128, 256>}, {transform_indices = @transform_1, window_bounds = array<i64: 256, 128>}, {pipeline_mode = #tpu.pipeline_mode<synchronous>, transform_indices = @transform_2, window_bounds = array<i64: 1, 128>}, {transform_indices = @transform_3, window_bounds = array<i64: 128, 128>}, {pipeline_mode = #tpu.pipeline_mode<synchronous>, transform_indices = @transform_4, window_bounds = array<i64: 1, 128>}, {pipeline_mode = #tpu.pipeline_mode<synchronous>, transform_indices = @transform_5, window_bounds = array<i64: 1, 128>}, {transform_indices = @transform_6, window_bounds = array<i64: 128, 128>}]} {
    %c0_i32 = arith.constant 0 : i32
    %0 = arith.cmpi eq, %arg1, %c0_i32 : i32
    %1 = arith.extui %0 : i1 to i32
    %c0_i32_0 = arith.constant 0 : i32
    %2 = arith.cmpi ne, %1, %c0_i32_0 : i32
    scf.if %2 {
      %cst_9 = arith.constant 0.000000e+00 : f32
      %12 = vector.broadcast %cst_9 : f32 to vector<128x128xf32>
      %c0_10 = arith.constant 0 : index
      %c0_11 = arith.constant 0 : index
      %13 = vector.load %arg9[%c0_10, %c0_11] : memref<128x128xf32, #tpu.memory_space<vmem>>, vector<128x128xf32>
      tpu.vector_store %arg9[%c0_10, %c0_11], %12 {strides = array<i32>} : memref<128x128xf32, #tpu.memory_space<vmem>>, vector<128x128xf32>,
    } else {
    }
    %c0 = arith.constant 0 : index
    %c0_1 = arith.constant 0 : index
    %3 = vector.load %arg9[%c0, %c0_1] : memref<128x128xf32, #tpu.memory_space<vmem>>, vector<128x128xf32>
    %c0_2 = arith.constant 0 : index
    %c0_3 = arith.constant 0 : index
    %4 = vector.load %arg2[%c0_2, %c0_3] : memref<128x256xbf16, #tpu.memory_space<vmem>>, vector<128x256xbf16>
    %c0_4 = arith.constant 0 : index
    %c0_5 = arith.constant 0 : index
    %5 = vector.load %arg3[%c0_4, %c0_5] : memref<256x128xbf16, #tpu.memory_space<vmem>>, vector<256x128xbf16>
    %cst = arith.constant dense<0.000000e+00> : vector<128x128xf32>
    %6 = tpu.matmul %4, %5, %cst {dimension_numbers = #tpu.dot_dimension_numbers<[1], [0], [0], [1], [0, 0, 1, 1], [], []>} : vector<128x256xbf16>, vector<256x128xbf16>, vector<128x128xf32> -> vector<128x128xf32>
    %7 = arith.addf %3, %6 : vector<128x128xf32>
    %c0_6 = arith.constant 0 : index
    %c0_7 = arith.constant 0 : index
    %8 = vector.load %arg9[%c0_6, %c0_7] : memref<128x128xf32, #tpu.memory_space<vmem>>, vector<128x128xf32>
    tpu.vector_store %arg9[%c0_6, %c0_7], %7 {strides = array<i32>} : memref<128x128xf32, #tpu.memory_space<vmem>>, vector<128x128xf32>,
    %c1_i32 = arith.constant 1 : i32
    %9 = arith.cmpi eq, %arg1, %c1_i32 : i32
    %10 = arith.extui %9 : i1 to i32
    %c0_i32_8 = arith.constant 0 : i32
    %11 = arith.cmpi ne, %10, %c0_i32_8 : i32
    scf.if %11 {
      %c0_9 = arith.constant 0 : index
      %c0_10 = arith.constant 0 : index
      %12 = vector.load %arg9[%c0_9, %c0_10] : memref<128x128xf32, #tpu.memory_space<vmem>>, vector<128x128xf32>
      %c0_11 = arith.constant 0 : index
      %c0_12 = arith.constant 0 : index
      %13 = vector.load %arg4[%c0_11, %c0_12] : memref<1x128xbf16, #tpu.memory_space<vmem>>, vector<1x128xbf16>
      %14 = arith.extf %13 : vector<1x128xbf16> to vector<1x128xf32>
      %15 = vector.broadcast %14 : vector<1x128xf32> to vector<128x128xf32>
      %16 = arith.addf %12, %15 : vector<128x128xf32>
      %c0_13 = arith.constant 0 : index
      %c0_14 = arith.constant 0 : index
      %17 = vector.load %arg5[%c0_13, %c0_14] : memref<128x128xbf16, #tpu.memory_space<vmem>>, vector<128x128xbf16>
      %18 = arith.extf %17 : vector<128x128xbf16> to vector<128x128xf32>
      %19 = arith.addf %16, %18 : vector<128x128xf32>
      %cst_15 = arith.constant dense<0.000000e+00> : vector<128xf32>
      %20 = vector.multi_reduction <add>, %19, %cst_15 [1] : vector<128x128xf32> to vector<128xf32>
      %21 = vector.shape_cast %20 : vector<128xf32> to vector<128x1xf32>
      %cst_16 = arith.constant 1.280000e+02 : f32
      %22 = vector.broadcast %cst_16 : f32 to vector<128x1xf32>
      %23 = arith.divf %21, %22 : vector<128x1xf32>
      %24 = vector.broadcast %23 : vector<128x1xf32> to vector<128x128xf32>
      %25 = arith.subf %19, %24 : vector<128x128xf32>
      %26 = arith.mulf %25, %25 : vector<128x128xf32>
      %cst_17 = arith.constant dense<0.000000e+00> : vector<128xf32>
      %27 = vector.multi_reduction <add>, %26, %cst_17 [1] : vector<128x128xf32> to vector<128xf32>
      %28 = vector.shape_cast %27 : vector<128xf32> to vector<128x1xf32>
      %cst_18 = arith.constant 1.280000e+02 : f32
      %29 = vector.broadcast %cst_18 : f32 to vector<128x1xf32>
      %30 = arith.divf %28, %29 : vector<128x1xf32>
      %31 = vector.broadcast %23 : vector<128x1xf32> to vector<128x128xf32>
      %32 = arith.subf %19, %31 : vector<128x128xf32>
      %cst_19 = arith.constant 9.99999996E-13 : f32
      %33 = vector.broadcast %cst_19 : f32 to vector<128x1xf32>
      %34 = arith.addf %30, %33 : vector<128x1xf32>
      %35 = math.rsqrt %34 : vector<128x1xf32>
      %36 = vector.broadcast %35 : vector<128x1xf32> to vector<128x128xf32>
      %37 = arith.mulf %32, %36 : vector<128x128xf32>
      %c0_20 = arith.constant 0 : index
      %c0_21 = arith.constant 0 : index
      %38 = vector.load %arg6[%c0_20, %c0_21] : memref<1x128xbf16, #tpu.memory_space<vmem>>, vector<1x128xbf16>
      %39 = arith.extf %38 : vector<1x128xbf16> to vector<1x128xf32>
      %40 = vector.broadcast %39 : vector<1x128xf32> to vector<128x128xf32>
      %41 = arith.mulf %37, %40 : vector<128x128xf32>
      %c0_22 = arith.constant 0 : index
      %c0_23 = arith.constant 0 : index
      %42 = vector.load %arg7[%c0_22, %c0_23] : memref<1x128xbf16, #tpu.memory_space<vmem>>, vector<1x128xbf16>
      %43 = arith.extf %42 : vector<1x128xbf16> to vector<1x128xf32>
      %44 = vector.broadcast %43 : vector<1x128xf32> to vector<128x128xf32>
      %45 = arith.addf %41, %44 : vector<128x128xf32>
      %46 = arith.truncf %45 : vector<128x128xf32> to vector<128x128xbf16>
      %c0_24 = arith.constant 0 : index
      %c0_25 = arith.constant 0 : index
      %47 = vector.load %arg8[%c0_24, %c0_25] : memref<128x128xbf16, #tpu.memory_space<vmem>>, vector<128x128xbf16>
      tpu.vector_store %arg8[%c0_24, %c0_25], %46 {strides = array<i32>} : memref<128x128xbf16, #tpu.memory_space<vmem>>, vector<128x128xbf16>,
    } else {
    }
    return
  }
  func.func @transform_0(%arg0: i32, %arg1: i32) -> (i32, i32) {
    %c0_i32 = arith.constant 0 : i32
    return %arg0, %arg1 : i32, i32
  }
  func.func @transform_1(%arg0: i32, %arg1: i32) -> (i32, i32) {
    %c0_i32 = arith.constant 0 : i32
    %c0_i32_0 = arith.constant 0 : i32
    return %arg1, %c0_i32 : i32, i32
  }
  func.func @transform_2(%arg0: i32, %arg1: i32) -> (i32, i32) {
    %c0_i32 = arith.constant 0 : i32
    %c0_i32_0 = arith.constant 0 : i32
    %c0_i32_1 = arith.constant 0 : i32
    return %c0_i32, %c0_i32_0 : i32, i32
  }
  func.func @transform_3(%arg0: i32, %arg1: i32) -> (i32, i32) {
    %c0_i32 = arith.constant 0 : i32
    %c0_i32_0 = arith.constant 0 : i32
    return %arg0, %c0_i32 : i32, i32
  }
  func.func @transform_4(%arg0: i32, %arg1: i32) -> (i32, i32) {
    %c0_i32 = arith.constant 0 : i32
    %c0_i32_0 = arith.constant 0 : i32
    %c0_i32_1 = arith.constant 0 : i32
    return %c0_i32, %c0_i32_0 : i32, i32
  }
  func.func @transform_5(%arg0: i32, %arg1: i32) -> (i32, i32) {
    %c0_i32 = arith.constant 0 : i32
    %c0_i32_0 = arith.constant 0 : i32
    %c0_i32_1 = arith.constant 0 : i32
    return %c0_i32, %c0_i32_0 : i32, i32
  }
  func.func @transform_6(%arg0: i32, %arg1: i32) -> (i32, i32) {
    %c0_i32 = arith.constant 0 : i32
    %c0_i32_0 = arith.constant 0 : i32
    return %arg0, %c0_i32 : i32, i32
  }
}

</mosaic_0001>

<bundles_post_ra>
// kernel: bert_forward.11
= control target key start
LH: loop header
LB: loop body
LE: loop exit
PB: predicated region body
PF: predicated region fallthrough
CT: control target
= control target key end

     0   :  { %s705_s12 = smov 0   ;;  %s878_s0 = inlined_call_operand.vmem [shape: f32[256,128], index: 0, kind: input, shape index: {}]   ;;  %s879_s1 = inlined_call_operand.vmem [shape: bf16[1,128], index: 1, kind: input, shape index: {}]   ;;  %s880_s2 = inlined_call_operand.vmem [shape: bf16[1,128], index: 2, kind: input, shape index: {}]   ;;  %s881_s3 = inlined_call_operand.vmem [shape: bf16[256,128], index: 3, kind: output, shape index: {}]  }
   0x1 LB: > { %s547_s13 = sadd.s32 4294967295, %s683_s12   ;;  %p551_p0 = scmp.ge.s32.totalorder %s683_s12, 1  ;;  %s683_s12 = sphi %s705_s12, %s13_s12  }
   0x2   : > { %p138_p1 = scmp.lt.s32.totalorder %s683_s12, 3 }
   0x4   : > { %p139_p2 = pnand %p551_p0, %p138_p1 }
   0x5   : > { %s552_s14 = sshll.u32 (!%p139_p2), %s547_s13, 4 }
   0x6   : > { %142 = sbr.rel (%p139_p2) target bundleno = 363 (0x16b), region = 32  ;;  %p163_p3 = scmp.lt.s32.totalorder (!%p139_p2), %s552_s14, 31 }
   0xd   : > { %s883_s14 = smov (!%p163_p3, %s552_s14), 31 }
   0xe   : > { %s553_s15 = sshll.u32 %s883_s14, 3  ;;  %s555_s23 = sshll.u32 %s883_s14, 2 }
   0xf   : > { %s166_s18 = scalar_lea.vmem %s878_s0, %s553_s15  ;;  %s826_s26 = scalar_lea.vmem %s881_s3, %s555_s23 }
  0x10   : > { %v174_v0 = vld [vmem:[%s166_s18] sm:$0xff]  ;;  %v176_v1 = vld [vmem:[%s166_s18 + $0x10] sm:$0xff]  ;;  %v175_v2 = vld [vmem:[%s166_s18 + $0x8] sm:$0xff] }
  0x11   : > { %190 = vadd.xlane.f32.xlu0 %v174_v0  ;;  %194 = vadd.xlane.f32.xlu1 %v176_v1  ;;  %v177_v3 = vld [vmem:[%s166_s18 + $0x18] sm:$0xff]  ;;  %v178_v4 = vld [vmem:[%s166_s18 + $0x20] sm:$0xff]  ;;  %v179_v5 = vld [vmem:[%s166_s18 + $0x28] sm:$0xff] }
  0x12   : > { %v180_v6 = vld [vmem:[%s166_s18 + $0x30] sm:$0xff]  ;;  %v181_v7 = vld [vmem:[%s166_s18 + $0x38] sm:$0xff]  ;;  %v182_v8 = vld [vmem:[%s166_s18 + $0x40] sm:$0xff] }
  0x13   : > { %v183_v9 = vld [vmem:[%s166_s18 + $0x48] sm:$0xff]  ;;  %v184_v10 = vld [vmem:[%s166_s18 + $0x50] sm:$0xff]  ;;  %v719_v11 = vld [vmem:[%s166_s18 + $0x58] sm:$0xff] }
  0x14   : > { %v722_v12 = vld [vmem:[%s166_s18 + $0x60] sm:$0xff]  ;;  %v724_v13 = vld [vmem:[%s166_s18 + $0x68] sm:$0xff]  ;;  %v728_v14 = vld [vmem:[%s166_s18 + $0x70] sm:$0xff] }
  0x15   : > { %192 = vadd.xlane.f32.xlu0 %v175_v2  ;;  %196 = vadd.xlane.f32.xlu1 %v177_v3  ;;  %v730_v15 = vld [vmem:[%s166_s18 + $0x78] sm:$0xff] }
  0x19   : > { %198 = vadd.xlane.f32.xlu0 %v178_v4  ;;  %200 = vadd.xlane.f32.xlu1 %v179_v5 }
  0x1d   : > { %202 = vadd.xlane.f32.xlu0 %v180_v6  ;;  %204 = vadd.xlane.f32.xlu1 %v181_v7 }
  0x21   : > { %206 = vadd.xlane.f32.xlu0 %v182_v8  ;;  %208 = vadd.xlane.f32.xlu1 %v183_v9 }
  0x25   : > { %210 = vadd.xlane.f32.xlu0 %v184_v10  ;;  %212 = vadd.xlane.f32.xlu1 %v719_v11 }
  0x29   : > { %214 = vadd.xlane.f32.xlu0 %v722_v12  ;;  %216 = vadd.xlane.f32.xlu1 %v724_v13 }
  0x2d   : > { %218 = vadd.xlane.f32.xlu0 %v728_v14  ;;  %220 = vadd.xlane.f32.xlu1 %v730_v15 }
  0x9e   : > { %v191_v16 = vpop.xlane.xlu0 %190  ;;  %v195_v17 = vpop.xlane.xlu1 %194 }
  0x9f   : > { %v223_v18 = vmul.f32 0.0078125, %v191_v16  ;;  %v225_v19 = vmul.f32 0.0078125, %v195_v17 }
  0xa1   : > { %v734_v20 = vsub.f32 %v174_v0, %v223_v18  ;;  %v736_v21 = vsub.f32 %v176_v1, %v225_v19 }
  0xa2   : > { %v193_v22 = vpop.xlane.xlu0 %192  ;;  %v197_v23 = vpop.xlane.xlu1 %196 }
  0xa3   : > { %v224_v24 = vmul.f32 0.0078125, %v193_v22  ;;  %v255_v25 = vmul.f32 %v734_v20, %v734_v20  ;;  %v226_v26 = vmul.f32 0.0078125, %v197_v23  ;;  %v257_v29 = vmul.f32 %v736_v21, %v736_v21 }
  0xa4   : > { %v369_v22 = vlaneseq }
  0xa5   : > { %v740_v27 = vsub.f32 %v175_v2, %v224_v24  ;;  %271 = vadd.xlane.f32.xlu0 %v255_v25  ;;  %v742_v28 = vsub.f32 %v177_v3, %v226_v26 }
  0xa6   : > { %v199_v30 = vpop.xlane.xlu0 %198  ;;  %v201_v31 = vpop.xlane.xlu1 %200 }
  0xa7   : > { %v227_v32 = vmul.f32 0.0078125, %v199_v30  ;;  %v256_v33 = vmul.f32 %v740_v27, %v740_v27  ;;  %v228_v34 = vmul.f32 0.0078125, %v201_v31  ;;  %v258_v37 = vmul.f32 %v742_v28, %v742_v28 }
  0xa8   : > { %v370_v30 = vshrl.u32 %v369_v22, 7 }
  0xa9   : > { %v748_v35 = vsub.f32 %v178_v4, %v227_v32  ;;  %275 = vadd.xlane.f32.xlu0 %v257_v29  ;;  %273 = vadd.xlane.f32.xlu1 %v256_v33  ;;  %v750_v36 = vsub.f32 %v179_v5, %v228_v34  ;;  %v367_v33 = vld [vmem:[%s879_s1] sm:$0x1] }
  0xaa   : > { %v203_v38 = vpop.xlane.xlu0 %202  ;;  %v205_v39 = vpop.xlane.xlu1 %204 }
  0xab   : > { %v229_v40 = vmul.f32 0.0078125, %v203_v38  ;;  %v259_v41 = vmul.f32 %v748_v35, %v748_v35  ;;  %v230_v42 = vmul.f32 0.0078125, %v205_v39  ;;  %v260_v45 = vmul.f32 %v750_v36, %v750_v36 }
  0xad   : > { %v756_v43 = vsub.f32 %v180_v6, %v229_v40  ;;  %277 = vadd.xlane.f32.xlu1 %v258_v37  ;;  %279 = vadd.xlane.f32.xlu0 %v259_v41  ;;  %v758_v44 = vsub.f32 %v181_v7, %v230_v42  ;;  %v368_v40 = vunpack.c.l.bf16 %v367_v33  ;;  %v371_v41 = vsub.s32 0, %v370_v30 }
  0xae   : > { %v207_v46 = vpop.xlane.xlu0 %206  ;;  %v209_v47 = vpop.xlane.xlu1 %208 }
  0xaf   : > { %v231_v48 = vmul.f32 0.0078125, %v207_v46  ;;  %v261_v49 = vmul.f32 %v756_v43, %v756_v43  ;;  %v232_v50 = vmul.f32 0.0078125, %v209_v47  ;;  %v262_v53 = vmul.f32 %v758_v44, %v758_v44  ;;  %v389_v46 = vld [vmem:[%s880_s2] sm:$0x1] }
  0xb1   : > { %v764_v51 = vsub.f32 %v182_v8, %v231_v48  ;;  %281 = vadd.xlane.f32.xlu1 %v260_v45  ;;  %283 = vadd.xlane.f32.xlu0 %v261_v49  ;;  %v766_v52 = vsub.f32 %v183_v9, %v232_v50 }
  0xb2   : > { %v211_v54 = vpop.xlane.xlu0 %210  ;;  %v213_v55 = vpop.xlane.xlu1 %212 }
  0xb3   : > { %v233_v56 = vmul.f32 0.0078125, %v211_v54  ;;  %v263_v57 = vmul.f32 %v764_v51, %v764_v51  ;;  %v234_v58 = vmul.f32 0.0078125, %v213_v55  ;;  %v264_v61 = vmul.f32 %v766_v52, %v766_v52 }
  0xb4   : > { %v809_v54 = vrot.slane %v368_v40, %v371_v41  ;;  %v390_v55 = vunpack.c.l.bf16 %v389_v46 }
  0xb5   : > { %v772_v59 = vsub.f32 %v184_v10, %v233_v56  ;;  %285 = vadd.xlane.f32.xlu1 %v262_v53  ;;  %287 = vadd.xlane.f32.xlu0 %v263_v57  ;;  %v775_v60 = vsub.f32 %v719_v11, %v234_v58 }
  0xb6   : > { %v215_v62 = vpop.xlane.xlu0 %214  ;;  %v217_v63 = vpop.xlane.xlu1 %216 }
  0xb7   : > { %v235_v0 = vmul.f32 0.0078125, %v215_v62  ;;  %v265_v1 = vmul.f32 %v772_v59, %v772_v59  ;;  %v236_v2 = vmul.f32 0.0078125, %v217_v63  ;;  %v266_v5 = vmul.f32 %v775_v60, %v775_v60 }
  0xb9   : > { %v782_v3 = vsub.f32 %v722_v12, %v235_v0  ;;  %289 = vadd.xlane.f32.xlu1 %v264_v61  ;;  %291 = vadd.xlane.f32.xlu0 %v265_v1  ;;  %v785_v4 = vsub.f32 %v724_v13, %v236_v2 }
  0xba   : > { %v219_v6 = vpop.xlane.xlu0 %218  ;;  %v221_v7 = vpop.xlane.xlu1 %220 }
  0xbb   : > { %v237_v8 = vmul.f32 0.0078125, %v219_v6  ;;  %v267_v9 = vmul.f32 %v782_v3, %v782_v3  ;;  %v238_v10 = vmul.f32 0.0078125, %v221_v7  ;;  %v268_v13 = vmul.f32 %v785_v4, %v785_v4 }
  0xbd   : > { %v792_v11 = vsub.f32 %v728_v14, %v237_v8  ;;  %293 = vadd.xlane.f32.xlu1 %v266_v5  ;;  %295 = vadd.xlane.f32.xlu0 %v267_v9  ;;  %v795_v12 = vsub.f32 %v730_v15, %v238_v10  ;;  %v812_v5 = vrot.slane %v390_v55, %v371_v41 }
  0xbf   : > { %v269_v16 = vmul.f32 %v792_v11, %v792_v11  ;;  %v270_v17 = vmul.f32 %v795_v12, %v795_v12 }
  0xc1   : > { %297 = vadd.xlane.f32.xlu1 %v268_v13  ;;  %299 = vadd.xlane.f32.xlu0 %v269_v16 }
  0xc5   : > { %301 = vadd.xlane.f32.xlu1 %v270_v17 }
 0x132   : > { %v272_v18 = vpop.xlane.xlu0 %271 }
 0x133   : > { %v303_v14 = vmul.f32 0.0078125, %v272_v18 }
 0x135   : > { %v319_v19 = vadd.f32 1e-12, %v303_v14 }
 0x136   : > { %v274_v23 = vpop.xlane.xlu1 %273  ;;  %v276_v24 = vpop.xlane.xlu0 %275 }
 0x137   : > { %645 = vrsqrt.f32 %v319_v19  ;;  %v304_v15 = vmul.f32 0.0078125, %v274_v23  ;;  %v305_v25 = vmul.f32 0.0078125, %v276_v24 }
 0x139   : > { %v320_v26 = vadd.f32 1e-12, %v304_v15  ;;  %v321_v29 = vadd.f32 1e-12, %v305_v25 }
 0x13a   : > { %v278_v31 = vpop.xlane.xlu1 %277  ;;  %v280_v32 = vpop.xlane.xlu0 %279 }
 0x13b   : > { %647 = vrsqrt.f32 %v320_v26  ;;  %v306_v34 = vmul.f32 0.0078125, %v278_v31  ;;  %v307_v37 = vmul.f32 0.0078125, %v280_v32 }
 0x13c   : > { %649 = vrsqrt.f32 %v321_v29 }
 0x13d   : > { %v322_v38 = vadd.f32 1e-12, %v306_v34  ;;  %v323_v39 = vadd.f32 1e-12, %v307_v37 }
 0x13e   : > { %v282_v42 = vpop.xlane.xlu1 %281  ;;  %v284_v45 = vpop.xlane.xlu0 %283 }
 0x13f   : > { %651 = vrsqrt.f32 %v322_v38  ;;  %v308_v47 = vmul.f32 0.0078125, %v282_v42  ;;  %v309_v48 = vmul.f32 0.0078125, %v284_v45 }
 0x140   : > { %653 = vrsqrt.f32 %v323_v39 }
 0x141   : > { %v646_v49 = vpop.eup %645  ;;  %v324_v50 = vadd.f32 1e-12, %v308_v47  ;;  %v325_v53 = vadd.f32 1e-12, %v309_v48 }
 0x142   : > { %v351_v56 = vmul.f32 %v646_v49, %v734_v20  ;;  %v286_v57 = vpop.xlane.xlu1 %285  ;;  %v288_v58 = vpop.xlane.xlu0 %287 }
 0x143   : > { %655 = vrsqrt.f32 %v324_v50  ;;  %v310_v61 = vmul.f32 0.0078125, %v286_v57  ;;  %v311_v62 = vmul.f32 0.0078125, %v288_v58 }
 0x144   : > { %657 = vrsqrt.f32 %v325_v53  ;;  %v373_v6 = vmul.f32 %v809_v54, %v351_v56 }
 0x145   : > { %v648_v63 = vpop.eup %647  ;;  %v326_v0 = vadd.f32 1e-12, %v310_v61  ;;  %v327_v1 = vadd.f32 1e-12, %v311_v62 }
 0x146   : > { %v650_v2 = vpop.eup %649  ;;  %v352_v7 = vmul.f32 %v648_v63, %v740_v27  ;;  %v290_v8 = vpop.xlane.xlu1 %289  ;;  %v395_v22 = vadd.f32 %v812_v5, %v373_v6 }
 0x147   : > { %v292_v9 = vpop.xlane.xlu0 %291  ;;  %v353_v20 = vmul.f32 %v650_v2, %v736_v21  ;;  %659 = vrsqrt.f32 %v326_v0  ;;  %v312_v10 = vmul.f32 0.0078125, %v290_v8 }
 0x148   : > { %v313_v13 = vmul.f32 0.0078125, %v292_v9  ;;  %v374_v16 = vmul.f32 %v809_v54, %v352_v7  ;;  %661 = vrsqrt.f32 %v327_v1 }
 0x149   : > { %v652_v17 = vpop.eup %651  ;;  %v328_v18 = vadd.f32 1e-12, %v312_v10  ;;  %v375_v27 = vmul.f32 %v809_v54, %v353_v20 }
 0x14a   : > { %v329_v14 = vadd.f32 1e-12, %v313_v13  ;;  %v654_v19 = vpop.eup %653  ;;  %v396_v23 = vadd.f32 %v812_v5, %v374_v16  ;;  %v354_v24 = vmul.f32 %v652_v17, %v742_v28  ;;  %v294_v21 = vpop.xlane.xlu1 %293 }
 0x14b   : > { %v296_v15 = vpop.xlane.xlu0 %295  ;;  %v355_v25 = vmul.f32 %v654_v19, %v748_v35  ;;  %663 = vrsqrt.f32 %v328_v18  ;;  %v314_v26 = vmul.f32 0.0078125, %v294_v21  ;;  %v397_v37 = vadd.f32 %v812_v5, %v375_v27 }
 0x14c   : > { %v593_v29 = vpack.c.bf16 %v396_v23, %v395_v22  ;;  %v376_v30 = vmul.f32 %v809_v54, %v354_v24  ;;  %665 = vrsqrt.f32 %v329_v14  ;;  %v315_v31 = vmul.f32 0.0078125, %v296_v15 }
 0x14d   : > { %v656_v32 = vpop.eup %655  ;;  %v377_v28 = vmul.f32 %v809_v54, %v355_v25  ;;  %v330_v33 = vadd.f32 1e-12, %v314_v26 }
 0x14e   : > { %v658_v34 = vpop.eup %657  ;;  %594 = vst [vmem:[%s826_s26] sm:$0xff] %v593_v29   ;;  %v398_v38 = vadd.f32 %v812_v5, %v376_v30  ;;  %v356_v35 = vmul.f32 %v656_v32, %v750_v36  ;;  %v331_v39 = vadd.f32 1e-12, %v315_v31  ;;  %v298_v40 = vpop.xlane.xlu1 %297 }
 0x14f   : > { %v300_v41 = vpop.xlane.xlu0 %299  ;;  %v357_v42 = vmul.f32 %v658_v34, %v756_v43  ;;  %667 = vrsqrt.f32 %v330_v33  ;;  %v316_v45 = vmul.f32 0.0078125, %v298_v40  ;;  %v399_v50 = vadd.f32 %v812_v5, %v377_v28 }
 0x150   : > { %v598_v46 = vpack.c.bf16 %v398_v38, %v397_v37  ;;  %v378_v47 = vmul.f32 %v809_v54, %v356_v35  ;;  %669 = vrsqrt.f32 %v331_v39  ;;  %v317_v48 = vmul.f32 0.0078125, %v300_v41 }
 0x151   : > { %v660_v49 = vpop.eup %659  ;;  %v332_v53 = vadd.f32 1e-12, %v316_v45  ;;  %v379_v56 = vmul.f32 %v809_v54, %v357_v42 }
 0x152   : > { %v662_v55 = vpop.eup %661  ;;  %630 = vst [vmem:[%s826_s26 + $0x8] sm:$0xff] %v598_v46   ;;  %v400_v36 = vadd.f32 %v812_v5, %v378_v47  ;;  %v358_v43 = vmul.f32 %v660_v49, %v758_v44  ;;  %v333_v57 = vadd.f32 1e-12, %v317_v48  ;;  %v302_v58 = vpop.xlane.xlu1 %301 }
 0x153   : > { %v359_v61 = vmul.f32 %v662_v55, %v764_v51  ;;  %671 = vrsqrt.f32 %v332_v53  ;;  %v318_v62 = vmul.f32 0.0078125, %v302_v58  ;;  %v401_v7 = vadd.f32 %v812_v5, %v379_v56 }
 0x154   : > { %v603_v63 = vpack.c.bf16 %v400_v36, %v399_v50  ;;  %v380_v0 = vmul.f32 %v809_v54, %v358_v43  ;;  %673 = vrsqrt.f32 %v333_v57 }
 0x155   : > { %v664_v1 = vpop.eup %663  ;;  %v334_v2 = vadd.f32 1e-12, %v318_v62  ;;  %v381_v44 = vmul.f32 %v809_v54, %v359_v61 }
 0x156   : > { %v666_v6 = vpop.eup %665  ;;  %631 = vst [vmem:[%s826_s26 + $0x10] sm:$0xff] %v603_v63   ;;  %v402_v8 = vadd.f32 %v812_v5, %v380_v0  ;;  %v360_v9 = vmul.f32 %v664_v1, %v766_v52 }
 0x157   : > { %v361_v51 = vmul.f32 %v666_v6, %v772_v59  ;;  %675 = vrsqrt.f32 %v334_v2  ;;  %v403_v17 = vadd.f32 %v812_v5, %v381_v44 }
 0x158   : > { %v608_v20 = vpack.c.bf16 %v402_v8, %v401_v7  ;;  %v382_v10 = vmul.f32 %v809_v54, %v360_v9 }
 0x159   : > { %v668_v13 = vpop.eup %667  ;;  %v383_v14 = vmul.f32 %v809_v54, %v361_v51 }
 0x15a   : > { %v670_v16 = vpop.eup %669  ;;  %632 = vst [vmem:[%s826_s26 + $0x18] sm:$0xff] %v608_v20   ;;  %v404_v18 = vadd.f32 %v812_v5, %v382_v10  ;;  %v362_v19 = vmul.f32 %v668_v13, %v775_v60 }
 0x15b   : > { %v363_v52 = vmul.f32 %v670_v16, %v782_v3  ;;  %v405_v24 = vadd.f32 %v812_v5, %v383_v14 }
 0x15c   : > { %v613_v59 = vpack.c.bf16 %v404_v18, %v403_v17  ;;  %v384_v22 = vmul.f32 %v809_v54, %v362_v19 }
 0x15d   : > { %v672_v23 = vpop.eup %671  ;;  %v385_v15 = vmul.f32 %v809_v54, %v363_v52 }
 0x15e   : > { %v674_v27 = vpop.eup %673  ;;  %633 = vst [vmem:[%s826_s26 + $0x20] sm:$0xff] %v613_v59   ;;  %v406_v21 = vadd.f32 %v812_v5, %v384_v22  ;;  %v364_v25 = vmul.f32 %v672_v23, %v785_v4 }
 0x15f   : > { %v365_v60 = vmul.f32 %v674_v27, %v792_v11  ;;  %v407_v30 = vadd.f32 %v812_v5, %v385_v15 }
 0x160   : > { %v618_v26 = vpack.c.bf16 %v406_v21, %v405_v24  ;;  %v386_v3 = vmul.f32 %v809_v54, %v364_v25 }
 0x161   : > { %v676_v29 = vpop.eup %675  ;;  %v387_v32 = vmul.f32 %v809_v54, %v365_v60 }
 0x162   : > { %634 = vst [vmem:[%s826_s26 + $0x28] sm:$0xff] %v618_v26   ;;  %v408_v31 = vadd.f32 %v812_v5, %v386_v3  ;;  %v366_v28 = vmul.f32 %v676_v29, %v795_v12 }
 0x163   : > { %v409_v4 = vadd.f32 %v812_v5, %v387_v32 }
 0x164   : > { %v623_v33 = vpack.c.bf16 %v408_v31, %v407_v30  ;;  %v388_v34 = vmul.f32 %v809_v54, %v366_v28 }
 0x166   : > { %635 = vst [vmem:[%s826_s26 + $0x30] sm:$0xff] %v623_v33   ;;  %v410_v11 = vadd.f32 %v812_v5, %v388_v34 }
 0x168   : > { %v628_v37 = vpack.c.bf16 %v410_v11, %v409_v4 }
 0x16a   : > { %636 = vst [vmem:[%s826_s26 + $0x38] sm:$0xff] %v628_v37  }
 0x16b PF: > { %s13_s12 = sadd.s32 1, %s683_s12  }
 0x16c   : > { %p10_p4 = scmp.ge.s32.totalorder %s13_s12, 4  }
 0x16e   :  { %12 = sbr.rel (!%p10_p4) target bundleno = 1 (0x1), region = 62 }

// kernel: bert_forward.14
= control target key start
LH: loop header
LB: loop body
LE: loop exit
PB: predicated region body
PF: predicated region fallthrough
CT: control target
= control target key end

     0   :  { %s1444_s21 = smov 0   ;;  %s1446_s22 = smov 0   ;;  %s1751_s0 = inlined_call_operand.vmem [shape: bf16[256,128], index: 0, kind: input, shape index: {}]   ;;  %s1752_s1 = inlined_call_operand.vmem [shape: bf16[128,128], index: 1, kind: input, shape index: {}]   ;;  %s1753_s2 = inlined_call_operand.vmem [shape: bf16[1,128], index: 2, kind: input, shape index: {}]   ;;  %s1754_s3 = inlined_call_operand.vmem [shape: bf16[256,128], index: 3, kind: input, shape index: {}]   ;;  %s1755_s4 = inlined_call_operand.vmem [shape: bf16[1,128], index: 4, kind: input, shape index: {}]   ;;  %s1756_s5 = inlined_call_operand.vmem [shape: bf16[1,128], index: 5, kind: input, shape index: {}]   ;;  %s1757_s6 = inlined_call_operand.vmem [shape: bf16[256,128], index: 6, kind: output, shape index: {}]  }
   0x1   :  { %s1448_s23 = smov 0  }
   0x2 LB: > { %s28_s24 = sadd.s32 1, %s1403_s22  ;;  %p1106_p0 = scmp.ge.s32.totalorder %s1407_s23, 1  ;;  %s1407_s23 = sphi %s1448_s23, %s16_s23   ;;  %s1403_s22 = sphi %s1446_s22, %s1759_s22   ;;  %s1399_s21 = sphi %s1444_s21, %s1758_s21  }
   0x3   : > { %p30_p1 = scmp.ge.s32.totalorder %s28_s24, 2  ;;  %p252_p2 = scmp.lt.s32.totalorder %s1407_s23, 3 }
   0x5   : > { %s1761_s24 = smov (%p30_p1, %s28_s24), 0  ;;  %p253_p3 = pnand %p1106_p0, %p252_p2 }
   0x6   : > { %v1337_v0 = vld [vmem:[%s1752_s1] sm:$0xff] (!%p253_p3)   ;;  %s1107_s27 = sshll.u32 (!%p253_p3), %s1399_s21, 4  ;;  %v1338_v1 = vld [vmem:[%s1752_s1 + $0x8] sm:$0xff] (!%p253_p3)   ;;  %v1339_v2 = vld [vmem:[%s1752_s1 + $0x10] sm:$0xff] (!%p253_p3)   ;;  %v637_v16 = vlaneseq (!%p253_p3) }
   0x7   : > { %256 = sbr.rel (%p253_p3) target bundleno = 602 (0x25a), region = 44  ;;  %p296_p4 = scmp.lt.s32.totalorder (!%p253_p3), %s1107_s27, 31  ;;  %1265 = vmatprep.subr.bf16.mxu0 (!%p253_p3), %v1337_v0  ;;  %1297 = vmatprep.subr.bf16.mxu1 (!%p253_p3), %v1337_v0  ;;  %v1340_v3 = vld [vmem:[%s1752_s1 + $0x18] sm:$0xff] (!%p253_p3)   ;;  %v1341_v6 = vld [vmem:[%s1752_s1 + $0x20] sm:$0xff] (!%p253_p3)   ;;  %v1342_v7 = vld [vmem:[%s1752_s1 + $0x28] sm:$0xff] (!%p253_p3)  }
   0x8   : > { %1266 = vmatpush3.bf16.msra.mxu0 (!%p253_p3), %v1337_v0  ;;  %1305 = vmatpush3.bf16.msra.mxu1 (!%p253_p3), %v1337_v0  ;;  %v1343_v8 = vld [vmem:[%s1752_s1 + $0x30] sm:$0xff] (!%p253_p3)   ;;  %v1344_v9 = vld [vmem:[%s1752_s1 + $0x38] sm:$0xff] (!%p253_p3)   ;;  %v638_v17 = vshrl.u32 (!%p253_p3), %v637_v16, 7  ;;  %v635_v18 = vld [vmem:[%s1753_s2] sm:$0x1] (!%p253_p3) }
   0x9   : > { %1267 = vmatprep.subr.bf16.mxu0 (!%p253_p3), %v1338_v1  ;;  %1298 = vmatprep.subr.bf16.mxu1 (!%p253_p3), %v1338_v1  ;;  %v636_v19 = vunpack.c.l.bf16 (!%p253_p3), %v635_v18 }
   0xa   : > { %v1505_v20 = vsub.s32 (!%p253_p3), 0, %v638_v17 }
   0xc   : > { %1268 = vmatpush3.bf16.msra.mxu0 (!%p253_p3), %v1338_v1  ;;  %1306 = vmatpush3.bf16.msra.mxu1 (!%p253_p3), %v1338_v1  ;;  %v1516_v23 = vrot.slane (!%p253_p3), %v636_v19, %v1505_v20 }
   0xd   : > { %1269 = vmatprep.subr.bf16.mxu0 (!%p253_p3), %v1339_v2  ;;  %1299 = vmatprep.subr.bf16.mxu1 (!%p253_p3), %v1339_v2 }
   0xe   : > { %s1763_s27 = smov (!%p296_p4, %s1107_s27), 31 }
   0xf   : > { %s1471_s8 = sshll.u32 %s1763_s27, 2 }
  0x10   : > { %s1477_s11 = scalar_lea.vmem %s1751_s0, %s1471_s8  ;;  %1270 = vmatpush3.bf16.msra.mxu0 %v1339_v2  ;;  %1307 = vmatpush3.bf16.msra.mxu1 %v1339_v2  ;;  %s1511_s29 = scalar_lea.vmem %s1754_s3, %s1471_s8 }
  0x11   : > { %v1345_v4 = vld [vmem:[%s1477_s11] sm:$0xff]   ;;  %1271 = vmatprep.subr.bf16.mxu0 %v1340_v3  ;;  %1300 = vmatprep.subr.bf16.mxu1 %v1340_v3  ;;  %v1347_v10 = vld [vmem:[%s1477_s11 + $0x8] sm:$0xff]   ;;  %v1349_v12 = vld [vmem:[%s1477_s11 + $0x10] sm:$0xff]   ;;  %s1694_s13 = scalar_lea.vmem %s1757_s6, %s1471_s8 }
  0x12   : > { %v1346_v5 = vld [vmem:[%s1477_s11 + $0x20] sm:$0xff]   ;;  %1281 = vmatprep.mubr.bf16.mxu0 %v1345_v4  ;;  %v1348_v11 = vld [vmem:[%s1477_s11 + $0x28] sm:$0xff]   ;;  %v1351_v13 = vld [vmem:[%s1477_s11 + $0x30] sm:$0xff]  }
  0x13   : > { %1289 = vmatprep.mubr.bf16.mxu1 %v1346_v5  ;;  %v1350_v14 = vld [vmem:[%s1477_s11 + $0x18] sm:$0xff]   ;;  %v1239_v21 = vld [vmem:[%s1511_s29 + $0x28] sm:$0xff]   ;;  %v1164_v26 = vld [vmem:[%s1511_s29] sm:$0xff]  }
  0x14   : > { %1272 = vmatpush3.bf16.msra.mxu0 %v1340_v3  ;;  %1308 = vmatpush3.bf16.msra.mxu1 %v1340_v3  ;;  %v1352_v15 = vld [vmem:[%s1477_s11 + $0x38] sm:$0xff]   ;;  %v1235_v22 = vld [vmem:[%s1511_s29 + $0x8] sm:$0xff]   ;;  %v1185_v24 = vunpack.c.l.bf16 %v1239_v21  ;;  %v1165_v35 = vunpack.c.l.bf16 %v1164_v26  ;;  %v1238_v43 = vld [vmem:[%s1511_s29 + $0x20] sm:$0xff]   ;;  %v1186_v45 = vunpack.c.h.bf16 %v1239_v21  ;;  %v1166_v56 = vunpack.c.h.bf16 %v1164_v26 }
  0x15   : > { %1273 = vmatprep.subr.bf16.mxu0 %v1341_v6  ;;  %1301 = vmatprep.subr.bf16.mxu1 %v1341_v6  ;;  %v1169_v25 = vunpack.c.l.bf16 %v1235_v22  ;;  %v1170_v36 = vunpack.c.h.bf16 %v1235_v22  ;;  %v1181_v44 = vunpack.c.l.bf16 %v1238_v43  ;;  %v1182_v55 = vunpack.c.h.bf16 %v1238_v43  ;;  %v1237_v57 = vld [vmem:[%s1511_s29 + $0x18] sm:$0xff]  }
  0x16   : > { %v1177_v3 = vunpack.c.l.bf16 %v1237_v57  ;;  %v1178_v4 = vunpack.c.h.bf16 %v1237_v57  ;;  %v1241_v22 = vld [vmem:[%s1511_s29 + $0x38] sm:$0xff]  }
  0x18   : > { %1274 = vmatpush3.bf16.msra.mxu0 %v1341_v6  ;;  %1309 = vmatpush3.bf16.msra.mxu1 %v1341_v6 }
  0x19   : > { %1275 = vmatprep.subr.bf16.mxu0 %v1342_v7  ;;  %1302 = vmatprep.subr.bf16.mxu1 %v1342_v7 }
  0x1c   : > { %1276 = vmatpush3.bf16.msra.mxu0 %v1342_v7  ;;  %1310 = vmatpush3.bf16.msra.mxu1 %v1342_v7  ;;  %v1236_v7 = vld [vmem:[%s1511_s29 + $0x10] sm:$0xff]  }
  0x1d   : > { %1277 = vmatprep.subr.bf16.mxu0 %v1343_v8  ;;  %1303 = vmatprep.subr.bf16.mxu1 %v1343_v8 }
  0x20   : > { %1278 = vmatpush3.bf16.msra.mxu0 %v1343_v8  ;;  %1311 = vmatpush3.bf16.msra.mxu1 %v1343_v8 }
  0x21   : > { %1279 = vmatprep.subr.bf16.mxu0 %v1344_v9  ;;  %1304 = vmatprep.subr.bf16.mxu1 %v1344_v9 }
  0x24   : > { %1280 = vmatpush3.bf16.msra.mxu0 %v1344_v9  ;;  %1312 = vmatpush3.bf16.msra.mxu1 %v1344_v9 }
  0x27   : > { %1282 = vmatmul.mubr.bf16.vlgmr.msra.gmra.mrb[0].mxu0 %v1347_v10  ;;  %1290 = vmatmul.mubr.bf16.vlgmr.msra.gmra.mrb[0].mxu1 %v1348_v11  ;;  %v1240_v10 = vld [vmem:[%s1511_s29 + $0x30] sm:$0xff]  }
  0x28   : > { %1285 = vmatprep.mubr.bf16.mxu0 %v1349_v12  ;;  %1293 = vmatprep.mubr.bf16.mxu1 %v1351_v13  ;;  %v1173_v13 = vunpack.c.l.bf16 %v1236_v7  ;;  %v1189_v17 = vunpack.c.l.bf16 %v1240_v10  ;;  %v1190_v18 = vunpack.c.h.bf16 %v1240_v10 }
  0x2f   : > { %1286 = vmatmul.mubr.bf16.gmra.mrb[4].mxu0 %v1350_v14  ;;  %1294 = vmatmul.mubr.bf16.gmra.mrb[4].mxu1 %v1352_v15  ;;  %v1174_v14 = vunpack.c.h.bf16 %v1236_v7 }
  0xfa   : > { %v1283_v27 = vpop.f32.mrb[0].mxu0  ;;  %v1291_v28 = vpop.f32.mrb[0].mxu1 }
  0xfb   : > { %v643_v29 = vadd.f32 %v1283_v27, %v1516_v23  ;;  %v651_v30 = vadd.f32 %v1291_v28, %v1516_v23  ;;  %v521_v31 = vpop.f32.mrb[1].mxu0  ;;  %v553_v32 = vpop.f32.mrb[1].mxu1  ;;  %v1193_v28 = vunpack.c.l.bf16 %v1241_v22 }
  0xfc   : > { %v1284_v33 = vpop.f32.mrb[2].mxu0  ;;  %v1292_v34 = vpop.f32.mrb[2].mxu1  ;;  %v641_v37 = vadd.f32 %v1516_v23, %v521_v31  ;;  %v649_v46 = vadd.f32 %v1516_v23, %v553_v32 }
  0xfd   : > { %v644_v38 = vadd.f32 %v1284_v33, %v1516_v23  ;;  %v524_v39 = vpop.f32.mrb[3].mxu0  ;;  %v556_v40 = vpop.f32.mrb[3].mxu1  ;;  %v1523_v41 = vadd.f32 %v1185_v24, %v651_v30  ;;  %v1525_v42 = vadd.f32 %v1169_v25, %v643_v29  ;;  %v652_v47 = vadd.f32 %v1292_v34, %v1516_v23 }
  0xfe   : > { %v1532_v48 = vadd.f32 %v1165_v35, %v641_v37  ;;  %v642_v59 = vadd.f32 %v1516_v23, %v524_v39  ;;  %v650_v60 = vadd.f32 %v1516_v23, %v556_v40  ;;  %v1541_v61 = vadd.f32 %v1181_v44, %v649_v46 }
  0xff   : > { %725 = vadd.xlane.f32.xlu0 %v1523_v41  ;;  %709 = vadd.xlane.f32.xlu1 %v1525_v42  ;;  %v1534_v49 = vadd.f32 %v1170_v36, %v644_v38  ;;  %v1543_v62 = vadd.f32 %v1186_v45, %v652_v47  ;;  %v1194_v29 = vunpack.c.h.bf16 %v1241_v22 }
 0x100   : > { %v1549_v5 = vadd.f32 %v1182_v55, %v650_v60  ;;  %v1551_v6 = vadd.f32 %v1166_v56, %v642_v59 }
 0x102   : > { %v1287_v50 = vpop.f32.mrb[4].mxu0  ;;  %v1295_v51 = vpop.f32.mrb[4].mxu1 }
 0x103   : > { %705 = vadd.xlane.f32.xlu0 %v1532_v48  ;;  %711 = vadd.xlane.f32.xlu1 %v1534_v49  ;;  %v537_v52 = vpop.f32.mrb[5].mxu0  ;;  %v569_v53 = vpop.f32.mrb[5].mxu1  ;;  %v647_v1 = vadd.f32 %v1287_v50, %v1516_v23  ;;  %v655_v26 = vadd.f32 %v1295_v51, %v1516_v23 }
 0x104   : > { %v1288_v54 = vpop.f32.mrb[6].mxu0  ;;  %v1296_v58 = vpop.f32.mrb[6].mxu1  ;;  %v645_v11 = vadd.f32 %v1516_v23, %v537_v52  ;;  %v653_v15 = vadd.f32 %v1516_v23, %v569_v53 }
 0x105   : > { %v540_v63 = vpop.f32.mrb[7].mxu0  ;;  %v572_v0 = vpop.f32.mrb[7].mxu1  ;;  %v648_v2 = vadd.f32 %v1288_v54, %v1516_v23  ;;  %v1556_v8 = vadd.f32 %v1177_v3, %v647_v1  ;;  %v656_v27 = vadd.f32 %v1296_v58, %v1516_v23  ;;  %v1582_v30 = vadd.f32 %v1193_v28, %v655_v26 }
 0x106   : > { %v646_v12 = vadd.f32 %v1516_v23, %v540_v63  ;;  %v654_v16 = vadd.f32 %v1516_v23, %v572_v0  ;;  %v1567_v19 = vadd.f32 %v1173_v13, %v645_v11  ;;  %v1574_v24 = vadd.f32 %v1189_v17, %v653_v15 }
 0x107   : > { %721 = vadd.xlane.f32.xlu0 %v1541_v61  ;;  %727 = vadd.xlane.f32.xlu1 %v1543_v62  ;;  %v1558_v9 = vadd.f32 %v1178_v4, %v648_v2  ;;  %v1584_v31 = vadd.f32 %v1194_v29, %v656_v27 }
 0x108   : > { %v1569_v21 = vadd.f32 %v1174_v14, %v646_v12  ;;  %v1576_v25 = vadd.f32 %v1190_v18, %v654_v16 }
 0x10b   : > { %723 = vadd.xlane.f32.xlu1 %v1549_v5  ;;  %707 = vadd.xlane.f32.xlu0 %v1551_v6 }
 0x10f   : > { %717 = vadd.xlane.f32.xlu0 %v1556_v8  ;;  %719 = vadd.xlane.f32.xlu1 %v1558_v9 }
 0x113   : > { %713 = vadd.xlane.f32.xlu0 %v1567_v19  ;;  %715 = vadd.xlane.f32.xlu1 %v1569_v21 }
 0x117   : > { %729 = vadd.xlane.f32.xlu0 %v1574_v24  ;;  %731 = vadd.xlane.f32.xlu1 %v1576_v25 }
 0x11b   : > { %733 = vadd.xlane.f32.xlu0 %v1582_v30  ;;  %735 = vadd.xlane.f32.xlu1 %v1584_v31 }
 0x18c   : > { %v726_v32 = vpop.xlane.xlu0 %725  ;;  %v710_v33 = vpop.xlane.xlu1 %709 }
 0x18d   : > { %v748_v34 = vmul.f32 0.0078125, %v726_v32  ;;  %v740_v35 = vmul.f32 0.0078125, %v710_v33 }
 0x18f   : > { %v1589_v23 = vsub.f32 %v1525_v42, %v740_v35  ;;  %v1592_v38 = vsub.f32 %v1523_v41, %v748_v34 }
 0x190   : > { %v706_v36 = vpop.xlane.xlu0 %705  ;;  %v712_v37 = vpop.xlane.xlu1 %711 }
 0x191   : > { %v738_v39 = vmul.f32 0.0078125, %v706_v36  ;;  %v741_v40 = vmul.f32 0.0078125, %v712_v37  ;;  %v772_v43 = vmul.f32 %v1589_v23, %v1589_v23  ;;  %v780_v41 = vmul.f32 %v1592_v38, %v1592_v38 }
 0x193   : > { %v1597_v44 = vsub.f32 %v1534_v49, %v741_v40  ;;  %790 = vadd.xlane.f32.xlu0 %v772_v43  ;;  %v1600_v45 = vsub.f32 %v1532_v48, %v738_v39 }
 0x194   : > { %v722_v46 = vpop.xlane.xlu0 %721  ;;  %v728_v42 = vpop.xlane.xlu1 %727 }
 0x195   : > { %v746_v47 = vmul.f32 0.0078125, %v722_v46  ;;  %v749_v50 = vmul.f32 0.0078125, %v728_v42  ;;  %v773_v51 = vmul.f32 %v1597_v44, %v1597_v44  ;;  %v770_v48 = vmul.f32 %v1600_v45, %v1600_v45 }
 0x197   : > { %v1607_v52 = vsub.f32 %v1543_v62, %v749_v50  ;;  %806 = vadd.xlane.f32.xlu0 %v780_v41  ;;  %792 = vadd.xlane.f32.xlu1 %v773_v51  ;;  %v1612_v54 = vsub.f32 %v1541_v61, %v746_v47  ;;  %v882_v50 = vld [vmem:[%s1755_s4] sm:$0x1] }
 0x198   : > { %v724_v49 = vpop.xlane.xlu1 %723  ;;  %v708_v53 = vpop.xlane.xlu0 %707 }
 0x199   : > { %v747_v55 = vmul.f32 0.0078125, %v724_v49  ;;  %v739_v56 = vmul.f32 0.0078125, %v708_v53  ;;  %v781_v57 = vmul.f32 %v1607_v52, %v1607_v52  ;;  %v778_v61 = vmul.f32 %v1612_v54, %v1612_v54 }
 0x19b   : > { %v1617_v58 = vsub.f32 %v1551_v6, %v739_v56  ;;  %786 = vadd.xlane.f32.xlu0 %v770_v48  ;;  %808 = vadd.xlane.f32.xlu1 %v781_v57  ;;  %v1620_v59 = vsub.f32 %v1549_v5, %v747_v55  ;;  %v883_v48 = vunpack.c.l.bf16 %v882_v50  ;;  %v904_v57 = vld [vmem:[%s1756_s5] sm:$0x1] }
 0x19c   : > { %v718_v60 = vpop.xlane.xlu0 %717  ;;  %v720_v62 = vpop.xlane.xlu1 %719 }
 0x19d   : > { %v744_v63 = vmul.f32 0.0078125, %v718_v60  ;;  %v745_v0 = vmul.f32 0.0078125, %v720_v62  ;;  %v771_v1 = vmul.f32 %v1617_v58, %v1617_v58  ;;  %v779_v5 = vmul.f32 %v1620_v59, %v1620_v59 }
 0x19f   : > { %v1627_v2 = vsub.f32 %v1556_v8, %v744_v63  ;;  %802 = vadd.xlane.f32.xlu0 %v778_v61  ;;  %788 = vadd.xlane.f32.xlu1 %v771_v1  ;;  %v1632_v6 = vsub.f32 %v1558_v9, %v745_v0  ;;  %v1675_v1 = vrot.slane %v883_v48, %v1505_v20 }
 0x1a0   : > { %v714_v3 = vpop.xlane.xlu0 %713  ;;  %v716_v4 = vpop.xlane.xlu1 %715 }
 0x1a1   : > { %v742_v7 = vmul.f32 0.0078125, %v714_v3  ;;  %v743_v10 = vmul.f32 0.0078125, %v716_v4  ;;  %v776_v11 = vmul.f32 %v1627_v2, %v1627_v2  ;;  %v777_v17 = vmul.f32 %v1632_v6, %v1632_v6 }
 0x1a2   : > { %v905_v3 = vunpack.c.l.bf16 %v904_v57 }
 0x1a3   : > { %v1637_v12 = vsub.f32 %v1567_v19, %v742_v7  ;;  %798 = vadd.xlane.f32.xlu0 %v776_v11  ;;  %804 = vadd.xlane.f32.xlu1 %v779_v5  ;;  %v1640_v8 = vsub.f32 %v1569_v21, %v743_v10 }
 0x1a4   : > { %v730_v13 = vpop.xlane.xlu0 %729  ;;  %v732_v14 = vpop.xlane.xlu1 %731 }
 0x1a5   : > { %v750_v15 = vmul.f32 0.0078125, %v730_v13  ;;  %v751_v16 = vmul.f32 0.0078125, %v732_v14  ;;  %v774_v9 = vmul.f32 %v1637_v12, %v1637_v12  ;;  %v775_v21 = vmul.f32 %v1640_v8, %v1640_v8 }
 0x1a7   : > { %v1647_v18 = vsub.f32 %v1574_v24, %v750_v15  ;;  %794 = vadd.xlane.f32.xlu0 %v774_v9  ;;  %800 = vadd.xlane.f32.xlu1 %v777_v17  ;;  %v1652_v26 = vsub.f32 %v1576_v25, %v751_v16  ;;  %v1679_v9 = vrot.slane %v905_v3, %v1505_v20 }
 0x1a8   : > { %v734_v19 = vpop.xlane.xlu0 %733  ;;  %v736_v22 = vpop.xlane.xlu1 %735 }
 0x1a9   : > { %v752_v27 = vmul.f32 0.0078125, %v734_v19  ;;  %v753_v28 = vmul.f32 0.0078125, %v736_v22  ;;  %v782_v29 = vmul.f32 %v1647_v18, %v1647_v18  ;;  %v783_v25 = vmul.f32 %v1652_v26, %v1652_v26 }
 0x1ab   : > { %v1657_v32 = vsub.f32 %v1582_v30, %v752_v27  ;;  %810 = vadd.xlane.f32.xlu0 %v782_v29  ;;  %796 = vadd.xlane.f32.xlu1 %v775_v21  ;;  %v1660_v24 = vsub.f32 %v1584_v31, %v753_v28 }
 0x1ad   : > { %v784_v33 = vmul.f32 %v1657_v32, %v1657_v32  ;;  %v785_v34 = vmul.f32 %v1660_v24, %v1660_v24 }
 0x1af   : > { %814 = vadd.xlane.f32.xlu0 %v784_v33  ;;  %812 = vadd.xlane.f32.xlu1 %v783_v25 }
 0x1b3   : > { %816 = vadd.xlane.f32.xlu1 %v785_v34 }
 0x220   : > { %v791_v35 = vpop.xlane.xlu0 %790 }
 0x221   : > { %v820_v30 = vmul.f32 0.0078125, %v791_v35 }
 0x223   : > { %v836_v36 = vadd.f32 1e-12, %v820_v30 }
 0x224   : > { %v807_v37 = vpop.xlane.xlu0 %806  ;;  %v793_v39 = vpop.xlane.xlu1 %792 }
 0x225   : > { %1353 = vrsqrt.f32 %v836_v36  ;;  %v828_v31 = vmul.f32 0.0078125, %v807_v37  ;;  %v821_v40 = vmul.f32 0.0078125, %v793_v39 }
 0x227   : > { %v844_v43 = vadd.f32 1e-12, %v828_v31  ;;  %v837_v46 = vadd.f32 1e-12, %v821_v40 }
 0x228   : > { %v787_v42 = vpop.xlane.xlu0 %786  ;;  %v809_v47 = vpop.xlane.xlu1 %808 }
 0x229   : > { %1355 = vrsqrt.f32 %v844_v43  ;;  %v818_v41 = vmul.f32 0.0078125, %v787_v42  ;;  %v829_v51 = vmul.f32 0.0078125, %v809_v47 }
 0x22a   : > { %1357 = vrsqrt.f32 %v837_v46 }
 0x22b   : > { %v834_v49 = vadd.f32 1e-12, %v818_v41  ;;  %v845_v53 = vadd.f32 1e-12, %v829_v51 }
 0x22c   : > { %v803_v55 = vpop.xlane.xlu0 %802  ;;  %v789_v56 = vpop.xlane.xlu1 %788 }
 0x22d   : > { %1359 = vrsqrt.f32 %v834_v49  ;;  %v826_v60 = vmul.f32 0.0078125, %v803_v55  ;;  %v819_v62 = vmul.f32 0.0078125, %v789_v56 }
 0x22e   : > { %1361 = vrsqrt.f32 %v845_v53 }
 0x22f   : > { %v1354_v63 = vpop.eup %1353  ;;  %v842_v0 = vadd.f32 1e-12, %v826_v60  ;;  %v835_v61 = vadd.f32 1e-12, %v819_v62 }
 0x230   : > { %v868_v4 = vmul.f32 %v1354_v63, %v1589_v23  ;;  %v799_v5 = vpop.xlane.xlu0 %798  ;;  %v805_v7 = vpop.xlane.xlu1 %804 }
 0x231   : > { %1363 = vrsqrt.f32 %v842_v0  ;;  %v824_v10 = vmul.f32 0.0078125, %v799_v5  ;;  %v827_v11 = vmul.f32 0.0078125, %v805_v7 }
 0x232   : > { %1365 = vrsqrt.f32 %v835_v61  ;;  %v890_v17 = vmul.f32 %v1675_v1, %v868_v4 }
 0x233   : > { %v1356_v13 = vpop.eup %1355  ;;  %v840_v14 = vadd.f32 1e-12, %v824_v10  ;;  %v843_v15 = vadd.f32 1e-12, %v827_v11 }
 0x234   : > { %v1358_v16 = vpop.eup %1357  ;;  %v876_v19 = vmul.f32 %v1356_v13, %v1592_v38  ;;  %v795_v22 = vpop.xlane.xlu0 %794  ;;  %v912_v35 = vadd.f32 %v1679_v9, %v890_v17 }
 0x235   : > { %v801_v21 = vpop.xlane.xlu1 %800  ;;  %v869_v23 = vmul.f32 %v1358_v16, %v1597_v44  ;;  %1367 = vrsqrt.f32 %v840_v14  ;;  %v822_v27 = vmul.f32 0.0078125, %v795_v22 }
 0x236   : > { %v825_v28 = vmul.f32 0.0078125, %v801_v21  ;;  %1369 = vrsqrt.f32 %v843_v15  ;;  %v898_v30 = vmul.f32 %v1675_v1, %v876_v19 }
 0x237   : > { %v1360_v29 = vpop.eup %1359  ;;  %v891_v33 = vmul.f32 %v1675_v1, %v869_v23  ;;  %v838_v25 = vadd.f32 1e-12, %v822_v27 }
 0x238   : > { %v841_v34 = vadd.f32 1e-12, %v825_v28  ;;  %v1362_v20 = vpop.eup %1361  ;;  %v866_v38 = vmul.f32 %v1360_v29, %v1600_v45  ;;  %v811_v36 = vpop.xlane.xlu0 %810  ;;  %v920_v50 = vadd.f32 %v1679_v9, %v898_v30 }
 0x239   : > { %v797_v37 = vpop.xlane.xlu1 %796  ;;  %v913_v44 = vadd.f32 %v1679_v9, %v891_v33  ;;  %v877_v39 = vmul.f32 %v1362_v20, %v1607_v52  ;;  %1371 = vrsqrt.f32 %v838_v25  ;;  %v830_v31 = vmul.f32 0.0078125, %v811_v36 }
 0x23a   : > { %1373 = vrsqrt.f32 %v841_v34  ;;  %v823_v40 = vmul.f32 0.0078125, %v797_v37  ;;  %v888_v52 = vmul.f32 %v1675_v1, %v866_v38 }
 0x23b   : > { %v1364_v43 = vpop.eup %1363  ;;  %v1203_v46 = vpack.c.bf16 %v913_v44, %v912_v35  ;;  %v899_v45 = vmul.f32 %v1675_v1, %v877_v39  ;;  %v846_v42 = vadd.f32 1e-12, %v830_v31 }
 0x23c   : > { %v1366_v47 = vpop.eup %1365  ;;  %v874_v41 = vmul.f32 %v1364_v43, %v1612_v54  ;;  %v839_v51 = vadd.f32 1e-12, %v823_v40  ;;  %v815_v49 = vpop.xlane.xlu0 %814  ;;  %v910_v54 = vadd.f32 %v1679_v9, %v888_v52 }
 0x23d   : > { %v813_v53 = vpop.xlane.xlu1 %812  ;;  %1242 = vst [vmem:[%s1694_s13 + $0x8] sm:$0xff] %v1203_v46   ;;  %v921_v48 = vadd.f32 %v1679_v9, %v899_v45  ;;  %v867_v55 = vmul.f32 %v1366_v47, %v1617_v58  ;;  %1375 = vrsqrt.f32 %v846_v42  ;;  %v832_v56 = vmul.f32 0.0078125, %v815_v49 }
 0x23e   : > { %1377 = vrsqrt.f32 %v839_v51  ;;  %v831_v57 = vmul.f32 0.0078125, %v813_v53  ;;  %v896_v3 = vmul.f32 %v1675_v1, %v874_v41 }
 0x23f   : > { %v1368_v60 = vpop.eup %1367  ;;  %v1223_v62 = vpack.c.bf16 %v921_v48, %v920_v50  ;;  %v889_v63 = vmul.f32 %v1675_v1, %v867_v55  ;;  %v848_v0 = vadd.f32 1e-12, %v832_v56 }
 0x240   : > { %v1370_v61 = vpop.eup %1369  ;;  %v872_v4 = vmul.f32 %v1368_v60, %v1627_v2  ;;  %v847_v5 = vadd.f32 1e-12, %v831_v57  ;;  %v918_v2 = vadd.f32 %v1679_v9, %v896_v3 }
 0x241   : > { %v817_v7 = vpop.xlane.xlu1 %816  ;;  %1246 = vst [vmem:[%s1694_s13 + $0x28] sm:$0xff] %v1223_v62   ;;  %v911_v58 = vadd.f32 %v1679_v9, %v889_v63  ;;  %v875_v10 = vmul.f32 %v1370_v61, %v1620_v59  ;;  %1379 = vrsqrt.f32 %v848_v0 }
 0x242   : > { %v833_v11 = vmul.f32 0.0078125, %v817_v7  ;;  %1381 = vrsqrt.f32 %v847_v5  ;;  %v894_v19 = vmul.f32 %v1675_v1, %v872_v4 }
 0x243   : > { %v1372_v13 = vpop.eup %1371  ;;  %v1198_v14 = vpack.c.bf16 %v911_v58, %v910_v54  ;;  %v897_v15 = vmul.f32 %v1675_v1, %v875_v10 }
 0x244   : > { %v849_v16 = vadd.f32 1e-12, %v833_v11  ;;  %v1374_v17 = vpop.eup %1373  ;;  %v870_v21 = vmul.f32 %v1372_v13, %v1637_v12  ;;  %v916_v33 = vadd.f32 %v1679_v9, %v894_v19 }
 0x245   : > { %1199 = vst [vmem:[%s1694_s13] sm:$0xff] %v1198_v14   ;;  %v919_v22 = vadd.f32 %v1679_v9, %v897_v15  ;;  %v873_v59 = vmul.f32 %v1374_v17, %v1632_v6 }
 0x246   : > { %1383 = vrsqrt.f32 %v849_v16  ;;  %v892_v25 = vmul.f32 %v1675_v1, %v870_v21 }
 0x247   : > { %v1376_v23 = vpop.eup %1375  ;;  %v1218_v27 = vpack.c.bf16 %v919_v22, %v918_v2  ;;  %v895_v28 = vmul.f32 %v1675_v1, %v873_v59 }
 0x248   : > { %v1378_v29 = vpop.eup %1377  ;;  %v878_v20 = vmul.f32 %v1376_v23, %v1647_v18  ;;  %v914_v37 = vadd.f32 %v1679_v9, %v892_v25 }
 0x249   : > { %1245 = vst [vmem:[%s1694_s13 + $0x20] sm:$0xff] %v1218_v27   ;;  %v917_v34 = vadd.f32 %v1679_v9, %v895_v28  ;;  %v871_v12 = vmul.f32 %v1378_v29, %v1640_v8 }
 0x24a   : > { %v900_v44 = vmul.f32 %v1675_v1, %v878_v20 }
 0x24b   : > { %v1380_v35 = vpop.eup %1379  ;;  %v1213_v6 = vpack.c.bf16 %v917_v34, %v916_v33  ;;  %v893_v30 = vmul.f32 %v1675_v1, %v871_v12 }
 0x24c   : > { %v1382_v38 = vpop.eup %1381  ;;  %v880_v36 = vmul.f32 %v1380_v35, %v1657_v32  ;;  %v922_v32 = vadd.f32 %v1679_v9, %v900_v44 }
 0x24d   : > { %1244 = vst [vmem:[%s1694_s13 + $0x18] sm:$0xff] %v1213_v6   ;;  %v915_v39 = vadd.f32 %v1679_v9, %v893_v30  ;;  %v879_v18 = vmul.f32 %v1382_v38, %v1652_v26 }
 0x24e   : > { %v902_v43 = vmul.f32 %v1675_v1, %v880_v36 }
 0x24f   : > { %v1208_v31 = vpack.c.bf16 %v915_v39, %v914_v37  ;;  %v901_v40 = vmul.f32 %v1675_v1, %v879_v18 }
 0x250   : > { %v1384_v8 = vpop.eup %1383  ;;  %v924_v50 = vadd.f32 %v1679_v9, %v902_v43 }
 0x251   : > { %v881_v46 = vmul.f32 %v1384_v8, %v1660_v24  ;;  %1243 = vst [vmem:[%s1694_s13 + $0x10] sm:$0xff] %v1208_v31   ;;  %v923_v45 = vadd.f32 %v1679_v9, %v901_v40 }
 0x253   : > { %v903_v42 = vmul.f32 %v1675_v1, %v881_v46  ;;  %v1228_v47 = vpack.c.bf16 %v923_v45, %v922_v32 }
 0x255   : > { %v925_v26 = vadd.f32 %v1679_v9, %v903_v42  ;;  %1247 = vst [vmem:[%s1694_s13 + $0x30] sm:$0xff] %v1228_v47  }
 0x257   : > { %v1233_v52 = vpack.c.bf16 %v925_v26, %v924_v50 }
 0x259   : > { %1248 = vst [vmem:[%s1694_s13 + $0x38] sm:$0xff] %v1233_v52  }
 0x25a PF: > { %s16_s23 = sadd.s32 1, %s1407_s23   ;;  %s1758_s21 = smov %s1403_s22 }
 0x25b   : > { %p13_p5 = scmp.ge.s32.totalorder %s16_s23, 4   ;;  %s1759_s22 = smov %s1761_s24 }
 0x25d   :  { %15 = sbr.rel (!%p13_p5) target bundleno = 2 (0x2), region = 88 }

// kernel: bert_forward.12
= control target key start
LH: loop header
LB: loop body
LE: loop exit
PB: predicated region body
PF: predicated region fallthrough
CT: control target
= control target key end

     0   :  { %s1907_s18 = smov 0   ;;  %s1909_s19 = smov 0   ;;  %s2129_s0 = inlined_call_operand.vmem [shape: bf16[256,128], index: 0, kind: input, shape index: {}]   ;;  %s2130_s1 = inlined_call_operand.vmem [shape: bf16[128,384], index: 1, kind: input, shape index: {}]   ;;  %s2131_s2 = inlined_call_operand.vmem [shape: bf16[1,384], index: 2, kind: input, shape index: {}]   ;;  %s2132_s3 = inlined_call_operand.vmem [shape: bf16[256,128], index: 3, kind: output, shape index: {0}]   ;;  %s2133_s4 = inlined_call_operand.vmem [shape: bf16[256,128], index: 4, kind: output, shape index: {1}]   ;;  %s2134_s5 = inlined_call_operand.vmem [shape: bf16[256,128], index: 5, kind: output, shape index: {2}]  }
   0x1   :  { %s1911_s20 = smov 0  }
   0x2 LB: > { %s28_s21 = sadd.s32 1, %s1870_s19  ;;  %p1459_p0 = scmp.ge.s32.totalorder %s1874_s20, 1  ;;  %s1874_s20 = sphi %s1911_s20, %s16_s20   ;;  %s1870_s19 = sphi %s1909_s19, %s2136_s19   ;;  %s1866_s18 = sphi %s1907_s18, %s2135_s18  }
   0x3   : > { %p30_p1 = scmp.ge.s32.totalorder %s28_s21, 2  ;;  %p222_p2 = scmp.lt.s32.totalorder %s1874_s20, 3 }
   0x5   : > { %s2138_s21 = smov (%p30_p1, %s28_s21), 0  ;;  %p223_p3 = pnand %p1459_p0, %p222_p2 }
   0x6   : > { %v1812_v0 = vld [vmem:[%s2130_s1 + $0x4] ss:$12 sps:$4 sm:$0xff] (!%p223_p3)   ;;  %s1460_s24 = sshll.u32 (!%p223_p3), %s1866_s18, 4  ;;  %v1814_v1 = vld [vmem:[%s2130_s1] ss:$12 sps:$4 sm:$0xff] (!%p223_p3)   ;;  %v1876_v2 = vmov (!%p223_p3), 0   ;;  %v988_v33 = vlaneseq (!%p223_p3) }
   0x7   : > { %226 = sbr.rel (%p223_p3) target bundleno = 315 (0x13b), region = 32  ;;  %660 = vmatprep.mubr.bf16.mxu0 (!%p223_p3), %v1876_v2  ;;  %p270_p4 = scmp.lt.s32.totalorder (!%p223_p3), %s1460_s24, 31  ;;  %628 = vmatprep.subr.bf16.mxu0 (!%p223_p3), %v1812_v0  ;;  %v1815_v3 = vld [vmem:[%s2130_s1 + $0x1c] ss:$12 sps:$4 sm:$0xff] (!%p223_p3)   ;;  %v1817_v4 = vld [vmem:[%s2130_s1 + $0x18] ss:$12 sps:$4 sm:$0xff] (!%p223_p3)  }
   0x8   : > { %629 = vmatpush1.bf16.msra.mxu0 (!%p223_p3), %v1814_v1  ;;  %v1818_v5 = vld [vmem:[%s2130_s1 + $0x34] ss:$12 sps:$4 sm:$0xff] (!%p223_p3)   ;;  %v1820_v6 = vld [vmem:[%s2130_s1 + $0x30] ss:$12 sps:$4 sm:$0xff] (!%p223_p3)   ;;  %v1821_v7 = vld [vmem:[%s2130_s1 + $0x4c] ss:$12 sps:$4 sm:$0xff] (!%p223_p3)  }
   0x9   : > { %630 = vmatprep.subr.bf16.mxu0 (!%p223_p3), %v1815_v3  ;;  %v1823_v8 = vld [vmem:[%s2130_s1 + $0x48] ss:$12 sps:$4 sm:$0xff] (!%p223_p3)   ;;  %v1824_v9 = vld [vmem:[%s2130_s1 + $0x64] ss:$12 sps:$4 sm:$0xff] (!%p223_p3)   ;;  %v1838_v12 = vld [vmem:[%s2130_s1 + $0x20] ss:$12 sps:$4 sm:$0xff] (!%p223_p3)  }
   0xa   : > { %v1836_v10 = vld [vmem:[%s2130_s1 + $0x8] ss:$12 sps:$4 sm:$0xff] (!%p223_p3)   ;;  %v1826_v13 = vld [vmem:[%s2130_s1 + $0x60] ss:$12 sps:$4 sm:$0xff] (!%p223_p3)   ;;  %v1839_v14 = vld [vmem:[%s2130_s1 + $0x38] ss:$12 sps:$4 sm:$0xff] (!%p223_p3)  }
   0xb   : > { %1755 = vmatprep.subr.bf16.mxu1 (!%p223_p3), %v1836_v10  ;;  %v1827_v15 = vld [vmem:[%s2130_s1 + $0x7c] ss:$12 sps:$4 sm:$0xff] (!%p223_p3)   ;;  %v1829_v16 = vld [vmem:[%s2130_s1 + $0x78] ss:$12 sps:$4 sm:$0xff] (!%p223_p3)   ;;  %v1830_v18 = vld [vmem:[%s2130_s1 + $0x94] ss:$12 sps:$4 sm:$0xff] (!%p223_p3)  }
   0xc   : > { %631 = vmatpush1.bf16.msra.mxu0 (!%p223_p3), %v1817_v4  ;;  %1756 = vmatpush3.bf16.msra.mxu1 (!%p223_p3), %v1836_v10  ;;  %v1841_v17 = vld [vmem:[%s2130_s1 + $0x50] ss:$12 sps:$4 sm:$0xff] (!%p223_p3)   ;;  %v1842_v20 = vld [vmem:[%s2130_s1 + $0x68] ss:$12 sps:$4 sm:$0xff] (!%p223_p3)   ;;  %v1833_v21 = vld [vmem:[%s2130_s1 + $0xac] ss:$12 sps:$4 sm:$0xff] (!%p223_p3)  }
   0xd   : > { %632 = vmatprep.subr.bf16.mxu0 (!%p223_p3), %v1818_v5  ;;  %1757 = vmatprep.subr.bf16.mxu1 (!%p223_p3), %v1838_v12  ;;  %v1832_v19 = vld [vmem:[%s2130_s1 + $0x90] ss:$12 sps:$4 sm:$0xff] (!%p223_p3)   ;;  %v1835_v22 = vld [vmem:[%s2130_s1 + $0xa8] ss:$12 sps:$4 sm:$0xff] (!%p223_p3)   ;;  %v1844_v23 = vld [vmem:[%s2130_s1 + $0x80] ss:$12 sps:$4 sm:$0xff] (!%p223_p3)  }
   0xe   : > { %s2140_s24 = smov (!%p270_p4, %s1460_s24), 31  ;;  %v1845_v24 = vld [vmem:[%s2130_s1 + $0x98] ss:$12 sps:$4 sm:$0xff]   ;;  %v1847_v25 = vld [vmem:[%s2130_s1 + $0xb0] ss:$12 sps:$4 sm:$0xff]   ;;  %v989_v34 = vshrl.u32 %v988_v33, 7 }
   0xf   : > { %s1941_s8 = sshll.u32 %s2140_s24, 2  ;;  %v985_v35 = vld [vmem:[%s2131_s2] sm:$0x7] }
  0x10   : > { %s1953_s15 = scalar_lea.vmem %s2129_s0, %s1941_s8  ;;  %633 = vmatpush1.bf16.msra.mxu0 %v1820_v6  ;;  %1758 = vmatpush3.bf16.msra.mxu1 %v1838_v12  ;;  %v986_v36 = vunpack.c.l.bf16 %v985_v35  ;;  %v990_v37 = vsub.s32 0, %v989_v34  ;;  %v994_v38 = vsub.s32 2, %v989_v34  ;;  %v998_v44 = vsub.s32 4, %v989_v34  ;;  %s2035_s12 = scalar_lea.vmem %s2132_s3, %s1941_s8 }
  0x11   : > { %634 = vmatprep.subr.bf16.mxu0 %v1821_v7  ;;  %v1837_v11 = vld [vmem:[%s1953_s15] sm:$0xff]   ;;  %1759 = vmatprep.subr.bf16.mxu1 %v1839_v14  ;;  %v1840_v26 = vld [vmem:[%s1953_s15 + $0x8] sm:$0xff]   ;;  %v1843_v27 = vld [vmem:[%s1953_s15 + $0x10] sm:$0xff]   ;;  %s2042_s16 = scalar_lea.vmem %s2133_s4, %s1941_s8  ;;  %s2060_s22 = scalar_lea.vmem %s2134_s5, %s1941_s8 }
  0x12   : > { %1771 = vmatprep.mubr.bf16.mxu1 %v1837_v11  ;;  %v1846_v28 = vld [vmem:[%s1953_s15 + $0x18] sm:$0xff]   ;;  %v1848_v29 = vld [vmem:[%s1953_s15 + $0x20] sm:$0xff]   ;;  %v1849_v30 = vld [vmem:[%s1953_s15 + $0x28] sm:$0xff]   ;;  %v991_v39 = vrot.slane %v986_v36, %v990_v37  ;;  %v995_v40 = vrot.slane %v986_v36, %v994_v38  ;;  %v999_v52 = vrot.slane %v986_v36, %v998_v44 }
  0x13   : > { %v1850_v31 = vld [vmem:[%s1953_s15 + $0x30] sm:$0xff]   ;;  %v1851_v32 = vld [vmem:[%s1953_s15 + $0x38] sm:$0xff]  }
  0x14   : > { %635 = vmatpush1.bf16.msra.mxu0 %v1823_v8  ;;  %1760 = vmatpush3.bf16.msra.mxu1 %v1839_v14  ;;  %v2024_v41 = vrot.slane %v991_v39, %v990_v37  ;;  %v2026_v43 = vrot.slane %v995_v40, %v990_v37  ;;  %v2046_v56 = vrot.slane %v999_v52, %v990_v37 }
  0x15   : > { %636 = vmatprep.subr.bf16.mxu0 %v1824_v9  ;;  %1761 = vmatprep.subr.bf16.mxu1 %v1841_v17 }
  0x18   : > { %637 = vmatpush1.bf16.msra.mxu0 %v1826_v13  ;;  %1762 = vmatpush3.bf16.msra.mxu1 %v1841_v17 }
  0x19   : > { %638 = vmatprep.subr.bf16.mxu0 %v1827_v15  ;;  %1763 = vmatprep.subr.bf16.mxu1 %v1842_v20 }
  0x1c   : > { %639 = vmatpush1.bf16.msra.mxu0 %v1829_v16  ;;  %1764 = vmatpush3.bf16.msra.mxu1 %v1842_v20 }
  0x1d   : > { %640 = vmatprep.subr.bf16.mxu0 %v1830_v18  ;;  %1765 = vmatprep.subr.bf16.mxu1 %v1844_v23 }
  0x20   : > { %641 = vmatpush1.bf16.msra.mxu0 %v1832_v19  ;;  %1766 = vmatpush3.bf16.msra.mxu1 %v1844_v23 }
  0x21   : > { %642 = vmatprep.subr.bf16.mxu0 %v1833_v21  ;;  %1767 = vmatprep.subr.bf16.mxu1 %v1845_v24 }
  0x24   : > { %643 = vmatpush1.bf16.msra.mxu0 %v1835_v22  ;;  %1768 = vmatpush3.bf16.msra.mxu1 %v1845_v24 }
  0x25   : > { %1769 = vmatprep.subr.bf16.mxu1 %v1847_v25 }
  0x27   : > { %661 = vmatmul.mubr.bf16.vlgmr.msra.gmra.mrb[0].mxu0 %v1837_v11 }
  0x28   : > { %670 = vmatprep.mubr.bf16.mxu0 %v1876_v2  ;;  %1770 = vmatpush3.bf16.msra.mxu1 %v1847_v25 }
  0x2b   : > { %1772 = vmatmul.mubr.bf16.vlgmr.msra.gmra.mrb[0].mxu1 %v1840_v26 }
  0x2c   : > { %1775 = vmatprep.mubr.bf16.mxu1 %v1843_v27 }
  0x2f   : > { %671 = vmatmul.mubr.bf16.gmra.mrb[4].mxu0 %v1840_v26 }
  0x30   : > { %680 = vmatprep.mubr.bf16.mxu0 %v1876_v2 }
  0x33   : > { %1776 = vmatmul.mubr.bf16.gmra.mrb[4].mxu1 %v1846_v28 }
  0x34   : > { %1779 = vmatprep.mubr.bf16.mxu1 %v1848_v29 }
  0x37   : > { %681 = vmatmul.mubr.bf16.gmra.mrb[8].mxu0 %v1843_v27 }
  0x38   : > { %690 = vmatprep.mubr.bf16.mxu0 %v1876_v2 }
  0x3b   : > { %1780 = vmatmul.mubr.bf16.gmra.mrb[8].mxu1 %v1849_v30 }
  0x3c   : > { %1783 = vmatprep.mubr.bf16.mxu1 %v1850_v31 }
  0x3f   : > { %691 = vmatmul.mubr.bf16.gmra.mrb[12].mxu0 %v1846_v28 }
  0x40   : > { %700 = vmatprep.mubr.bf16.mxu0 %v1876_v2 }
  0x43   : > { %1784 = vmatmul.mubr.bf16.gmra.mrb[12].mxu1 %v1851_v32 }
  0x47   : > { %701 = vmatmul.mubr.bf16.gmra.mrb[16].mxu0 %v1848_v29 }
  0x48   : > { %710 = vmatprep.mubr.bf16.mxu0 %v1876_v2 }
  0x4f   : > { %711 = vmatmul.mubr.bf16.gmra.mrb[20].mxu0 %v1849_v30 }
  0x50   : > { %720 = vmatprep.mubr.bf16.mxu0 %v1876_v2 }
  0x57   : > { %721 = vmatmul.mubr.bf16.gmra.mrb[24].mxu0 %v1850_v31 }
  0x58   : > { %730 = vmatprep.mubr.bf16.mxu0 %v1876_v2 }
  0x5f   : > { %731 = vmatmul.mubr.bf16.gmra.mrb[28].mxu0 %v1851_v32 }
  0xfa   : > { %v662_v42 = vpop.f32.mrb[0].mxu0 }
  0xfb   : > { %v664_v45 = vpop.f32.mrb[1].mxu0  ;;  %v1015_v47 = vadd.f32 %v2024_v41, %v662_v42 }
  0xfc   : > { %v666_v46 = vpop.f32.mrb[2].mxu0  ;;  %v1016_v50 = vadd.f32 %v2026_v43, %v664_v45 }
  0xfd   : > { %v1018_v48 = vadd.f32 %v2024_v41, %v666_v46  ;;  %v668_v49 = vpop.f32.mrb[3].mxu0 }
  0xfe   : > { %v1019_v51 = vadd.f32 %v2026_v43, %v668_v49  ;;  %v1773_v62 = vpop.f32.mrb[0].mxu1 }
  0xff   : > { %v1601_v53 = vpack.c.bf16 %v1018_v48, %v1015_v47  ;;  %v1023_v1 = vadd.f32 %v1773_v62, %v2046_v56  ;;  %v775_v2 = vpop.f32.mrb[1].mxu1 }
 0x100   : > { %v1641_v54 = vpack.c.bf16 %v1019_v51, %v1016_v50  ;;  %v1017_v4 = vadd.f32 %v2046_v56, %v775_v2  ;;  %v1774_v5 = vpop.f32.mrb[2].mxu1 }
 0x101   : > { %1602 = vst [vmem:[%s2035_s12] sm:$0xff] %v1601_v53   ;;  %v1026_v7 = vadd.f32 %v1774_v5, %v2046_v56  ;;  %v778_v8 = vpop.f32.mrb[3].mxu1 }
 0x102   : > { %1642 = vst [vmem:[%s2042_s16] sm:$0xff] %v1641_v54   ;;  %v672_v55 = vpop.f32.mrb[4].mxu0  ;;  %v1020_v9 = vadd.f32 %v2046_v56, %v778_v8 }
 0x103   : > { %v674_v57 = vpop.f32.mrb[5].mxu0  ;;  %v1021_v59 = vadd.f32 %v2024_v41, %v672_v55  ;;  %v1686_v11 = vpack.c.bf16 %v1026_v7, %v1023_v1 }
 0x104   : > { %v676_v58 = vpop.f32.mrb[6].mxu0  ;;  %v1022_v63 = vadd.f32 %v2026_v43, %v674_v57  ;;  %v1681_v13 = vpack.c.bf16 %v1020_v9, %v1017_v4 }
 0x105   : > { %v1024_v60 = vadd.f32 %v2024_v41, %v676_v58  ;;  %v678_v61 = vpop.f32.mrb[7].mxu0  ;;  %1732 = vst [vmem:[%s2060_s22 + $0x8] sm:$0xff] %v1686_v11  }
 0x106   : > { %v1025_v0 = vadd.f32 %v2026_v43, %v678_v61  ;;  %1682 = vst [vmem:[%s2060_s22] sm:$0xff] %v1681_v13   ;;  %v1777_v18 = vpop.f32.mrb[4].mxu1 }
 0x107   : > { %v1606_v3 = vpack.c.bf16 %v1024_v60, %v1021_v59  ;;  %v1035_v21 = vadd.f32 %v1777_v18, %v2046_v56  ;;  %v791_v22 = vpop.f32.mrb[5].mxu1 }
 0x108   : > { %v1646_v6 = vpack.c.bf16 %v1025_v0, %v1022_v63  ;;  %v1029_v24 = vadd.f32 %v2046_v56, %v791_v22  ;;  %v1778_v25 = vpop.f32.mrb[6].mxu1 }
 0x109   : > { %1718 = vst [vmem:[%s2035_s12 + $0x8] sm:$0xff] %v1606_v3   ;;  %v1038_v27 = vadd.f32 %v1778_v25, %v2046_v56  ;;  %v794_v28 = vpop.f32.mrb[7].mxu1 }
 0x10a   : > { %1725 = vst [vmem:[%s2042_s16 + $0x8] sm:$0xff] %v1646_v6   ;;  %v682_v10 = vpop.f32.mrb[8].mxu0  ;;  %v1032_v29 = vadd.f32 %v2046_v56, %v794_v28 }
 0x10b   : > { %v684_v12 = vpop.f32.mrb[9].mxu0  ;;  %v1027_v15 = vadd.f32 %v2024_v41, %v682_v10  ;;  %v1696_v31 = vpack.c.bf16 %v1038_v27, %v1035_v21 }
 0x10c   : > { %v686_v14 = vpop.f32.mrb[10].mxu0  ;;  %v1028_v19 = vadd.f32 %v2026_v43, %v684_v12  ;;  %v1691_v33 = vpack.c.bf16 %v1032_v29, %v1029_v24 }
 0x10d   : > { %v1030_v16 = vadd.f32 %v2024_v41, %v686_v14  ;;  %v688_v17 = vpop.f32.mrb[11].mxu0  ;;  %1734 = vst [vmem:[%s2060_s22 + $0x18] sm:$0xff] %v1696_v31  }
 0x10e   : > { %v1031_v20 = vadd.f32 %v2026_v43, %v688_v17  ;;  %1733 = vst [vmem:[%s2060_s22 + $0x10] sm:$0xff] %v1691_v33   ;;  %v1781_v38 = vpop.f32.mrb[8].mxu1 }
 0x10f   : > { %v1611_v23 = vpack.c.bf16 %v1030_v16, %v1027_v15  ;;  %v1047_v42 = vadd.f32 %v1781_v38, %v2046_v56  ;;  %v807_v44 = vpop.f32.mrb[9].mxu1 }
 0x110   : > { %v1651_v26 = vpack.c.bf16 %v1031_v20, %v1028_v19  ;;  %v1041_v46 = vadd.f32 %v2046_v56, %v807_v44  ;;  %v1782_v47 = vpop.f32.mrb[10].mxu1 }
 0x111   : > { %1719 = vst [vmem:[%s2035_s12 + $0x10] sm:$0xff] %v1611_v23   ;;  %v1050_v49 = vadd.f32 %v1782_v47, %v2046_v56  ;;  %v810_v50 = vpop.f32.mrb[11].mxu1 }
 0x112   : > { %1726 = vst [vmem:[%s2042_s16 + $0x10] sm:$0xff] %v1651_v26   ;;  %v692_v30 = vpop.f32.mrb[12].mxu0  ;;  %v1044_v51 = vadd.f32 %v2046_v56, %v810_v50 }
 0x113   : > { %v694_v32 = vpop.f32.mrb[13].mxu0  ;;  %v1033_v35 = vadd.f32 %v2024_v41, %v692_v30  ;;  %v1706_v53 = vpack.c.bf16 %v1050_v49, %v1047_v42 }
 0x114   : > { %v696_v34 = vpop.f32.mrb[14].mxu0  ;;  %v1034_v39 = vadd.f32 %v2026_v43, %v694_v32  ;;  %v1701_v55 = vpack.c.bf16 %v1044_v51, %v1041_v46 }
 0x115   : > { %v1036_v36 = vadd.f32 %v2024_v41, %v696_v34  ;;  %v698_v37 = vpop.f32.mrb[15].mxu0  ;;  %1736 = vst [vmem:[%s2060_s22 + $0x28] sm:$0xff] %v1706_v53  }
 0x116   : > { %v1037_v40 = vadd.f32 %v2026_v43, %v698_v37  ;;  %1735 = vst [vmem:[%s2060_s22 + $0x20] sm:$0xff] %v1701_v55   ;;  %v1785_v61 = vpop.f32.mrb[12].mxu1 }
 0x117   : > { %v1616_v45 = vpack.c.bf16 %v1036_v36, %v1033_v35  ;;  %v1059_v0 = vadd.f32 %v1785_v61, %v2046_v56  ;;  %v823_v1 = vpop.f32.mrb[13].mxu1 }
 0x118   : > { %v1656_v48 = vpack.c.bf16 %v1037_v40, %v1034_v39  ;;  %v1053_v3 = vadd.f32 %v2046_v56, %v823_v1  ;;  %v1786_v4 = vpop.f32.mrb[14].mxu1 }
 0x119   : > { %1720 = vst [vmem:[%s2035_s12 + $0x18] sm:$0xff] %v1616_v45   ;;  %v1062_v6 = vadd.f32 %v1786_v4, %v2046_v56  ;;  %v826_v7 = vpop.f32.mrb[15].mxu1 }
 0x11a   : > { %1727 = vst [vmem:[%s2042_s16 + $0x18] sm:$0xff] %v1656_v48   ;;  %v702_v52 = vpop.f32.mrb[16].mxu0  ;;  %v1056_v8 = vadd.f32 %v2046_v56, %v826_v7 }
 0x11b   : > { %v704_v54 = vpop.f32.mrb[17].mxu0  ;;  %v1039_v58 = vadd.f32 %v2024_v41, %v702_v52  ;;  %v1716_v10 = vpack.c.bf16 %v1062_v6, %v1059_v0 }
 0x11c   : > { %v706_v57 = vpop.f32.mrb[18].mxu0  ;;  %v1040_v62 = vadd.f32 %v2026_v43, %v704_v54  ;;  %v1711_v12 = vpack.c.bf16 %v1056_v8, %v1053_v3 }
 0x11d   : > { %v1042_v59 = vadd.f32 %v2024_v41, %v706_v57  ;;  %v708_v60 = vpop.f32.mrb[19].mxu0  ;;  %1738 = vst [vmem:[%s2060_s22 + $0x38] sm:$0xff] %v1716_v10  }
 0x11e   : > { %v1043_v63 = vadd.f32 %v2026_v43, %v708_v60  ;;  %1737 = vst [vmem:[%s2060_s22 + $0x30] sm:$0xff] %v1711_v12  }
 0x11f   : > { %v1621_v2 = vpack.c.bf16 %v1042_v59, %v1039_v58 }
 0x120   : > { %v1661_v5 = vpack.c.bf16 %v1043_v63, %v1040_v62 }
 0x121   : > { %1721 = vst [vmem:[%s2035_s12 + $0x20] sm:$0xff] %v1621_v2  }
 0x122   : > { %1728 = vst [vmem:[%s2042_s16 + $0x20] sm:$0xff] %v1661_v5   ;;  %v712_v9 = vpop.f32.mrb[20].mxu0 }
 0x123   : > { %v714_v11 = vpop.f32.mrb[21].mxu0  ;;  %v1045_v14 = vadd.f32 %v2024_v41, %v712_v9 }
 0x124   : > { %v716_v13 = vpop.f32.mrb[22].mxu0  ;;  %v1046_v17 = vadd.f32 %v2026_v43, %v714_v11 }
 0x125   : > { %v1048_v15 = vadd.f32 %v2024_v41, %v716_v13  ;;  %v718_v16 = vpop.f32.mrb[23].mxu0 }
 0x126   : > { %v1049_v56 = vadd.f32 %v2026_v43, %v718_v16 }
 0x127   : > { %v1626_v18 = vpack.c.bf16 %v1048_v15, %v1045_v14 }
 0x128   : > { %v1666_v19 = vpack.c.bf16 %v1049_v56, %v1046_v17 }
 0x129   : > { %1722 = vst [vmem:[%s2035_s12 + $0x28] sm:$0xff] %v1626_v18  }
 0x12a   : > { %1729 = vst [vmem:[%s2042_s16 + $0x28] sm:$0xff] %v1666_v19   ;;  %v722_v20 = vpop.f32.mrb[24].mxu0 }
 0x12b   : > { %v724_v21 = vpop.f32.mrb[25].mxu0  ;;  %v1051_v23 = vadd.f32 %v2024_v41, %v722_v20 }
 0x12c   : > { %v726_v22 = vpop.f32.mrb[26].mxu0  ;;  %v1052_v26 = vadd.f32 %v2026_v43, %v724_v21 }
 0x12d   : > { %v1054_v24 = vadd.f32 %v2024_v41, %v726_v22  ;;  %v728_v25 = vpop.f32.mrb[27].mxu0 }
 0x12e   : > { %v1055_v27 = vadd.f32 %v2026_v43, %v728_v25 }
 0x12f   : > { %v1631_v28 = vpack.c.bf16 %v1054_v24, %v1051_v23 }
 0x130   : > { %v1671_v29 = vpack.c.bf16 %v1055_v27, %v1052_v26 }
 0x131   : > { %1723 = vst [vmem:[%s2035_s12 + $0x30] sm:$0xff] %v1631_v28  }
 0x132   : > { %1730 = vst [vmem:[%s2042_s16 + $0x30] sm:$0xff] %v1671_v29   ;;  %v732_v30 = vpop.f32.mrb[28].mxu0 }
 0x133   : > { %v734_v31 = vpop.f32.mrb[29].mxu0  ;;  %v1057_v33 = vadd.f32 %v2024_v41, %v732_v30 }
 0x134   : > { %v736_v32 = vpop.f32.mrb[30].mxu0  ;;  %v1058_v36 = vadd.f32 %v2026_v43, %v734_v31 }
 0x135   : > { %v1060_v34 = vadd.f32 %v2024_v41, %v736_v32  ;;  %v738_v35 = vpop.f32.mrb[31].mxu0 }
 0x136   : > { %v1061_v37 = vadd.f32 %v2026_v43, %v738_v35 }
 0x137   : > { %v1636_v38 = vpack.c.bf16 %v1060_v34, %v1057_v33 }
 0x138   : > { %v1676_v39 = vpack.c.bf16 %v1061_v37, %v1058_v36 }
 0x139   : > { %1724 = vst [vmem:[%s2035_s12 + $0x38] sm:$0xff] %v1636_v38  }
 0x13a   : > { %1731 = vst [vmem:[%s2042_s16 + $0x38] sm:$0xff] %v1676_v39  }
 0x13b PF: > { %s16_s20 = sadd.s32 1, %s1874_s20   ;;  %s2135_s18 = smov %s1870_s19 }
 0x13c   : > { %p13_p5 = scmp.ge.s32.totalorder %s16_s20, 4   ;;  %s2136_s19 = smov %s2138_s21 }
 0x13e   :  { %15 = sbr.rel (!%p13_p5) target bundleno = 2 (0x2), region = 97 }

// kernel: bert_forward.13
= control target key start
LH: loop header
LB: loop body
LE: loop exit
PB: predicated region body
PF: predicated region fallthrough
CT: control target
= control target key end

     0   :  { %s3865_s15 = smov 0   ;;  %s3867_s16 = smov 0   ;;  %s5196_s0 = inlined_call_operand.vmem [shape: bf16[2,128,128], index: 0, kind: input, shape index: {}]   ;;  %s5197_s1 = inlined_call_operand.vmem [shape: bf16[2,128,128], index: 1, kind: input, shape index: {}]   ;;  %s5198_s2 = inlined_call_operand.vmem [shape: bf16[2,128,128], index: 2, kind: input, shape index: {}]   ;;  %s5199_s3 = inlined_call_operand.vmem [shape: f32[2,1,128], index: 3, kind: input, shape index: {}]   ;;  %s5200_s4 = inlined_call_operand.vmem [shape: bf16[2,128,128], index: 4, kind: output, shape index: {}]  }
   0x1   :  { %s3869_s17 = smov 0  }
   0x2 LB: > { %s26_s18 = sadd.s32 1, %s3831_s16  ;;  %p2794_p0 = scmp.ge.s32.totalorder %s3835_s17, 1  ;;  %s3835_s17 = sphi %s3869_s17, %s14_s17   ;;  %s3831_s16 = sphi %s3867_s16, %s5319_s16   ;;  %s3827_s15 = sphi %s3865_s15, %s5318_s15  }
   0x3   : > { %p28_p1 = scmp.ge.s32.totalorder %s26_s18, 2  ;;  %p211_p2 = scmp.lt.s32.totalorder %s3835_s17, 3 }
   0x5   : > { %s5321_s18 = smov (%p28_p1, %s26_s18), 0  ;;  %p212_p3 = pnand %p2794_p0, %p211_p2 }
   0x7   : > { %215 = sbr.rel (%p212_p3) target bundleno = 2279 (0x8e7), region = 36 }
   0xe   : > { %p259_p4 = scmp.lt.s32.totalorder %s3827_s15, 1  ;;  %vm421_vm0 = vcmask 261120   ;;  %s3837_s23 = smov 96   ;;  %vm2556_vm1 = vcmask 523264   ;;  %vm2573_vm2 = vcmask 785408  }
   0xf   : > { %s3838_s7 = smov 64   ;;  %s3839_s8 = smov 32  }
  0x10   : > { %s5323_s15 = smov (!%p259_p4, %s3827_s15), 1 }
  0x11   : > { %s3886_s19 = sshll.u32 %s5323_s15, 6  ;;  %s4056_s6 = scalar_lea.vmem %s5199_s3, %s5323_s15 }
  0x12   : > { %s3892_s22 = scalar_lea.vmem %s5197_s1, %s3886_s19  ;;  %s3917_s26 = scalar_lea.vmem %s5196_s0, %s3886_s19  ;;  %v4059_v33 = vld [vmem:[%s4056_s6] ss:$0 sm:$0xff] }
  0x13   : > { %v3895_v0 = vld [vmem:[%s3892_s22] sm:$0xff]   ;;  %v3898_v1 = vld [vmem:[%s3892_s22 + $0x8] sm:$0xff]   ;;  %v3911_v3 = vld [vmem:[%s3892_s22 + $0x10] sm:$0xff]   ;;  %s4006_s29 = scalar_lea.vmem %s5198_s2, %s3886_s19  ;;  %s5118_s11 = scalar_lea.vmem %s5200_s4, %s3886_s19 }
  0x14   : > { %3329 = vmatprep.subr.msk.bf16.mxu0 %vm421_vm0, %v3895_v0  ;;  %v447_v2 = vsel %vm421_vm0, %v3895_v0, 0  ;;  %918 = vrot.lane.b32.xlu0 %v3895_v0, %s3837_s23  ;;  %v450_v4 = vsel %vm421_vm0, %v3898_v1, 0  ;;  %v3924_v5 = vld [vmem:[%s3917_s26] sm:$0xff]   ;;  %v453_v6 = vsel %vm421_vm0, %v3911_v3, 0  ;;  %v3933_v7 = vld [vmem:[%s3892_s22 + $0x18] sm:$0xff]   ;;  %v3947_v11 = vld [vmem:[%s3892_s22 + $0x28] sm:$0xff]  }
  0x15   : > { %3074 = vmatpush3.bf16.xpose.msra.mxu0 %v447_v2  ;;  %920 = vrot.lane.b32.xlu1 %v3898_v1, %s3837_s23  ;;  %v456_v8 = vsel %vm421_vm0, %v3933_v7, 0  ;;  %v3940_v9 = vld [vmem:[%s3892_s22 + $0x20] sm:$0xff]   ;;  %v462_v12 = vsel %vm421_vm0, %v3947_v11, 0  ;;  %v3954_v13 = vld [vmem:[%s3892_s22 + $0x30] sm:$0xff]   ;;  %v3961_v15 = vld [vmem:[%s3892_s22 + $0x38] sm:$0xff]  }
  0x16   : > { %3330 = vmatprep.subr.msk.bf16.mxu0 %vm421_vm0, %v3898_v1  ;;  %3089 = vmatprep.mubr.msk.bf16.mxu0 %vm421_vm0, %v3924_v5  ;;  %v459_v10 = vsel %vm421_vm0, %v3940_v9, 0  ;;  %v465_v14 = vsel %vm421_vm0, %v3954_v13, 0  ;;  %v468_v16 = vsel %vm421_vm0, %v3961_v15, 0  ;;  %v3968_v17 = vld [vmem:[%s3917_s26 + $0x8] sm:$0xff]   ;;  %v3971_v18 = vld [vmem:[%s3917_s26 + $0x10] sm:$0xff]   ;;  %v3978_v19 = vld [vmem:[%s3917_s26 + $0x18] sm:$0xff]  }
  0x17   : > { %v3981_v20 = vld [vmem:[%s3917_s26 + $0x20] sm:$0xff]   ;;  %v3988_v21 = vld [vmem:[%s3917_s26 + $0x28] sm:$0xff]   ;;  %v3991_v22 = vld [vmem:[%s3917_s26 + $0x30] sm:$0xff]  }
  0x18   : > { %922 = vrot.lane.b32.xlu0 %v3911_v3, %s3837_s23  ;;  %v3998_v23 = vld [vmem:[%s3917_s26 + $0x38] sm:$0xff]   ;;  %v4009_v24 = vld [vmem:[%s4006_s29] sm:$0xff]   ;;  %v4014_v25 = vld [vmem:[%s4006_s29 + $0x8] sm:$0xff]  }
  0x19   : > { %3105 = vmatprep.subr.bf16.mxu1 %v4009_v24  ;;  %v4019_v26 = vld [vmem:[%s4006_s29 + $0x10] sm:$0xff]   ;;  %v4024_v27 = vld [vmem:[%s4006_s29 + $0x18] sm:$0xff]   ;;  %v4029_v28 = vld [vmem:[%s4006_s29 + $0x20] sm:$0xff]  }
  0x1a   : > { %3106 = vmatpush3.bf16.msra.mxu1 %v4009_v24  ;;  %v4034_v29 = vld [vmem:[%s4006_s29 + $0x28] sm:$0xff]   ;;  %v4039_v30 = vld [vmem:[%s4006_s29 + $0x30] sm:$0xff]   ;;  %v4042_v31 = vld [vmem:[%s4006_s29 + $0x38] sm:$0xff]  }
  0x1b   : > { %3107 = vmatprep.subr.bf16.mxu1 %v4014_v25 }
  0x1d   : > { %3076 = vmatpush3.bf16.xpose.msra.mxu0 %v450_v4 }
  0x1e   : > { %3331 = vmatprep.subr.msk.bf16.mxu0 %vm421_vm0, %v3911_v3  ;;  %3108 = vmatpush3.bf16.msra.mxu1 %v4014_v25 }
  0x1f   : > { %3109 = vmatprep.subr.bf16.mxu1 %v4019_v26 }
  0x22   : > { %3110 = vmatpush3.bf16.msra.mxu1 %v4019_v26 }
  0x23   : > { %3111 = vmatprep.subr.bf16.mxu1 %v4024_v27 }
  0x25   : > { %3078 = vmatpush3.bf16.xpose.msra.mxu0 %v453_v6 }
  0x26   : > { %3332 = vmatprep.subr.msk.bf16.mxu0 %vm421_vm0, %v3933_v7  ;;  %3112 = vmatpush3.bf16.msra.mxu1 %v4024_v27 }
  0x27   : > { %3113 = vmatprep.subr.bf16.mxu1 %v4029_v28 }
  0x2a   : > { %3114 = vmatpush3.bf16.msra.mxu1 %v4029_v28 }
  0x2b   : > { %3115 = vmatprep.subr.bf16.mxu1 %v4034_v29 }
  0x2d   : > { %3080 = vmatpush3.bf16.xpose.msra.mxu0 %v456_v8 }
  0x2e   : > { %3333 = vmatprep.subr.msk.bf16.mxu0 %vm421_vm0, %v3940_v9  ;;  %3116 = vmatpush3.bf16.msra.mxu1 %v4034_v29 }
  0x2f   : > { %3117 = vmatprep.subr.bf16.mxu1 %v4039_v30 }
  0x32   : > { %3118 = vmatpush3.bf16.msra.mxu1 %v4039_v30 }
  0x33   : > { %3119 = vmatprep.subr.bf16.mxu1 %v4042_v31 }
  0x35   : > { %3082 = vmatpush3.bf16.xpose.msra.mxu0 %v459_v10 }
  0x36   : > { %3334 = vmatprep.subr.msk.bf16.mxu0 %vm421_vm0, %v3947_v11  ;;  %3120 = vmatpush3.bf16.msra.mxu1 %v4042_v31 }
  0x3d   : > { %3084 = vmatpush3.bf16.xpose.msra.mxu0 %v462_v12 }
  0x3e   : > { %3335 = vmatprep.subr.msk.bf16.mxu0 %vm421_vm0, %v3954_v13 }
  0x45   : > { %3086 = vmatpush3.bf16.xpose.msra.mxu0 %v465_v14 }
  0x46   : > { %3336 = vmatprep.subr.msk.bf16.mxu0 %vm421_vm0, %v3961_v15 }
  0x4d   : > { %3088 = vmatpush3.bf16.xpose.msra.mxu0 %v468_v16 }
  0x54   : > { %3090 = vmatmul.mubr.msk.bf16.vlgmr.msra.gmra.mrb[0].mxu0 %vm421_vm0, %v3968_v17 }
  0x55   : > { %3093 = vmatprep.mubr.msk.bf16.mxu0 %vm421_vm0, %v3971_v18 }
  0x5c   : > { %3094 = vmatmul.mubr.msk.bf16.gmra.mrb[4].mxu0 %vm421_vm0, %v3978_v19 }
  0x5d   : > { %3097 = vmatprep.mubr.msk.bf16.mxu0 %vm421_vm0, %v3981_v20 }
  0x64   : > { %3098 = vmatmul.mubr.msk.bf16.gmra.mrb[8].mxu0 %vm421_vm0, %v3988_v21 }
  0x65   : > { %3101 = vmatprep.mubr.msk.bf16.mxu0 %vm421_vm0, %v3991_v22 }
  0x6c   : > { %3102 = vmatmul.mubr.msk.bf16.gmra.mrb[12].mxu0 %vm421_vm0, %v3998_v23 }
  0x86   : > { %v4047_v32 = vpop.permute.xlu0 %918 }
  0x87   : > { %3337 = vmatprep.subr.msk.bf16.mxu1 %vm421_vm0, %v4047_v32 }
 0x127   : > { %v3091_v34 = vpop.f32.mrb[0].mxu0 }
 0x128   : > { %v569_v35 = vmul.f32 0.17677669, %v3091_v34  ;;  %v504_v36 = vpop.f32.mrb[1].mxu0 }
 0x129   : > { %v567_v37 = vmul.f32 0.17677669, %v504_v36  ;;  %v3092_v38 = vpop.f32.mrb[2].mxu0 }
 0x12a   : > { %v570_v39 = vmul.f32 0.17677669, %v3092_v38  ;;  %v507_v40 = vpop.f32.mrb[3].mxu0  ;;  %v4062_v41 = vadd.f32 %v4059_v33, %v569_v35 }
 0x12b   : > { %v568_v42 = vmul.f32 0.17677669, %v507_v40  ;;  %v4065_v43 = vadd.f32 %v4059_v33, %v567_v37 }
 0x12c   : > { %609 = vmax.xlane.f32.xlu1 %v4062_v41  ;;  %v4070_v44 = vadd.f32 %v4059_v33, %v570_v39 }
 0x12d   : > { %605 = vmax.xlane.f32.xlu0 %v4065_v43  ;;  %v4073_v45 = vadd.f32 %v4059_v33, %v568_v42 }
 0x12f   : > { %v3095_v46 = vpop.f32.mrb[4].mxu0 }
 0x130   : > { %611 = vmax.xlane.f32.xlu1 %v4070_v44  ;;  %v520_v47 = vpop.f32.mrb[5].mxu0  ;;  %v573_v59 = vmul.f32 0.17677669, %v3095_v46 }
 0x131   : > { %607 = vmax.xlane.f32.xlu0 %v4073_v45  ;;  %v3096_v48 = vpop.f32.mrb[6].mxu0  ;;  %v571_v58 = vmul.f32 0.17677669, %v520_v47 }
 0x132   : > { %v523_v49 = vpop.f32.mrb[7].mxu0  ;;  %v574_v62 = vmul.f32 0.17677669, %v3096_v48  ;;  %v4085_v63 = vadd.f32 %v4059_v33, %v573_v59  ;;  %v921_v48 = vpop.permute.xlu1 %920 }
 0x133   : > { %v4082_v60 = vadd.f32 %v4059_v33, %v571_v58  ;;  %v572_v6 = vmul.f32 0.17677669, %v523_v49  ;;  %v923_v49 = vpop.permute.xlu0 %922 }
 0x134   : > { %v4093_v8 = vadd.f32 %v4059_v33, %v574_v62 }
 0x135   : > { %v4101_v16 = vadd.f32 %v4059_v33, %v572_v6 }
 0x137   : > { %v3099_v50 = vpop.f32.mrb[8].mxu0 }
 0x138   : > { %v536_v51 = vpop.f32.mrb[9].mxu0  ;;  %v577_v10 = vmul.f32 0.17677669, %v3099_v50 }
 0x139   : > { %v3100_v52 = vpop.f32.mrb[10].mxu0  ;;  %v575_v61 = vmul.f32 0.17677669, %v536_v51 }
 0x13a   : > { %v539_v53 = vpop.f32.mrb[11].mxu0  ;;  %v4105_v34 = vadd.f32 %v4059_v33, %v577_v10  ;;  %v578_v36 = vmul.f32 0.17677669, %v3100_v52  ;;  %v959_v10 = vsel %vm421_vm0, %v4047_v32, 0 }
 0x13b   : > { %v576_v2 = vmul.f32 0.17677669, %v539_v53  ;;  %v4090_v4 = vadd.f32 %v4059_v33, %v575_v61 }
 0x13c   : > { %v4114_v38 = vadd.f32 %v4059_v33, %v578_v36  ;;  %v965_v36 = vsel %vm421_vm0, %v923_v49, 0 }
 0x13d   : > { %v4098_v14 = vadd.f32 %v4059_v33, %v576_v2 }
 0x13f   : > { %v3103_v54 = vpop.f32.mrb[12].mxu0 }
 0x140   : > { %v552_v55 = vpop.f32.mrb[13].mxu0  ;;  %v581_v12 = vmul.f32 0.17677669, %v3103_v54 }
 0x141   : > { %924 = vrot.lane.b32.xlu1 %v3933_v7, %s3837_s23  ;;  %v3104_v56 = vpop.f32.mrb[14].mxu0  ;;  %v579_v37 = vmul.f32 0.17677669, %v552_v55 }
 0x142   : > { %v555_v57 = vpop.f32.mrb[15].mxu0  ;;  %v4109_v35 = vadd.f32 %v4059_v33, %v581_v12  ;;  %v582_v40 = vmul.f32 0.17677669, %v3104_v56  ;;  %v962_v12 = vsel %vm421_vm0, %v921_v48, 0 }
 0x143   : > { %v4118_v39 = vadd.f32 %v4059_v33, %v579_v37  ;;  %v580_v42 = vmul.f32 0.17677669, %v555_v57 }
 0x144   : > { %v4122_v46 = vadd.f32 %v4059_v33, %v582_v40 }
 0x145   : > { %v4126_v47 = vadd.f32 %v4059_v33, %v580_v42 }
 0x147   : > { %926 = vrot.lane.b32.xlu0 %v3940_v9, %s3837_s23 }
 0x165   : > { %613 = vmax.xlane.f32.xlu1 %v4082_v60 }
 0x166   : > { %617 = vmax.xlane.f32.xlu0 %v4085_v63 }
 0x169   : > { %619 = vmax.xlane.f32.xlu1 %v4093_v8 }
 0x16a   : > { %621 = vmax.xlane.f32.xlu0 %v4090_v4 }
 0x16d   : > { %615 = vmax.xlane.f32.xlu1 %v4101_v16 }
 0x16e   : > { %623 = vmax.xlane.f32.xlu0 %v4098_v14 }
 0x171   : > { %625 = vmax.xlane.f32.xlu1 %v4105_v34 }
 0x172   : > { %633 = vmax.xlane.f32.xlu0 %v4109_v35 }
 0x175   : > { %627 = vmax.xlane.f32.xlu1 %v4114_v38 }
 0x179   : > { %629 = vmax.xlane.f32.xlu1 %v4118_v39 }
 0x17d   : > { %635 = vmax.xlane.f32.xlu1 %v4122_v46 }
 0x181   : > { %631 = vmax.xlane.f32.xlu1 %v4126_v47 }
 0x188   : > { %930 = vrot.lane.b32.xlu0 %v3954_v13, %s3837_s23 }
 0x18c   : > { %932 = vrot.lane.b32.xlu0 %v3961_v15, %s3837_s23 }
 0x190   : > { %902 = vrot.lane.b32.xlu0 %v3924_v5, %s3837_s23 }
 0x192   : > { %928 = vrot.lane.b32.xlu1 %v3947_v11, %s3837_s23 }
 0x194   : > { %906 = vrot.lane.b32.xlu0 %v3971_v18, %s3837_s23 }
 0x196   : > { %904 = vrot.lane.b32.xlu1 %v3968_v17, %s3837_s23 }
 0x198   : > { %910 = vrot.lane.b32.xlu0 %v3981_v20, %s3837_s23 }
 0x19a   : > { %908 = vrot.lane.b32.xlu1 %v3978_v19, %s3837_s23 }
 0x19c   : > { %914 = vrot.lane.b32.xlu0 %v3991_v22, %s3837_s23 }
 0x19e   : > { %912 = vrot.lane.b32.xlu1 %v3988_v21, %s3837_s23 }
 0x1a0   : > { %1231 = vrot.lane.b32.xlu0 %v4009_v24, %s3837_s23 }
 0x1a2   : > { %916 = vrot.lane.b32.xlu1 %v3998_v23, %s3837_s23 }
 0x1a4   : > { %1235 = vrot.lane.b32.xlu0 %v4019_v26, %s3837_s23 }
 0x1a6   : > { %1233 = vrot.lane.b32.xlu1 %v4014_v25, %s3837_s23 }
 0x1a8   : > { %1243 = vrot.lane.b32.xlu0 %v4039_v30, %s3837_s23 }
 0x1aa   : > { %1237 = vrot.lane.b32.xlu1 %v4024_v27, %s3837_s23 }
 0x1ac   : > { %1400 = vrot.lane.b32.xlu0 %v3895_v0, %s3838_s7 }
 0x1ae   : > { %1239 = vrot.lane.b32.xlu1 %v4029_v28, %s3837_s23 }
 0x1b0   : > { %1402 = vrot.lane.b32.xlu0 %v3898_v1, %s3838_s7 }
 0x1b2   : > { %1241 = vrot.lane.b32.xlu1 %v4034_v29, %s3837_s23 }
 0x1b4   : > { %1406 = vrot.lane.b32.xlu0 %v3933_v7, %s3838_s7 }
 0x1b6   : > { %1245 = vrot.lane.b32.xlu1 %v4042_v31, %s3837_s23 }
 0x1b9   : > { %v610_v50 = vpop.xlane.xlu1 %609 }
 0x1ba   : > { %v606_v51 = vpop.xlane.xlu0 %605  ;;  %v639_v53 = vsub.f32 %v4062_v41, %v610_v50  ;;  %1404 = vrot.lane.b32.xlu1 %v3911_v3, %s3838_s7 }
 0x1bb   : > { %v637_v52 = vsub.f32 %v4065_v43, %v606_v51 }
 0x1bc   : > { %v657_v59 = vmul.f32 1.442695, %v639_v53 }
 0x1bd   : > { %v653_v54 = vmul.f32 1.442695, %v637_v52  ;;  %v612_v55 = vpop.xlane.xlu1 %611 }
 0x1be   : > { %v640_v56 = vsub.f32 %v4070_v44, %v612_v55  ;;  %v608_v57 = vpop.xlane.xlu0 %607 }
 0x1bf   : > { %v638_v58 = vsub.f32 %v4073_v45, %v608_v57  ;;  %3532 = vpow2.f32 %v653_v54 }
 0x1c0   : > { %v659_v61 = vmul.f32 1.442695, %v640_v56 }
 0x1c1   : > { %v655_v62 = vmul.f32 1.442695, %v638_v58  ;;  %v925_v37 = vpop.permute.xlu1 %924 }
 0x1c2   : > { %3534 = vpow2.f32 %v659_v61  ;;  %v968_v40 = vsel %vm421_vm0, %v925_v37, 0  ;;  %v927_v42 = vpop.permute.xlu0 %926 }
 0x1c3   : > { %3536 = vpow2.f32 %v655_v62  ;;  %v971_v32 = vsel %vm421_vm0, %v927_v42, 0 }
 0x1c4   : > { %3538 = vpow2.f32 %v657_v59 }
 0x1c9   : > { %v4171_v2 = vpop.eup %3532 }
 0x1cc   : > { %v4173_v6 = vpop.eup %3534 }
 0x1cd   : > { %v4175_v43 = vpop.eup %3536 }
 0x1ce   : > { %v4177_v41 = vpop.eup %3538  ;;  %v717_v44 = vpack.c.bf16 %v4175_v43, %v4171_v2 }
 0x1cf   : > { %v718_v45 = vpack.c.bf16 %v4173_v6, %v4177_v41 }
 0x1d0   : > { %3121 = vmatprep.mubr.bf16.mxu1 %v717_v44 }
 0x1d1   : > { %3122 = vmatmul.mubr.bf16.vlgmr.msra.gmra.mrb[0].mxu1 %v718_v45 }
 0x1d2   : > { %3138 = vmatpush3.bf16.xpose.msra.mxu1 %v959_v10 }
 0x1d3   : > { %3338 = vmatprep.subr.msk.bf16.mxu1 %vm421_vm0, %v921_v48 }
 0x1da   : > { %3140 = vmatpush3.bf16.xpose.msra.mxu1 %v962_v12 }
 0x1db   : > { %3339 = vmatprep.subr.msk.bf16.mxu1 %vm421_vm0, %v923_v49 }
 0x1e2   : > { %3142 = vmatpush3.bf16.xpose.msra.mxu1 %v965_v36 }
 0x1e3   : > { %3340 = vmatprep.subr.msk.bf16.mxu1 %vm421_vm0, %v925_v37 }
 0x1ea   : > { %3144 = vmatpush3.bf16.xpose.msra.mxu1 %v968_v40 }
 0x1eb   : > { %3341 = vmatprep.subr.msk.bf16.mxu1 %vm421_vm0, %v927_v42 }
 0x1f2   : > { %3146 = vmatpush3.bf16.xpose.msra.mxu1 %v971_v32  ;;  %v614_v50 = vpop.xlane.xlu1 %613 }
 0x1f3   : > { %v641_v48 = vsub.f32 %v4082_v60, %v614_v50  ;;  %v618_v51 = vpop.xlane.xlu0 %617 }
 0x1f4   : > { %v643_v52 = vsub.f32 %v4085_v63, %v618_v51 }
 0x1f5   : > { %v661_v53 = vmul.f32 1.442695, %v641_v48 }
 0x1f6   : > { %v620_v49 = vpop.xlane.xlu1 %619  ;;  %v665_v56 = vmul.f32 1.442695, %v643_v52 }
 0x1f7   : > { %v644_v54 = vsub.f32 %v4093_v8, %v620_v49  ;;  %v622_v55 = vpop.xlane.xlu0 %621  ;;  %3540 = vpow2.f32 %v661_v53 }
 0x1f8   : > { %v645_v57 = vsub.f32 %v4090_v4, %v622_v55  ;;  %3542 = vpow2.f32 %v665_v56 }
 0x1f9   : > { %v667_v58 = vmul.f32 1.442695, %v644_v54 }
 0x1fa   : > { %v669_v59 = vmul.f32 1.442695, %v645_v57  ;;  %v616_v61 = vpop.xlane.xlu1 %615 }
 0x1fb   : > { %v642_v62 = vsub.f32 %v4101_v16, %v616_v61  ;;  %v624_v44 = vpop.xlane.xlu0 %623  ;;  %3544 = vpow2.f32 %v667_v58 }
 0x1fc   : > { %v646_v60 = vsub.f32 %v4098_v14, %v624_v44  ;;  %3546 = vpow2.f32 %v669_v59 }
 0x1fd   : > { %v663_v63 = vmul.f32 1.442695, %v642_v62 }
 0x1fe   : > { %v671_v45 = vmul.f32 1.442695, %v646_v60  ;;  %v626_v10 = vpop.xlane.xlu1 %625 }
 0x1ff   : > { %3548 = vpow2.f32 %v663_v63  ;;  %v647_v8 = vsub.f32 %v4105_v34, %v626_v10  ;;  %v634_v34 = vpop.xlane.xlu0 %633 }
 0x200   : > { %3550 = vpow2.f32 %v671_v45  ;;  %v651_v55 = vsub.f32 %v4109_v35, %v634_v34 }
 0x201   : > { %v673_v4 = vmul.f32 1.442695, %v647_v8  ;;  %v4201_v37 = vpop.eup %3540 }
 0x202   : > { %v628_v12 = vpop.xlane.xlu1 %627  ;;  %v4203_v40 = vpop.eup %3542  ;;  %v681_v61 = vmul.f32 1.442695, %v651_v55 }
 0x203   : > { %v648_v36 = vsub.f32 %v4114_v38, %v628_v12  ;;  %3552 = vpow2.f32 %v673_v4  ;;  %v931_v60 = vpop.permute.xlu0 %930 }
 0x205   : > { %v675_v16 = vmul.f32 1.442695, %v648_v36  ;;  %v4205_v42 = vpop.eup %3544 }
 0x206   : > { %v630_v14 = vpop.xlane.xlu1 %629  ;;  %v4207_v32 = vpop.eup %3546  ;;  %v720_v53 = vpack.c.bf16 %v4205_v42, %v4203_v40 }
 0x207   : > { %3554 = vpow2.f32 %v675_v16  ;;  %v649_v48 = vsub.f32 %v4118_v39, %v630_v14  ;;  %v933_v45 = vpop.permute.xlu0 %932 }
 0x208   : > { %v980_v34 = vsel %vm421_vm0, %v933_v45, 0 }
 0x209   : > { %v4209_v50 = vpop.eup %3548  ;;  %v677_v56 = vmul.f32 1.442695, %v649_v48 }
 0x20a   : > { %v4212_v51 = vpop.eup %3550  ;;  %v636_v38 = vpop.xlane.xlu1 %635  ;;  %v719_v52 = vpack.c.bf16 %v4209_v50, %v4201_v37 }
 0x20b   : > { %5208 = vst [vmem:[#allocation2_spill] sm:$0xff] %v4212_v51  ;;  %v652_v49 = vsub.f32 %v4122_v46, %v636_v38  ;;  %v721_v54 = vpack.c.bf16 %v4212_v51, %v4207_v32  ;;  %3556 = vpow2.f32 %v677_v56  ;;  %v903_v14 = vpop.permute.xlu0 %902 }
 0x20c   : > { %3125 = vmatprep.mubr.bf16.mxu1 %v719_v52 }
 0x20d   : > { %3126 = vmatmul.mubr.bf16.gmra.mrb[4].mxu1 %v720_v53  ;;  %v683_v39 = vmul.f32 1.442695, %v652_v49  ;;  %v4223_v59 = vpop.eup %3552 }
 0x20e   : > { %3129 = vmatprep.mubr.bf16.mxu1 %v721_v54  ;;  %v632_v57 = vpop.xlane.xlu1 %631  ;;  %5209 = vst [vmem:[#allocation3_spill] sm:$0xff] %v4223_v59 }
 0x20f   : > { %v650_v58 = vsub.f32 %v4126_v47, %v632_v57  ;;  %3558 = vpow2.f32 %v683_v39  ;;  %v977_v47 = vsel %vm421_vm0, %v931_v60, 0  ;;  %v907_v38 = vpop.permute.xlu0 %906 }
 0x211   : > { %v4225_v46 = vpop.eup %3554  ;;  %v679_v62 = vmul.f32 1.442695, %v650_v58 }
 0x212   : > { %5210 = vst [vmem:[#allocation4_spill] sm:$0xff] %v4225_v46  ;;  %v929_v44 = vpop.permute.xlu1 %928  ;;  %v722_v35 = vpack.c.bf16 %v4225_v46, %v4223_v59 }
 0x213   : > { %3560 = vpow2.f32 %v679_v62  ;;  %3342 = vmatprep.subr.msk.bf16.mxu1 %vm421_vm0, %v929_v44  ;;  %v974_v63 = vsel %vm421_vm0, %v929_v44, 0  ;;  %v911_v49 = vpop.permute.xlu0 %910 }
 0x214   : > { %3562 = vpow2.f32 %v681_v61  ;;  %3148 = vmatpush3.bf16.xpose.msra.mxu1 %v974_v63 }
 0x215   : > { %3130 = vmatmul.mubr.bf16.gmra.mrb[8].mxu1 %v722_v35  ;;  %3343 = vmatprep.subr.msk.bf16.mxu1 %vm421_vm0, %v931_v60  ;;  %v4233_v10 = vpop.eup %3556 }
 0x216   : > { %5211 = vst [vmem:[#allocation5_spill] sm:$0xff] %v4233_v10  ;;  %v905_v48 = vpop.permute.xlu1 %904 }
 0x217   : > { %v915_v53 = vpop.permute.xlu0 %914 }
 0x219   : > { %v4235_v8 = vpop.eup %3558 }
 0x21a   : > { %5212 = vst [vmem:[#allocation6_spill] sm:$0xff] %v4235_v8  ;;  %v909_v52 = vpop.permute.xlu1 %908 }
 0x21b   : > { %v1232_v56 = vpop.permute.xlu0 %1231 }
 0x21c   : > { %3150 = vmatpush3.bf16.xpose.msra.mxu1 %v977_v47  ;;  %3169 = vmatprep.subr.bf16.mxu0 %v1232_v56 }
 0x21d   : > { %v4237_v4 = vpop.eup %3560  ;;  %3344 = vmatprep.subr.msk.bf16.mxu1 %vm421_vm0, %v933_v45  ;;  %3170 = vmatpush3.bf16.msra.mxu0 %v1232_v56 }
 0x21e   : > { %5213 = vst [vmem:[#allocation7_spill] sm:$0xff] %v4237_v4  ;;  %v4240_v12 = vpop.eup %3562  ;;  %v723_v36 = vpack.c.bf16 %v4237_v4, %v4233_v10  ;;  %v913_v0 = vpop.permute.xlu1 %912 }
 0x21f   : > { %5214 = vst [vmem:[#allocation8_spill] sm:$0xff] %v4240_v12  ;;  %v724_v16 = vpack.c.bf16 %v4235_v8, %v4240_v12  ;;  %v1236_v57 = vpop.permute.xlu0 %1235 }
 0x220   : > { %3133 = vmatprep.mubr.bf16.mxu1 %v723_v36 }
 0x221   : > { %3134 = vmatmul.mubr.bf16.gmra.mrb[12].mxu1 %v724_v16 }
 0x222   : > { %3153 = vmatprep.mubr.msk.bf16.mxu1 %vm421_vm0, %v903_v14  ;;  %v917_v3 = vpop.permute.xlu1 %916 }
 0x223   : > { %v1244_v44 = vpop.permute.xlu0 %1243 }
 0x224   : > { %3152 = vmatpush3.bf16.xpose.msra.mxu1 %v980_v34 }
 0x226   : > { %v1234_v39 = vpop.permute.xlu1 %1233 }
 0x227   : > { %3171 = vmatprep.subr.bf16.mxu0 %v1234_v39  ;;  %v4271_v60 = vpop.permute.xlu0 %1400 }
 0x228   : > { %3172 = vmatpush3.bf16.msra.mxu0 %v1234_v39 }
 0x229   : > { %3173 = vmatprep.subr.bf16.mxu0 %v1236_v57 }
 0x22a   : > { %v1238_v58 = vpop.permute.xlu1 %1237 }
 0x22b   : > { %3154 = vmatmul.mubr.msk.bf16.vlgmr.msra.gmra.mrb[16].mxu1 %vm421_vm0, %v905_v48 }
 0x22c   : > { %3157 = vmatprep.mubr.msk.bf16.mxu1 %vm421_vm0, %v907_v38  ;;  %3174 = vmatpush3.bf16.msra.mxu0 %v1236_v57 }
 0x22d   : > { %3175 = vmatprep.subr.bf16.mxu0 %v1238_v58 }
 0x22e   : > { %v1240_v61 = vpop.permute.xlu1 %1239 }
 0x230   : > { %3176 = vmatpush3.bf16.msra.mxu0 %v1238_v58 }
 0x231   : > { %3177 = vmatprep.subr.bf16.mxu0 %v1240_v61 }
 0x232   : > { %v1242_v62 = vpop.permute.xlu1 %1241 }
 0x233   : > { %3158 = vmatmul.mubr.msk.bf16.gmra.mrb[20].mxu1 %vm421_vm0, %v909_v52 }
 0x234   : > { %3161 = vmatprep.mubr.msk.bf16.mxu1 %vm421_vm0, %v911_v49  ;;  %3178 = vmatpush3.bf16.msra.mxu0 %v1240_v61 }
 0x235   : > { %3179 = vmatprep.subr.bf16.mxu0 %v1242_v62 }
 0x236   : > { %v1246_v35 = vpop.permute.xlu1 %1245 }
 0x238   : > { %3180 = vmatpush3.bf16.msra.mxu0 %v1242_v62 }
 0x239   : > { %3181 = vmatprep.subr.bf16.mxu0 %v1244_v44 }
 0x23b   : > { %3162 = vmatmul.mubr.msk.bf16.gmra.mrb[24].mxu1 %vm421_vm0, %v913_v0 }
 0x23c   : > { %3165 = vmatprep.mubr.msk.bf16.mxu1 %vm421_vm0, %v915_v53  ;;  %3182 = vmatpush3.bf16.msra.mxu0 %v1244_v44 }
 0x23d   : > { %3183 = vmatprep.subr.bf16.mxu0 %v1246_v35 }
 0x240   : > { %3184 = vmatpush3.bf16.msra.mxu0 %v1246_v35 }
 0x241   : > { %3345 = vmatprep.subr.msk.bf16.mxu0 %vm421_vm0, %v4271_v60 }
 0x243   : > { %3166 = vmatmul.mubr.msk.bf16.gmra.mrb[28].mxu1 %vm421_vm0, %v917_v3 }
 0x2a4   : > { %v4263_v54 = vpop.f32.mrb[0].mxu1 }
 0x2a5   : > { %5215 = vst [vmem:[#allocation9_spill] sm:$0xff] %v4263_v54  ;;  %v4265_v1 = vpop.f32.mrb[1].mxu1 }
 0x2a6   : > { %5216 = vst [vmem:[#allocation10_spill] sm:$0xff] %v4265_v1  ;;  %v4267_v55 = vpop.f32.mrb[2].mxu1 }
 0x2a7   : > { %5217 = vst [vmem:[#allocation11_spill] sm:$0xff] %v4267_v55  ;;  %v4269_v7 = vpop.f32.mrb[3].mxu1 }
 0x2a8   : > { %5218 = vst [vmem:[#allocation12_spill] sm:$0xff] %v4269_v7 }
 0x2e0   : > { %v4275_v63 = vpop.f32.mrb[4].mxu1 }
 0x2e1   : > { %5219 = vst [vmem:[#allocation13_spill] sm:$0xff] %v4275_v63  ;;  %v4277_v47 = vpop.f32.mrb[5].mxu1 }
 0x2e2   : > { %5220 = vst [vmem:[#allocation14_spill] sm:$0xff] %v4277_v47  ;;  %v4279_v45 = vpop.f32.mrb[6].mxu1 }
 0x2e3   : > { %5221 = vst [vmem:[#allocation15_spill] sm:$0xff] %v4279_v45  ;;  %v4281_v36 = vpop.f32.mrb[7].mxu1 }
 0x2e4   : > { %5222 = vst [vmem:[#allocation16_spill] sm:$0xff] %v4281_v36 }
 0x2e8   : > { %v4283_v16 = vpop.f32.mrb[8].mxu1 }
 0x2e9   : > { %5223 = vst [vmem:[#allocation17_spill] sm:$0xff] %v4283_v16  ;;  %v4285_v14 = vpop.f32.mrb[9].mxu1 }
 0x2ea   : > { %5224 = vst [vmem:[#allocation18_spill] sm:$0xff] %v4285_v14  ;;  %v4287_v34 = vpop.f32.mrb[10].mxu1 }
 0x2eb   : > { %5225 = vst [vmem:[#allocation19_spill] sm:$0xff] %v4287_v34  ;;  %v4289_v48 = vpop.f32.mrb[11].mxu1 }
 0x2ec   : > { %5226 = vst [vmem:[#allocation20_spill] sm:$0xff] %v4289_v48 }
 0x2f4   : > { %v4291_v38 = vpop.f32.mrb[12].mxu1 }
 0x2f5   : > { %5227 = vst [vmem:[#allocation21_spill] sm:$0xff] %v4291_v38  ;;  %v4293_v52 = vpop.f32.mrb[13].mxu1 }
 0x2f6   : > { %5228 = vst [vmem:[#allocation22_spill] sm:$0xff] %v4293_v52  ;;  %v4295_v49 = vpop.f32.mrb[14].mxu1 }
 0x2f7   : > { %5229 = vst [vmem:[#allocation23_spill] sm:$0xff] %v4295_v49  ;;  %v4297_v0 = vpop.f32.mrb[15].mxu1 }
 0x2f8   : > { %5230 = vst [vmem:[#allocation24_spill] sm:$0xff] %v4297_v0 }
 0x2fe   : > { %v3155_v53 = vpop.f32.mrb[16].mxu1 }
 0x2ff   : > { %v1081_v3 = vmul.f32 0.17677669, %v3155_v53  ;;  %v1016_v56 = vpop.f32.mrb[17].mxu1 }
 0x300   : > { %v3156_v39 = vpop.f32.mrb[18].mxu1  ;;  %v1079_v57 = vmul.f32 0.17677669, %v1016_v56 }
 0x301   : > { %v1019_v58 = vpop.f32.mrb[19].mxu1  ;;  %v4300_v61 = vadd.f32 %v4059_v33, %v1081_v3  ;;  %v1082_v35 = vmul.f32 0.17677669, %v3156_v39 }
 0x302   : > { %v1080_v62 = vmul.f32 0.17677669, %v1019_v58  ;;  %v4307_v16 = vadd.f32 %v4059_v33, %v1079_v57 }
 0x303   : > { %1115 = vmax.xlane.f32.xlu0 %v4300_v61  ;;  %v4312_v58 = vadd.f32 %v4059_v33, %v1082_v35 }
 0x304   : > { %v4304_v44 = vadd.f32 %v4059_v33, %v1080_v62 }
 0x306   : > { %1113 = vmax.xlane.f32.xlu1 %v4304_v44  ;;  %v3159_v53 = vpop.f32.mrb[20].mxu1 }
 0x307   : > { %v1085_v38 = vmul.f32 0.17677669, %v3159_v53  ;;  %1111 = vmax.xlane.f32.xlu0 %v4307_v16  ;;  %v1032_v56 = vpop.f32.mrb[21].mxu1 }
 0x308   : > { %v3160_v52 = vpop.f32.mrb[22].mxu1  ;;  %v1083_v3 = vmul.f32 0.17677669, %v1032_v56 }
 0x309   : > { %v1035_v49 = vpop.f32.mrb[23].mxu1  ;;  %v4315_v62 = vadd.f32 %v4059_v33, %v1085_v38  ;;  %v1086_v53 = vmul.f32 0.17677669, %v3160_v52 }
 0x30a   : > { %v1084_v39 = vmul.f32 0.17677669, %v1035_v49  ;;  %v4323_v0 = vadd.f32 %v4059_v33, %v1083_v3 }
 0x30b   : > { %1117 = vmax.xlane.f32.xlu0 %v4312_v58  ;;  %1123 = vmax.xlane.f32.xlu1 %v4315_v62  ;;  %v4328_v45 = vadd.f32 %v4059_v33, %v1086_v53 }
 0x30c   : > { %v4320_v57 = vadd.f32 %v4059_v33, %v1084_v39 }
 0x30e   : > { %v3163_v56 = vpop.f32.mrb[24].mxu1 }
 0x30f   : > { %v1089_v34 = vmul.f32 0.17677669, %v3163_v56  ;;  %1119 = vmax.xlane.f32.xlu1 %v4323_v0  ;;  %1121 = vmax.xlane.f32.xlu0 %v4320_v57  ;;  %v1048_v38 = vpop.f32.mrb[25].mxu1 }
 0x310   : > { %v3164_v35 = vpop.f32.mrb[26].mxu1  ;;  %v1087_v49 = vmul.f32 0.17677669, %v1048_v38 }
 0x311   : > { %v1051_v48 = vpop.f32.mrb[27].mxu1  ;;  %v4331_v39 = vadd.f32 %v4059_v33, %v1089_v34  ;;  %v1090_v52 = vmul.f32 0.17677669, %v3164_v35 }
 0x312   : > { %v4336_v3 = vadd.f32 %v4059_v33, %v1087_v49  ;;  %v1088_v7 = vmul.f32 0.17677669, %v1051_v48 }
 0x313   : > { %1125 = vmax.xlane.f32.xlu1 %v4328_v45  ;;  %1131 = vmax.xlane.f32.xlu0 %v4331_v39  ;;  %v4340_v14 = vadd.f32 %v4059_v33, %v1090_v52 }
 0x314   : > { %v4348_v49 = vadd.f32 %v4059_v33, %v1088_v7 }
 0x316   : > { %v3167_v56 = vpop.f32.mrb[28].mxu1 }
 0x317   : > { %1127 = vmax.xlane.f32.xlu1 %v4336_v3  ;;  %v1064_v36 = vpop.f32.mrb[29].mxu1  ;;  %v1093_v35 = vmul.f32 0.17677669, %v3167_v56 }
 0x318   : > { %v1091_v38 = vmul.f32 0.17677669, %v1064_v36  ;;  %v3168_v55 = vpop.f32.mrb[30].mxu1 }
 0x319   : > { %v1067_v53 = vpop.f32.mrb[31].mxu1  ;;  %v1094_v36 = vmul.f32 0.17677669, %v3168_v55  ;;  %v4352_v48 = vadd.f32 %v4059_v33, %v1093_v35 }
 0x31a   : > { %v4343_v34 = vadd.f32 %v4059_v33, %v1091_v38  ;;  %v1092_v55 = vmul.f32 0.17677669, %v1067_v53 }
 0x31b   : > { %1133 = vmax.xlane.f32.xlu1 %v4340_v14  ;;  %v4356_v52 = vadd.f32 %v4059_v33, %v1094_v36 }
 0x31c   : > { %1135 = vmax.xlane.f32.xlu0 %v4343_v34 }
 0x31f   : > { %1129 = vmax.xlane.f32.xlu1 %v4348_v49 }
 0x323   : > { %1139 = vmax.xlane.f32.xlu1 %v4352_v48 }
 0x327   : > { %1141 = vmax.xlane.f32.xlu1 %v4356_v52 }
 0x332   : > { %1410 = vrot.lane.b32.xlu0 %v3947_v11, %s3838_s7  ;;  %v4374_v11 = vadd.f32 %v4059_v33, %v1092_v55 }
 0x338   : > { %1408 = vrot.lane.b32.xlu1 %v3940_v9, %s3838_s7  ;;  %v4401_v9 = vpop.permute.xlu0 %1402 }
 0x33c   : > { %1386 = vrot.lane.b32.xlu1 %v3968_v17, %s3838_s7 }
 0x340   : > { %1390 = vrot.lane.b32.xlu1 %v3978_v19, %s3838_s7 }
 0x344   : > { %1394 = vrot.lane.b32.xlu1 %v3988_v21, %s3838_s7 }
 0x348   : > { %1398 = vrot.lane.b32.xlu1 %v3998_v23, %s3838_s7 }
 0x34c   : > { %1715 = vrot.lane.b32.xlu1 %v4014_v25, %s3838_s7 }
 0x350   : > { %1719 = vrot.lane.b32.xlu1 %v4024_v27, %s3838_s7 }
 0x351   : > { %1137 = vmax.xlane.f32.xlu0 %v4374_v11 }
 0x354   : > { %1721 = vrot.lane.b32.xlu1 %v4029_v28, %s3838_s7 }
 0x358   : > { %1723 = vrot.lane.b32.xlu1 %v4034_v29, %s3838_s7 }
 0x35c   : > { %1727 = vrot.lane.b32.xlu1 %v4042_v31, %s3838_s7 }
 0x367   : > { %1412 = vrot.lane.b32.xlu0 %v3954_v13, %s3838_s7  ;;  %v4407_v13 = vpop.permute.xlu1 %1404 }
 0x36b   : > { %1414 = vrot.lane.b32.xlu0 %v3961_v15, %s3838_s7 }
 0x36f   : > { %1384 = vrot.lane.b32.xlu0 %v3924_v5, %s3838_s7  ;;  %v4405_v5 = vpop.permute.xlu0 %1406 }
 0x373   : > { %1388 = vrot.lane.b32.xlu0 %v3971_v18, %s3838_s7 }
 0x377   : > { %1392 = vrot.lane.b32.xlu0 %v3981_v20, %s3838_s7 }
 0x37b   : > { %1396 = vrot.lane.b32.xlu0 %v3991_v22, %s3838_s7 }
 0x37f   : > { %1713 = vrot.lane.b32.xlu0 %v4009_v24, %s3838_s7 }
 0x383   : > { %1717 = vrot.lane.b32.xlu0 %v4019_v26, %s3838_s7 }
 0x387   : > { %1725 = vrot.lane.b32.xlu0 %v4039_v30, %s3838_s7 }
 0x390   : > { %v1116_v15 = vpop.xlane.xlu0 %1115 }
 0x391   : > { %v1145_v18 = vsub.f32 %v4300_v61, %v1116_v15 }
 0x393   : > { %v1114_v17 = vpop.xlane.xlu1 %1113  ;;  %v1163_v24 = vmul.f32 1.442695, %v1145_v18 }
 0x394   : > { %v1144_v19 = vsub.f32 %v4304_v44, %v1114_v17  ;;  %v1112_v20 = vpop.xlane.xlu0 %1111 }
 0x395   : > { %v1143_v21 = vsub.f32 %v4307_v16, %v1112_v20  ;;  %v1441_v20 = vsel %vm421_vm0, %v4271_v60, 0 }
 0x396   : > { %v1161_v22 = vmul.f32 1.442695, %v1144_v19 }
 0x397   : > { %v1159_v23 = vmul.f32 1.442695, %v1143_v21 }
 0x398   : > { %3564 = vpow2.f32 %v1161_v22  ;;  %v1118_v25 = vpop.xlane.xlu0 %1117  ;;  %v1124_v26 = vpop.xlane.xlu1 %1123 }
 0x399   : > { %3566 = vpow2.f32 %v1159_v23  ;;  %v1146_v27 = vsub.f32 %v4312_v58, %v1118_v25  ;;  %v1149_v31 = vsub.f32 %v4315_v62, %v1124_v26 }
 0x39a   : > { %3568 = vpow2.f32 %v1163_v24 }
 0x39b   : > { %v1165_v28 = vmul.f32 1.442695, %v1146_v27  ;;  %v1171_v56 = vmul.f32 1.442695, %v1149_v31 }
 0x39c   : > { %v1122_v29 = vpop.xlane.xlu0 %1121  ;;  %v1120_v30 = vpop.xlane.xlu1 %1119 }
 0x39d   : > { %3570 = vpow2.f32 %v1165_v28  ;;  %v1148_v33 = vsub.f32 %v4320_v57, %v1122_v29  ;;  %v1147_v7 = vsub.f32 %v4323_v0, %v1120_v30 }
 0x39f   : > { %v1169_v16 = vmul.f32 1.442695, %v1148_v33  ;;  %v1167_v61 = vmul.f32 1.442695, %v1147_v7  ;;  %v1447_v7 = vsel %vm421_vm0, %v4407_v13, 0 }
 0x3a0   : > { %v1126_v44 = vpop.xlane.xlu1 %1125  ;;  %v1132_v55 = vpop.xlane.xlu0 %1131 }
 0x3a1   : > { %3572 = vpow2.f32 %v1169_v16  ;;  %v1150_v38 = vsub.f32 %v4328_v45, %v1126_v44  ;;  %v1153_v19 = vsub.f32 %v4331_v39, %v1132_v55 }
 0x3a2   : > { %v4417_v53 = vpop.eup %3564  ;;  %3574 = vpow2.f32 %v1167_v61 }
 0x3a3   : > { %v4419_v58 = vpop.eup %3566  ;;  %v1173_v35 = vmul.f32 1.442695, %v1150_v38  ;;  %3576 = vpow2.f32 %v1171_v56  ;;  %v1179_v39 = vmul.f32 1.442695, %v1153_v19  ;;  %v1450_v38 = vsel %vm421_vm0, %v4405_v5, 0 }
 0x3a4   : > { %v1128_v36 = vpop.xlane.xlu1 %1127  ;;  %v1223_v62 = vpack.c.bf16 %v4417_v53, %v4419_v58  ;;  %v4423_v57 = vpop.eup %3568 }
 0x3a5   : > { %3578 = vpow2.f32 %v1173_v35  ;;  %v1151_v45 = vsub.f32 %v4336_v3, %v1128_v36 }
 0x3a6   : > { %3185 = vmatprep.mubr.bf16.mxu0 %v1223_v62 }
 0x3a7   : > { %v4425_v0 = vpop.eup %3570  ;;  %v1175_v22 = vmul.f32 1.442695, %v1151_v45 }
 0x3a8   : > { %v1134_v15 = vpop.xlane.xlu1 %1133  ;;  %v1224_v17 = vpack.c.bf16 %v4425_v0, %v4423_v57 }
 0x3a9   : > { %v1154_v18 = vsub.f32 %v4340_v14, %v1134_v15  ;;  %3580 = vpow2.f32 %v1175_v22 }
 0x3aa   : > { %3186 = vmatmul.mubr.bf16.vlgmr.msra.gmra.mrb[16].mxu0 %v1224_v17 }
 0x3ab   : > { %v4434_v21 = vpop.eup %3572  ;;  %3202 = vmatpush3.bf16.xpose.msra.mxu0 %v1441_v20  ;;  %v1181_v24 = vmul.f32 1.442695, %v1154_v18 }
 0x3ac   : > { %v4436_v23 = vpop.eup %3574  ;;  %3346 = vmatprep.subr.msk.bf16.mxu0 %vm421_vm0, %v4401_v9  ;;  %v1130_v3 = vpop.xlane.xlu1 %1129 }
 0x3ad   : > { %v1152_v25 = vsub.f32 %v4348_v49, %v1130_v3  ;;  %v1225_v14 = vpack.c.bf16 %v4434_v21, %v4436_v23  ;;  %v4443_v26 = vpop.eup %3576  ;;  %3582 = vpow2.f32 %v1181_v24  ;;  %v1444_v49 = vsel %vm421_vm0, %v4401_v9, 0 }
 0x3af   : > { %v1177_v60 = vmul.f32 1.442695, %v1152_v25  ;;  %3189 = vmatprep.mubr.bf16.mxu0 %v1225_v14  ;;  %v4445_v27 = vpop.eup %3578 }
 0x3b0   : > { %v1226_v28 = vpack.c.bf16 %v4445_v27, %v4443_v26  ;;  %v1140_v29 = vpop.xlane.xlu1 %1139 }
 0x3b1   : > { %3584 = vpow2.f32 %v1177_v60  ;;  %v1157_v15 = vsub.f32 %v4352_v48, %v1140_v29 }
 0x3b2   : > { %3586 = vpow2.f32 %v1179_v39  ;;  %3190 = vmatmul.mubr.bf16.gmra.mrb[20].mxu0 %v1226_v28 }
 0x3b3   : > { %3204 = vmatpush3.bf16.xpose.msra.mxu0 %v1444_v49  ;;  %v4453_v30 = vpop.eup %3580  ;;  %v1187_v20 = vmul.f32 1.442695, %v1157_v15 }
 0x3b4   : > { %3347 = vmatprep.subr.msk.bf16.mxu0 %vm421_vm0, %v4407_v13  ;;  %v1142_v44 = vpop.xlane.xlu1 %1141  ;;  %v1136_v13 = vpop.xlane.xlu0 %1135 }
 0x3b5   : > { %v1155_v55 = vsub.f32 %v4343_v34, %v1136_v13  ;;  %v1158_v45 = vsub.f32 %v4356_v52, %v1142_v44  ;;  %v3789_v13 = vld [vmem:[%s3892_s22 + $0x10] sm:$0xff]  }
 0x3b6   : > { %1886 = vrot.lane.b32.xlu1 %v3789_v13, %s3839_s8 }
 0x3b7   : > { %v4455_v31 = vpop.eup %3582  ;;  %v1189_v17 = vmul.f32 1.442695, %v1158_v45 }
 0x3b8   : > { %v1409_v56 = vpop.permute.xlu1 %1408  ;;  %v1411_v36 = vpop.permute.xlu0 %1410 }
 0x3b9   : > { %v1453_v35 = vsel %vm421_vm0, %v1409_v56, 0  ;;  %v1456_v62 = vsel %vm421_vm0, %v1411_v36, 0 }
 0x3bb   : > { %v4457_v33 = vpop.eup %3584  ;;  %3206 = vmatpush3.bf16.xpose.msra.mxu0 %v1447_v7 }
 0x3bc   : > { %v4461_v16 = vpop.eup %3586  ;;  %v1227_v9 = vpack.c.bf16 %v4457_v33, %v4453_v30  ;;  %3348 = vmatprep.subr.msk.bf16.mxu0 %vm421_vm0, %v4405_v5  ;;  %v1183_v5 = vmul.f32 1.442695, %v1155_v55  ;;  %v1387_v49 = vpop.permute.xlu1 %1386 }
 0x3bd   : > { %v1228_v61 = vpack.c.bf16 %v4455_v31, %v4461_v16 }
 0x3be   : > { %3193 = vmatprep.mubr.bf16.mxu0 %v1227_v9  ;;  %3588 = vpow2.f32 %v1183_v5 }
 0x3bf   : > { %3194 = vmatmul.mubr.bf16.gmra.mrb[24].mxu0 %v1228_v61  ;;  %3590 = vpow2.f32 %v1189_v17 }
 0x3c0   : > { %v1391_v7 = vpop.permute.xlu1 %1390 }
 0x3c3   : > { %3208 = vmatpush3.bf16.xpose.msra.mxu0 %v1450_v38  ;;  %v3788_v38 = vld [vmem:[%s3892_s22] sm:$0xff]  }
 0x3c4   : > { %3349 = vmatprep.subr.msk.bf16.mxu0 %vm421_vm0, %v1409_v56  ;;  %v1395_v61 = vpop.permute.xlu1 %1394  ;;  %1882 = vrot.lane.b32.xlu0 %v3788_v38, %s3839_s8 }
 0x3c8   : > { %v4483_v52 = vpop.eup %3588  ;;  %v1399_v56 = vpop.permute.xlu1 %1398 }
 0x3cb   : > { %3210 = vmatpush3.bf16.xpose.msra.mxu0 %v1453_v35  ;;  %v3790_v35 = vld [vmem:[%s3892_s22 + $0x8] sm:$0xff]  }
 0x3cc   : > { %3350 = vmatprep.subr.msk.bf16.mxu0 %vm421_vm0, %v1411_v36  ;;  %1884 = vrot.lane.b32.xlu0 %v3790_v35, %s3839_s8  ;;  %v3791_v36 = vld [vmem:[%s3892_s22 + $0x18] sm:$0xff]   ;;  %v1716_v17 = vpop.permute.xlu1 %1715 }
 0x3d0   : > { %1888 = vrot.lane.b32.xlu0 %v3791_v36, %s3839_s8 }
 0x3d3   : > { %3212 = vmatpush3.bf16.xpose.msra.mxu0 %v1456_v62 }
 0x3de   : > { %v1138_v18 = vpop.xlane.xlu0 %1137 }
 0x3df   : > { %v1156_v19 = vsub.f32 %v4374_v11, %v1138_v18  ;;  %v4485_v11 = vpop.eup %3590 }
 0x3e1   : > { %v1185_v22 = vmul.f32 1.442695, %v1156_v19  ;;  %v1720_v19 = vpop.permute.xlu1 %1719 }
 0x3e2   : > { %v1413_v24 = vpop.permute.xlu0 %1412 }
 0x3e3   : > { %3592 = vpow2.f32 %v1185_v22  ;;  %3351 = vmatprep.subr.msk.bf16.mxu0 %vm421_vm0, %v1413_v24  ;;  %v1459_v3 = vsel %vm421_vm0, %v1413_v24, 0 }
 0x3e4   : > { %3594 = vpow2.f32 %v1187_v20  ;;  %3214 = vmatpush3.bf16.xpose.msra.mxu0 %v1459_v3 }
 0x3e6   : > { %v1415_v34 = vpop.permute.xlu0 %1414 }
 0x3e7   : > { %3352 = vmatprep.subr.msk.bf16.mxu0 %vm421_vm0, %v1415_v34  ;;  %v1462_v48 = vsel %vm421_vm0, %v1415_v34, 0  ;;  %v1722_v34 = vpop.permute.xlu1 %1721 }
 0x3ea   : > { %v1385_v28 = vpop.permute.xlu0 %1384 }
 0x3ec   : > { %3216 = vmatpush3.bf16.xpose.msra.mxu0 %v1462_v48  ;;  %v1724_v48 = vpop.permute.xlu1 %1723 }
 0x3ed   : > { %v4487_v25 = vpop.eup %3592 }
 0x3ee   : > { %v4489_v14 = vpop.eup %3594  ;;  %v1229_v39 = vpack.c.bf16 %v4487_v25, %v4483_v52  ;;  %v1389_v29 = vpop.permute.xlu0 %1388 }
 0x3ef   : > { %v1230_v60 = vpack.c.bf16 %v4485_v11, %v4489_v14 }
 0x3f0   : > { %3197 = vmatprep.mubr.bf16.mxu0 %v1229_v39 }
 0x3f1   : > { %3198 = vmatmul.mubr.bf16.gmra.mrb[28].mxu0 %v1230_v60 }
 0x3f2   : > { %3217 = vmatprep.mubr.msk.bf16.mxu0 %vm421_vm0, %v1385_v28  ;;  %v1393_v9 = vpop.permute.xlu0 %1392 }
 0x3f6   : > { %v1397_v44 = vpop.permute.xlu0 %1396 }
 0x3f9   : > { %3218 = vmatmul.mubr.msk.bf16.vlgmr.msra.gmra.mrb[32].mxu0 %vm421_vm0, %v1387_v49 }
 0x3fa   : > { %3221 = vmatprep.mubr.msk.bf16.mxu0 %vm421_vm0, %v1389_v29  ;;  %v1714_v5 = vpop.permute.xlu0 %1713 }
 0x3fb   : > { %3233 = vmatprep.subr.bf16.mxu1 %v1714_v5 }
 0x3fc   : > { %3234 = vmatpush3.bf16.msra.mxu1 %v1714_v5 }
 0x3fd   : > { %3235 = vmatprep.subr.bf16.mxu1 %v1716_v17 }
 0x3fe   : > { %v1718_v18 = vpop.permute.xlu0 %1717 }
 0x400   : > { %3236 = vmatpush3.bf16.msra.mxu1 %v1716_v17 }
 0x401   : > { %3222 = vmatmul.mubr.msk.bf16.gmra.mrb[36].mxu0 %vm421_vm0, %v1391_v7  ;;  %3237 = vmatprep.subr.bf16.mxu1 %v1718_v18  ;;  %v1728_v7 = vpop.permute.xlu1 %1727 }
 0x402   : > { %3225 = vmatprep.mubr.msk.bf16.mxu0 %vm421_vm0, %v1393_v9  ;;  %v1726_v49 = vpop.permute.xlu0 %1725 }
 0x404   : > { %3238 = vmatpush3.bf16.msra.mxu1 %v1718_v18 }
 0x405   : > { %3239 = vmatprep.subr.bf16.mxu1 %v1720_v19 }
 0x408   : > { %3240 = vmatpush3.bf16.msra.mxu1 %v1720_v19  ;;  %v4548_v19 = vld [vmem:[%s4056_s6] ss:$0 sm:$0xff] }
 0x409   : > { %3226 = vmatmul.mubr.msk.bf16.gmra.mrb[40].mxu0 %vm421_vm0, %v1395_v61  ;;  %3241 = vmatprep.subr.bf16.mxu1 %v1722_v34 }
 0x40a   : > { %3229 = vmatprep.mubr.msk.bf16.mxu0 %vm421_vm0, %v1397_v44 }
 0x40c   : > { %3242 = vmatpush3.bf16.msra.mxu1 %v1722_v34 }
 0x40d   : > { %3243 = vmatprep.subr.bf16.mxu1 %v1724_v48 }
 0x410   : > { %3244 = vmatpush3.bf16.msra.mxu1 %v1724_v48 }
 0x411   : > { %3230 = vmatmul.mubr.msk.bf16.gmra.mrb[44].mxu0 %vm421_vm0, %v1399_v56  ;;  %3245 = vmatprep.subr.bf16.mxu1 %v1726_v49 }
 0x414   : > { %3246 = vmatpush3.bf16.msra.mxu1 %v1726_v49 }
 0x415   : > { %3247 = vmatprep.subr.bf16.mxu1 %v1728_v7 }
 0x418   : > { %3248 = vmatpush3.bf16.msra.mxu1 %v1728_v7 }
 0x436   : > { %v4535_v9 = vpop.permute.xlu0 %1882 }
 0x437   : > { %3353 = vmatprep.subr.msk.bf16.mxu1 %vm421_vm0, %v4535_v9 }
 0x47d   : > { %v4511_v62 = vpop.f32.mrb[16].mxu0 }
 0x47e   : > { %5231 = vst [vmem:[#allocation25_spill] sm:$0xff] %v4511_v62  ;;  %v4513_v55 = vpop.f32.mrb[17].mxu0 }
 0x47f   : > { %5232 = vst [vmem:[#allocation26_spill] sm:$0xff] %v4513_v55  ;;  %v4515_v45 = vpop.f32.mrb[18].mxu0 }
 0x480   : > { %5233 = vst [vmem:[#allocation27_spill] sm:$0xff] %v4515_v45  ;;  %v4517_v15 = vpop.f32.mrb[19].mxu0 }
 0x481   : > { %5234 = vst [vmem:[#allocation28_spill] sm:$0xff] %v4517_v15 }
 0x485   : > { %v4519_v20 = vpop.f32.mrb[20].mxu0 }
 0x486   : > { %5235 = vst [vmem:[#allocation29_spill] sm:$0xff] %v4519_v20  ;;  %v4521_v22 = vpop.f32.mrb[21].mxu0  ;;  %v3809_v20 = vld [vmem:[%s4006_s29 + $0x18] sm:$0xff]  }
 0x487   : > { %5236 = vst [vmem:[#allocation30_spill] sm:$0xff] %v4521_v22  ;;  %v4523_v24 = vpop.f32.mrb[22].mxu0 }
 0x488   : > { %5237 = vst [vmem:[#allocation31_spill] sm:$0xff] %v4523_v24  ;;  %v4525_v3 = vpop.f32.mrb[23].mxu0  ;;  %v3799_v24 = vld [vmem:[%s4006_s29 + $0x8] sm:$0xff]  }
 0x489   : > { %5238 = vst [vmem:[#allocation32_spill] sm:$0xff] %v4525_v3 }
 0x492   : > { %v4527_v39 = vpop.f32.mrb[24].mxu0 }
 0x493   : > { %5239 = vst [vmem:[#allocation33_spill] sm:$0xff] %v4527_v39  ;;  %v4529_v60 = vpop.f32.mrb[25].mxu0 }
 0x494   : > { %5240 = vst [vmem:[#allocation34_spill] sm:$0xff] %v4529_v60  ;;  %v4531_v28 = vpop.f32.mrb[26].mxu0 }
 0x495   : > { %5241 = vst [vmem:[#allocation35_spill] sm:$0xff] %v4531_v28  ;;  %v4533_v29 = vpop.f32.mrb[27].mxu0 }
 0x496   : > { %5242 = vst [vmem:[#allocation36_spill] sm:$0xff] %v4533_v29 }
 0x4c4   : > { %v4539_v61 = vpop.f32.mrb[28].mxu0 }
 0x4c5   : > { %5243 = vst [vmem:[#allocation37_spill] sm:$0xff] %v4539_v61  ;;  %v4541_v44 = vpop.f32.mrb[29].mxu0 }
 0x4c6   : > { %5244 = vst [vmem:[#allocation38_spill] sm:$0xff] %v4541_v44  ;;  %v4543_v56 = vpop.f32.mrb[30].mxu0 }
 0x4c7   : > { %5245 = vst [vmem:[#allocation39_spill] sm:$0xff] %v4543_v56  ;;  %v4545_v38 = vpop.f32.mrb[31].mxu0 }
 0x4c8   : > { %5246 = vst [vmem:[#allocation40_spill] sm:$0xff] %v4545_v38 }
 0x4cc   : > { %v3219_v13 = vpop.f32.mrb[32].mxu0 }
 0x4cd   : > { %v1563_v35 = vmul.f32 0.17677669, %v3219_v13  ;;  %v1498_v36 = vpop.f32.mrb[33].mxu0 }
 0x4ce   : > { %v3220_v5 = vpop.f32.mrb[34].mxu0  ;;  %v1561_v17 = vmul.f32 0.17677669, %v1498_v36 }
 0x4cf   : > { %v1501_v18 = vpop.f32.mrb[35].mxu0  ;;  %v4551_v34 = vadd.f32 %v4548_v19, %v1563_v35  ;;  %v1564_v7 = vmul.f32 0.17677669, %v3220_v5 }
 0x4d0   : > { %v1562_v48 = vmul.f32 0.17677669, %v1501_v18  ;;  %v4558_v63 = vadd.f32 %v4548_v19, %v1561_v17 }
 0x4d1   : > { %1597 = vmax.xlane.f32.xlu0 %v4551_v34  ;;  %v4563_v18 = vadd.f32 %v4548_v19, %v1564_v7 }
 0x4d2   : > { %v4555_v49 = vadd.f32 %v4548_v19, %v1562_v48 }
 0x4d4   : > { %1595 = vmax.xlane.f32.xlu1 %v4555_v49  ;;  %v3223_v13 = vpop.f32.mrb[36].mxu0 }
 0x4d5   : > { %v1567_v36 = vmul.f32 0.17677669, %v3223_v13  ;;  %1593 = vmax.xlane.f32.xlu0 %v4558_v63  ;;  %v1514_v47 = vpop.f32.mrb[37].mxu0 }
 0x4d6   : > { %v3224_v54 = vpop.f32.mrb[38].mxu0  ;;  %v1565_v35 = vmul.f32 0.17677669, %v1514_v47 }
 0x4d7   : > { %v1517_v56 = vpop.f32.mrb[39].mxu0  ;;  %v4566_v48 = vadd.f32 %v4548_v19, %v1567_v36  ;;  %v1568_v13 = vmul.f32 0.17677669, %v3224_v54 }
 0x4d8   : > { %v1566_v5 = vmul.f32 0.17677669, %v1517_v56  ;;  %v4574_v61 = vadd.f32 %v4548_v19, %v1565_v35 }
 0x4d9   : > { %1599 = vmax.xlane.f32.xlu0 %v4563_v18  ;;  %1605 = vmax.xlane.f32.xlu1 %v4566_v48  ;;  %v4579_v44 = vadd.f32 %v4548_v19, %v1568_v13 }
 0x4da   : > { %v4571_v17 = vadd.f32 %v4548_v19, %v1566_v5 }
 0x4dc   : > { %v3227_v47 = vpop.f32.mrb[40].mxu0 }
 0x4dd   : > { %v1571_v1 = vmul.f32 0.17677669, %v3227_v47  ;;  %1601 = vmax.xlane.f32.xlu1 %v4574_v61  ;;  %1603 = vmax.xlane.f32.xlu0 %v4571_v17  ;;  %v1530_v7 = vpop.f32.mrb[41].mxu0 }
 0x4de   : > { %v3228_v36 = vpop.f32.mrb[42].mxu0  ;;  %v1569_v56 = vmul.f32 0.17677669, %v1530_v7 }
 0x4df   : > { %v1533_v38 = vpop.f32.mrb[43].mxu0  ;;  %v4582_v5 = vadd.f32 %v4548_v19, %v1571_v1  ;;  %v1572_v54 = vmul.f32 0.17677669, %v3228_v36 }
 0x4e0   : > { %v4587_v35 = vadd.f32 %v4548_v19, %v1569_v56  ;;  %v1570_v13 = vmul.f32 0.17677669, %v1533_v38 }
 0x4e1   : > { %1607 = vmax.xlane.f32.xlu1 %v4579_v44  ;;  %1613 = vmax.xlane.f32.xlu0 %v4582_v5  ;;  %v4591_v1 = vadd.f32 %v4548_v19, %v1572_v54 }
 0x4e2   : > { %v4599_v36 = vadd.f32 %v4548_v19, %v1570_v13  ;;  %v3795_v13 = vld [vmem:[%s3917_s26 + $0x8] sm:$0xff]  }
 0x4e4   : > { %v3231_v47 = vpop.f32.mrb[44].mxu0 }
 0x4e5   : > { %1609 = vmax.xlane.f32.xlu1 %v4587_v35  ;;  %v1546_v28 = vpop.f32.mrb[45].mxu0 }
 0x4e6   : > { %v1573_v7 = vmul.f32 0.17677669, %v1546_v28  ;;  %v3232_v39 = vpop.f32.mrb[46].mxu0  ;;  %v1575_v28 = vmul.f32 0.17677669, %v3231_v47  ;;  %v3794_v47 = vld [vmem:[%s3892_s22 + $0x20] sm:$0xff]  }
 0x4e7   : > { %v1549_v29 = vpop.f32.mrb[47].mxu0  ;;  %v1576_v56 = vmul.f32 0.17677669, %v3232_v39  ;;  %v3796_v39 = vld [vmem:[%s3917_s26 + $0x18] sm:$0xff]  }
 0x4e8   : > { %v4594_v60 = vadd.f32 %v4548_v19, %v1573_v7  ;;  %v4603_v38 = vadd.f32 %v4548_v19, %v1575_v28  ;;  %v3793_v7 = vld [vmem:[%s3892_s22 + $0x28] sm:$0xff]  }
 0x4e9   : > { %1615 = vmax.xlane.f32.xlu1 %v4591_v1  ;;  %v4607_v54 = vadd.f32 %v4548_v19, %v1576_v56  ;;  %v3797_v28 = vld [vmem:[%s3917_s26 + $0x28] sm:$0xff]   ;;  %v3798_v56 = vld [vmem:[%s3917_s26 + $0x38] sm:$0xff]  }
 0x4ea   : > { %1617 = vmax.xlane.f32.xlu0 %v4594_v60 }
 0x4ed   : > { %1611 = vmax.xlane.f32.xlu1 %v4599_v36 }
 0x4f1   : > { %1621 = vmax.xlane.f32.xlu1 %v4603_v38 }
 0x4f5   : > { %1623 = vmax.xlane.f32.xlu1 %v4607_v54 }
 0x500   : > { %1892 = vrot.lane.b32.xlu0 %v3793_v7, %s3839_s8  ;;  %v1574_v7 = vmul.f32 0.17677669, %v1549_v29  ;;  %v3803_v29 = vld [vmem:[%s3917_s26] sm:$0xff]  }
 0x506   : > { %1890 = vrot.lane.b32.xlu1 %v3794_v47, %s3839_s8  ;;  %v4625_v47 = vadd.f32 %v4548_v19, %v1574_v7  ;;  %v3806_v7 = vld [vmem:[%s3917_s26 + $0x30] sm:$0xff]  }
 0x50a   : > { %1868 = vrot.lane.b32.xlu1 %v3795_v13, %s3839_s8  ;;  %v3800_v13 = vld [vmem:[%s4006_s29 + $0x20] sm:$0xff]  }
 0x50e   : > { %1872 = vrot.lane.b32.xlu1 %v3796_v39, %s3839_s8  ;;  %v3801_v39 = vld [vmem:[%s3892_s22 + $0x30] sm:$0xff]  }
 0x512   : > { %1876 = vrot.lane.b32.xlu1 %v3797_v28, %s3839_s8  ;;  %v3802_v28 = vld [vmem:[%s3892_s22 + $0x38] sm:$0xff]  }
 0x516   : > { %1880 = vrot.lane.b32.xlu1 %v3798_v56, %s3839_s8  ;;  %v3805_v56 = vld [vmem:[%s3917_s26 + $0x20] sm:$0xff]  }
 0x51a   : > { %2197 = vrot.lane.b32.xlu1 %v3799_v24, %s3839_s8  ;;  %v3804_v24 = vld [vmem:[%s3917_s26 + $0x10] sm:$0xff]  }
 0x51e   : > { %2203 = vrot.lane.b32.xlu1 %v3800_v13, %s3839_s8  ;;  %v3807_v13 = vld [vmem:[%s4006_s29] sm:$0xff]  }
 0x51f   : > { %1619 = vmax.xlane.f32.xlu0 %v4625_v47 }
 0x535   : > { %1894 = vrot.lane.b32.xlu0 %v3801_v39, %s3839_s8  ;;  %v3808_v39 = vld [vmem:[%s4006_s29 + $0x10] sm:$0xff]  }
 0x539   : > { %1896 = vrot.lane.b32.xlu0 %v3802_v28, %s3839_s8  ;;  %v4646_v28 = vpop.permute.xlu0 %1884 }
 0x53d   : > { %1866 = vrot.lane.b32.xlu0 %v3803_v29, %s3839_s8  ;;  %v3810_v29 = vld [vmem:[%s4006_s29 + $0x28] sm:$0xff]  }
 0x541   : > { %1870 = vrot.lane.b32.xlu0 %v3804_v24, %s3839_s8  ;;  %v4652_v24 = vpop.permute.xlu0 %1888 }
 0x545   : > { %1874 = vrot.lane.b32.xlu0 %v3805_v56, %s3839_s8  ;;  %v4654_v56 = vpop.permute.xlu1 %1886 }
 0x549   : > { %1878 = vrot.lane.b32.xlu0 %v3806_v7, %s3839_s8 }
 0x54d   : > { %2195 = vrot.lane.b32.xlu0 %v3807_v13, %s3839_s8 }
 0x551   : > { %2199 = vrot.lane.b32.xlu0 %v3808_v39, %s3839_s8 }
 0x555   : > { %2201 = vrot.lane.b32.xlu0 %v3809_v20, %s3839_s8 }
 0x559   : > { %2205 = vrot.lane.b32.xlu0 %v3810_v29, %s3839_s8 }
 0x55e   : > { %v1598_v3 = vpop.xlane.xlu0 %1597 }
 0x55f   : > { %v1627_v22 = vsub.f32 %v4551_v34, %v1598_v3 }
 0x561   : > { %v1596_v7 = vpop.xlane.xlu1 %1595  ;;  %v1645_v62 = vmul.f32 1.442695, %v1627_v22 }
 0x562   : > { %v1626_v13 = vsub.f32 %v4555_v49, %v1596_v7  ;;  %v1594_v12 = vpop.xlane.xlu0 %1593 }
 0x563   : > { %v1625_v39 = vsub.f32 %v4558_v63, %v1594_v12 }
 0x564   : > { %v1643_v10 = vmul.f32 1.442695, %v1626_v13 }
 0x565   : > { %v1641_v45 = vmul.f32 1.442695, %v1625_v39 }
 0x566   : > { %3596 = vpow2.f32 %v1643_v10  ;;  %v1600_v20 = vpop.xlane.xlu0 %1599  ;;  %v1606_v59 = vpop.xlane.xlu1 %1605 }
 0x567   : > { %3598 = vpow2.f32 %v1641_v45  ;;  %v1628_v29 = vsub.f32 %v4563_v18, %v1600_v20  ;;  %v1631_v3 = vsub.f32 %v4566_v48, %v1606_v59  ;;  %v1923_v20 = vsel %vm421_vm0, %v4535_v9, 0 }
 0x568   : > { %3600 = vpow2.f32 %v1645_v62 }
 0x569   : > { %v1647_v15 = vmul.f32 1.442695, %v1628_v29  ;;  %v1653_v10 = vmul.f32 1.442695, %v1631_v3 }
 0x56a   : > { %v1604_v55 = vpop.xlane.xlu0 %1603  ;;  %v1602_v8 = vpop.xlane.xlu1 %1601 }
 0x56b   : > { %3602 = vpow2.f32 %v1647_v15  ;;  %v1630_v34 = vsub.f32 %v4571_v17, %v1604_v55  ;;  %v1629_v12 = vsub.f32 %v4574_v61, %v1602_v8 }
 0x56d   : > { %v1651_v63 = vmul.f32 1.442695, %v1630_v34  ;;  %v1649_v49 = vmul.f32 1.442695, %v1629_v12 }
 0x56e   : > { %v1608_v22 = vpop.xlane.xlu1 %1607  ;;  %v1614_v61 = vpop.xlane.xlu0 %1613 }
 0x56f   : > { %3604 = vpow2.f32 %v1651_v63  ;;  %v1632_v45 = vsub.f32 %v4579_v44, %v1608_v22  ;;  %v1635_v39 = vsub.f32 %v4582_v5, %v1614_v61  ;;  %v1929_v61 = vsel %vm421_vm0, %v4654_v56, 0 }
 0x570   : > { %v4664_v7 = vpop.eup %3596  ;;  %3606 = vpow2.f32 %v1649_v49 }
 0x571   : > { %v4666_v62 = vpop.eup %3598  ;;  %v1655_v18 = vmul.f32 1.442695, %v1632_v45  ;;  %3608 = vpow2.f32 %v1653_v10 }
 0x572   : > { %v1610_v15 = vpop.xlane.xlu1 %1609  ;;  %v1705_v59 = vpack.c.bf16 %v4664_v7, %v4666_v62  ;;  %v4670_v55 = vpop.eup %3600 }
 0x573   : > { %3610 = vpow2.f32 %v1655_v18  ;;  %v1633_v44 = vsub.f32 %v4587_v35, %v1610_v15 }
 0x574   : > { %3249 = vmatprep.mubr.bf16.mxu1 %v1705_v59 }
 0x575   : > { %v4672_v8 = vpop.eup %3602  ;;  %v1657_v3 = vmul.f32 1.442695, %v1633_v44 }
 0x576   : > { %v1616_v48 = vpop.xlane.xlu1 %1615  ;;  %v1706_v17 = vpack.c.bf16 %v4672_v8, %v4670_v55 }
 0x577   : > { %v1636_v13 = vsub.f32 %v4591_v1, %v1616_v48  ;;  %v1661_v1 = vmul.f32 1.442695, %v1635_v39  ;;  %3612 = vpow2.f32 %v1657_v3  ;;  %v1932_v39 = vsel %vm421_vm0, %v4652_v24, 0 }
 0x578   : > { %3250 = vmatmul.mubr.bf16.vlgmr.msra.gmra.mrb[32].mxu1 %v1706_v17 }
 0x579   : > { %v4681_v29 = vpop.eup %3604  ;;  %3266 = vmatpush3.bf16.xpose.msra.mxu1 %v1923_v20  ;;  %v1663_v12 = vmul.f32 1.442695, %v1636_v13 }
 0x57a   : > { %v4683_v34 = vpop.eup %3606  ;;  %3354 = vmatprep.subr.msk.bf16.mxu1 %vm421_vm0, %v4646_v28  ;;  %v1612_v35 = vpop.xlane.xlu1 %1611 }
 0x57b   : > { %v1634_v63 = vsub.f32 %v4599_v36, %v1612_v35  ;;  %v1707_v5 = vpack.c.bf16 %v4681_v29, %v4683_v34  ;;  %v4690_v49 = vpop.eup %3608  ;;  %3614 = vpow2.f32 %v1663_v12  ;;  %v1926_v36 = vsel %vm421_vm0, %v4646_v28, 0 }
 0x57d   : > { %v1659_v9 = vmul.f32 1.442695, %v1634_v63  ;;  %3253 = vmatprep.mubr.bf16.mxu1 %v1707_v5  ;;  %v4692_v22 = vpop.eup %3610 }
 0x57e   : > { %v1708_v10 = vpack.c.bf16 %v4692_v22, %v4690_v49  ;;  %v1622_v45 = vpop.xlane.xlu1 %1621 }
 0x57f   : > { %3616 = vpow2.f32 %v1659_v9  ;;  %v1639_v5 = vsub.f32 %v4603_v38, %v1622_v45 }
 0x580   : > { %3618 = vpow2.f32 %v1661_v1  ;;  %3254 = vmatmul.mubr.bf16.gmra.mrb[36].mxu1 %v1708_v10 }
 0x581   : > { %3268 = vmatpush3.bf16.xpose.msra.mxu1 %v1926_v36  ;;  %v4700_v18 = vpop.eup %3612  ;;  %v1669_v36 = vmul.f32 1.442695, %v1639_v5 }
 0x582   : > { %3355 = vmatprep.subr.msk.bf16.mxu1 %vm421_vm0, %v4654_v56  ;;  %v1624_v17 = vpop.xlane.xlu1 %1623  ;;  %v1618_v56 = vpop.xlane.xlu0 %1617 }
 0x583   : > { %v1637_v35 = vsub.f32 %v4594_v60, %v1618_v56  ;;  %v1640_v63 = vsub.f32 %v4607_v54, %v1624_v17 }
 0x585   : > { %v4702_v15 = vpop.eup %3614  ;;  %v1671_v1 = vmul.f32 1.442695, %v1640_v63 }
 0x586   : > { %v1891_v13 = vpop.permute.xlu1 %1890  ;;  %v1893_v3 = vpop.permute.xlu0 %1892 }
 0x587   : > { %v1935_v20 = vsel %vm421_vm0, %v1891_v13, 0  ;;  %v1938_v12 = vsel %vm421_vm0, %v1893_v3, 0 }
 0x589   : > { %v4704_v59 = vpop.eup %3616  ;;  %3270 = vmatpush3.bf16.xpose.msra.mxu1 %v1929_v61 }
 0x58a   : > { %v4708_v44 = vpop.eup %3618  ;;  %v1709_v28 = vpack.c.bf16 %v4704_v59, %v4700_v18  ;;  %3356 = vmatprep.subr.msk.bf16.mxu1 %vm421_vm0, %v4652_v24  ;;  %v1665_v24 = vmul.f32 1.442695, %v1637_v35 }
 0x58b   : > { %v1710_v48 = vpack.c.bf16 %v4702_v15, %v4708_v44 }
 0x58c   : > { %3257 = vmatprep.mubr.bf16.mxu1 %v1709_v28  ;;  %3620 = vpow2.f32 %v1665_v24 }
 0x58d   : > { %3258 = vmatmul.mubr.bf16.gmra.mrb[40].mxu1 %v1710_v48  ;;  %3622 = vpow2.f32 %v1671_v1 }
 0x591   : > { %3272 = vmatpush3.bf16.xpose.msra.mxu1 %v1932_v39 }
 0x592   : > { %3357 = vmatprep.subr.msk.bf16.mxu1 %vm421_vm0, %v1891_v13 }
 0x596   : > { %v4730_v54 = vpop.eup %3620 }
 0x599   : > { %3274 = vmatpush3.bf16.xpose.msra.mxu1 %v1935_v20  ;;  %v1869_v20 = vpop.permute.xlu1 %1868 }
 0x59a   : > { %3358 = vmatprep.subr.msk.bf16.mxu1 %vm421_vm0, %v1893_v3 }
 0x5a1   : > { %3276 = vmatpush3.bf16.xpose.msra.mxu1 %v1938_v12  ;;  %v1873_v12 = vpop.permute.xlu1 %1872 }
 0x5a5   : > { %v1877_v63 = vpop.permute.xlu1 %1876 }
 0x5a9   : > { %v1881_v24 = vpop.permute.xlu1 %1880 }
 0x5ac   : > { %v1620_v9 = vpop.xlane.xlu0 %1619 }
 0x5ad   : > { %v1638_v10 = vsub.f32 %v4625_v47, %v1620_v9  ;;  %v4732_v47 = vpop.eup %3622 }
 0x5af   : > { %v1667_v61 = vmul.f32 1.442695, %v1638_v10 }
 0x5b0   : > { %v1895_v28 = vpop.permute.xlu0 %1894 }
 0x5b1   : > { %3624 = vpow2.f32 %v1667_v61  ;;  %3359 = vmatprep.subr.msk.bf16.mxu1 %vm421_vm0, %v1895_v28  ;;  %v1941_v48 = vsel %vm421_vm0, %v1895_v28, 0  ;;  %v2198_v28 = vpop.permute.xlu1 %2197 }
 0x5b2   : > { %3626 = vpow2.f32 %v1669_v36  ;;  %3278 = vmatpush3.bf16.xpose.msra.mxu1 %v1941_v48 }
 0x5b4   : > { %v1897_v60 = vpop.permute.xlu0 %1896 }
 0x5b5   : > { %3360 = vmatprep.subr.msk.bf16.mxu1 %vm421_vm0, %v1897_v60  ;;  %v1944_v38 = vsel %vm421_vm0, %v1897_v60, 0 }
 0x5b8   : > { %v1867_v56 = vpop.permute.xlu0 %1866 }
 0x5ba   : > { %3280 = vmatpush3.bf16.xpose.msra.mxu1 %v1944_v38 }
 0x5bb   : > { %v4734_v45 = vpop.eup %3624 }
 0x5bc   : > { %v4736_v17 = vpop.eup %3626  ;;  %v1711_v13 = vpack.c.bf16 %v4734_v45, %v4730_v54  ;;  %v1871_v3 = vpop.permute.xlu0 %1870 }
 0x5bd   : > { %v1712_v39 = vpack.c.bf16 %v4732_v47, %v4736_v17 }
 0x5be   : > { %3261 = vmatprep.mubr.bf16.mxu1 %v1711_v13 }
 0x5bf   : > { %3262 = vmatmul.mubr.bf16.gmra.mrb[44].mxu1 %v1712_v39 }
 0x5c0   : > { %3281 = vmatprep.mubr.msk.bf16.mxu1 %vm421_vm0, %v1867_v56  ;;  %v1875_v35 = vpop.permute.xlu0 %1874 }
 0x5c4   : > { %v1879_v5 = vpop.permute.xlu0 %1878 }
 0x5c7   : > { %3282 = vmatmul.mubr.msk.bf16.vlgmr.msra.gmra.mrb[48].mxu1 %vm421_vm0, %v1869_v20  ;;  %v2204_v20 = vpop.permute.xlu1 %2203 }
 0x5c8   : > { %3285 = vmatprep.mubr.msk.bf16.mxu1 %vm421_vm0, %v1871_v3  ;;  %v2196_v61 = vpop.permute.xlu0 %2195 }
 0x5c9   : > { %3297 = vmatprep.subr.bf16.mxu0 %v2196_v61 }
 0x5ca   : > { %3298 = vmatpush3.bf16.msra.mxu0 %v2196_v61 }
 0x5cb   : > { %3299 = vmatprep.subr.bf16.mxu0 %v2198_v28 }
 0x5cc   : > { %v2200_v39 = vpop.permute.xlu0 %2199 }
 0x5ce   : > { %3300 = vmatpush3.bf16.msra.mxu0 %v2198_v28 }
 0x5cf   : > { %3286 = vmatmul.mubr.msk.bf16.gmra.mrb[52].mxu1 %vm421_vm0, %v1873_v12  ;;  %3301 = vmatprep.subr.bf16.mxu0 %v2200_v39 }
 0x5d0   : > { %3289 = vmatprep.mubr.msk.bf16.mxu1 %vm421_vm0, %v1875_v35  ;;  %v2202_v56 = vpop.permute.xlu0 %2201 }
 0x5d2   : > { %3302 = vmatpush3.bf16.msra.mxu0 %v2200_v39 }
 0x5d3   : > { %3303 = vmatprep.subr.bf16.mxu0 %v2202_v56 }
 0x5d6   : > { %3304 = vmatpush3.bf16.msra.mxu0 %v2202_v56 }
 0x5d7   : > { %3290 = vmatmul.mubr.msk.bf16.gmra.mrb[56].mxu1 %vm421_vm0, %v1877_v63  ;;  %3305 = vmatprep.subr.bf16.mxu0 %v2204_v20 }
 0x5d8   : > { %3293 = vmatprep.mubr.msk.bf16.mxu1 %vm421_vm0, %v1879_v5 }
 0x5da   : > { %3306 = vmatpush3.bf16.msra.mxu0 %v2204_v20 }
 0x5df   : > { %3294 = vmatmul.mubr.msk.bf16.gmra.mrb[60].mxu1 %vm421_vm0, %v1881_v24 }
 0x64b   : > { %v4750_v1 = vpop.f32.mrb[32].mxu1 }
 0x64c   : > { %5247 = vst [vmem:[#allocation41_spill] sm:$0xff] %v4750_v1  ;;  %v4752_v9 = vpop.f32.mrb[33].mxu1 }
 0x64d   : > { %5248 = vst [vmem:[#allocation42_spill] sm:$0xff] %v4752_v9  ;;  %v4754_v10 = vpop.f32.mrb[34].mxu1 }
 0x64e   : > { %5249 = vst [vmem:[#allocation43_spill] sm:$0xff] %v4754_v10  ;;  %v4756_v36 = vpop.f32.mrb[35].mxu1 }
 0x64f   : > { %5250 = vst [vmem:[#allocation44_spill] sm:$0xff] %v4756_v36 }
 0x653   : > { %v4758_v48 = vpop.f32.mrb[36].mxu1 }
 0x654   : > { %5251 = vst [vmem:[#allocation45_spill] sm:$0xff] %v4758_v48  ;;  %v4760_v60 = vpop.f32.mrb[37].mxu1 }
 0x655   : > { %5252 = vst [vmem:[#allocation46_spill] sm:$0xff] %v4760_v60  ;;  %v4762_v38 = vpop.f32.mrb[38].mxu1 }
 0x656   : > { %5253 = vst [vmem:[#allocation47_spill] sm:$0xff] %v4762_v38  ;;  %v4764_v13 = vpop.f32.mrb[39].mxu1 }
 0x657   : > { %5254 = vst [vmem:[#allocation48_spill] sm:$0xff] %v4764_v13 }
 0x660   : > { %v4766_v3 = vpop.f32.mrb[40].mxu1 }
 0x661   : > { %5255 = vst [vmem:[#allocation49_spill] sm:$0xff] %v4766_v3  ;;  %v4768_v12 = vpop.f32.mrb[41].mxu1 }
 0x662   : > { %5256 = vst [vmem:[#allocation50_spill] sm:$0xff] %v4768_v12  ;;  %v4770_v35 = vpop.f32.mrb[42].mxu1 }
 0x663   : > { %5257 = vst [vmem:[#allocation51_spill] sm:$0xff] %v4770_v35  ;;  %v4772_v63 = vpop.f32.mrb[43].mxu1 }
 0x664   : > { %5258 = vst [vmem:[#allocation52_spill] sm:$0xff] %v4772_v63 }
 0x692   : > { %v4774_v5 = vpop.f32.mrb[44].mxu1 }
 0x693   : > { %5259 = vst [vmem:[#allocation53_spill] sm:$0xff] %v4774_v5  ;;  %v4776_v24 = vpop.f32.mrb[45].mxu1 }
 0x694   : > { %5260 = vst [vmem:[#allocation54_spill] sm:$0xff] %v4776_v24  ;;  %v4778_v61 = vpop.f32.mrb[46].mxu1 }
 0x695   : > { %5261 = vst [vmem:[#allocation55_spill] sm:$0xff] %v4778_v61  ;;  %v4780_v28 = vpop.f32.mrb[47].mxu1  ;;  %v2206_v61 = vpop.permute.xlu0 %2205 }
 0x696   : > { %5262 = vst [vmem:[#allocation56_spill] sm:$0xff] %v4780_v28  ;;  %3307 = vmatprep.subr.bf16.mxu0 %v2206_v61 }
 0x697   : > { %3308 = vmatpush3.bf16.msra.mxu0 %v2206_v61 }
 0x69a   : > { %v3283_v39 = vpop.f32.mrb[48].mxu1 }
 0x69b   : > { %v2045_v38 = vmul.f32 0.17677669, %v3283_v39  ;;  %v1980_v3 = vpop.f32.mrb[49].mxu1 }
 0x69c   : > { %v2043_v48 = vmul.f32 0.17677669, %v1980_v3  ;;  %v3284_v12 = vpop.f32.mrb[50].mxu1 }
 0x69d   : > { %v4783_v56 = vadd.f32 %v4548_v19, %v2045_v38  ;;  %v2046_v35 = vmul.f32 0.17677669, %v3284_v12  ;;  %v1983_v13 = vpop.f32.mrb[51].mxu1 }
 0x69e   : > { %v4786_v20 = vadd.f32 %v4548_v19, %v2043_v48  ;;  %v2044_v39 = vmul.f32 0.17677669, %v1983_v13 }
 0x69f   : > { %2079 = vmax.xlane.f32.xlu1 %v4783_v56  ;;  %v4791_v5 = vadd.f32 %v4548_v19, %v2046_v35 }
 0x6a0   : > { %2075 = vmax.xlane.f32.xlu0 %v4786_v20  ;;  %v4795_v48 = vadd.f32 %v4548_v19, %v2044_v39 }
 0x6a2   : > { %v3287_v3 = vpop.f32.mrb[52].mxu1 }
 0x6a3   : > { %v2049_v28 = vmul.f32 0.17677669, %v3287_v3  ;;  %2081 = vmax.xlane.f32.xlu1 %v4791_v5  ;;  %v1996_v38 = vpop.f32.mrb[53].mxu1 }
 0x6a4   : > { %v2047_v12 = vmul.f32 0.17677669, %v1996_v38  ;;  %v3288_v24 = vpop.f32.mrb[54].mxu1 }
 0x6a5   : > { %v1999_v63 = vpop.f32.mrb[55].mxu1  ;;  %v4801_v35 = vadd.f32 %v4548_v19, %v2049_v28  ;;  %v2050_v13 = vmul.f32 0.17677669, %v3288_v24 }
 0x6a6   : > { %v4798_v60 = vadd.f32 %v4548_v19, %v2047_v12  ;;  %v2048_v10 = vmul.f32 0.17677669, %v1999_v63 }
 0x6a7   : > { %2077 = vmax.xlane.f32.xlu1 %v4795_v48  ;;  %v4807_v39 = vadd.f32 %v4548_v19, %v2050_v13 }
 0x6a8   : > { %2083 = vmax.xlane.f32.xlu0 %v4798_v60  ;;  %v4814_v24 = vadd.f32 %v4548_v19, %v2048_v10 }
 0x6aa   : > { %v3291_v61 = vpop.f32.mrb[56].mxu1 }
 0x6ab   : > { %2087 = vmax.xlane.f32.xlu1 %v4801_v35  ;;  %v2012_v3 = vpop.f32.mrb[57].mxu1  ;;  %v2053_v9 = vmul.f32 0.17677669, %v3291_v61 }
 0x6ac   : > { %v3292_v38 = vpop.f32.mrb[58].mxu1 }
 0x6ad   : > { %v2054_v1 = vmul.f32 0.17677669, %v3292_v38  ;;  %v2015_v12 = vpop.f32.mrb[59].mxu1  ;;  %v4821_v63 = vadd.f32 %v4548_v19, %v2053_v9  ;;  %v2051_v38 = vmul.f32 0.17677669, %v2012_v3  ;;  %v3811_v3 = vld [vmem:[%s4006_s29 + $0x30] sm:$0xff]  }
 0x6ae   : > { %v2052_v36 = vmul.f32 0.17677669, %v2015_v12 }
 0x6af   : > { %v4810_v28 = vadd.f32 %v4548_v19, %v2054_v1  ;;  %2089 = vmax.xlane.f32.xlu1 %v4807_v39  ;;  %v4830_v9 = vadd.f32 %v4548_v19, %v2051_v38 }
 0x6b0   : > { %v4817_v4 = vadd.f32 %v4548_v19, %v2052_v36 }
 0x6b1   : > { %2097 = vmax.xlane.f32.xlu0 %v4810_v28 }
 0x6b2   : > { %v3295_v13 = vpop.f32.mrb[60].mxu1 }
 0x6b3   : > { %2085 = vmax.xlane.f32.xlu1 %v4814_v24  ;;  %v2028_v61 = vpop.f32.mrb[61].mxu1 }
 0x6b4   : > { %v3296_v1 = vpop.f32.mrb[62].mxu1 }
 0x6b5   : > { %v2058_v12 = vmul.f32 0.17677669, %v3296_v1  ;;  %2093 = vmax.xlane.f32.xlu0 %v4817_v4  ;;  %v2031_v10 = vpop.f32.mrb[63].mxu1  ;;  %v3812_v1 = vld [vmem:[%s4006_s29 + $0x38] sm:$0xff]  }
 0x6b6   : > { %v2056_v46 = vmul.f32 0.17677669, %v2031_v10  ;;  %v2057_v10 = vmul.f32 0.17677669, %v3295_v13 }
 0x6b7   : > { %v4826_v36 = vadd.f32 %v4548_v19, %v2058_v12  ;;  %2095 = vmax.xlane.f32.xlu1 %v4821_v63  ;;  %v2055_v12 = vmul.f32 0.17677669, %v2028_v61 }
 0x6b8   : > { %v4833_v51 = vadd.f32 %v4548_v19, %v2056_v46  ;;  %v4847_v46 = vadd.f32 %v4548_v19, %v2057_v10 }
 0x6b9   : > { %2105 = vmax.xlane.f32.xlu0 %v4826_v36  ;;  %v4843_v38 = vadd.f32 %v4548_v19, %v2055_v12 }
 0x6bb   : > { %2091 = vmax.xlane.f32.xlu1 %v4830_v9 }
 0x6bd   : > { %2101 = vmax.xlane.f32.xlu0 %v4833_v51 }
 0x6cc   : > { %2207 = vrot.lane.b32.xlu1 %v3811_v3, %s3839_s8  ;;  %v5263_v3 = vld [vmem:[#allocation2_spill] sm:$0xff] }
 0x6d3   : > { %2209 = vrot.lane.b32.xlu0 %v3812_v1, %s3839_s8 }
 0x6f0   : > { %2099 = vmax.xlane.f32.xlu1 %v4843_v38 }
 0x6f2   : > { %1193 = vadd.xlane.f32.xlu0 %v4417_v53 }
 0x6f4   : > { %2103 = vmax.xlane.f32.xlu1 %v4847_v46 }
 0x6f6   : > { %1211 = vadd.xlane.f32.xlu0 %v4461_v16 }
 0x6f8   : > { %1191 = vadd.xlane.f32.xlu1 %v4419_v58 }
 0x6fa   : > { %1215 = vadd.xlane.f32.xlu0 %v4483_v52 }
 0x6fc   : > { %1195 = vadd.xlane.f32.xlu1 %v4423_v57 }
 0x6fe   : > { %1219 = vadd.xlane.f32.xlu0 %v4489_v14 }
 0x700   : > { %1197 = vadd.xlane.f32.xlu1 %v4425_v0 }
 0x702   : > { %1673 = vadd.xlane.f32.xlu0 %v4666_v62 }
 0x704   : > { %1199 = vadd.xlane.f32.xlu1 %v4436_v23 }
 0x706   : > { %1677 = vadd.xlane.f32.xlu0 %v4670_v55 }
 0x708   : > { %1201 = vadd.xlane.f32.xlu1 %v4434_v21 }
 0x70a   : > { %1681 = vadd.xlane.f32.xlu0 %v4683_v34 }
 0x70c   : > { %1203 = vadd.xlane.f32.xlu1 %v4443_v26 }
 0x70e   : > { %1685 = vadd.xlane.f32.xlu0 %v4690_v49 }
 0x710   : > { %1205 = vadd.xlane.f32.xlu1 %v4445_v27 }
 0x712   : > { %1689 = vadd.xlane.f32.xlu0 %v4700_v18 }
 0x714   : > { %1207 = vadd.xlane.f32.xlu1 %v4453_v30 }
 0x716   : > { %1693 = vadd.xlane.f32.xlu0 %v4708_v44 }
 0x718   : > { %1209 = vadd.xlane.f32.xlu1 %v4457_v33 }
 0x71a   : > { %1697 = vadd.xlane.f32.xlu0 %v4730_v54 }
 0x71c   : > { %1213 = vadd.xlane.f32.xlu1 %v4455_v31 }
 0x71e   : > { %1701 = vadd.xlane.f32.xlu0 %v4736_v17 }
 0x720   : > { %1217 = vadd.xlane.f32.xlu1 %v4487_v25 }
 0x722   : > { %685 = vadd.xlane.f32.xlu0 %v4171_v2 }
 0x724   : > { %1221 = vadd.xlane.f32.xlu1 %v4485_v11 }
 0x726   : > { %689 = vadd.xlane.f32.xlu0 %v4177_v41 }
 0x728   : > { %1675 = vadd.xlane.f32.xlu1 %v4664_v7 }
 0x72a   : > { %693 = vadd.xlane.f32.xlu0 %v4201_v37 }
 0x72c   : > { %1679 = vadd.xlane.f32.xlu1 %v4672_v8  ;;  %v2080_v53 = vpop.xlane.xlu1 %2079 }
 0x72d   : > { %v2109_v58 = vsub.f32 %v4783_v56, %v2080_v53  ;;  %v2076_v57 = vpop.xlane.xlu0 %2075 }
 0x72e   : > { %v2107_v0 = vsub.f32 %v4786_v20, %v2076_v57  ;;  %697 = vadd.xlane.f32.xlu0 %v4203_v40 }
 0x72f   : > { %v2127_v21 = vmul.f32 1.442695, %v2109_v58 }
 0x730   : > { %1683 = vadd.xlane.f32.xlu1 %v4681_v29  ;;  %v2082_v2 = vpop.xlane.xlu1 %2081  ;;  %v2123_v41 = vmul.f32 1.442695, %v2107_v0  ;;  %v5264_v0 = vld [vmem:[#allocation4_spill] sm:$0xff] }
 0x731   : > { %3628 = vpow2.f32 %v2127_v21  ;;  %v2110_v11 = vsub.f32 %v4791_v5, %v2082_v2 }
 0x732   : > { %701 = vadd.xlane.f32.xlu0 %v4207_v32  ;;  %3630 = vpow2.f32 %v2123_v41 }
 0x733   : > { %v2129_v62 = vmul.f32 1.442695, %v2110_v11 }
 0x734   : > { %1687 = vadd.xlane.f32.xlu1 %v4692_v22  ;;  %v2078_v37 = vpop.xlane.xlu1 %2077 }
 0x735   : > { %v2108_v23 = vsub.f32 %v4795_v48, %v2078_v37  ;;  %v2084_v26 = vpop.xlane.xlu0 %2083 }
 0x736   : > { %v2111_v40 = vsub.f32 %v4798_v60, %v2084_v26  ;;  %v5265_v26 = vld [vmem:[#allocation7_spill] sm:$0xff] }
 0x737   : > { %v2125_v27 = vmul.f32 1.442695, %v2108_v23 }
 0x738   : > { %1691 = vadd.xlane.f32.xlu1 %v4704_v59  ;;  %v2088_v30 = vpop.xlane.xlu1 %2087  ;;  %v2131_v52 = vmul.f32 1.442695, %v2111_v40 }
 0x739   : > { %3632 = vpow2.f32 %v2125_v27  ;;  %v2113_v31 = vsub.f32 %v4801_v35, %v2088_v30 }
 0x73b   : > { %v3629_v33 = vpop.eup %3628  ;;  %v2135_v16 = vmul.f32 1.442695, %v2113_v31  ;;  %v5266_v31 = vld [vmem:[#allocation6_spill] sm:$0xff] }
 0x73c   : > { %1695 = vadd.xlane.f32.xlu1 %v4702_v15  ;;  %2159 = vadd.xlane.f32.xlu0 %v3629_v33  ;;  %v2090_v32 = vpop.xlane.xlu1 %2089  ;;  %v3631_v14 = vpop.eup %3630 }
 0x73d   : > { %3634 = vpow2.f32 %v2135_v16  ;;  %v2114_v18 = vsub.f32 %v4807_v39, %v2090_v32 }
 0x73e   : > { %v2098_v25 = vpop.xlane.xlu0 %2097  ;;  %3636 = vpow2.f32 %v2131_v52 }
 0x73f   : > { %3638 = vpow2.f32 %v2129_v62  ;;  %v2137_v17 = vmul.f32 1.442695, %v2114_v18 }
 0x740   : > { %1699 = vadd.xlane.f32.xlu1 %v4734_v45  ;;  %2155 = vadd.xlane.f32.xlu0 %v3631_v14  ;;  %v2086_v19 = vpop.xlane.xlu1 %2085 }
 0x741   : > { %v2112_v7 = vsub.f32 %v4814_v24, %v2086_v19 }
 0x742   : > { %v2094_v55 = vpop.xlane.xlu0 %2093 }
 0x743   : > { %v3633_v8 = vpop.eup %3632  ;;  %v2133_v29 = vmul.f32 1.442695, %v2112_v7  ;;  %v2116_v45 = vsub.f32 %v4817_v4, %v2094_v55  ;;  %v2118_v4 = vsub.f32 %v4810_v28, %v2098_v25 }
 0x744   : > { %1703 = vadd.xlane.f32.xlu1 %v4732_v47  ;;  %v2096_v34 = vpop.xlane.xlu1 %2095  ;;  %v2187_v49 = vpack.c.bf16 %v3633_v8, %v3631_v14 }
 0x745   : > { %v2117_v22 = vsub.f32 %v4821_v63, %v2096_v34  ;;  %3640 = vpow2.f32 %v2133_v29  ;;  %v2141_v48 = vmul.f32 1.442695, %v2116_v45  ;;  %v5268_v34 = vld [vmem:[#allocation28_spill] sm:$0xff]  ;;  %v5269_v45 = vld [vmem:[#allocation3_spill] sm:$0xff] }
 0x746   : > { %v2106_v15 = vpop.xlane.xlu0 %2105  ;;  %3313 = vmatprep.mubr.bf16.mxu0 %v2187_v49 }
 0x747   : > { %v3635_v59 = vpop.eup %3634  ;;  %v2143_v44 = vmul.f32 1.442695, %v2117_v22 }
 0x748   : > { %687 = vadd.xlane.f32.xlu1 %v4175_v43  ;;  %2167 = vadd.xlane.f32.xlu0 %v3635_v59  ;;  %v2092_v54 = vpop.xlane.xlu1 %2091  ;;  %v3637_v5 = vpop.eup %3636 }
 0x749   : > { %3642 = vpow2.f32 %v2143_v44  ;;  %v2115_v47 = vsub.f32 %v4830_v9, %v2092_v54  ;;  %v3639_v35 = vpop.eup %3638 }
 0x74a   : > { %v2102_v60 = vpop.xlane.xlu0 %2101  ;;  %v2188_v13 = vpack.c.bf16 %v3639_v35, %v3629_v33 }
 0x74b   : > { %v2139_v56 = vmul.f32 1.442695, %v2115_v47  ;;  %v2120_v58 = vsub.f32 %v4833_v51, %v2102_v60 }
 0x74c   : > { %691 = vadd.xlane.f32.xlu1 %v4173_v6  ;;  %2163 = vadd.xlane.f32.xlu0 %v3637_v5  ;;  %v2208_v20 = vpop.permute.xlu1 %2207  ;;  %v2145_v6 = vmul.f32 1.442695, %v2118_v4 }
 0x74d   : > { %3644 = vpow2.f32 %v2139_v56  ;;  %3309 = vmatprep.subr.bf16.mxu0 %v2208_v20  ;;  %v2149_v57 = vmul.f32 1.442695, %v2120_v58  ;;  %v5276_v58 = vld [vmem:[#allocation29_spill] sm:$0xff] }
 0x74e   : > { %3646 = vpow2.f32 %v2137_v17  ;;  %3310 = vmatpush3.bf16.msra.mxu0 %v2208_v20  ;;  %v2210_v43 = vpop.permute.xlu0 %2209  ;;  %v5270_v17 = vld [vmem:[#allocation25_spill] sm:$0xff] }
 0x74f   : > { %3311 = vmatprep.subr.bf16.mxu0 %v2210_v43  ;;  %v3641_v39 = vpop.eup %3640  ;;  %3648 = vpow2.f32 %v2141_v48 }
 0x750   : > { %695 = vadd.xlane.f32.xlu1 %v4209_v50  ;;  %v2189_v63 = vpack.c.bf16 %v3641_v39, %v3637_v5  ;;  %3650 = vpow2.f32 %v2145_v6  ;;  %v5271_v5 = vld [vmem:[#allocation27_spill] sm:$0xff] }
 0x752   : > { %3312 = vmatpush3.bf16.msra.mxu0 %v2210_v43  ;;  %v5272_v43 = vld [vmem:[#allocation5_spill] sm:$0xff] }
 0x753   : > { %v3643_v24 = vpop.eup %3642 }
 0x754   : > { %699 = vadd.xlane.f32.xlu1 %v4205_v42  ;;  %2175 = vadd.xlane.f32.xlu0 %v3643_v24  ;;  %v2122_v42 = vsub.f32 %v4826_v36, %v2106_v15 }
 0x755   : > { %3314 = vmatmul.mubr.bf16.vlgmr.msra.gmra.mrb[48].mxu0 %v2188_v13  ;;  %v5273_v13 = vld [vmem:[#allocation8_spill] sm:$0xff] }
 0x756   : > { %3317 = vmatprep.mubr.bf16.mxu0 %v2189_v63  ;;  %v2153_v53 = vmul.f32 1.442695, %v2122_v42  ;;  %v5274_v63 = vld [vmem:[#allocation30_spill] sm:$0xff] }
 0x757   : > { %v3645_v61 = vpop.eup %3644 }
 0x758   : > { %v3647_v9 = vpop.eup %3646  ;;  %703 = vadd.xlane.f32.xlu1 %v5263_v3  ;;  %2171 = vadd.xlane.f32.xlu0 %v3645_v61  ;;  %3652 = vpow2.f32 %v2153_v53 }
 0x759   : > { %v3649_v28 = vpop.eup %3648  ;;  %v2190_v50 = vpack.c.bf16 %v3647_v9, %v3635_v59  ;;  %3654 = vpow2.f32 %v2149_v57 }
 0x75a   : > { %v2191_v1 = vpack.c.bf16 %v3649_v28, %v3645_v61  ;;  %v3651_v12 = vpop.eup %3650 }
 0x75b   : > { %v2192_v10 = vpack.c.bf16 %v3651_v12, %v3643_v24 }
 0x75c   : > { %2161 = vadd.xlane.f32.xlu1 %v3639_v35 }
 0x75d   : > { %3318 = vmatmul.mubr.bf16.gmra.mrb[52].mxu0 %v2190_v50 }
 0x75e   : > { %3321 = vmatprep.mubr.bf16.mxu0 %v2191_v1 }
 0x760   : > { %2157 = vadd.xlane.f32.xlu1 %v3633_v8  ;;  %v5267_v8 = vld [vmem:[#allocation26_spill] sm:$0xff] }
 0x762   : > { %v3653_v21 = vpop.eup %3652 }
 0x763   : > { %v3655_v2 = vpop.eup %3654 }
 0x764   : > { %2169 = vadd.xlane.f32.xlu1 %v3647_v9  ;;  %v5275_v9 = vld [vmem:[#allocation32_spill] sm:$0xff] }
 0x765   : > { %3322 = vmatmul.mubr.bf16.gmra.mrb[56].mxu0 %v2192_v10 }
 0x768   : > { %2165 = vadd.xlane.f32.xlu1 %v3641_v39 }
 0x76c   : > { %2177 = vadd.xlane.f32.xlu1 %v3651_v12 }
 0x770   : > { %2173 = vadd.xlane.f32.xlu1 %v3649_v28 }
 0x774   : > { %707 = vadd.xlane.f32.xlu1 %v5264_v0  ;;  %v5277_v0 = vld [vmem:[#allocation31_spill] sm:$0xff] }
 0x778   : > { %2185 = vadd.xlane.f32.xlu1 %v3653_v21 }
 0x77c   : > { %2181 = vadd.xlane.f32.xlu1 %v3655_v2 }
 0x77d   : > { %v2100_v41 = vpop.xlane.xlu1 %2099 }
 0x77e   : > { %v2119_v37 = vsub.f32 %v4843_v38, %v2100_v41 }
 0x77f   : > { %v1194_v36 = vpop.xlane.xlu0 %1193 }
 0x780   : > { %v2147_v23 = vmul.f32 1.442695, %v2119_v37  ;;  %711 = vadd.xlane.f32.xlu1 %v5265_v26 }
 0x781   : > { %v2104_v27 = vpop.xlane.xlu1 %2103 }
 0x782   : > { %3656 = vpow2.f32 %v2147_v23  ;;  %v2121_v51 = vsub.f32 %v4847_v46, %v2104_v27 }
 0x783   : > { %v1212_v30 = vpop.xlane.xlu0 %1211  ;;  %3658 = vrcp.f32 %v1194_v36 }
 0x784   : > { %v2151_v40 = vmul.f32 1.442695, %v2121_v51  ;;  %715 = vadd.xlane.f32.xlu1 %v5266_v31  ;;  %v5278_v51 = vld [vmem:[#allocation34_spill] sm:$0xff] }
 0x785   : > { %v1192_v33 = vpop.xlane.xlu1 %1191 }
 0x786   : > { %3660 = vpow2.f32 %v2151_v40  ;;  %v5279_v40 = vld [vmem:[#allocation36_spill] sm:$0xff] }
 0x787   : > { %3662 = vrcp.f32 %v1192_v33  ;;  %v1216_v16 = vpop.xlane.xlu0 %1215 }
 0x789   : > { %v1196_v32 = vpop.xlane.xlu1 %1195 }
 0x78a   : > { %3664 = vrcp.f32 %v1196_v32 }
 0x78b   : > { %v4911_v52 = vpop.xlane.xlu0 %1219 }
 0x78c   : > { %v3657_v38 = vpop.eup %3656 }
 0x78d   : > { %v1198_v11 = vpop.xlane.xlu1 %1197  ;;  %v2193_v25 = vpack.c.bf16 %v3655_v2, %v3657_v38  ;;  %v3659_v14 = vpop.eup %3658 }
 0x78e   : > { %3666 = vrcp.f32 %v1198_v11  ;;  %v4919_v49 = vmul.f32 %v3659_v14, %v5268_v34  ;;  %v5281_v14 = vld [vmem:[#allocation35_spill] sm:$0xff] }
 0x78f   : > { %v4913_v19 = vpop.xlane.xlu0 %1673  ;;  %3325 = vmatprep.mubr.bf16.mxu0 %v2193_v25 }
 0x790   : > { %v3661_v46 = vpop.eup %3660 }
 0x791   : > { %v3663_v7 = vpop.eup %3662  ;;  %2183 = vadd.xlane.f32.xlu0 %v3661_v46  ;;  %v1200_v62 = vpop.xlane.xlu1 %1199  ;;  %v2194_v55 = vpack.c.bf16 %v3653_v21, %v3661_v46 }
 0x792   : > { %v4916_v29 = vmul.f32 %v3663_v7, %v5267_v8  ;;  %3668 = vrcp.f32 %v1200_v62 }
 0x793   : > { %v4921_v22 = vpop.xlane.xlu0 %1677  ;;  %3326 = vmatmul.mubr.bf16.gmra.mrb[60].mxu0 %v2194_v55 }
 0x794   : > { %v3388_v18 = vpack.i.bf16 %v4919_v49, %v4916_v29  ;;  %v3665_v59 = vpop.eup %3664 }
 0x795   : > { %2179 = vadd.xlane.f32.xlu0 %v3657_v38  ;;  %v1202_v15 = vpop.xlane.xlu1 %1201  ;;  %v1370_v60 = vmul.f32 %v3665_v59, %v5270_v17 }
 0x796   : > { %3670 = vrcp.f32 %v1202_v15  ;;  %v5282_v15 = vld [vmem:[#allocation38_spill] sm:$0xff] }
 0x797   : > { %v4925_v44 = vpop.xlane.xlu0 %1681 }
 0x798   : > { %v3667_v54 = vpop.eup %3666 }
 0x799   : > { %705 = vadd.xlane.f32.xlu0 %v5269_v45  ;;  %v1204_v47 = vpop.xlane.xlu1 %1203  ;;  %v1371_v56 = vmul.f32 %v3667_v54, %v5271_v5  ;;  %v5283_v54 = vld [vmem:[#allocation40_spill] sm:$0xff] }
 0x79a   : > { %3672 = vrcp.f32 %v1204_v47 }
 0x79b   : > { %v4930_v20 = vpop.xlane.xlu0 %1685  ;;  %v3393_v48 = vpack.i.bf16 %v1371_v56, %v1370_v60  ;;  %v5284_v60 = vld [vmem:[#allocation10_spill] sm:$0xff]  ;;  %v5285_v56 = vld [vmem:[#allocation37_spill] sm:$0xff] }
 0x79c   : > { %v3669_v4 = vpop.eup %3668 }
 0x79d   : > { %709 = vadd.xlane.f32.xlu0 %v5272_v43  ;;  %3394 = vrot.lane.b32.xlu1 %v3393_v48, %s3839_s8  ;;  %v1206_v35 = vpop.xlane.xlu1 %1205  ;;  %v1372_v61 = vmul.f32 %v3669_v4, %v5274_v63  ;;  %v5286_v43 = vld [vmem:[#allocation39_spill] sm:$0xff] }
 0x79e   : > { %3674 = vrcp.f32 %v1206_v35 }
 0x79f   : > { %v4934_v39 = vpop.xlane.xlu0 %1689 }
 0x7a0   : > { %v3671_v24 = vpop.eup %3670 }
 0x7a1   : > { %713 = vadd.xlane.f32.xlu0 %v5273_v13  ;;  %v1208_v6 = vpop.xlane.xlu1 %1207  ;;  %v1373_v3 = vmul.f32 %v3671_v24, %v5275_v9  ;;  %v5287_v13 = vld [vmem:[#allocation9_spill] sm:$0xff] }
 0x7a2   : > { %3676 = vrcp.f32 %v1208_v6 }
 0x7a3   : > { %v4939_v28 = vpop.xlane.xlu0 %1693  ;;  %v3398_v50 = vpack.i.bf16 %v1373_v3, %v1372_v61  ;;  %v5288_v3 = vld [vmem:[#allocation42_spill] sm:$0xff] }
 0x7a4   : > { %v3673_v12 = vpop.eup %3672 }
 0x7a5   : > { %3399 = vrot.lane.b32.xlu1 %v3398_v50, %s3839_s8  ;;  %v1210_v1 = vpop.xlane.xlu1 %1209  ;;  %v1374_v57 = vmul.f32 %v3673_v12, %v5276_v58 }
 0x7a6   : > { %3678 = vrcp.f32 %v1210_v1  ;;  %v5289_v1 = vld [vmem:[#allocation44_spill] sm:$0xff] }
 0x7a7   : > { %v4942_v10 = vpop.xlane.xlu0 %1697  ;;  %3680 = vrcp.f32 %v1212_v30 }
 0x7a8   : > { %v3675_v42 = vpop.eup %3674 }
 0x7a9   : > { %v1214_v53 = vpop.xlane.xlu1 %1213  ;;  %v1375_v21 = vmul.f32 %v3675_v42, %v5277_v0 }
 0x7aa   : > { %3682 = vrcp.f32 %v1214_v53  ;;  %v5290_v53 = vld [vmem:[#allocation14_spill] sm:$0xff] }
 0x7ab   : > { %v4946_v2 = vpop.xlane.xlu0 %1701  ;;  %v3403_v41 = vpack.i.bf16 %v1375_v21, %v1374_v57  ;;  %3684 = vrcp.f32 %v1216_v16 }
 0x7ac   : > { %v3677_v36 = vpop.eup %3676 }
 0x7ad   : > { %v1218_v37 = vpop.xlane.xlu1 %1217  ;;  %v1376_v30 = vmul.f32 %v3677_v36, %v5278_v51  ;;  %v5292_v36 = vld [vmem:[#allocation43_spill] sm:$0xff]  ;;  %v5293_v51 = vld [vmem:[#allocation13_spill] sm:$0xff] }
 0x7ae   : > { %3686 = vrcp.f32 %v1218_v37 }
 0x7af   : > { %3688 = vrcp.f32 %v4911_v52  ;;  %v686_v23 = vpop.xlane.xlu0 %685  ;;  %v5280_v52 = vld [vmem:[#allocation33_spill] sm:$0xff] }
 0x7b0   : > { %v3679_v26 = vpop.eup %3678  ;;  %3690 = vrcp.f32 %v686_v23 }
 0x7b1   : > { %v1222_v27 = vpop.xlane.xlu1 %1221  ;;  %v1377_v31 = vmul.f32 %v3679_v26, %v5279_v40  ;;  %v3681_v33 = vpop.eup %3680 }
 0x7b2   : > { %3692 = vrcp.f32 %v1222_v27  ;;  %v1378_v25 = vmul.f32 %v3681_v33, %v5280_v52  ;;  %v5294_v33 = vld [vmem:[#allocation46_spill] sm:$0xff] }
 0x7b3   : > { %3694 = vrcp.f32 %v4913_v19  ;;  %v690_v32 = vpop.xlane.xlu0 %689  ;;  %v3408_v38 = vpack.i.bf16 %v1377_v31, %v1376_v30 }
 0x7b4   : > { %v3683_v16 = vpop.eup %3682  ;;  %3696 = vrcp.f32 %v690_v32 }
 0x7b5   : > { %3409 = vrot.lane.b32.xlu1 %v3408_v38, %s3839_s8  ;;  %v1676_v11 = vpop.xlane.xlu1 %1675  ;;  %v1379_v46 = vmul.f32 %v3683_v16, %v5281_v14  ;;  %v3685_v7 = vpop.eup %3684  ;;  %v5295_v38 = vld [vmem:[#allocation48_spill] sm:$0xff] }
 0x7b6   : > { %3698 = vrcp.f32 %v1676_v11  ;;  %v1380_v59 = vmul.f32 %v3685_v7, %v5282_v15 }
 0x7b7   : > { %3700 = vrcp.f32 %v4921_v22  ;;  %v694_v62 = vpop.xlane.xlu0 %693  ;;  %3389 = vrot.lane.b32.xlu0 %v3388_v18, %s3839_s8  ;;  %v3413_v19 = vpack.i.bf16 %v1379_v46, %v1378_v25  ;;  %v5296_v25 = vld [vmem:[#allocation18_spill] sm:$0xff] }
 0x7b8   : > { %v3687_v55 = vpop.eup %3686  ;;  %3702 = vrcp.f32 %v694_v62 }
 0x7b9   : > { %v3689_v8 = vpop.eup %3688  ;;  %v1680_v34 = vpop.xlane.xlu1 %1679  ;;  %v1381_v45 = vmul.f32 %v3687_v55, %v5283_v54  ;;  %v5299_v54 = vld [vmem:[#allocation50_spill] sm:$0xff] }
 0x7ba   : > { %v3691_v47 = vpop.eup %3690  ;;  %3704 = vrcp.f32 %v1680_v34  ;;  %v1382_v48 = vmul.f32 %v3689_v8, %v5285_v56  ;;  %v5302_v56 = vld [vmem:[#allocation51_spill] sm:$0xff] }
 0x7bb   : > { %3706 = vrcp.f32 %v4925_v44  ;;  %v698_v22 = vpop.xlane.xlu0 %697  ;;  %3404 = vrot.lane.b32.xlu0 %v3403_v41, %s3839_s8  ;;  %v3418_v17 = vpack.i.bf16 %v1381_v45, %v1380_v59  ;;  %v4965_v29 = vmul.f32 %v3691_v47, %v5284_v60  ;;  %v5291_v41 = vld [vmem:[#allocation41_spill] sm:$0xff]  ;;  %v5300_v47 = vld [vmem:[#allocation52_spill] sm:$0xff] }
 0x7bc   : > { %v3693_v49 = vpop.eup %3692  ;;  %3708 = vrcp.f32 %v698_v22 }
 0x7bd   : > { %v3695_v18 = vpop.eup %3694  ;;  %3419 = vrot.lane.b32.xlu1 %v3418_v17, %s3839_s8  ;;  %v1684_v5 = vpop.xlane.xlu1 %1683  ;;  %v1383_v35 = vmul.f32 %v3693_v49, %v5286_v43 }
 0x7be   : > { %v3697_v4 = vpop.eup %3696  ;;  %3710 = vrcp.f32 %v1684_v5  ;;  %v1850_v50 = vmul.f32 %v3695_v18, %v5288_v3  ;;  %v5301_v18 = vld [vmem:[#allocation49_spill] sm:$0xff] }
 0x7bf   : > { %3712 = vrcp.f32 %v4930_v20  ;;  %v702_v44 = vpop.xlane.xlu0 %701  ;;  %3414 = vrot.lane.b32.xlu0 %v3413_v19, %s3839_s8  ;;  %v3423_v24 = vpack.i.bf16 %v1383_v35, %v1382_v48  ;;  %v4973_v6 = vmul.f32 %v3697_v4, %v5287_v13  ;;  %v5298_v19 = vld [vmem:[#allocation47_spill] sm:$0xff] }
 0x7c0   : > { %v3699_v63 = vpop.eup %3698  ;;  %3714 = vrcp.f32 %v702_v44 }
 0x7c1   : > { %v3701_v61 = vpop.eup %3700  ;;  %v1688_v9 = vpop.xlane.xlu1 %1687  ;;  %v1851_v12 = vmul.f32 %v3699_v63, %v5289_v1  ;;  %v5304_v63 = vld [vmem:[#allocation56_spill] sm:$0xff]  ;;  %v5305_v1 = vld [vmem:[#allocation53_spill] sm:$0xff] }
 0x7c2   : > { %v3703_v42 = vpop.eup %3702  ;;  %3716 = vrcp.f32 %v1688_v9  ;;  %v1852_v37 = vmul.f32 %v3701_v61, %v5291_v41 }
 0x7c3   : > { %3424 = vrot.lane.b32.xlu0 %v3423_v24, %s3839_s8  ;;  %v3428_v20 = vpack.i.bf16 %v1851_v12, %v1850_v50  ;;  %v4979_v58 = vmul.f32 %v3703_v42, %v5290_v53  ;;  %3718 = vrcp.f32 %v4934_v39  ;;  %v5303_v24 = vld [vmem:[#allocation54_spill] sm:$0xff]  ;;  %v5306_v42 = vld [vmem:[#allocation55_spill] sm:$0xff] }
 0x7c4   : > { %v3705_v57 = vpop.eup %3704 }
 0x7c5   : > { %v3707_v0 = vpop.eup %3706  ;;  %3429 = vrot.lane.b32.xlu1 %v3428_v20, %s3838_s7  ;;  %v1692_v21 = vpop.xlane.xlu1 %1691  ;;  %v1853_v23 = vmul.f32 %v3705_v57, %v5292_v36 }
 0x7c6   : > { %v3709_v26 = vpop.eup %3708  ;;  %3720 = vrcp.f32 %v1692_v21  ;;  %v1854_v32 = vmul.f32 %v3707_v0, %v5294_v33  ;;  %v5307_v21 = vld [vmem:[#allocation12_spill] sm:$0xff] }
 0x7c7   : > { %v3433_v27 = vpack.i.bf16 %v1853_v23, %v1852_v37  ;;  %v4986_v30 = vmul.f32 %v3709_v26, %v5293_v51  ;;  %3722 = vrcp.f32 %v4939_v28  ;;  %v5297_v28 = vld [vmem:[#allocation45_spill] sm:$0xff]  ;;  %v5308_v23 = vld [vmem:[#allocation11_spill] sm:$0xff] }
 0x7c8   : > { %v3711_v40 = vpop.eup %3710 }
 0x7c9   : > { %v3713_v31 = vpop.eup %3712  ;;  %3434 = vrot.lane.b32.xlu0 %v3433_v27, %s3838_s7  ;;  %v1696_v39 = vpop.xlane.xlu1 %1695  ;;  %v1855_v16 = vmul.f32 %v3711_v40, %v5295_v38  ;;  %v5309_v40 = vld [vmem:[#allocation16_spill] sm:$0xff] }
 0x7ca   : > { %v3715_v11 = vpop.eup %3714  ;;  %3724 = vrcp.f32 %v1696_v39  ;;  %v1856_v62 = vmul.f32 %v3713_v31, %v5297_v28 }
 0x7cb   : > { %v3438_v52 = vpack.i.bf16 %v1855_v16, %v1854_v32  ;;  %v4993_v14 = vmul.f32 %v3715_v11, %v5296_v25  ;;  %3726 = vrcp.f32 %v4942_v10  ;;  %v5310_v32 = vld [vmem:[#allocation15_spill] sm:$0xff] }
 0x7cc   : > { %v3717_v46 = vpop.eup %3716 }
 0x7cd   : > { %3439 = vrot.lane.b32.xlu1 %v3438_v52, %s3838_s7  ;;  %v1700_v7 = vpop.xlane.xlu1 %1699  ;;  %v1857_v55 = vmul.f32 %v3717_v46, %v5298_v19  ;;  %v3719_v8 = vpop.eup %3718  ;;  %v5311_v52 = vld [vmem:[#allocation20_spill] sm:$0xff] }
 0x7ce   : > { %3728 = vrcp.f32 %v1700_v7  ;;  %v1858_v45 = vmul.f32 %v3719_v8, %v5299_v54 }
 0x7cf   : > { %v3443_v34 = vpack.i.bf16 %v1857_v55, %v1856_v62  ;;  %3730 = vrcp.f32 %v4946_v2  ;;  %v2160_v62 = vpop.xlane.xlu0 %2159 }
 0x7d0   : > { %v3721_v15 = vpop.eup %3720 }
 0x7d1   : > { %3444 = vrot.lane.b32.xlu0 %v3443_v34, %s3838_s7  ;;  %v1704_v59 = vpop.xlane.xlu1 %1703  ;;  %v1859_v10 = vmul.f32 %v3721_v15, %v5300_v47  ;;  %v3723_v22 = vpop.eup %3722 }
 0x7d2   : > { %3732 = vrcp.f32 %v1704_v59  ;;  %v1860_v5 = vmul.f32 %v3723_v22, %v5301_v18 }
 0x7d3   : > { %v3448_v17 = vpack.i.bf16 %v1859_v10, %v1858_v45  ;;  %v2156_v8 = vpop.xlane.xlu0 %2155  ;;  %v5312_v45 = vld [vmem:[#allocation19_spill] sm:$0xff] }
 0x7d4   : > { %v3725_v60 = vpop.eup %3724 }
 0x7d5   : > { %3449 = vrot.lane.b32.xlu1 %v3448_v17, %s3838_s7  ;;  %v688_v49 = vpop.xlane.xlu1 %687  ;;  %v1861_v48 = vmul.f32 %v3725_v60, %v5302_v56  ;;  %v3727_v43 = vpop.eup %3726 }
 0x7d6   : > { %3734 = vrcp.f32 %v688_v49  ;;  %v1862_v13 = vmul.f32 %v3727_v43, %v5303_v24  ;;  %v5313_v49 = vld [vmem:[#allocation24_spill] sm:$0xff] }
 0x7d7   : > { %v3453_v2 = vpack.i.bf16 %v1861_v48, %v1860_v5  ;;  %v2168_v15 = vpop.xlane.xlu0 %2167  ;;  %v5314_v48 = vld [vmem:[#allocation23_spill] sm:$0xff] }
 0x7d8   : > { %v3729_v35 = vpop.eup %3728 }
 0x7d9   : > { %v692_v4 = vpop.xlane.xlu1 %691  ;;  %v3731_v44 = vpop.eup %3730  ;;  %3454 = vrot.lane.b32.xlu0 %v3453_v2, %s3838_s7  ;;  %v1863_v61 = vmul.f32 %v3729_v35, %v5304_v63 }
 0x7da   : > { %3736 = vrcp.f32 %v692_v4  ;;  %v1864_v12 = vmul.f32 %v3731_v44, %v5305_v1 }
 0x7db   : > { %v3458_v3 = vpack.i.bf16 %v1863_v61, %v1862_v13  ;;  %v2164_v10 = vpop.xlane.xlu0 %2163 }
 0x7dc   : > { %v3733_v9 = vpop.eup %3732 }
 0x7dd   : > { %v696_v50 = vpop.xlane.xlu1 %695  ;;  %v1865_v20 = vmul.f32 %v3733_v9, %v5306_v42  ;;  %3459 = vrot.lane.b32.xlu1 %v3458_v3, %s3838_s7 }
 0x7de   : > { %3738 = vrcp.f32 %v696_v50 }
 0x7df   : > { %v3463_v53 = vpack.i.bf16 %v1865_v20, %v1864_v12 }
 0x7e0   : > { %v3735_v57 = vpop.eup %3734 }
 0x7e1   : > { %3464 = vrot.lane.b32.xlu0 %v3463_v53, %s3838_s7  ;;  %v700_v0 = vpop.xlane.xlu1 %699  ;;  %v5014_v41 = vmul.f32 %v3735_v57, %v5307_v21  ;;  %v2176_v17 = vpop.xlane.xlu0 %2175 }
 0x7e2   : > { %3740 = vrcp.f32 %v700_v0 }
 0x7e4   : > { %v3737_v37 = vpop.eup %3736 }
 0x7e5   : > { %v704_v36 = vpop.xlane.xlu1 %703  ;;  %v5017_v26 = vmul.f32 %v3737_v37, %v5308_v23  ;;  %v2172_v5 = vpop.xlane.xlu0 %2171 }
 0x7e6   : > { %3742 = vrcp.f32 %v704_v36 }
 0x7e8   : > { %v3739_v27 = vpop.eup %3738 }
 0x7e9   : > { %v2162_v51 = vpop.xlane.xlu1 %2161  ;;  %v5020_v31 = vmul.f32 %v3739_v27, %v5309_v40 }
 0x7ec   : > { %v3741_v39 = vpop.eup %3740 }
 0x7ed   : > { %v2158_v33 = vpop.xlane.xlu1 %2157  ;;  %v5023_v38 = vmul.f32 %v3741_v39, %v5310_v32 }
 0x7f0   : > { %v3743_v16 = vpop.eup %3742 }
 0x7f1   : > { %v2170_v11 = vpop.xlane.xlu1 %2169  ;;  %v5026_v25 = vmul.f32 %v3743_v16, %v5311_v52 }
 0x7f5   : > { %v2166_v46 = vpop.xlane.xlu1 %2165 }
 0x7f9   : > { %v2178_v7 = vpop.xlane.xlu1 %2177 }
 0x7fd   : > { %v2174_v28 = vpop.xlane.xlu1 %2173 }
 0x801   : > { %v708_v19 = vpop.xlane.xlu1 %707 }
 0x802   : > { %3744 = vrcp.f32 %v708_v19 }
 0x805   : > { %v5028_v55 = vpop.xlane.xlu1 %2185 }
 0x809   : > { %v5030_v34 = vpop.xlane.xlu1 %2181 }
 0x80c   : > { %v3745_v59 = vpop.eup %3744 }
 0x80d   : > { %v712_v54 = vpop.xlane.xlu1 %711  ;;  %v5033_v47 = vmul.f32 %v3745_v59, %v5312_v45 }
 0x80e   : > { %3746 = vrcp.f32 %v712_v54 }
 0x811   : > { %v716_v22 = vpop.xlane.xlu1 %715 }
 0x812   : > { %3748 = vrcp.f32 %v716_v22 }
 0x813   : > { %3750 = vrcp.f32 %v2160_v62 }
 0x814   : > { %3752 = vrcp.f32 %v2156_v8 }
 0x815   : > { %3754 = vrcp.f32 %v2162_v51  ;;  %v5041_v35 = vpop.permute.xlu1 %3394 }
 0x816   : > { %3756 = vrcp.f32 %v2158_v33 }
 0x817   : > { %3758 = vrcp.f32 %v2168_v15 }
 0x818   : > { %v3747_v60 = vpop.eup %3746  ;;  %3760 = vrcp.f32 %v2164_v10  ;;  %v5315_v10 = vld [vmem:[#allocation22_spill] sm:$0xff] }
 0x819   : > { %v899_v18 = vmul.f32 %v3747_v60, %v5313_v49  ;;  %v5047_v24 = vpop.permute.xlu1 %3399  ;;  %3762 = vrcp.f32 %v2170_v11 }
 0x81a   : > { %3764 = vrcp.f32 %v2166_v46 }
 0x81c   : > { %v3749_v56 = vpop.eup %3748 }
 0x81d   : > { %v5037_v43 = vmul.f32 %v3749_v56, %v5314_v48  ;;  %v3751_v13 = vpop.eup %3750 }
 0x81e   : > { %v5039_v2 = vpop.xlane.xlu0 %2183  ;;  %v3753_v61 = vpop.eup %3752 }
 0x81f   : > { %v3755_v3 = vpop.eup %3754 }
 0x820   : > { %v3757_v12 = vpop.eup %3756 }
 0x821   : > { %v3759_v51 = vpop.eup %3758 }
 0x822   : > { %v5043_v4 = vpop.xlane.xlu0 %2179  ;;  %v3761_v33 = vpop.eup %3760 }
 0x823   : > { %v3763_v16 = vpop.eup %3762 }
 0x824   : > { %v3765_v62 = vpop.eup %3764 }
 0x826   : > { %v5045_v44 = vpop.xlane.xlu0 %705 }
 0x827   : > { %v5049_v42 = vpop.permute.xlu1 %3409 }
 0x828   : > { %v3315_v63 = vpop.f32.mrb[48].mxu0 }
 0x829   : > { %v2253_v9 = vpop.f32.mrb[49].mxu0  ;;  %v2334_v20 = vmul.f32 %v3751_v13, %v3315_v63 }
 0x82a   : > { %v3316_v50 = vpop.f32.mrb[50].mxu0  ;;  %v710_v1 = vpop.xlane.xlu0 %709  ;;  %v2332_v0 = vmul.f32 %v3753_v61, %v2253_v9 }
 0x82b   : > { %v2335_v53 = vmul.f32 %v3755_v3, %v3316_v50  ;;  %3766 = vrcp.f32 %v710_v1  ;;  %v2256_v57 = vpop.f32.mrb[51].mxu0  ;;  %v5316_v3 = vld [vmem:[#allocation21_spill] sm:$0xff] }
 0x82c   : > { %v2333_v21 = vmul.f32 %v3757_v12, %v2256_v57  ;;  %3768 = vrcp.f32 %v2176_v17 }
 0x82d   : > { %v3468_v37 = vpack.i.bf16 %v2335_v53, %v2334_v20  ;;  %3770 = vrcp.f32 %v2172_v5 }
 0x82e   : > { %v3473_v36 = vpack.i.bf16 %v2333_v21, %v2332_v0  ;;  %v714_v23 = vpop.xlane.xlu0 %713 }
 0x82f   : > { %3772 = vrcp.f32 %v714_v23  ;;  %3469 = vrot.lane.b32.xlu0 %v3468_v37, %s3837_s23  ;;  %v3420_v27 = vpop.permute.xlu1 %3419 }
 0x830   : > { %3774 = vrcp.f32 %v2178_v7  ;;  %v3422_v40 = vunpack.i.h.bf16 %v3420_v27  ;;  %v3319_v39 = vpop.f32.mrb[52].mxu0  ;;  %3474 = vrot.lane.b32.xlu1 %v3473_v36, %s3837_s23  ;;  %v3421_v17 = vunpack.i.l.bf16 %v3420_v27 }
 0x831   : > { %3776 = vrcp.f32 %v2174_v28  ;;  %v2269_v32 = vpop.f32.mrb[53].mxu0  ;;  %v2338_v19 = vmul.f32 %v3759_v51, %v3319_v39 }
 0x832   : > { %v2553_v11 = vsel %vm421_vm0, %v899_v18, %v3422_v40  ;;  %v3320_v52 = vpop.f32.mrb[54].mxu0  ;;  %v5054_v46 = vpop.permute.xlu0 %3389  ;;  %v2336_v59 = vmul.f32 %v3761_v33, %v2269_v32  ;;  %3778 = vrcp.f32 %v5028_v55 }
 0x833   : > { %v2339_v8 = vmul.f32 %v3763_v16, %v3320_v52  ;;  %v2272_v15 = vpop.f32.mrb[55].mxu0  ;;  %3780 = vrcp.f32 %v5030_v34  ;;  %v3397_v34 = vunpack.i.h.bf16 %v5041_v35 }
 0x834   : > { %v2337_v54 = vmul.f32 %v3765_v62, %v2272_v15  ;;  %3782 = vrcp.f32 %v5039_v2  ;;  %v3396_v2 = vunpack.i.l.bf16 %v5041_v35 }
 0x835   : > { %v3767_v7 = vpop.eup %3766  ;;  %v3478_v45 = vpack.i.bf16 %v2339_v8, %v2338_v19  ;;  %3784 = vrcp.f32 %v5043_v4  ;;  %v3392_v4 = vunpack.i.h.bf16 %v5054_v46 }
 0x836   : > { %v898_v22 = vmul.f32 %v3767_v7, %v5315_v10  ;;  %v3483_v60 = vpack.i.bf16 %v2337_v54, %v2336_v59  ;;  %v5057_v28 = vpop.permute.xlu0 %3404  ;;  %v3769_v49 = vpop.eup %3768  ;;  %3786 = vrcp.f32 %v5045_v44 }
 0x837   : > { %3479 = vrot.lane.b32.xlu0 %v3478_v45, %s3837_s23  ;;  %v3771_v18 = vpop.eup %3770  ;;  %v3430_v33 = vpop.permute.xlu1 %3429 }
 0x838   : > { %v2552_v5 = vsel %vm421_vm0, %v898_v22, %v3421_v17  ;;  %v3323_v56 = vpop.f32.mrb[56].mxu0  ;;  %3484 = vrot.lane.b32.xlu1 %v3483_v60, %s3837_s23 }
 0x839   : > { %v3773_v48 = vpop.eup %3772  ;;  %v2285_v13 = vpop.f32.mrb[57].mxu0  ;;  %v2342_v12 = vmul.f32 %v3769_v49, %v3323_v56 }
 0x83a   : > { %v3775_v63 = vpop.eup %3774  ;;  %v3324_v61 = vpop.f32.mrb[58].mxu0  ;;  %v900_v50 = vmul.f32 %v3773_v48, %v5316_v3  ;;  %v2340_v57 = vmul.f32 %v3771_v18, %v2285_v13 }
 0x83b   : > { %v5062_v9 = vpop.permute.xlu0 %3414  ;;  %v3777_v1 = vpop.eup %3776  ;;  %v2343_v20 = vmul.f32 %v3775_v63, %v3324_v61 }
 0x83c   : > { %v2288_v53 = vpop.f32.mrb[59].mxu0  ;;  %v3779_v17 = vpop.eup %3778 }
 0x83d   : > { %v2341_v0 = vmul.f32 %v3777_v1, %v2288_v53  ;;  %v3488_v21 = vpack.i.bf16 %v2343_v20, %v2342_v12  ;;  %v3781_v60 = vpop.eup %3780  ;;  %v3391_v1 = vunpack.i.l.bf16 %v5054_v46  ;;  %v3432_v53 = vunpack.i.h.bf16 %v3430_v33 }
 0x83e   : > { %v3783_v18 = vpop.eup %3782 }
 0x83f   : > { %v3493_v37 = vpack.i.bf16 %v2341_v0, %v2340_v57  ;;  %v3425_v36 = vpop.permute.xlu0 %3424  ;;  %3489 = vrot.lane.b32.xlu0 %v3488_v21, %s3837_s23  ;;  %v5070_v32 = vpop.permute.xlu1 %3439  ;;  %v3431_v57 = vunpack.i.l.bf16 %v3430_v33  ;;  %v2543_v0 = vsel %vm421_vm0, %v5017_v26, %v3397_v34  ;;  %v2542_v21 = vsel %vm421_vm0, %v4973_v6, %v3396_v2 }
 0x840   : > { %v3427_v23 = vunpack.i.h.bf16 %v3425_v36  ;;  %v3426_v27 = vunpack.i.l.bf16 %v3425_v36  ;;  %v3785_v56 = vpop.eup %3784  ;;  %v2540_v46 = vsel %vm421_vm0, %v4965_v29, %v3391_v1  ;;  %v2541_v36 = vsel %vm421_vm0, %v5014_v41, %v3392_v4 }
 0x841   : > { %3494 = vrot.lane.b32.xlu1 %v3493_v37, %s3837_s23  ;;  %v3402_v37 = vunpack.i.h.bf16 %v5047_v24  ;;  %v2558_v33 = vsel %vm2556_vm1, %v2541_v36, %v3432_v53  ;;  %v2557_v44 = vsel %vm2556_vm1, %v2540_v46, %v3431_v57  ;;  %v3411_v2 = vunpack.i.l.bf16 %v5049_v42 }
 0x842   : > { %v2554_v51 = vsel %vm421_vm0, %v900_v50, %v3426_v27  ;;  %v2555_v40 = vsel %vm421_vm0, %v5037_v43, %v3427_v23  ;;  %v3416_v53 = vunpack.i.l.bf16 %v5062_v9 }
 0x843   : > { %v3435_v39 = vpop.permute.xlu0 %3434 }
 0x844   : > { %v3437_v12 = vunpack.i.h.bf16 %v3435_v39  ;;  %v3436_v20 = vunpack.i.l.bf16 %v3435_v39 }
 0x846   : > { %v2559_v26 = vsel %vm2556_vm1, %v2542_v21, %v3436_v20  ;;  %v3417_v20 = vunpack.i.h.bf16 %v5062_v9 }
 0x847   : > { %v5072_v16 = vpop.permute.xlu0 %3444  ;;  %v5074_v52 = vpop.permute.xlu1 %3449 }
 0x848   : > { %v3452_v46 = vunpack.i.h.bf16 %v5074_v52 }
 0x84b   : > { %v5076_v62 = vpop.permute.xlu0 %3454 }
 0x84c   : > { %v3456_v21 = vunpack.i.l.bf16 %v5076_v62 }
 0x84f   : > { %v3460_v19 = vpop.permute.xlu1 %3459 }
 0x850   : > { %v3462_v8 = vunpack.i.h.bf16 %v3460_v19  ;;  %v3461_v15 = vunpack.i.l.bf16 %v3460_v19  ;;  %v3401_v19 = vunpack.i.l.bf16 %v5047_v24  ;;  %v2545_v24 = vsel %vm421_vm0, %v5020_v31, %v3402_v37  ;;  %v5317_v37 = vld [vmem:[#allocation17_spill] sm:$0xff] }
 0x852   : > { %v5079_v59 = vsel %vm2556_vm1, %v2552_v5, %v3461_v15  ;;  %v5082_v54 = vsel %vm2556_vm1, %v2553_v11, %v3462_v8 }
 0x853   : > { %v3465_v43 = vpop.permute.xlu0 %3464 }
 0x854   : > { %v3467_v7 = vunpack.i.h.bf16 %v3465_v43  ;;  %v3466_v45 = vunpack.i.l.bf16 %v3465_v43 }
 0x856   : > { %v5085_v10 = vsel %vm2556_vm1, %v2554_v51, %v3466_v45  ;;  %v5088_v22 = vsel %vm2556_vm1, %v2555_v40, %v3467_v7  ;;  %v2560_v40 = vsel %vm2556_vm1, %v2543_v0, %v3437_v12  ;;  %v3407_v7 = vunpack.i.h.bf16 %v5057_v28 }
 0x857   : > { %v3406_v45 = vunpack.i.l.bf16 %v5057_v28  ;;  %v3457_v0 = vunpack.i.h.bf16 %v5076_v62  ;;  %v2551_v62 = vsel %vm421_vm0, %v5033_v47, %v3417_v20 }
 0x866   : > { %v3327_v11 = vpop.f32.mrb[60].mxu0 }
 0x867   : > { %v2301_v49 = vpop.f32.mrb[61].mxu0  ;;  %v2346_v48 = vmul.f32 %v3783_v18, %v3327_v11  ;;  %v3447_v11 = vunpack.i.h.bf16 %v5072_v16  ;;  %v3441_v18 = vunpack.i.l.bf16 %v5070_v32 }
 0x868   : > { %v3328_v5 = vpop.f32.mrb[62].mxu0  ;;  %v2344_v61 = vmul.f32 %v3785_v56, %v2301_v49  ;;  %v3442_v49 = vunpack.i.h.bf16 %v5070_v32  ;;  %v3412_v56 = vunpack.i.h.bf16 %v5049_v42  ;;  %v3787_v32 = vpop.eup %3786  ;;  %v3451_v42 = vunpack.i.l.bf16 %v5074_v52 }
 0x869   : > { %v2347_v13 = vmul.f32 %v3779_v17, %v3328_v5  ;;  %v2304_v63 = vpop.f32.mrb[63].mxu0  ;;  %v2544_v5 = vsel %vm421_vm0, %v4979_v58, %v3401_v19 }
 0x86a   : > { %v2345_v3 = vmul.f32 %v3781_v60, %v2304_v63  ;;  %v3446_v60 = vunpack.i.l.bf16 %v5072_v16  ;;  %v2547_v16 = vsel %vm421_vm0, %v5023_v38, %v3407_v7  ;;  %v2562_v34 = vsel %vm2556_vm1, %v2545_v24, %v3442_v49 }
 0x86b   : > { %v3503_v50 = vpack.i.bf16 %v2347_v13, %v2346_v48  ;;  %v2546_v48 = vsel %vm421_vm0, %v4986_v30, %v3406_v45  ;;  %v2564_v31 = vsel %vm2556_vm1, %v2547_v16, %v3447_v11  ;;  %v2549_v36 = vsel %vm421_vm0, %v5026_v25, %v3412_v56 }
 0x86c   : > { %v3498_v55 = vpack.i.bf16 %v2345_v3, %v2344_v61  ;;  %v2563_v3 = vsel %vm2556_vm1, %v2546_v48, %v3446_v60 }
 0x86d   : > { %3504 = vrot.lane.b32.xlu0 %v3503_v50, %s3837_s23 }
 0x86e   : > { %3499 = vrot.lane.b32.xlu1 %v3498_v55, %s3837_s23  ;;  %v2561_v55 = vsel %vm2556_vm1, %v2544_v5, %v3441_v18 }
 0x8a1   : > { %v3470_v35 = vpop.permute.xlu0 %3469 }
 0x8a2   : > { %v3472_v23 = vunpack.i.h.bf16 %v3470_v35  ;;  %v3471_v27 = vunpack.i.l.bf16 %v3470_v35  ;;  %v3475_v51 = vpop.permute.xlu1 %3474  ;;  %v896_v35 = vmul.f32 %v3787_v32, %v5317_v37 }
 0x8a3   : > { %v3477_v39 = vunpack.i.h.bf16 %v3475_v51  ;;  %v3476_v6 = vunpack.i.l.bf16 %v3475_v51 }
 0x8a4   : > { %v2576_v29 = vsel %vm2573_vm2, %v2559_v26, %v3471_v27  ;;  %v2577_v41 = vsel %vm2573_vm2, %v2560_v40, %v3472_v23  ;;  %v2548_v23 = vsel %vm421_vm0, %v4993_v14, %v3411_v2  ;;  %v2550_v27 = vsel %vm421_vm0, %v896_v35, %v3416_v53 }
 0x8a5   : > { %v2906_v8 = vpack.c.bf16 %v2577_v41, %v2576_v29  ;;  %v2574_v15 = vsel %vm2573_vm2, %v2557_v44, %v3476_v6  ;;  %v2575_v43 = vsel %vm2573_vm2, %v2558_v33, %v3477_v39  ;;  %v2567_v52 = vsel %vm2556_vm1, %v2550_v27, %v3456_v21 }
 0x8a6   : > { %v2901_v17 = vpack.c.bf16 %v2575_v43, %v2574_v15  ;;  %v2568_v39 = vsel %vm2556_vm1, %v2551_v62, %v3457_v0  ;;  %v2565_v33 = vsel %vm2556_vm1, %v2548_v23, %v3451_v42  ;;  %v2566_v14 = vsel %vm2556_vm1, %v2549_v36, %v3452_v46 }
 0x8a7   : > { %2938 = vst [vmem:[%s5118_s11 + $0x8] sm:$0xff] %v2906_v8  }
 0x8a8   : > { %2902 = vst [vmem:[%s5118_s11] sm:$0xff] %v2901_v17  }
 0x8a9   : > { %v3480_v28 = vpop.permute.xlu0 %3479 }
 0x8aa   : > { %v3482_v13 = vunpack.i.h.bf16 %v3480_v28  ;;  %v3481_v63 = vunpack.i.l.bf16 %v3480_v28  ;;  %v3485_v61 = vpop.permute.xlu1 %3484 }
 0x8ab   : > { %v3487_v50 = vunpack.i.h.bf16 %v3485_v61  ;;  %v3486_v58 = vunpack.i.l.bf16 %v3485_v61 }
 0x8ac   : > { %v2581_v30 = vsel %vm2573_vm2, %v2564_v31, %v3482_v13  ;;  %v2580_v38 = vsel %vm2573_vm2, %v2563_v3, %v3481_v63 }
 0x8ad   : > { %v2916_v4 = vpack.c.bf16 %v2581_v30, %v2580_v38  ;;  %v2578_v1 = vsel %vm2573_vm2, %v2561_v55, %v3486_v58  ;;  %v2579_v12 = vsel %vm2573_vm2, %v2562_v34, %v3487_v50 }
 0x8ae   : > { %v2911_v57 = vpack.c.bf16 %v2579_v12, %v2578_v1 }
 0x8af   : > { %2940 = vst [vmem:[%s5118_s11 + $0x18] sm:$0xff] %v2916_v4  }
 0x8b0   : > { %2939 = vst [vmem:[%s5118_s11 + $0x10] sm:$0xff] %v2911_v57  }
 0x8b1   : > { %v3490_v9 = vpop.permute.xlu0 %3489 }
 0x8b2   : > { %v3492_v51 = vunpack.i.h.bf16 %v3490_v9  ;;  %v3491_v26 = vunpack.i.l.bf16 %v3490_v9 }
 0x8b3   : > { %v3495_v40 = vpop.permute.xlu1 %3494 }
 0x8b4   : > { %v3497_v6 = vunpack.i.h.bf16 %v3495_v40  ;;  %v3496_v25 = vunpack.i.l.bf16 %v3495_v40  ;;  %v2584_v44 = vsel %vm2573_vm2, %v2567_v52, %v3491_v26  ;;  %v2585_v29 = vsel %vm2573_vm2, %v2568_v39, %v3492_v51 }
 0x8b5   : > { %v2926_v47 = vpack.c.bf16 %v2585_v29, %v2584_v44 }
 0x8b6   : > { %v2582_v41 = vsel %vm2573_vm2, %v2565_v33, %v3496_v25  ;;  %v2583_v19 = vsel %vm2573_vm2, %v2566_v14, %v3497_v6 }
 0x8b7   : > { %v2921_v8 = vpack.c.bf16 %v2583_v19, %v2582_v41  ;;  %2942 = vst [vmem:[%s5118_s11 + $0x28] sm:$0xff] %v2926_v47  }
 0x8b9   : > { %2941 = vst [vmem:[%s5118_s11 + $0x20] sm:$0xff] %v2921_v8  }
 0x8df   : > { %v3505_v15 = vpop.permute.xlu0 %3504 }
 0x8e0   : > { %v3507_v43 = vunpack.i.h.bf16 %v3505_v15  ;;  %v3506_v7 = vunpack.i.l.bf16 %v3505_v15  ;;  %v3500_v45 = vpop.permute.xlu1 %3499 }
 0x8e1   : > { %v3502_v17 = vunpack.i.h.bf16 %v3500_v45  ;;  %v3501_v11 = vunpack.i.l.bf16 %v3500_v45 }
 0x8e2   : > { %v2588_v60 = vsel %vm2573_vm2, %v5085_v10, %v3506_v7  ;;  %v2589_v49 = vsel %vm2573_vm2, %v5088_v22, %v3507_v43 }
 0x8e3   : > { %v2936_v18 = vpack.c.bf16 %v2589_v49, %v2588_v60  ;;  %v2586_v24 = vsel %vm2573_vm2, %v5079_v59, %v3501_v11  ;;  %v2587_v5 = vsel %vm2573_vm2, %v5082_v54, %v3502_v17 }
 0x8e4   : > { %v2931_v56 = vpack.c.bf16 %v2587_v5, %v2586_v24 }
 0x8e5   : > { %2944 = vst [vmem:[%s5118_s11 + $0x38] sm:$0xff] %v2936_v18  }
 0x8e6   : > { %2943 = vst [vmem:[%s5118_s11 + $0x30] sm:$0xff] %v2931_v56  }
 0x8e7 PF: > { %s14_s17 = sadd.s32 1, %s3835_s17   ;;  %s5318_s15 = smov %s3831_s16 }
 0x8e8   : > { %p11_p5 = scmp.ge.s32.totalorder %s14_s17, 4   ;;  %s5319_s16 = smov %s5321_s18 }
 0x8ea   :  { %13 = sbr.rel (!%p11_p5) target bundleno = 2 (0x2), region = 75 }

// kernel: bert_forward.15
= control target key start
LH: loop header
LB: loop body
LE: loop exit
PB: predicated region body
PF: predicated region fallthrough
CT: control target
= control target key end

     0   :  { %s1798_s12 = smov 0   ;;  %s1800_s13 = smov 0   ;;  %s2330_s0 = inlined_call_operand.vmem [shape: bf16[256,128], index: 0, kind: input, shape index: {}]   ;;  %s2331_s1 = inlined_call_operand.vmem [shape: bf16[128,512], index: 1, kind: input, shape index: {}]   ;;  %s2332_s2 = inlined_call_operand.vmem [shape: bf16[1,512], index: 2, kind: input, shape index: {}]   ;;  %s2333_s3 = inlined_call_operand.vmem [shape: bf16[256,512], index: 3, kind: output, shape index: {}]  }
   0x1   :  { %s1802_s14 = smov 0   ;;  %s1804_s15 = smov 0  }
   0x2   :  { %s1806_s16 = smov 0   ;;  %s1808_s17 = smov 0  }
   0x3   :  { %s1810_s18 = smov 0   ;;  %s1812_s19 = smov 0  }
   0x4   :  { %s1814_s20 = smov 0  }
   0x5 LB: > { %s1442_s21 = sadd.s32 4294967295, %s1775_s20   ;;  %s28_s22 = sadd.s32 1, %s1767_s18  ;;  %s1775_s20 = sphi %s1814_s20, %s13_s20   ;;  %s1771_s19 = sphi %s1812_s19, %s2342_s19   ;;  %s1767_s18 = sphi %s1810_s18, %s2341_s18   ;;  %s1763_s17 = sphi %s1808_s17, %s2340_s17   ;;  %s1759_s16 = sphi %s1806_s16, %s2339_s16   ;;  %s1755_s15 = sphi %s1804_s15, %s2338_s15   ;;  %s1751_s14 = sphi %s1802_s14, %s2337_s14   ;;  %s1747_s13 = sphi %s1800_s13, %s2336_s13   ;;  %s1743_s12 = sphi %s1798_s12, %s2335_s12  }
   0x6   : > { %p30_p0 = scmp.ge.s32.totalorder %s28_s22, 2  ;;  %s32_s23 = sadd.s32 1, %s1771_s19 }
   0x7   : > { %s69_s24 = sadd.s32 1, %s1755_s15  ;;  %p76_p1 = scmp.ne.s32.totalorder %s1755_s15, %s1751_s14 }
   0x8   : > { %s2344_s22 = smov (%p30_p0, %s28_s22), 0  ;;  %s2346_s23 = smov (!%p30_p0, %s32_s23), %s1771_s19 }
   0x9   : > { %s65_s25 = ssub.s32 %s1767_s18, %s2344_s22  ;;  %p77_p2 = scmp.eq.s32.totalorder %s1775_s20, 0 }
   0xa   : > { %p34_p3 = scmp.ge.s32.totalorder %s2346_s23, 2  ;;  %p67_p4 = scmp.eq.s32.totalorder %s65_s25, 0 }
   0xb   : > { %p78_p5 = por %p77_p2, %p76_p1  ;;  %s123_s26 = sadd.s32 1, %s1747_s13 }
   0xc   : > { %s2348_s23 = smov (%p34_p3, %s2346_s23), 0  ;;  %p133_p6 = scmp.ne.s32.totalorder %s1747_s13, %s1743_s12 }
   0xd   : > { %s1859_s27 = scalar_select %p67_p4, %s1755_s15, %s69_s24  }
   0xe   : > { %s118_s28 = ssub.s32 %s1771_s19, %s2348_s23  ;;  %p134_p7 = scmp.eq.s32.totalorder %s1442_s21, 3 }
   0xf   : > { %s120_s29 = sor.u32 %s118_s28, %s65_s25  ;;  %p1445_p10 = scmp.ge.s32.totalorder %s1775_s20, 4 }
  0x10   : > { %p121_p8 = scmp.eq.s32.totalorder %s120_s29, 0  ;;  %p1865_p9 = por %p134_p7, %p133_p6 }
  0x11   : > { %156 = sbr.rel (%p1445_p10) target bundleno = 36 (0x24), region = 16 }
  0x12   : > { %s1870_s4 = scalar_select %p121_p8, %s1747_s13, %s123_s26  }
  0x18   : > { %171 = sbr.rel (!%p78_p5) target bundleno = 36 (0x24), region = 24  ;;  %s173_s5 = sand.u32 (%p78_p5), 1, %s1755_s15  }
  0x19   : > { %s1502_s6 = sshll.u32 (%p78_p5), %s1767_s18, 3  ;;  %s1446_s7 = sshll.u32 (%p78_p5), %s173_s5, 7 }
  0x1a   : > { %s1878_s10 = scalar_lea.vmem (%p78_p5), %s2331_s1, %s1502_s6  ;;  %s175_s11 = scalar_lea.vmem (%p78_p5), [#allocation3], %s1446_s7 }
  0x1b   : > { %v239_v0 = vld [vmem:[%s1878_s10] sm:$0xff] (%p78_p5)  ;;  %v241_v1 = vld [vmem:[%s1878_s10 + $0x10] sm:$0xff] (%p78_p5) }
  0x1c   : > { %v243_v2 = vld [vmem:[%s1878_s10 + $0x20] sm:$0xff] (%p78_p5)  ;;  %240 = vst [vmem:[%s175_s11] sm:$0xff] (%p78_p5), %v239_v0  ;;  %242 = vst [vmem:[%s175_s11 + $0x8] sm:$0xff] (%p78_p5), %v241_v1  ;;  %v245_v3 = vld [vmem:[%s1878_s10 + $0x30] sm:$0xff] (%p78_p5) }
  0x1d   : > { %244 = vst [vmem:[%s175_s11 + $0x10] sm:$0xff] (%p78_p5), %v243_v2  ;;  %v247_v4 = vld [vmem:[%s1878_s10 + $0x40] sm:$0xff] (%p78_p5)  ;;  %v249_v5 = vld [vmem:[%s1878_s10 + $0x50] sm:$0xff] (%p78_p5)  ;;  %246 = vst [vmem:[%s175_s11 + $0x18] sm:$0xff] (%p78_p5), %v245_v3 }
  0x1e   : > { %248 = vst [vmem:[%s175_s11 + $0x20] sm:$0xff] (%p78_p5), %v247_v4  ;;  %250 = vst [vmem:[%s175_s11 + $0x28] sm:$0xff] (%p78_p5), %v249_v5  ;;  %v251_v6 = vld [vmem:[%s1878_s10 + $0x60] sm:$0xff] (%p78_p5)  ;;  %v253_v7 = vld [vmem:[%s1878_s10 + $0x70] sm:$0xff] (%p78_p5) }
  0x1f   : > { %v255_v8 = vld [vmem:[%s1878_s10 + $0x80] sm:$0xff]  ;;  %252 = vst [vmem:[%s175_s11 + $0x30] sm:$0xff] %v251_v6  ;;  %254 = vst [vmem:[%s175_s11 + $0x38] sm:$0xff] %v253_v7  ;;  %v257_v9 = vld [vmem:[%s1878_s10 + $0x90] sm:$0xff] }
  0x20   : > { %256 = vst [vmem:[%s175_s11 + $0x40] sm:$0xff] %v255_v8  ;;  %v259_v10 = vld [vmem:[%s1878_s10 + $0xa0] sm:$0xff]  ;;  %v261_v11 = vld [vmem:[%s1878_s10 + $0xb0] sm:$0xff]  ;;  %258 = vst [vmem:[%s175_s11 + $0x48] sm:$0xff] %v257_v9 }
  0x21   : > { %260 = vst [vmem:[%s175_s11 + $0x50] sm:$0xff] %v259_v10  ;;  %262 = vst [vmem:[%s175_s11 + $0x58] sm:$0xff] %v261_v11  ;;  %v263_v12 = vld [vmem:[%s1878_s10 + $0xc0] sm:$0xff]  ;;  %v265_v13 = vld [vmem:[%s1878_s10 + $0xd0] sm:$0xff] }
  0x22   : > { %v267_v14 = vld [vmem:[%s1878_s10 + $0xe0] sm:$0xff]  ;;  %264 = vst [vmem:[%s175_s11 + $0x60] sm:$0xff] %v263_v12  ;;  %266 = vst [vmem:[%s175_s11 + $0x68] sm:$0xff] %v265_v13  ;;  %v269_v15 = vld [vmem:[%s1878_s10 + $0xf0] sm:$0xff] }
  0x23   : > { %268 = vst [vmem:[%s175_s11 + $0x70] sm:$0xff] %v267_v14  ;;  %270 = vst [vmem:[%s175_s11 + $0x78] sm:$0xff] %v269_v15 }
  0x24 PF: > { %p1449_p11 = scmp.ge.s32.totalorder %s1775_s20, 1  ;;  %p283_p12 = scmp.lt.s32.totalorder %s1775_s20, 5 }
  0x26   : > { %p284_p13 = pnand %p1449_p11, %p283_p12 }
  0x27   : > { %s290_s21 = sand.u32 (!%p284_p13), 1, %s1751_s14   ;;  %s1452_s24 = sshll.u32 (!%p284_p13), %s1763_s17, 4  ;;  %v1777_v16 = vmov (!%p284_p13), 0   ;;  %v786_v41 = vlaneseq (!%p284_p13) }
  0x28   : > { %287 = sbr.rel (%p284_p13) target bundleno = 398 (0x18e), region = 66  ;;  %s1450_s25 = sshll.u32 (!%p284_p13), %s290_s21, 7  ;;  %603 = vmatprep.mubr.bf16.mxu0 (!%p284_p13), %v1777_v16  ;;  %643 = vmatprep.mubr.bf16.mxu1 (!%p284_p13), %v1777_v16 }
  0x29   : > { %p325_p0 = scmp.lt.s32.totalorder (!%p284_p13), %s1452_s24, 31  ;;  %s1902_s26 = scalar_lea.vmem (!%p284_p13), [#allocation3], %s1450_s25  ;;  %v787_v42 = vshrl.u32 (!%p284_p13), %v786_v41, 7 }
  0x2a   : > { %v1609_v17 = vld [vmem:[%s1902_s26 + $0x4] ss:$8 sps:$4 sm:$0xff] (!%p284_p13)   ;;  %v1611_v18 = vld [vmem:[%s1902_s26] ss:$8 sps:$4 sm:$0xff] (!%p284_p13)   ;;  %v1612_v19 = vld [vmem:[%s1902_s26 + $0x14] ss:$8 sps:$4 sm:$0xff] (!%p284_p13)  }
  0x2b   : > { %571 = vmatprep.subr.bf16.mxu0 (!%p284_p13), %v1609_v17  ;;  %1520 = vmatprep.subr.bf16.mxu1 (!%p284_p13), %v1609_v17  ;;  %v1614_v20 = vld [vmem:[%s1902_s26 + $0x10] ss:$8 sps:$4 sm:$0xff] (!%p284_p13)   ;;  %v1615_v21 = vld [vmem:[%s1902_s26 + $0x24] ss:$8 sps:$4 sm:$0xff] (!%p284_p13)   ;;  %v1617_v22 = vld [vmem:[%s1902_s26 + $0x20] ss:$8 sps:$4 sm:$0xff] (!%p284_p13)  }
  0x2c   : > { %572 = vmatpush1.bf16.msra.mxu0 (!%p284_p13), %v1611_v18  ;;  %1528 = vmatpush1.bf16.msra.mxu1 (!%p284_p13), %v1611_v18  ;;  %v1618_v23 = vld [vmem:[%s1902_s26 + $0x34] ss:$8 sps:$4 sm:$0xff] (!%p284_p13)   ;;  %v1620_v24 = vld [vmem:[%s1902_s26 + $0x30] ss:$8 sps:$4 sm:$0xff] (!%p284_p13)   ;;  %v1621_v25 = vld [vmem:[%s1902_s26 + $0x44] ss:$8 sps:$4 sm:$0xff] (!%p284_p13)  }
  0x2d   : > { %573 = vmatprep.subr.bf16.mxu0 (!%p284_p13), %v1612_v19  ;;  %1521 = vmatprep.subr.bf16.mxu1 (!%p284_p13), %v1612_v19  ;;  %v1623_v26 = vld [vmem:[%s1902_s26 + $0x40] ss:$8 sps:$4 sm:$0xff] (!%p284_p13)   ;;  %v1624_v27 = vld [vmem:[%s1902_s26 + $0x54] ss:$8 sps:$4 sm:$0xff] (!%p284_p13)   ;;  %v1626_v28 = vld [vmem:[%s1902_s26 + $0x50] ss:$8 sps:$4 sm:$0xff] (!%p284_p13)  }
  0x2e   : > { %v1627_v29 = vld [vmem:[%s1902_s26 + $0x64] ss:$8 sps:$4 sm:$0xff] (!%p284_p13)   ;;  %v1629_v30 = vld [vmem:[%s1902_s26 + $0x60] ss:$8 sps:$4 sm:$0xff] (!%p284_p13)   ;;  %v1630_v31 = vld [vmem:[%s1902_s26 + $0x74] ss:$8 sps:$4 sm:$0xff] (!%p284_p13)  }
  0x2f   : > { %s2350_s24 = smov (!%p325_p0, %s1452_s24), 31  ;;  %v1632_v32 = vld [vmem:[%s1902_s26 + $0x70] ss:$8 sps:$4 sm:$0xff]   ;;  %s1940_s6 = sshll.u32 %s1759_s16, 1  ;;  %v788_v45 = vsub.s32 0, %v787_v42  ;;  %v792_v46 = vsub.s32 2, %v787_v42 }
  0x30   : > { %s1453_s14 = sshll.u32 %s2350_s24, 2  ;;  %574 = vmatpush1.bf16.msra.mxu0 %v1614_v20  ;;  %1529 = vmatpush1.bf16.msra.mxu1 %v1614_v20  ;;  %p336_p1 = scmp.lt.s32.totalorder %s1940_s6, 3 }
  0x31   : > { %575 = vmatprep.subr.bf16.mxu0 %v1615_v21  ;;  %1522 = vmatprep.subr.bf16.mxu1 %v1615_v21  ;;  %s1914_s5 = scalar_lea.vmem %s2330_s0, %s1453_s14  ;;  %s321_s16 = sand.u32 1, %s1743_s12  }
  0x32   : > { %v1633_v33 = vld [vmem:[%s1914_s5] sm:$0xff]   ;;  %v1635_v35 = vld [vmem:[%s1914_s5 + $0x8] sm:$0xff]   ;;  %v1637_v37 = vld [vmem:[%s1914_s5 + $0x10] sm:$0xff]   ;;  %s337_s7 = scalar_select %p336_p1, %s1940_s6, 3 }
  0x33   : > { %v1634_v34 = vld [vmem:[%s1914_s5 + $0x20] sm:$0xff]   ;;  %v1636_v36 = vld [vmem:[%s1914_s5 + $0x28] sm:$0xff]   ;;  %v1638_v38 = vld [vmem:[%s1914_s5 + $0x30] sm:$0xff]   ;;  %s2075_s12 = sshll.u32 %s321_s16, 7  ;;  %s1519_s21 = sshll.u32 (%p1865_p9), %s1763_s17, 6 }
  0x34   : > { %576 = vmatpush1.bf16.msra.mxu0 %v1617_v22  ;;  %1530 = vmatpush1.bf16.msra.mxu1 %v1617_v22  ;;  %v1639_v39 = vld [vmem:[%s1914_s5 + $0x18] sm:$0xff]   ;;  %s338_s10 = scalar_lea.vmem %s2332_s2, %s337_s7  ;;  %s2094_s11 = scalar_lea.vmem [#allocation4], %s2075_s12 }
  0x35   : > { %577 = vmatprep.subr.bf16.mxu0 %v1618_v23  ;;  %1523 = vmatprep.subr.bf16.mxu1 %v1618_v23  ;;  %v1640_v40 = vld [vmem:[%s1914_s5 + $0x38] sm:$0xff]   ;;  %v783_v43 = vld [vmem:[%s338_s10] sm:$0x3]  ;;  %s1246_s30 = sadd.s32 (%p1865_p9), %s1519_s21, %s1940_s6 }
  0x36   : > { %v784_v44 = vunpack.c.l.bf16 %v783_v43  ;;  %s1499_s24 = sshll.u32 (%p1865_p9), %s1246_s30, 2 }
  0x37   : > { %s1248_s14 = scalar_lea.vmem (%p1865_p9), %s2333_s3, %s1499_s24 }
  0x38   : > { %578 = vmatpush1.bf16.msra.mxu0 %v1620_v24  ;;  %1531 = vmatpush1.bf16.msra.mxu1 %v1620_v24  ;;  %v789_v47 = vrot.slane %v784_v44, %v788_v45  ;;  %v793_v48 = vrot.slane %v784_v44, %v792_v46 }
  0x39   : > { %579 = vmatprep.subr.bf16.mxu0 %v1621_v25  ;;  %1524 = vmatprep.subr.bf16.mxu1 %v1621_v25 }
  0x3a   : > { %v1947_v49 = vrot.slane %v789_v47, %v788_v45  ;;  %v1949_v50 = vrot.slane %v793_v48, %v788_v45 }
  0x3c   : > { %580 = vmatpush1.bf16.msra.mxu0 %v1623_v26  ;;  %1532 = vmatpush1.bf16.msra.mxu1 %v1623_v26 }
  0x3d   : > { %581 = vmatprep.subr.bf16.mxu0 %v1624_v27  ;;  %1525 = vmatprep.subr.bf16.mxu1 %v1624_v27 }
  0x40   : > { %582 = vmatpush1.bf16.msra.mxu0 %v1626_v28  ;;  %1533 = vmatpush1.bf16.msra.mxu1 %v1626_v28 }
  0x41   : > { %583 = vmatprep.subr.bf16.mxu0 %v1627_v29  ;;  %1526 = vmatprep.subr.bf16.mxu1 %v1627_v29 }
  0x44   : > { %584 = vmatpush1.bf16.msra.mxu0 %v1629_v30  ;;  %1534 = vmatpush1.bf16.msra.mxu1 %v1629_v30 }
  0x45   : > { %585 = vmatprep.subr.bf16.mxu0 %v1630_v31  ;;  %1527 = vmatprep.subr.bf16.mxu1 %v1630_v31 }
  0x48   : > { %586 = vmatpush1.bf16.msra.mxu0 %v1632_v32  ;;  %1535 = vmatpush1.bf16.msra.mxu1 %v1632_v32 }
  0x4b   : > { %604 = vmatmul.mubr.bf16.vlgmr.msra.gmra.mrb[0].mxu0 %v1633_v33  ;;  %644 = vmatmul.mubr.bf16.vlgmr.msra.gmra.mrb[0].mxu1 %v1634_v34 }
  0x4c   : > { %613 = vmatprep.mubr.bf16.mxu0 %v1777_v16  ;;  %653 = vmatprep.mubr.bf16.mxu1 %v1777_v16 }
  0x53   : > { %614 = vmatmul.mubr.bf16.gmra.mrb[4].mxu0 %v1635_v35  ;;  %654 = vmatmul.mubr.bf16.gmra.mrb[4].mxu1 %v1636_v36 }
  0x54   : > { %623 = vmatprep.mubr.bf16.mxu0 %v1777_v16  ;;  %663 = vmatprep.mubr.bf16.mxu1 %v1777_v16 }
  0x5b   : > { %624 = vmatmul.mubr.bf16.gmra.mrb[8].mxu0 %v1637_v37  ;;  %664 = vmatmul.mubr.bf16.gmra.mrb[8].mxu1 %v1638_v38 }
  0x5c   : > { %633 = vmatprep.mubr.bf16.mxu0 %v1777_v16  ;;  %673 = vmatprep.mubr.bf16.mxu1 %v1777_v16 }
  0x63   : > { %634 = vmatmul.mubr.bf16.gmra.mrb[12].mxu0 %v1639_v39  ;;  %674 = vmatmul.mubr.bf16.gmra.mrb[12].mxu1 %v1640_v40 }
 0x11e   : > { %v605_v51 = vpop.f32.mrb[0].mxu0  ;;  %v645_v52 = vpop.f32.mrb[0].mxu1 }
 0x11f   : > { %v804_v53 = vadd.f32 %v1947_v49, %v605_v51  ;;  %v820_v54 = vadd.f32 %v1947_v49, %v645_v52  ;;  %v607_v55 = vpop.f32.mrb[1].mxu0  ;;  %v647_v56 = vpop.f32.mrb[1].mxu1 }
 0x120   : > { %v1954_v57 = vadd.f32 %v1949_v50, %v607_v55  ;;  %v1957_v58 = vadd.f32 %v1949_v50, %v647_v56  ;;  %v609_v59 = vpop.f32.mrb[2].mxu0  ;;  %v649_v60 = vpop.f32.mrb[2].mxu1 }
 0x121   : > { %v868_v61 = vmul.f32 0.044715, %v804_v53  ;;  %v884_v62 = vmul.f32 0.044715, %v820_v54  ;;  %v1962_v3 = vadd.f32 %v1947_v49, %v609_v59  ;;  %v1965_v4 = vadd.f32 %v1947_v49, %v649_v60  ;;  %v611_v5 = vpop.f32.mrb[3].mxu0  ;;  %v651_v6 = vpop.f32.mrb[3].mxu1 }
 0x122   : > { %v869_v63 = vmul.f32 0.044715, %v1954_v57  ;;  %v885_v0 = vmul.f32 0.044715, %v1957_v58  ;;  %v1970_v9 = vadd.f32 %v1949_v50, %v611_v5  ;;  %v1978_v21 = vadd.f32 %v1949_v50, %v651_v6 }
 0x123   : > { %v900_v1 = vmul.f32 %v868_v61, %v804_v53  ;;  %v916_v2 = vmul.f32 %v884_v62, %v820_v54  ;;  %v870_v12 = vmul.f32 0.044715, %v1962_v3  ;;  %v886_v15 = vmul.f32 0.044715, %v1965_v4 }
 0x124   : > { %v901_v7 = vmul.f32 %v869_v63, %v1954_v57  ;;  %v917_v8 = vmul.f32 %v885_v0, %v1957_v58  ;;  %v871_v27 = vmul.f32 0.044715, %v1970_v9  ;;  %v1986_v30 = vmul.f32 0.5, %v804_v53 }
 0x125   : > { %v932_v10 = vmul.f32 %v900_v1, %v804_v53  ;;  %v948_v11 = vmul.f32 %v916_v2, %v820_v54  ;;  %v902_v20 = vmul.f32 %v870_v12, %v1962_v3  ;;  %v918_v26 = vmul.f32 %v886_v15, %v1965_v4 }
 0x126   : > { %v933_v13 = vmul.f32 %v901_v7, %v1954_v57  ;;  %v949_v14 = vmul.f32 %v917_v8, %v1957_v58  ;;  %v615_v16 = vpop.f32.mrb[4].mxu0  ;;  %v655_v17 = vpop.f32.mrb[4].mxu1  ;;  %v903_v38 = vmul.f32 %v871_v27, %v1970_v9  ;;  %v887_v41 = vmul.f32 0.044715, %v1978_v21 }
 0x127   : > { %v964_v18 = vadd.f32 %v932_v10, %v804_v53  ;;  %v980_v19 = vadd.f32 %v948_v11, %v820_v54  ;;  %v617_v22 = vpop.f32.mrb[5].mxu0  ;;  %v657_v23 = vpop.f32.mrb[5].mxu1  ;;  %v934_v33 = vmul.f32 %v902_v20, %v1962_v3  ;;  %v950_v37 = vmul.f32 %v918_v26, %v1965_v4 }
 0x128   : > { %v965_v24 = vadd.f32 %v933_v13, %v1954_v57  ;;  %v981_v25 = vadd.f32 %v949_v14, %v1957_v58  ;;  %v619_v28 = vpop.f32.mrb[6].mxu0  ;;  %v1984_v29 = vpop.f32.mrb[6].mxu1  ;;  %v1998_v42 = vadd.f32 %v1947_v49, %v615_v16  ;;  %v935_v44 = vmul.f32 %v903_v38, %v1970_v9 }
 0x129   : > { %v996_v31 = vmul.f32 0.7978846, %v964_v18  ;;  %v1012_v32 = vmul.f32 0.7978846, %v980_v19  ;;  %v1989_v34 = vpop.f32.mrb[7].mxu0  ;;  %v1993_v39 = vpop.f32.mrb[7].mxu1  ;;  %v966_v40 = vadd.f32 %v934_v33, %v1962_v3  ;;  %v982_v43 = vadd.f32 %v950_v37, %v1965_v4 }
 0x12a   : > { %v997_v35 = vmul.f32 0.7978846, %v965_v24  ;;  %v1013_v36 = vmul.f32 0.7978846, %v981_v25  ;;  %v2003_v45 = vadd.f32 %v1947_v49, %v655_v17  ;;  %v2005_v46 = vmul.f32 0.5, %v820_v54 }
 0x12b   : > { %1641 = vtanh.f32 %v996_v31  ;;  %v998_v47 = vmul.f32 0.7978846, %v966_v40  ;;  %v919_v48 = vmul.f32 %v887_v41, %v1978_v21  ;;  %v1014_v51 = vmul.f32 0.7978846, %v982_v43 }
 0x12c   : > { %1643 = vtanh.f32 %v1012_v32  ;;  %v967_v52 = vadd.f32 %v935_v44, %v1970_v9  ;;  %v872_v53 = vmul.f32 0.044715, %v1998_v42  ;;  %v2015_v59 = vmul.f32 0.5, %v1954_v57 }
 0x12d   : > { %1645 = vtanh.f32 %v997_v35  ;;  %v951_v54 = vmul.f32 %v919_v48, %v1978_v21  ;;  %v888_v60 = vmul.f32 0.044715, %v2003_v45  ;;  %v2025_v1 = vadd.f32 %v1949_v50, %v617_v22 }
 0x12e   : > { %1647 = vtanh.f32 %v1013_v36  ;;  %v2010_v55 = vpop.f32.mrb[8].mxu0  ;;  %v2012_v56 = vpop.f32.mrb[8].mxu1  ;;  %v999_v63 = vmul.f32 0.7978846, %v967_v52  ;;  %v904_v0 = vmul.f32 %v872_v53, %v1998_v42  ;;  %v2034_v7 = vadd.f32 %v1949_v50, %v657_v23 }
 0x12f   : > { %1649 = vtanh.f32 %v998_v47  ;;  %v2019_v61 = vpop.f32.mrb[9].mxu0  ;;  %v2021_v62 = vpop.f32.mrb[9].mxu1  ;;  %v983_v5 = vadd.f32 %v951_v54, %v1978_v21  ;;  %v920_v6 = vmul.f32 %v888_v60, %v2003_v45  ;;  %v2037_v8 = vadd.f32 %v1947_v49, %v619_v28 }
 0x130   : > { %1651 = vtanh.f32 %v1014_v51  ;;  %v2027_v2 = vpop.f32.mrb[10].mxu0  ;;  %v2029_v57 = vpop.f32.mrb[10].mxu1  ;;  %v853_v12 = vmul.f32 0.5, %v1957_v58  ;;  %v936_v13 = vmul.f32 %v904_v0, %v1998_v42  ;;  %v873_v14 = vmul.f32 0.044715, %v2025_v1 }
 0x131   : > { %v2039_v10 = vpop.f32.mrb[11].mxu0  ;;  %v2041_v11 = vpop.f32.mrb[11].mxu1  ;;  %1653 = vtanh.f32 %v999_v63  ;;  %v838_v15 = vmul.f32 0.5, %v1962_v3  ;;  %v1015_v16 = vmul.f32 0.7978846, %v983_v5  ;;  %v952_v17 = vmul.f32 %v920_v6, %v2003_v45 }
 0x132   : > { %v889_v18 = vmul.f32 0.044715, %v2034_v7  ;;  %v2050_v19 = vmul.f32 0.5, %v1965_v4  ;;  %v968_v20 = vadd.f32 %v936_v13, %v1998_v42  ;;  %v905_v22 = vmul.f32 %v873_v14, %v2025_v1 }
 0x133   : > { %v874_v58 = vmul.f32 0.044715, %v2037_v8  ;;  %v839_v24 = vmul.f32 0.5, %v1970_v9  ;;  %1655 = vtanh.f32 %v1015_v16  ;;  %v984_v3 = vadd.f32 %v952_v17, %v2003_v45 }
 0x134   : > { %v921_v25 = vmul.f32 %v889_v18, %v2034_v7  ;;  %v1000_v28 = vmul.f32 0.7978846, %v968_v20  ;;  %v937_v4 = vmul.f32 %v905_v22, %v2025_v1  ;;  %v2068_v38 = vadd.f32 %v1947_v49, %v1984_v29 }
 0x135   : > { %v1642_v23 = vpop.eup %1641  ;;  %v906_v31 = vmul.f32 %v874_v58, %v2037_v8  ;;  %v1016_v37 = vmul.f32 0.7978846, %v984_v3  ;;  %v855_v17 = vmul.f32 0.5, %v1978_v21 }
 0x136   : > { %v1644_v26 = vpop.eup %1643  ;;  %v1060_v27 = vadd.f32 1.0, %v1642_v23  ;;  %v2061_v32 = vpop.f32.mrb[12].mxu0  ;;  %v953_v9 = vmul.f32 %v921_v25, %v2034_v7  ;;  %1657 = vtanh.f32 %v1000_v28  ;;  %v969_v48 = vadd.f32 %v937_v4, %v2025_v1 }
 0x137   : > { %v2063_v33 = vpop.f32.mrb[12].mxu1  ;;  %v1646_v35 = vpop.eup %1645  ;;  %v1076_v36 = vadd.f32 1.0, %v1644_v26  ;;  %1659 = vtanh.f32 %v1016_v37  ;;  %v938_v14 = vmul.f32 %v906_v31, %v2037_v8  ;;  %v890_v18 = vmul.f32 0.044715, %v2068_v38 }
 0x138   : > { %v2070_v40 = vpop.f32.mrb[13].mxu0  ;;  %v2072_v41 = vpop.f32.mrb[13].mxu1  ;;  %v1092_v44 = vmul.f32 %v1060_v27, %v1986_v30  ;;  %v1061_v47 = vadd.f32 1.0, %v1646_v35  ;;  %v985_v60 = vadd.f32 %v953_v9, %v2034_v7  ;;  %v1001_v13 = vmul.f32 0.7978846, %v969_v48 }
 0x139   : > { %v1648_v43 = vpop.eup %1647  ;;  %v2078_v51 = vpop.f32.mrb[14].mxu0  ;;  %v1108_v29 = vmul.f32 %v1076_v36, %v2005_v46  ;;  %v970_v23 = vadd.f32 %v938_v14, %v2037_v8  ;;  %v922_v21 = vmul.f32 %v890_v18, %v2068_v38  ;;  %v2100_v26 = vadd.f32 %v1949_v50, %v1989_v34 }
 0x13a   : > { %v2080_v52 = vpop.f32.mrb[14].mxu1  ;;  %v1650_v53 = vpop.eup %1649  ;;  %v1077_v54 = vadd.f32 1.0, %v1648_v43  ;;  %v1093_v5 = vmul.f32 %v1061_v47, %v2015_v59  ;;  %v1017_v46 = vmul.f32 0.7978846, %v985_v60  ;;  %1661 = vtanh.f32 %v1001_v13 }
 0x13b   : > { %v2084_v63 = vpop.f32.mrb[15].mxu0  ;;  %v2086_v30 = vpop.f32.mrb[15].mxu1  ;;  %v1062_v6 = vadd.f32 1.0, %v1650_v53  ;;  %v2104_v27 = vadd.f32 %v1949_v50, %v1993_v39  ;;  %v840_v4 = vmul.f32 0.5, %v1998_v42  ;;  %v856_v31 = vmul.f32 0.5, %v2003_v45 }
 0x13c   : > { %v1652_v0 = vpop.eup %1651  ;;  %v1109_v16 = vmul.f32 %v1077_v54, %v853_v12  ;;  %v1503_v22 = vpack.c.bf16 %v1093_v5, %v1092_v44  ;;  %1663 = vtanh.f32 %v1017_v46  ;;  %v1002_v12 = vmul.f32 0.7978846, %v970_v23 }
 0x13d   : > { %v1654_v20 = vpop.eup %1653  ;;  %v1078_v58 = vadd.f32 1.0, %v1652_v0  ;;  %v1094_v25 = vmul.f32 %v1062_v6, %v838_v15  ;;  %v2111_v35 = vadd.f32 %v1947_v49, %v2010_v55  ;;  %v841_v37 = vmul.f32 0.5, %v2025_v1 }
 0x13e   : > { %v1511_v3 = vpack.c.bf16 %v1109_v16, %v1108_v29  ;;  %v1063_v59 = vadd.f32 1.0, %v1654_v20  ;;  %1220 = vst [vmem:[%s2094_s11] sm:$0xff] %v1503_v22  ;;  %v1656_v28 = vpop.eup %1655  ;;  %v954_v39 = vmul.f32 %v922_v21, %v2068_v38  ;;  %v875_v43 = vmul.f32 0.044715, %v2100_v26 }
 0x13f   : > { %v1110_v36 = vmul.f32 %v1078_v58, %v2050_v19  ;;  %v1079_v34 = vadd.f32 1.0, %v1656_v28  ;;  %v2120_v42 = vadd.f32 %v1947_v49, %v2012_v56  ;;  %1665 = vtanh.f32 %v1002_v12 }
 0x140   : > { %1228 = vst [vmem:[%s2094_s11 + $0x40] sm:$0xff] %v1511_v3  ;;  %v1095_v15 = vmul.f32 %v1063_v59, %v839_v24  ;;  %v891_v24 = vmul.f32 0.044715, %v2104_v27  ;;  %v1658_v45 = vpop.eup %1657  ;;  %v986_v55 = vadd.f32 %v954_v39, %v2068_v38  ;;  %v876_v19 = vmul.f32 0.044715, %v2111_v35 }
 0x141   : > { %v1111_v44 = vmul.f32 %v1079_v34, %v855_v17  ;;  %v1660_v1 = vpop.eup %1659  ;;  %v1064_v47 = vadd.f32 1.0, %v1658_v45  ;;  %v907_v48 = vmul.f32 %v875_v43, %v2100_v26  ;;  %v2129_v29 = vadd.f32 %v1949_v50, %v2019_v61 }
 0x142   : > { %v1504_v9 = vpack.c.bf16 %v1095_v15, %v1094_v25  ;;  %v923_v53 = vmul.f32 %v891_v24, %v2104_v27  ;;  %v1080_v54 = vadd.f32 1.0, %v1660_v1  ;;  %v1018_v60 = vmul.f32 0.7978846, %v986_v55 }
 0x143   : > { %v1512_v56 = vpack.c.bf16 %v1111_v44, %v1110_v36  ;;  %v908_v0 = vmul.f32 %v876_v19, %v2111_v35  ;;  %v857_v5 = vmul.f32 0.5, %v2034_v7  ;;  %v939_v6 = vmul.f32 %v907_v48, %v2100_v26 }
 0x144   : > { %1221 = vst [vmem:[%s2094_s11 + $0x8] sm:$0xff] %v1504_v9  ;;  %v955_v13 = vmul.f32 %v923_v53, %v2104_v27  ;;  %v892_v14 = vmul.f32 0.044715, %v2120_v42  ;;  %v1662_v16 = vpop.eup %1661  ;;  %v1096_v17 = vmul.f32 %v1064_v47, %v840_v4  ;;  %v1112_v46 = vmul.f32 %v1080_v54, %v856_v31 }
 0x145   : > { %1229 = vst [vmem:[%s2094_s11 + $0x48] sm:$0xff] %v1512_v56  ;;  %1667 = vtanh.f32 %v1018_v60  ;;  %v940_v61 = vmul.f32 %v908_v0, %v2111_v35  ;;  %v1065_v20 = vadd.f32 1.0, %v1662_v16  ;;  %v971_v22 = vadd.f32 %v939_v6, %v2100_v26 }
 0x146   : > { %v1664_v18 = vpop.eup %1663  ;;  %v987_v58 = vadd.f32 %v955_v13, %v2104_v27  ;;  %v924_v7 = vmul.f32 %v892_v14, %v2120_v42  ;;  %v877_v25 = vmul.f32 0.044715, %v2129_v29  ;;  %v2145_v59 = vadd.f32 %v1949_v50, %v2021_v62 }
 0x147   : > { %v1081_v23 = vadd.f32 1.0, %v1664_v18  ;;  %v972_v3 = vadd.f32 %v940_v61, %v2111_v35  ;;  %v1097_v12 = vmul.f32 %v1065_v20, %v841_v37  ;;  %v1003_v21 = vmul.f32 0.7978846, %v971_v22 }
 0x148   : > { %v1019_v28 = vmul.f32 0.7978846, %v987_v58  ;;  %v956_v15 = vmul.f32 %v924_v7, %v2120_v42  ;;  %v842_v31 = vmul.f32 0.5, %v2037_v8  ;;  %v909_v34 = vmul.f32 %v877_v25, %v2129_v29 }
 0x149   : > { %v1113_v4 = vmul.f32 %v1081_v23, %v857_v5  ;;  %v1004_v36 = vmul.f32 0.7978846, %v972_v3  ;;  %v1505_v39 = vpack.c.bf16 %v1097_v12, %v1096_v17  ;;  %v858_v9 = vmul.f32 0.5, %v2068_v38  ;;  %v1666_v43 = vpop.eup %1665 }
 0x14a   : > { %1669 = vtanh.f32 %v1003_v21  ;;  %v988_v62 = vadd.f32 %v956_v15, %v2120_v42  ;;  %v941_v24 = vmul.f32 %v909_v34, %v2129_v29  ;;  %v893_v45 = vmul.f32 0.044715, %v2145_v59 }
 0x14b   : > { %v1513_v37 = vpack.c.bf16 %v1113_v4, %v1112_v46  ;;  %1671 = vtanh.f32 %v1019_v28  ;;  %1222 = vst [vmem:[%s2094_s11 + $0x10] sm:$0xff] %v1505_v39  ;;  %v843_v8 = vmul.f32 0.5, %v2100_v26  ;;  %v2158_v55 = vadd.f32 %v1947_v49, %v2027_v2 }
 0x14c   : > { %1673 = vtanh.f32 %v1004_v36  ;;  %v1020_v44 = vmul.f32 0.7978846, %v988_v62  ;;  %v973_v38 = vadd.f32 %v941_v24, %v2129_v29  ;;  %v925_v19 = vmul.f32 %v893_v45, %v2145_v59 }
 0x14d   : > { %1230 = vst [vmem:[%s2094_s11 + $0x50] sm:$0xff] %v1513_v37  ;;  %v2165_v1 = vadd.f32 %v1947_v49, %v2029_v57  ;;  %v2169_v47 = vadd.f32 %v1949_v50, %v2039_v10  ;;  %v1066_v26 = vadd.f32 1.0, %v1666_v43  ;;  %v878_v48 = vmul.f32 0.044715, %v2158_v55 }
 0x14e   : > { %1675 = vtanh.f32 %v1020_v44  ;;  %v2174_v2 = vadd.f32 %v1949_v50, %v2041_v11  ;;  %v859_v56 = vmul.f32 0.5, %v2104_v27  ;;  %v1005_v54 = vmul.f32 0.7978846, %v973_v38 }
 0x14f   : > { %v1668_v53 = vpop.eup %1667  ;;  %v957_v60 = vmul.f32 %v925_v19, %v2145_v59  ;;  %v894_v57 = vmul.f32 0.044715, %v2165_v1  ;;  %v844_v10 = vmul.f32 0.5, %v2111_v35  ;;  %v910_v5 = vmul.f32 %v878_v48, %v2158_v55 }
 0x150   : > { %v1082_v0 = vadd.f32 1.0, %v1668_v53  ;;  %v879_v6 = vmul.f32 0.044715, %v2169_v47  ;;  %v2183_v13 = vmul.f32 0.5, %v2120_v42  ;;  %1677 = vtanh.f32 %v1005_v54 }
 0x151   : > { %v989_v11 = vadd.f32 %v957_v60, %v2145_v59  ;;  %v926_v27 = vmul.f32 %v894_v57, %v2165_v1  ;;  %v1098_v14 = vmul.f32 %v1066_v26, %v842_v31  ;;  %v942_v16 = vmul.f32 %v910_v5, %v2158_v55 }
 0x152   : > { %v911_v17 = vmul.f32 %v879_v6, %v2169_v47  ;;  %v895_v46 = vmul.f32 0.044715, %v2174_v2  ;;  %v1114_v35 = vmul.f32 %v1082_v0, %v858_v9  ;;  %v2193_v42 = vadd.f32 %v1947_v49, %v2061_v32 }
 0x153   : > { %v1021_v61 = vmul.f32 0.7978846, %v989_v11  ;;  %v958_v18 = vmul.f32 %v926_v27, %v2165_v1  ;;  %v974_v22 = vadd.f32 %v942_v16, %v2158_v55  ;;  %v2200_v23 = vadd.f32 %v1947_v49, %v2063_v33 }
 0x154   : > { %v1670_v20 = vpop.eup %1669  ;;  %v943_v58 = vmul.f32 %v911_v17, %v2169_v47  ;;  %v927_v7 = vmul.f32 %v895_v46, %v2174_v2  ;;  %v2205_v32 = vadd.f32 %v1949_v50, %v2070_v40  ;;  %v880_v39 = vmul.f32 0.044715, %v2193_v42 }
 0x155   : > { %v1672_v3 = vpop.eup %1671  ;;  %v1067_v25 = vadd.f32 1.0, %v1670_v20  ;;  %1679 = vtanh.f32 %v1021_v61  ;;  %v990_v12 = vadd.f32 %v958_v18, %v2165_v1  ;;  %v1006_v15 = vmul.f32 0.7978846, %v974_v22 }
 0x156   : > { %v1674_v21 = vpop.eup %1673  ;;  %v1083_v28 = vadd.f32 1.0, %v1672_v3  ;;  %v975_v4 = vadd.f32 %v943_v58, %v2169_v47  ;;  %v959_v31 = vmul.f32 %v927_v7, %v2174_v2  ;;  %v845_v24 = vmul.f32 0.5, %v2129_v29 }
 0x157   : > { %v1099_v36 = vmul.f32 %v1067_v25, %v843_v8  ;;  %v1068_v34 = vadd.f32 1.0, %v1674_v21  ;;  %v1022_v33 = vmul.f32 0.7978846, %v990_v12  ;;  %1681 = vtanh.f32 %v1006_v15 }
 0x158   : > { %v1676_v9 = vpop.eup %1675  ;;  %v1115_v62 = vmul.f32 %v1083_v28, %v859_v56  ;;  %v1007_v43 = vmul.f32 0.7978846, %v975_v4  ;;  %v991_v40 = vadd.f32 %v959_v31, %v2174_v2  ;;  %v861_v45 = vmul.f32 0.5, %v2145_v59 }
 0x159   : > { %v1506_v37 = vpack.c.bf16 %v1099_v36, %v1098_v14  ;;  %1683 = vtanh.f32 %v1022_v33  ;;  %v912_v38 = vmul.f32 %v880_v39, %v2193_v42  ;;  %v1100_v26 = vmul.f32 %v1068_v34, %v844_v10 }
 0x15a   : > { %v1514_v44 = vpack.c.bf16 %v1115_v62, %v1114_v35  ;;  %1685 = vtanh.f32 %v1007_v43  ;;  %v1023_v8 = vmul.f32 0.7978846, %v991_v40  ;;  %v1678_v19 = vpop.eup %1677  ;;  %v1084_v48 = vadd.f32 1.0, %v1676_v9 }
 0x15b   : > { %1223 = vst [vmem:[%s2094_s11 + $0x18] sm:$0xff] %v1506_v37  ;;  %v846_v53 = vmul.f32 0.5, %v2158_v55  ;;  %v896_v56 = vmul.f32 0.044715, %v2200_v23  ;;  %v1069_v54 = vadd.f32 1.0, %v1678_v19  ;;  %v944_v29 = vmul.f32 %v912_v38, %v2193_v42 }
 0x15c   : > { %1231 = vst [vmem:[%s2094_s11 + $0x58] sm:$0xff] %v1514_v44  ;;  %1687 = vtanh.f32 %v1023_v8  ;;  %v881_v59 = vmul.f32 0.044715, %v2205_v32  ;;  %v2223_v57 = vadd.f32 %v1949_v50, %v2072_v41  ;;  %v2227_v0 = vadd.f32 %v1947_v49, %v2078_v51 }
 0x15d   : > { %v928_v60 = vmul.f32 %v896_v56, %v2200_v23  ;;  %v2231_v55 = vadd.f32 %v1947_v49, %v2080_v52  ;;  %v1101_v10 = vmul.f32 %v1069_v54, %v845_v24  ;;  %v862_v5 = vmul.f32 0.5, %v2165_v1 }
 0x15e   : > { %v976_v6 = vadd.f32 %v944_v29, %v2193_v42  ;;  %v913_v11 = vmul.f32 %v881_v59, %v2205_v32  ;;  %v1116_v41 = vmul.f32 %v1084_v48, %v2183_v13  ;;  %v847_v14 = vmul.f32 0.5, %v2169_v47 }
 0x15f   : > { %v1680_v27 = vpop.eup %1679  ;;  %v960_v51 = vmul.f32 %v928_v60, %v2200_v23  ;;  %v897_v16 = vmul.f32 0.044715, %v2223_v57  ;;  %v1507_v17 = vpack.c.bf16 %v1101_v10, %v1100_v26  ;;  %v882_v61 = vmul.f32 0.044715, %v2227_v0 }
 0x160   : > { %v1085_v49 = vadd.f32 1.0, %v1680_v27  ;;  %v1008_v52 = vmul.f32 0.7978846, %v976_v6  ;;  %v945_v46 = vmul.f32 %v913_v11, %v2205_v32  ;;  %v2246_v13 = vadd.f32 %v1949_v50, %v2084_v63 }
 0x161   : > { %v992_v1 = vadd.f32 %v960_v51, %v2200_v23  ;;  %v929_v35 = vmul.f32 %v897_v16, %v2223_v57  ;;  %v1682_v47 = vpop.eup %1681  ;;  %1224 = vst [vmem:[%s2094_s11 + $0x20] sm:$0xff] %v1507_v17  ;;  %v898_v22 = vmul.f32 0.044715, %v2231_v55  ;;  %v914_v12 = vmul.f32 %v882_v61, %v2227_v0 }
 0x162   : > { %v1117_v18 = vmul.f32 %v1085_v49, %v861_v45  ;;  %1689 = vtanh.f32 %v1008_v52  ;;  %v977_v20 = vadd.f32 %v945_v46, %v2205_v32  ;;  %v1070_v7 = vadd.f32 1.0, %v1682_v47 }
 0x163   : > { %v1684_v58 = vpop.eup %1683  ;;  %v1024_v3 = vmul.f32 0.7978846, %v992_v1  ;;  %v961_v25 = vmul.f32 %v929_v35, %v2223_v57  ;;  %v930_v4 = vmul.f32 %v898_v22, %v2231_v55  ;;  %v863_v39 = vmul.f32 0.5, %v2174_v2 }
 0x164   : > { %v1686_v21 = vpop.eup %1685  ;;  %v1515_v28 = vpack.c.bf16 %v1117_v18, %v1116_v41  ;;  %v1086_v63 = vadd.f32 1.0, %v1684_v58  ;;  %v1009_v15 = vmul.f32 0.7978846, %v977_v20  ;;  %v1102_v31 = vmul.f32 %v1070_v7, %v846_v53 }
 0x165   : > { %v1071_v36 = vadd.f32 1.0, %v1686_v21  ;;  %1691 = vtanh.f32 %v1024_v3  ;;  %v993_v34 = vadd.f32 %v961_v25, %v2223_v57  ;;  %v946_v9 = vmul.f32 %v914_v12, %v2227_v0 }
 0x166   : > { %v1688_v33 = vpop.eup %1687  ;;  %1232 = vst [vmem:[%s2094_s11 + $0x60] sm:$0xff] %v1515_v28  ;;  %1693 = vtanh.f32 %v1009_v15  ;;  %v962_v62 = vmul.f32 %v930_v4, %v2231_v55  ;;  %v1118_v43 = vmul.f32 %v1086_v63, %v862_v5  ;;  %v883_v8 = vmul.f32 0.044715, %v2246_v13 }
 0x167   : > { %v1103_v40 = vmul.f32 %v1071_v36, %v847_v14  ;;  %v1087_v37 = vadd.f32 1.0, %v1688_v33  ;;  %v1025_v24 = vmul.f32 0.7978846, %v993_v34  ;;  %v978_v45 = vadd.f32 %v946_v9, %v2227_v0 }
 0x168   : > { %v994_v44 = vadd.f32 %v962_v62, %v2231_v55  ;;  %v835_v2 = vadd.f32 %v1949_v50, %v2086_v30  ;;  %v915_v48 = vmul.f32 %v883_v8, %v2246_v13  ;;  %v848_v30 = vmul.f32 0.5, %v2193_v42  ;;  %v1314_v9 = vld [vmem:[%s2094_s11 + $0x20] sm:$0xff] (%p1865_p9) }
 0x169   : > { %v1508_v38 = vpack.c.bf16 %v1103_v40, %v1102_v31  ;;  %v1119_v19 = vmul.f32 %v1087_v37, %v863_v39  ;;  %1695 = vtanh.f32 %v1025_v24  ;;  %v1010_v26 = vmul.f32 0.7978846, %v978_v45  ;;  %v1312_v39 = vld [vmem:[%s2094_s11 + $0x18] sm:$0xff] (%p1865_p9)  ;;  %v1322_v37 = vld [vmem:[%s2094_s11 + $0x40] sm:$0xff] (%p1865_p9)  ;;  %v1324_v24 = vld [vmem:[%s2094_s11 + $0x48] sm:$0xff] (%p1865_p9)  ;;  %1315 = vst [vmem:[%s1248_s14 + $0x40] sm:$0xff] (%p1865_p9), %v1314_v9 }
 0x16a   : > { %v1026_v56 = vmul.f32 0.7978846, %v994_v44  ;;  %v899_v54 = vmul.f32 0.044715, %v835_v2  ;;  %v947_v59 = vmul.f32 %v915_v48, %v2246_v13  ;;  %v849_v51 = vmul.f32 0.5, %v2205_v32  ;;  %v1326_v45 = vld [vmem:[%s2094_s11 + $0x50] sm:$0xff] (%p1865_p9) }
 0x16b   : > { %1225 = vst [vmem:[%s2094_s11 + $0x28] sm:$0xff] %v1508_v38  ;;  %v1516_v53 = vpack.c.bf16 %v1119_v19, %v1118_v43  ;;  %1697 = vtanh.f32 %v1010_v26  ;;  %v864_v49 = vmul.f32 0.5, %v2200_v23  ;;  %v865_v42 = vmul.f32 0.5, %v2223_v57  ;;  %v1328_v44 = vld [vmem:[%s2094_s11 + $0x58] sm:$0xff] (%p1865_p9)  ;;  %1313 = vst [vmem:[%s1248_s14 + $0x30] sm:$0xff] (%p1865_p9), %v1312_v39 }
 0x16c   : > { %v1690_v29 = vpop.eup %1689  ;;  %v931_v10 = vmul.f32 %v899_v54, %v835_v2  ;;  %v979_v5 = vadd.f32 %v947_v59, %v2246_v13  ;;  %1699 = vtanh.f32 %v1026_v56  ;;  %v850_v23 = vmul.f32 0.5, %v2227_v0  ;;  %v1306_v0 = vld [vmem:[%s2094_s11] sm:$0xff] (%p1865_p9)  ;;  %1323 = vst [vmem:[%s1248_s14 + $0x80] sm:$0xff] (%p1865_p9), %v1322_v37  ;;  %1325 = vst [vmem:[%s1248_s14 + $0x90] sm:$0xff] (%p1865_p9), %v1324_v24 }
 0x16d   : > { %1233 = vst [vmem:[%s2094_s11 + $0x68] sm:$0xff] %v1516_v53  ;;  %v1072_v60 = vadd.f32 1.0, %v1690_v29  ;;  %v851_v12 = vmul.f32 0.5, %v2246_v13  ;;  %v866_v21 = vmul.f32 0.5, %v2231_v55  ;;  %v867_v4 = vmul.f32 0.5, %v835_v2  ;;  %v1308_v55 = vld [vmem:[%s2094_s11 + $0x8] sm:$0xff] (%p1865_p9)  ;;  %1307 = vst [vmem:[%s1248_s14] sm:$0xff] (%p1865_p9), %v1306_v0 }
 0x16e   : > { %v963_v6 = vmul.f32 %v931_v10, %v835_v2  ;;  %v1011_v41 = vmul.f32 0.7978846, %v979_v5  ;;  %v1310_v13 = vld [vmem:[%s2094_s11 + $0x10] sm:$0xff] (%p1865_p9)  ;;  %1309 = vst [vmem:[%s1248_s14 + $0x10] sm:$0xff] (%p1865_p9), %v1308_v55  ;;  %1327 = vst [vmem:[%s1248_s14 + $0xa0] sm:$0xff] (%p1865_p9), %v1326_v45  ;;  %v1330_v8 = vld [vmem:[%s2094_s11 + $0x60] sm:$0xff] (%p1865_p9) }
 0x16f   : > { %v1692_v50 = vpop.eup %1691  ;;  %v1104_v14 = vmul.f32 %v1072_v60, %v848_v30  ;;  %1311 = vst [vmem:[%s1248_s14 + $0x20] sm:$0xff] (%p1865_p9), %v1310_v13  ;;  %1329 = vst [vmem:[%s1248_s14 + $0xb0] sm:$0xff] (%p1865_p9), %v1328_v44 }
 0x170   : > { %v1694_v11 = vpop.eup %1693  ;;  %v1088_v27 = vadd.f32 1.0, %v1692_v50  ;;  %v995_v17 = vadd.f32 %v963_v6, %v835_v2  ;;  %1701 = vtanh.f32 %v1011_v41  ;;  %1331 = vst [vmem:[%s1248_s14 + $0xc0] sm:$0xff] (%p1865_p9), %v1330_v8 }
 0x171   : > { %v1073_v16 = vadd.f32 1.0, %v1694_v11 }
 0x172   : > { %v1027_v1 = vmul.f32 0.7978846, %v995_v17  ;;  %v1120_v35 = vmul.f32 %v1088_v27, %v864_v49  ;;  %v1316_v62 = vld [vmem:[%s2094_s11 + $0x28] sm:$0xff] (%p1865_p9) }
 0x173   : > { %v1696_v52 = vpop.eup %1695  ;;  %v1105_v46 = vmul.f32 %v1073_v16, %v849_v51  ;;  %1317 = vst [vmem:[%s1248_s14 + $0x50] sm:$0xff] (%p1865_p9), %v1316_v62 }
 0x174   : > { %v1089_v61 = vadd.f32 1.0, %v1696_v52  ;;  %1703 = vtanh.f32 %v1027_v1  ;;  %v1332_v2 = vld [vmem:[%s2094_s11 + $0x68] sm:$0xff] (%p1865_p9) }
 0x175   : > { %v1509_v47 = vpack.c.bf16 %v1105_v46, %v1104_v14  ;;  %v1698_v18 = vpop.eup %1697  ;;  %1333 = vst [vmem:[%s1248_s14 + $0xd0] sm:$0xff] (%p1865_p9), %v1332_v2 }
 0x176   : > { %v1121_v20 = vmul.f32 %v1089_v61, %v865_v42  ;;  %v1700_v32 = vpop.eup %1699  ;;  %v1074_v58 = vadd.f32 1.0, %v1698_v18 }
 0x177   : > { %1226 = vst [vmem:[%s2094_s11 + $0x30] sm:$0xff] %v1509_v47  ;;  %v1090_v3 = vadd.f32 1.0, %v1700_v32 }
 0x178   : > { %v1517_v22 = vpack.c.bf16 %v1121_v20, %v1120_v35  ;;  %v1106_v25 = vmul.f32 %v1074_v58, %v850_v23 }
 0x179   : > { %v1122_v15 = vmul.f32 %v1090_v3, %v866_v21 }
 0x17a   : > { %1234 = vst [vmem:[%s2094_s11 + $0x70] sm:$0xff] %v1517_v22  ;;  %v1702_v7 = vpop.eup %1701 }
 0x17b   : > { %v1075_v57 = vadd.f32 1.0, %v1702_v7 }
 0x17d   : > { %v1107_v63 = vmul.f32 %v1075_v57, %v851_v12 }
 0x17e   : > { %v1704_v28 = vpop.eup %1703  ;;  %v1318_v43 = vld [vmem:[%s2094_s11 + $0x30] sm:$0xff] (%p1865_p9) }
 0x17f   : > { %v1091_v31 = vadd.f32 1.0, %v1704_v28  ;;  %v1510_v36 = vpack.c.bf16 %v1107_v63, %v1106_v25  ;;  %1242 = sbr.rel (!%p1865_p9) target bundleno = 398 (0x18e), region = 82  ;;  %1319 = vst [vmem:[%s1248_s14 + $0x60] sm:$0xff] (%p1865_p9), %v1318_v43 }
 0x181   : > { %v1123_v34 = vmul.f32 %v1091_v31, %v867_v4  ;;  %1227 = vst [vmem:[%s2094_s11 + $0x38] sm:$0xff] %v1510_v36  ;;  %v1334_v38 = vld [vmem:[%s2094_s11 + $0x70] sm:$0xff] (%p1865_p9) }
 0x182   : > { %1335 = vst [vmem:[%s1248_s14 + $0xe0] sm:$0xff] (%p1865_p9), %v1334_v38 }
 0x183   : > { %v1518_v33 = vpack.c.bf16 %v1123_v34, %v1122_v15 }
 0x185   : > { %1235 = vst [vmem:[%s2094_s11 + $0x78] sm:$0xff] %v1518_v33 }
 0x188   : > { %v1320_v40 = vld [vmem:[%s2094_s11 + $0x38] sm:$0xff] }
 0x189   : > { %1321 = vst [vmem:[%s1248_s14 + $0x70] sm:$0xff] %v1320_v40 }
 0x18c   : > { %v1336_v19 = vld [vmem:[%s2094_s11 + $0x78] sm:$0xff] }
 0x18d   : > { %1337 = vst [vmem:[%s1248_s14 + $0xf0] sm:$0xff] %v1336_v19 }
 0x18e PF: > { %s13_s20 = sadd.s32 1, %s1775_s20   ;;  %s2335_s12 = smov %s1747_s13 }
 0x18f   : > { %p10_p2 = scmp.ge.s32.totalorder %s13_s20, 6   ;;  %s2336_s13 = smov %s1870_s4 }
 0x190   : > { %s2337_s14 = smov %s1755_s15  ;;  %s2338_s15 = smov %s1859_s27 }
 0x191   : > { %s2339_s16 = smov %s1767_s18  ;;  %s2340_s17 = smov %s1771_s19 }
 0x192   : > { %s2341_s18 = smov %s2344_s22  ;;  %s2342_s19 = smov %s2348_s23 }
 0x193   :  { %12 = sbr.rel (!%p10_p2) target bundleno = 5 (0x5), region = 157 }

// kernel: bert_forward.16
= control target key start
LH: loop header
LB: loop body
LE: loop exit
PB: predicated region body
PF: predicated region fallthrough
CT: control target
= control target key end

     0   :  { %s1766_s21 = smov 0   ;;  %s1768_s22 = smov 0   ;;  %s2149_s0 = inlined_call_operand.vmem [shape: bf16[256,512], index: 0, kind: input, shape index: {}]   ;;  %s2150_s1 = inlined_call_operand.vmem [shape: bf16[512,128], index: 1, kind: input, shape index: {}]   ;;  %s2151_s2 = inlined_call_operand.vmem [shape: bf16[1,128], index: 2, kind: input, shape index: {}]   ;;  %s2152_s3 = inlined_call_operand.vmem [shape: bf16[256,128], index: 3, kind: input, shape index: {}]   ;;  %s2153_s4 = inlined_call_operand.vmem [shape: bf16[1,128], index: 4, kind: input, shape index: {}]   ;;  %s2154_s5 = inlined_call_operand.vmem [shape: bf16[1,128], index: 5, kind: input, shape index: {}]   ;;  %s2155_s6 = inlined_call_operand.vmem [shape: bf16[256,128], index: 6, kind: output, shape index: {}]  }
   0x1   :  { %s1770_s23 = smov 0   ;;  %s1772_s24 = smov 0  }
   0x2   :  { %s1774_s25 = smov 0   ;;  %s1776_s26 = smov 0  }
   0x3   :  { %s1778_s27 = smov 0  }
   0x4 LB: > { %s25_s28 = sadd.s32 1, %s1720_s25  ;;  %s28_s29 = sadd.s32 1, %s1724_s26  ;;  %s1728_s27 = sphi %s1778_s27, %s16_s27   ;;  %s1724_s26 = sphi %s1776_s26, %s2161_s26   ;;  %s1720_s25 = sphi %s1774_s25, %s2160_s25   ;;  %s1716_s24 = sphi %s1772_s24, %s2159_s24   ;;  %s1712_s23 = sphi %s1770_s23, %s2158_s23   ;;  %s1708_s22 = sphi %s1768_s22, %s2157_s22   ;;  %s1704_s21 = sphi %s1766_s21, %s2156_s21  }
   0x5   : > { %p26_p0 = scmp.ge.s32.totalorder %s25_s28, 2  ;;  %p44_p1 = scmp.ne.s32.totalorder %s1708_s22, %s1704_s21 }
   0x6   : > { %p45_p2 = scmp.eq.s32.totalorder %s1728_s27, 0  ;;  %s37_s9 = sadd.s32 1, %s1708_s22 }
   0x7   : > { %s2163_s28 = smov (%p26_p0, %s25_s28), 0  ;;  %s2165_s29 = smov (!%p26_p0, %s28_s29), %s1724_s26 }
   0x8   : > { %p46_p3 = por %p45_p2, %p44_p1  ;;  %p30_p4 = scmp.ge.s32.totalorder %s2165_s29, 2 }
   0x9   : > { %s33_s30 = ssub.s32 %s1720_s25, %s2163_s28  ;;  %p1296_p6 = scmp.ge.s32.totalorder %s1728_s27, 4 }
   0xa   : > { %s2167_s29 = smov (%p30_p4, %s2165_s29), 0 }
   0xb   : > { %s32_s7 = ssub.s32 %s1724_s26, %s2167_s29  ;;  %220 = sbr.rel (%p1296_p6) target bundleno = 33 (0x21), region = 28 }
   0xc   : > { %s34_s8 = sor.u32 %s33_s30, %s32_s7 }
   0xd   : > { %p35_p5 = scmp.eq.s32.totalorder %s34_s8, 0 }
   0xf   : > { %s1817_s10 = scalar_select %p35_p5, %s1708_s22, %s37_s9  }
  0x12   : > { %223 = sbr.rel (!%p46_p3) target bundleno = 33 (0x21), region = 32  ;;  %s225_s11 = sand.u32 (%p46_p3), 1, %s1708_s22  }
  0x13   : > { %s1299_s12 = sshll.u32 (%p46_p3), %s1720_s25, 1  ;;  %s1297_s13 = sshll.u32 (%p46_p3), %s225_s11, 7 }
  0x14   : > { %s1362_s14 = sshll.u32 (%p46_p3), %s1724_s26, 6  ;;  %s227_s20 = scalar_lea.vmem (%p46_p3), [#allocation3], %s1297_s13 }
  0x15   : > { %s231_s15 = sadd.s32 (%p46_p3), %s1362_s14, %s1299_s12 }
  0x16   : > { %s1301_s16 = sshll.u32 (%p46_p3), %s231_s15, 2 }
  0x17   : > { %s1826_s19 = scalar_lea.vmem (%p46_p3), %s2149_s0, %s1301_s16 }
  0x18   : > { %v291_v0 = vld [vmem:[%s1826_s19] sm:$0xff] (%p46_p3)  ;;  %v293_v1 = vld [vmem:[%s1826_s19 + $0x10] sm:$0xff] (%p46_p3) }
  0x19   : > { %v295_v2 = vld [vmem:[%s1826_s19 + $0x20] sm:$0xff]  ;;  %292 = vst [vmem:[%s227_s20] sm:$0xff] %v291_v0  ;;  %294 = vst [vmem:[%s227_s20 + $0x8] sm:$0xff] %v293_v1  ;;  %v297_v3 = vld [vmem:[%s1826_s19 + $0x30] sm:$0xff] }
  0x1a   : > { %296 = vst [vmem:[%s227_s20 + $0x10] sm:$0xff] %v295_v2  ;;  %v299_v4 = vld [vmem:[%s1826_s19 + $0x40] sm:$0xff]  ;;  %v301_v5 = vld [vmem:[%s1826_s19 + $0x50] sm:$0xff]  ;;  %298 = vst [vmem:[%s227_s20 + $0x18] sm:$0xff] %v297_v3 }
  0x1b   : > { %300 = vst [vmem:[%s227_s20 + $0x20] sm:$0xff] %v299_v4  ;;  %302 = vst [vmem:[%s227_s20 + $0x28] sm:$0xff] %v301_v5  ;;  %v303_v6 = vld [vmem:[%s1826_s19 + $0x60] sm:$0xff]  ;;  %v305_v7 = vld [vmem:[%s1826_s19 + $0x70] sm:$0xff] }
  0x1c   : > { %v307_v8 = vld [vmem:[%s1826_s19 + $0x80] sm:$0xff]  ;;  %304 = vst [vmem:[%s227_s20 + $0x30] sm:$0xff] %v303_v6  ;;  %306 = vst [vmem:[%s227_s20 + $0x38] sm:$0xff] %v305_v7  ;;  %v309_v9 = vld [vmem:[%s1826_s19 + $0x90] sm:$0xff] }
  0x1d   : > { %308 = vst [vmem:[%s227_s20 + $0x40] sm:$0xff] %v307_v8  ;;  %v311_v10 = vld [vmem:[%s1826_s19 + $0xa0] sm:$0xff]  ;;  %v313_v11 = vld [vmem:[%s1826_s19 + $0xb0] sm:$0xff]  ;;  %310 = vst [vmem:[%s227_s20 + $0x48] sm:$0xff] %v309_v9 }
  0x1e   : > { %312 = vst [vmem:[%s227_s20 + $0x50] sm:$0xff] %v311_v10  ;;  %314 = vst [vmem:[%s227_s20 + $0x58] sm:$0xff] %v313_v11  ;;  %v315_v12 = vld [vmem:[%s1826_s19 + $0xc0] sm:$0xff]  ;;  %v317_v13 = vld [vmem:[%s1826_s19 + $0xd0] sm:$0xff] }
  0x1f   : > { %v319_v14 = vld [vmem:[%s1826_s19 + $0xe0] sm:$0xff]  ;;  %316 = vst [vmem:[%s227_s20 + $0x60] sm:$0xff] %v315_v12  ;;  %318 = vst [vmem:[%s227_s20 + $0x68] sm:$0xff] %v317_v13  ;;  %v321_v15 = vld [vmem:[%s1826_s19 + $0xf0] sm:$0xff] }
  0x20   : > { %320 = vst [vmem:[%s227_s20 + $0x70] sm:$0xff] %v319_v14  ;;  %322 = vst [vmem:[%s227_s20 + $0x78] sm:$0xff] %v321_v15 }
  0x21 PF: > { %p1302_p7 = scmp.ge.s32.totalorder %s1728_s27, 1  ;;  %p345_p8 = scmp.lt.s32.totalorder %s1728_s27, 5 }
  0x23   : > { %p346_p9 = pnand %p1302_p7, %p345_p8 }
  0x24   : > { %s352_s30 = sand.u32 (!%p346_p9), 1, %s1704_s21   ;;  %s1304_s7 = sshll.u32 (!%p346_p9), %s1712_s23, 5 }
  0x25   : > { %349 = sbr.rel (%p346_p9) target bundleno = 672 (0x2a0), region = 78  ;;  %s1303_s8 = sshll.u32 (!%p346_p9), %s352_s30, 7 }
  0x26   : > { %p394_p10 = scmp.lt.s32.totalorder (!%p346_p9), %s1304_s7, 63  ;;  %s1306_s9 = sshll.u32 (!%p346_p9), %s1716_s24, 4 }
  0x27   : > { %p400_p11 = scmp.lt.s32.totalorder (!%p346_p9), %s1306_s9, 31  ;;  %s1864_s24 = scalar_lea.vmem (!%p346_p9), [#allocation3], %s1303_s8 }
  0x28   : > { %p1310_p12 = scmp.ne.s32.totalorder (!%p346_p9), %s1712_s23, 0 }
  0x2c   : > { %s2169_s7 = smov (!%p394_p10, %s1304_s7), 63  ;;  %s2171_s9 = smov (!%p400_p11, %s1306_s9), 31 }
  0x2d   : > { %s1305_s11 = sshll.u32 %s2169_s7, 2  ;;  %s1307_s15 = sshll.u32 %s2171_s9, 2  ;;  %v1730_v16 = vmov (!%p1310_p12), 0.0  }
  0x2e   : > { %s1852_s14 = scalar_lea.vmem %s2150_s1, %s1305_s11  ;;  %s1857_s18 = scalar_lea.vmem %s2152_s3, %s1307_s15  ;;  %416 = vst [vmem:[#allocation2] sm:$0xff] (!%p1310_p12), %v1730_v16  ;;  %417 = vst [vmem:[#allocation2 + $0x8] sm:$0xff] (!%p1310_p12), %v1730_v16 }
  0x2f   : > { %s1862_s20 = scalar_lea.vmem %s2155_s6, %s1307_s15  ;;  %415 = sbr.rel (%p1310_p12) target bundleno = 54 (0x36), region = 86  ;;  %418 = vst [vmem:[#allocation2 + $0x10] sm:$0xff] (!%p1310_p12), %v1730_v16  ;;  %419 = vst [vmem:[#allocation2 + $0x18] sm:$0xff] (!%p1310_p12), %v1730_v16 }
  0x30   : > { %420 = vst [vmem:[#allocation2 + $0x20] sm:$0xff] (!%p1310_p12), %v1730_v16  ;;  %421 = vst [vmem:[#allocation2 + $0x28] sm:$0xff] (!%p1310_p12), %v1730_v16 }
  0x31   : > { %422 = vst [vmem:[#allocation2 + $0x30] sm:$0xff] (!%p1310_p12), %v1730_v16  ;;  %423 = vst [vmem:[#allocation2 + $0x38] sm:$0xff] (!%p1310_p12), %v1730_v16 }
  0x32   : > { %424 = vst [vmem:[#allocation2 + $0x40] sm:$0xff] (!%p1310_p12), %v1730_v16  ;;  %425 = vst [vmem:[#allocation2 + $0x48] sm:$0xff] (!%p1310_p12), %v1730_v16 }
  0x33   : > { %426 = vst [vmem:[#allocation2 + $0x50] sm:$0xff] (!%p1310_p12), %v1730_v16  ;;  %427 = vst [vmem:[#allocation2 + $0x58] sm:$0xff] (!%p1310_p12), %v1730_v16 }
  0x34   : > { %428 = vst [vmem:[#allocation2 + $0x60] sm:$0xff] (!%p1310_p12), %v1730_v16  ;;  %429 = vst [vmem:[#allocation2 + $0x68] sm:$0xff] (!%p1310_p12), %v1730_v16 }
  0x35   : > { %430 = vst [vmem:[#allocation2 + $0x70] sm:$0xff] (!%p1310_p12), %v1730_v16  ;;  %431 = vst [vmem:[#allocation2 + $0x78] sm:$0xff] (!%p1310_p12), %v1730_v16 }
  0x36 PF: > { %v1602_v17 = vld [vmem:[%s1852_s14 + $0x40] sm:$0xff]   ;;  %v1604_v19 = vld [vmem:[%s1852_s14 + $0x48] sm:$0xff]   ;;  %v1606_v21 = vld [vmem:[%s1852_s14 + $0x50] sm:$0xff]   ;;  %p1343_p13 = scmp.ne.s32.totalorder %s1712_s23, 1 }
  0x37   : > { %v1603_v18 = vld [vmem:[%s1852_s14] sm:$0xff]   ;;  %1465 = vmatprep.subr.bf16.mxu0 %v1602_v17  ;;  %1529 = vmatprep.subr.bf16.mxu1 %v1602_v17  ;;  %v1605_v20 = vld [vmem:[%s1852_s14 + $0x8] sm:$0xff]   ;;  %v1607_v22 = vld [vmem:[%s1852_s14 + $0x10] sm:$0xff]  }
  0x38   : > { %1466 = vmatpush3.bf16.msra.mxu0 %v1603_v18  ;;  %1537 = vmatpush3.bf16.msra.mxu1 %v1603_v18  ;;  %v1608_v23 = vld [vmem:[%s1852_s14 + $0x58] sm:$0xff]   ;;  %v1610_v25 = vld [vmem:[%s1852_s14 + $0x60] sm:$0xff]   ;;  %v1612_v27 = vld [vmem:[%s1852_s14 + $0x68] sm:$0xff]  }
  0x39   : > { %1467 = vmatprep.subr.bf16.mxu0 %v1604_v19  ;;  %1530 = vmatprep.subr.bf16.mxu1 %v1604_v19  ;;  %v1609_v24 = vld [vmem:[%s1852_s14 + $0x18] sm:$0xff]   ;;  %v1611_v26 = vld [vmem:[%s1852_s14 + $0x20] sm:$0xff]   ;;  %v1613_v30 = vld [vmem:[%s1852_s14 + $0x28] sm:$0xff]  }
  0x3a   : > { %v1620_v28 = vld [vmem:[%s1864_s24 + $0x4] ss:$8 sps:$4 sm:$0xff]   ;;  %v1614_v31 = vld [vmem:[%s1852_s14 + $0x70] sm:$0xff]   ;;  %v1616_v33 = vld [vmem:[%s1852_s14 + $0x78] sm:$0xff]  }
  0x3b   : > { %v1623_v29 = vld [vmem:[%s1864_s24 + $0x44] ss:$8 sps:$4 sm:$0xff]   ;;  %704 = vmatprep.mubr.bf16.mxu0 %v1620_v28  ;;  %v1615_v32 = vld [vmem:[%s1852_s14 + $0x30] sm:$0xff]   ;;  %v1617_v34 = vld [vmem:[%s1852_s14 + $0x38] sm:$0xff]  }
  0x3c   : > { %1468 = vmatpush3.bf16.msra.mxu0 %v1605_v20  ;;  %1538 = vmatpush3.bf16.msra.mxu1 %v1605_v20  ;;  %v1618_v35 = vld [vmem:[%s1864_s24] ss:$8 sps:$4 sm:$0xff]   ;;  %v1624_v37 = vld [vmem:[%s1864_s24 + $0x14] ss:$8 sps:$4 sm:$0xff]   ;;  %v1628_v39 = vld [vmem:[%s1864_s24 + $0x10] ss:$8 sps:$4 sm:$0xff]  }
  0x3d   : > { %1469 = vmatprep.subr.bf16.mxu0 %v1606_v21  ;;  %1531 = vmatprep.subr.bf16.mxu1 %v1606_v21  ;;  %v1621_v36 = vld [vmem:[%s1864_s24 + $0x40] ss:$8 sps:$4 sm:$0xff]   ;;  %v1626_v38 = vld [vmem:[%s1864_s24 + $0x54] ss:$8 sps:$4 sm:$0xff]   ;;  %v1629_v40 = vld [vmem:[%s1864_s24 + $0x50] ss:$8 sps:$4 sm:$0xff]  }
  0x3e   : > { %736 = vmatprep.mubr.bf16.mxu1 %v1623_v29  ;;  %v1630_v41 = vld [vmem:[%s1864_s24 + $0x24] ss:$8 sps:$4 sm:$0xff]   ;;  %v1634_v43 = vld [vmem:[%s1864_s24 + $0x20] ss:$8 sps:$4 sm:$0xff]   ;;  %v1636_v45 = vld [vmem:[%s1864_s24 + $0x34] ss:$8 sps:$4 sm:$0xff]  }
  0x3f   : > { %v1632_v42 = vld [vmem:[%s1864_s24 + $0x64] ss:$8 sps:$4 sm:$0xff]   ;;  %v1635_v44 = vld [vmem:[%s1864_s24 + $0x60] ss:$8 sps:$4 sm:$0xff]   ;;  %v1638_v46 = vld [vmem:[%s1864_s24 + $0x74] ss:$8 sps:$4 sm:$0xff]  }
  0x40   : > { %1470 = vmatpush3.bf16.msra.mxu0 %v1607_v22  ;;  %1539 = vmatpush3.bf16.msra.mxu1 %v1607_v22  ;;  %v1640_v47 = vld [vmem:[%s1864_s24 + $0x30] ss:$8 sps:$4 sm:$0xff]   ;;  %v432_v51 = vld [vmem:[#allocation2] sm:$0xff]  ;;  %v433_v59 = vld [vmem:[#allocation2 + $0x8] sm:$0xff] }
  0x41   : > { %1471 = vmatprep.subr.bf16.mxu0 %v1608_v23  ;;  %1532 = vmatprep.subr.bf16.mxu1 %v1608_v23  ;;  %v1641_v48 = vld [vmem:[%s1864_s24 + $0x70] ss:$8 sps:$4 sm:$0xff]   ;;  %v440_v53 = vld [vmem:[#allocation2 + $0x40] sm:$0xff]  ;;  %v441_v61 = vld [vmem:[#allocation2 + $0x48] sm:$0xff] }
  0x42   : > { %v434_v7 = vld [vmem:[#allocation2 + $0x10] sm:$0xff]  ;;  %v435_v15 = vld [vmem:[#allocation2 + $0x18] sm:$0xff]  ;;  %v444_v29 = vld [vmem:[#allocation2 + $0x60] sm:$0xff] }
  0x43   : > { %v442_v9 = vld [vmem:[#allocation2 + $0x50] sm:$0xff]  ;;  %v443_v17 = vld [vmem:[#allocation2 + $0x58] sm:$0xff] }
  0x44   : > { %1472 = vmatpush3.bf16.msra.mxu0 %v1609_v24  ;;  %1540 = vmatpush3.bf16.msra.mxu1 %v1609_v24 }
  0x45   : > { %1473 = vmatprep.subr.bf16.mxu0 %v1610_v25  ;;  %1533 = vmatprep.subr.bf16.mxu1 %v1610_v25 }
  0x48   : > { %1474 = vmatpush3.bf16.msra.mxu0 %v1611_v26  ;;  %1541 = vmatpush3.bf16.msra.mxu1 %v1611_v26 }
  0x49   : > { %1475 = vmatprep.subr.bf16.mxu0 %v1612_v27  ;;  %1534 = vmatprep.subr.bf16.mxu1 %v1612_v27  ;;  %v436_v27 = vld [vmem:[#allocation2 + $0x20] sm:$0xff] }
  0x4c   : > { %1476 = vmatpush3.bf16.msra.mxu0 %v1613_v30  ;;  %1542 = vmatpush3.bf16.msra.mxu1 %v1613_v30 }
  0x4d   : > { %1477 = vmatprep.subr.bf16.mxu0 %v1614_v31  ;;  %1535 = vmatprep.subr.bf16.mxu1 %v1614_v31 }
  0x50   : > { %1478 = vmatpush3.bf16.msra.mxu0 %v1615_v32  ;;  %1543 = vmatpush3.bf16.msra.mxu1 %v1615_v32 }
  0x51   : > { %1479 = vmatprep.subr.bf16.mxu0 %v1616_v33  ;;  %1536 = vmatprep.subr.bf16.mxu1 %v1616_v33 }
  0x54   : > { %1480 = vmatpush3.bf16.msra.mxu0 %v1617_v34  ;;  %1544 = vmatpush3.bf16.msra.mxu1 %v1617_v34 }
  0x57   : > { %705 = vmatmul.mubr.bf16.vlgmr.msra.gmra.mrb[0].mxu0 %v1618_v35  ;;  %737 = vmatmul.mubr.bf16.vlgmr.msra.gmra.mrb[0].mxu1 %v1621_v36  ;;  %v437_v35 = vld [vmem:[#allocation2 + $0x28] sm:$0xff] }
  0x58   : > { %712 = vmatprep.mubr.bf16.mxu0 %v1624_v37  ;;  %744 = vmatprep.mubr.bf16.mxu1 %v1626_v38  ;;  %v445_v37 = vld [vmem:[#allocation2 + $0x68] sm:$0xff] }
  0x5f   : > { %713 = vmatmul.mubr.bf16.gmra.mrb[4].mxu0 %v1628_v39  ;;  %745 = vmatmul.mubr.bf16.gmra.mrb[4].mxu1 %v1629_v40 }
  0x60   : > { %720 = vmatprep.mubr.bf16.mxu0 %v1630_v41  ;;  %752 = vmatprep.mubr.bf16.mxu1 %v1632_v42 }
  0x67   : > { %721 = vmatmul.mubr.bf16.gmra.mrb[8].mxu0 %v1634_v43  ;;  %753 = vmatmul.mubr.bf16.gmra.mrb[8].mxu1 %v1635_v44 }
  0x68   : > { %728 = vmatprep.mubr.bf16.mxu0 %v1636_v45  ;;  %760 = vmatprep.mubr.bf16.mxu1 %v1638_v46 }
  0x6f   : > { %729 = vmatmul.mubr.bf16.gmra.mrb[12].mxu0 %v1640_v47  ;;  %761 = vmatmul.mubr.bf16.gmra.mrb[12].mxu1 %v1641_v48  ;;  %v438_v47 = vld [vmem:[#allocation2 + $0x30] sm:$0xff] }
 0x12a   : > { %v1481_v49 = vpop.f32.mrb[0].mxu0  ;;  %v1505_v50 = vpop.f32.mrb[0].mxu1 }
 0x12b   : > { %v1482_v52 = vpop.f32.mrb[1].mxu0  ;;  %v1506_v54 = vpop.f32.mrb[1].mxu1 }
 0x12c   : > { %v1483_v55 = vadd.f32 %v1482_v52, %v1481_v49  ;;  %v1507_v56 = vadd.f32 %v1506_v54, %v1505_v50  ;;  %v1484_v57 = vpop.f32.mrb[2].mxu0  ;;  %v1508_v58 = vpop.f32.mrb[2].mxu1  ;;  %v446_v49 = vld [vmem:[#allocation2 + $0x70] sm:$0xff] }
 0x12d   : > { %v1485_v60 = vpop.f32.mrb[3].mxu0  ;;  %v1509_v62 = vpop.f32.mrb[3].mxu1 }
 0x12e   : > { %v769_v63 = vadd.f32 %v1483_v55, %v432_v51  ;;  %v777_v0 = vadd.f32 %v1507_v56, %v440_v53  ;;  %v1486_v1 = vadd.f32 %v1485_v60, %v1484_v57  ;;  %v1510_v2 = vadd.f32 %v1509_v62, %v1508_v58  ;;  %v439_v55 = vld [vmem:[#allocation2 + $0x38] sm:$0xff] }
 0x12f   : > { %v447_v57 = vld [vmem:[#allocation2 + $0x78] sm:$0xff] }
 0x130   : > { %785 = vst [vmem:[#allocation2] sm:$0xff] %v769_v63  ;;  %793 = vst [vmem:[#allocation2 + $0x40] sm:$0xff] %v777_v0  ;;  %v770_v3 = vadd.f32 %v1486_v1, %v433_v59  ;;  %v778_v4 = vadd.f32 %v1510_v2, %v441_v61  ;;  %v821_v1 = vld [vmem:[%s2151_s2] sm:$0x1] (!%p1343_p13)  ;;  %v823_v2 = vlaneseq (!%p1343_p13) }
 0x132   : > { %786 = vst [vmem:[#allocation2 + $0x8] sm:$0xff] %v770_v3  ;;  %794 = vst [vmem:[#allocation2 + $0x48] sm:$0xff] %v778_v4  ;;  %v1487_v5 = vpop.f32.mrb[4].mxu0  ;;  %v1511_v6 = vpop.f32.mrb[4].mxu1  ;;  %v822_v3 = vunpack.c.l.bf16 (!%p1343_p13), %v821_v1  ;;  %v824_v4 = vshrl.u32 (!%p1343_p13), %v823_v2, 7 }
 0x133   : > { %v1488_v8 = vpop.f32.mrb[5].mxu0  ;;  %v1512_v10 = vpop.f32.mrb[5].mxu1 }
 0x134   : > { %v1489_v11 = vadd.f32 %v1488_v8, %v1487_v5  ;;  %v1513_v12 = vadd.f32 %v1512_v10, %v1511_v6  ;;  %v1490_v13 = vpop.f32.mrb[6].mxu0  ;;  %v1514_v14 = vpop.f32.mrb[6].mxu1  ;;  %v1380_v5 = vld [vmem:[%s1857_s18] sm:$0xff] (!%p1343_p13)   ;;  %v1451_v6 = vld [vmem:[%s1857_s18 + $0x8] sm:$0xff] (!%p1343_p13)   ;;  %v1905_v8 = vsub.s32 (!%p1343_p13), 0, %v824_v4 }
 0x135   : > { %v1491_v16 = vpop.f32.mrb[7].mxu0  ;;  %v1515_v18 = vpop.f32.mrb[7].mxu1 }
 0x136   : > { %v771_v19 = vadd.f32 %v1489_v11, %v434_v7  ;;  %v779_v20 = vadd.f32 %v1513_v12, %v442_v9  ;;  %v1492_v21 = vadd.f32 %v1491_v16, %v1490_v13  ;;  %v1516_v22 = vadd.f32 %v1515_v18, %v1514_v14 }
 0x137   : > { %v805_v7 = vld [vmem:[#allocation2] sm:$0xff] (!%p1343_p13)  ;;  %v1908_v12 = vrot.slane (!%p1343_p13), %v822_v3, %v1905_v8  ;;  %v1381_v13 = vunpack.c.l.bf16 (!%p1343_p13), %v1380_v5  ;;  %v1385_v14 = vunpack.c.l.bf16 (!%p1343_p13), %v1451_v6  ;;  %v1386_v16 = vunpack.c.h.bf16 (!%p1343_p13), %v1451_v6 }
 0x138   : > { %787 = vst [vmem:[#allocation2 + $0x10] sm:$0xff] %v771_v19  ;;  %795 = vst [vmem:[#allocation2 + $0x50] sm:$0xff] %v779_v20  ;;  %v772_v23 = vadd.f32 %v1492_v21, %v435_v15  ;;  %v780_v24 = vadd.f32 %v1516_v22, %v443_v17  ;;  %v1382_v15 = vunpack.c.h.bf16 (!%p1343_p13), %v1380_v5  ;;  %v1452_v22 = vld [vmem:[%s1857_s18 + $0x10] sm:$0xff] (!%p1343_p13)   ;;  %v1457_v5 = vld [vmem:[%s1857_s18 + $0x38] sm:$0xff] (!%p1343_p13)  }
 0x139   : > { %v806_v10 = vld [vmem:[#allocation2 + $0x8] sm:$0xff] (!%p1343_p13)  ;;  %v827_v17 = vadd.f32 (!%p1343_p13), %v1908_v12, %v805_v7 }
 0x13a   : > { %788 = vst [vmem:[#allocation2 + $0x18] sm:$0xff] %v772_v23  ;;  %796 = vst [vmem:[#allocation2 + $0x58] sm:$0xff] %v780_v24  ;;  %v1493_v25 = vpop.f32.mrb[8].mxu0  ;;  %v1517_v26 = vpop.f32.mrb[8].mxu1  ;;  %v828_v19 = vadd.f32 (!%p1343_p13), %v1908_v12, %v806_v10 }
 0x13b   : > { %v1494_v28 = vpop.f32.mrb[9].mxu0  ;;  %v1518_v30 = vpop.f32.mrb[9].mxu1  ;;  %v1915_v24 = vadd.f32 (!%p1343_p13), %v1381_v13, %v827_v17 }
 0x13c   : > { %v1495_v31 = vadd.f32 %v1494_v28, %v1493_v25  ;;  %v1519_v32 = vadd.f32 %v1518_v30, %v1517_v26  ;;  %v1496_v33 = vpop.f32.mrb[10].mxu0  ;;  %v1520_v34 = vpop.f32.mrb[10].mxu1  ;;  %v1922_v28 = vadd.f32 (!%p1343_p13), %v1382_v15, %v828_v19 }
 0x13d   : > { %v1497_v36 = vpop.f32.mrb[11].mxu0  ;;  %v1521_v38 = vpop.f32.mrb[11].mxu1  ;;  %891 = vadd.xlane.f32.xlu0 (!%p1343_p13), %v1915_v24 }
 0x13e   : > { %v773_v39 = vadd.f32 %v1495_v31, %v436_v27  ;;  %v781_v40 = vadd.f32 %v1519_v32, %v444_v29  ;;  %v1498_v41 = vadd.f32 %v1497_v36, %v1496_v33  ;;  %v1522_v42 = vadd.f32 %v1521_v38, %v1520_v34  ;;  %v1453_v33 = vld [vmem:[%s1857_s18 + $0x18] sm:$0xff] (!%p1343_p13)  }
 0x13f   : > { %v807_v9 = vld [vmem:[#allocation2 + $0x10] sm:$0xff] (!%p1343_p13)  ;;  %v1389_v27 = vunpack.c.l.bf16 (!%p1343_p13), %v1452_v22  ;;  %v1390_v31 = vunpack.c.h.bf16 (!%p1343_p13), %v1452_v22  ;;  %v1393_v36 = vunpack.c.l.bf16 (!%p1343_p13), %v1453_v33 }
 0x140   : > { %789 = vst [vmem:[#allocation2 + $0x20] sm:$0xff] %v773_v39  ;;  %797 = vst [vmem:[#allocation2 + $0x60] sm:$0xff] %v781_v40  ;;  %v774_v43 = vadd.f32 %v1498_v41, %v437_v35  ;;  %v782_v44 = vadd.f32 %v1522_v42, %v445_v37  ;;  %v829_v18 = vadd.f32 (!%p1343_p13), %v1908_v12, %v807_v9  ;;  %v1394_v40 = vunpack.c.h.bf16 (!%p1343_p13), %v1453_v33  ;;  %v1454_v41 = vld [vmem:[%s1857_s18 + $0x20] sm:$0xff] (!%p1343_p13)  }
 0x141   : > { %v808_v11 = vld [vmem:[#allocation2 + $0x18] sm:$0xff] (!%p1343_p13)  ;;  %893 = vadd.xlane.f32.xlu0 (!%p1343_p13), %v1922_v28  ;;  %v813_v42 = vld [vmem:[#allocation2 + $0x40] sm:$0xff] (!%p1343_p13)  ;;  %v1409_v9 = vunpack.c.l.bf16 (!%p1343_p13), %v1457_v5 }
 0x142   : > { %790 = vst [vmem:[#allocation2 + $0x28] sm:$0xff] %v774_v43  ;;  %798 = vst [vmem:[#allocation2 + $0x68] sm:$0xff] %v782_v44  ;;  %v1499_v45 = vpop.f32.mrb[12].mxu0  ;;  %v1523_v46 = vpop.f32.mrb[12].mxu1  ;;  %v830_v20 = vadd.f32 (!%p1343_p13), %v1908_v12, %v808_v11  ;;  %v1917_v25 = vadd.f32 (!%p1343_p13), %v1385_v14, %v829_v18  ;;  %v814_v43 = vld [vmem:[#allocation2 + $0x48] sm:$0xff] (!%p1343_p13)  ;;  %v1410_v14 = vunpack.c.h.bf16 (!%p1343_p13), %v1457_v5 }
 0x143   : > { %v1500_v48 = vpop.f32.mrb[13].mxu0  ;;  %v1524_v50 = vpop.f32.mrb[13].mxu1 }
 0x144   : > { %v1501_v51 = vadd.f32 %v1500_v48, %v1499_v45  ;;  %v1525_v52 = vadd.f32 %v1524_v50, %v1523_v46  ;;  %v1502_v53 = vpop.f32.mrb[14].mxu0  ;;  %v1526_v54 = vpop.f32.mrb[14].mxu1  ;;  %804 = sbr.rel (%p1343_p13) target bundleno = 672 (0x2a0), region = 90  ;;  %895 = vadd.xlane.f32.xlu1 (!%p1343_p13), %v1917_v25  ;;  %v1924_v29 = vadd.f32 (!%p1343_p13), %v1386_v16, %v830_v20  ;;  %v1397_v45 = vunpack.c.l.bf16 (!%p1343_p13), %v1454_v41  ;;  %v815_v50 = vld [vmem:[#allocation2 + $0x50] sm:$0xff] (!%p1343_p13) }
 0x145   : > { %v1503_v56 = vpop.f32.mrb[15].mxu0  ;;  %v1527_v58 = vpop.f32.mrb[15].mxu1  ;;  %v836_v48 = vadd.f32 (!%p1343_p13), %v1908_v12, %v814_v43 }
 0x146   : > { %v775_v59 = vadd.f32 %v1501_v51, %v438_v47  ;;  %v783_v60 = vadd.f32 %v1525_v52, %v446_v49  ;;  %v1504_v61 = vadd.f32 %v1503_v56, %v1502_v53  ;;  %v1528_v62 = vadd.f32 %v1527_v58, %v1526_v54  ;;  %v1455_v51 = vld [vmem:[%s1857_s18 + $0x28] sm:$0xff] (!%p1343_p13)   ;;  %v816_v52 = vld [vmem:[#allocation2 + $0x58] sm:$0xff] (!%p1343_p13) }
 0x147   : > { %v809_v21 = vld [vmem:[#allocation2 + $0x20] sm:$0xff] (!%p1343_p13)  ;;  %v835_v47 = vadd.f32 (!%p1343_p13), %v1908_v12, %v813_v42  ;;  %v1398_v49 = vunpack.c.h.bf16 (!%p1343_p13), %v1454_v41  ;;  %v837_v53 = vadd.f32 (!%p1343_p13), %v1908_v12, %v815_v50  ;;  %v1401_v54 = vunpack.c.l.bf16 (!%p1343_p13), %v1455_v51 }
 0x148   : > { %791 = vst [vmem:[#allocation2 + $0x30] sm:$0xff] %v775_v59  ;;  %799 = vst [vmem:[#allocation2 + $0x70] sm:$0xff] %v783_v60  ;;  %v776_v63 = vadd.f32 %v1504_v61, %v439_v55  ;;  %v784_v0 = vadd.f32 %v1528_v62, %v447_v57  ;;  %v831_v26 = vadd.f32 (!%p1343_p13), %v1908_v12, %v809_v21  ;;  %897 = vadd.xlane.f32.xlu1 (!%p1343_p13), %v1924_v29  ;;  %v817_v59 = vld [vmem:[#allocation2 + $0x60] sm:$0xff] (!%p1343_p13)  ;;  %v1456_v60 = vld [vmem:[%s1857_s18 + $0x30] sm:$0xff] (!%p1343_p13)  }
 0x149   : > { %v810_v23 = vld [vmem:[#allocation2 + $0x28] sm:$0xff] (!%p1343_p13)  ;;  %v1949_v55 = vadd.f32 (!%p1343_p13), %v1397_v45, %v835_v47  ;;  %v1951_v56 = vadd.f32 (!%p1343_p13), %v1398_v49, %v836_v48  ;;  %v838_v57 = vadd.f32 (!%p1343_p13), %v1908_v12, %v816_v52  ;;  %v1402_v58 = vunpack.c.h.bf16 (!%p1343_p13), %v1455_v51 }
 0x14a   : > { %792 = vst [vmem:[#allocation2 + $0x38] sm:$0xff] %v776_v63  ;;  %800 = vst [vmem:[#allocation2 + $0x78] sm:$0xff] %v784_v0  ;;  %v832_v30 = vadd.f32 (!%p1343_p13), %v1908_v12, %v810_v23  ;;  %v1931_v37 = vadd.f32 (!%p1343_p13), %v1389_v27, %v831_v26  ;;  %v818_v61 = vld [vmem:[#allocation2 + $0x68] sm:$0xff] (!%p1343_p13)  ;;  %v839_v62 = vadd.f32 (!%p1343_p13), %v1908_v12, %v817_v59  ;;  %v1405_v63 = vunpack.c.l.bf16 (!%p1343_p13), %v1456_v60 }
 0x14b   : > { %v1958_v0 = vadd.f32 %v1401_v54, %v837_v53  ;;  %v1960_v1 = vadd.f32 %v1402_v58, %v838_v57  ;;  %v840_v2 = vadd.f32 %v1908_v12, %v818_v61  ;;  %v1406_v3 = vunpack.c.h.bf16 %v1456_v60 }
 0x14c   : > { %v1933_v38 = vadd.f32 %v1390_v31, %v832_v30  ;;  %899 = vadd.xlane.f32.xlu0 %v1931_v37  ;;  %v1967_v10 = vadd.f32 %v1405_v63, %v839_v62 }
 0x14d   : > { %v1969_v11 = vadd.f32 %v1406_v3, %v840_v2 }
 0x14e   : > { %901 = vadd.xlane.f32.xlu1 %v1933_v38 }
 0x14f   : > { %v811_v32 = vld [vmem:[#allocation2 + $0x30] sm:$0xff] }
 0x150   : > { %v833_v35 = vadd.f32 %v1908_v12, %v811_v32  ;;  %v819_v4 = vld [vmem:[#allocation2 + $0x70] sm:$0xff] }
 0x151   : > { %v812_v34 = vld [vmem:[#allocation2 + $0x38] sm:$0xff]  ;;  %v841_v7 = vadd.f32 %v1908_v12, %v819_v4 }
 0x152   : > { %v834_v39 = vadd.f32 %v1908_v12, %v812_v34  ;;  %v1937_v44 = vadd.f32 %v1393_v36, %v833_v35  ;;  %v820_v6 = vld [vmem:[#allocation2 + $0x78] sm:$0xff] }
 0x153   : > { %v842_v13 = vadd.f32 %v1908_v12, %v820_v6  ;;  %v1974_v15 = vadd.f32 %v1409_v9, %v841_v7 }
 0x154   : > { %v1941_v46 = vadd.f32 %v1394_v40, %v834_v39  ;;  %903 = vadd.xlane.f32.xlu0 %v1937_v44 }
 0x155   : > { %v1976_v16 = vadd.f32 %v1410_v14, %v842_v13 }
 0x156   : > { %905 = vadd.xlane.f32.xlu1 %v1941_v46 }
 0x158   : > { %907 = vadd.xlane.f32.xlu0 %v1949_v55 }
 0x15a   : > { %909 = vadd.xlane.f32.xlu1 %v1951_v56 }
 0x15c   : > { %911 = vadd.xlane.f32.xlu0 %v1958_v0 }
 0x15e   : > { %913 = vadd.xlane.f32.xlu1 %v1960_v1 }
 0x160   : > { %915 = vadd.xlane.f32.xlu0 %v1967_v10 }
 0x162   : > { %917 = vadd.xlane.f32.xlu1 %v1969_v11 }
 0x164   : > { %919 = vadd.xlane.f32.xlu0 %v1974_v15 }
 0x166   : > { %921 = vadd.xlane.f32.xlu1 %v1976_v16 }
 0x1ca   : > { %v892_v17 = vpop.xlane.xlu0 %891 }
 0x1cb   : > { %v924_v19 = vmul.f32 0.0078125, %v892_v17 }
 0x1cd   : > { %v1981_v21 = vsub.f32 %v1915_v24, %v924_v19 }
 0x1ce   : > { %v894_v22 = vpop.xlane.xlu0 %893 }
 0x1cf   : > { %v925_v26 = vmul.f32 0.0078125, %v894_v22  ;;  %v956_v27 = vmul.f32 %v1981_v21, %v1981_v21 }
 0x1d1   : > { %v896_v18 = vpop.xlane.xlu1 %895  ;;  %v1989_v31 = vsub.f32 %v1922_v28, %v925_v26  ;;  %972 = vadd.xlane.f32.xlu0 %v956_v27 }
 0x1d2   : > { %v926_v20 = vmul.f32 0.0078125, %v896_v18 }
 0x1d3   : > { %v957_v35 = vmul.f32 %v1989_v31, %v1989_v31 }
 0x1d4   : > { %v1984_v12 = vsub.f32 %v1917_v25, %v926_v20 }
 0x1d5   : > { %v898_v23 = vpop.xlane.xlu1 %897  ;;  %974 = vadd.xlane.f32.xlu1 %v957_v35 }
 0x1d6   : > { %v927_v30 = vmul.f32 0.0078125, %v898_v23  ;;  %v958_v24 = vmul.f32 %v1984_v12, %v1984_v12 }
 0x1d8   : > { %v1992_v32 = vsub.f32 %v1924_v29, %v927_v30  ;;  %976 = vadd.xlane.f32.xlu0 %v958_v24 }
 0x1d9   : > { %v900_v33 = vpop.xlane.xlu0 %899 }
 0x1da   : > { %v928_v34 = vmul.f32 0.0078125, %v900_v33  ;;  %v959_v29 = vmul.f32 %v1992_v32, %v1992_v32 }
 0x1db   : > { %v902_v25 = vpop.xlane.xlu1 %901 }
 0x1dc   : > { %v929_v36 = vmul.f32 0.0078125, %v902_v25  ;;  %v1999_v39 = vsub.f32 %v1931_v37, %v928_v34  ;;  %978 = vadd.xlane.f32.xlu1 %v959_v29  ;;  %v1068_v34 = vld [vmem:[%s2153_s4] sm:$0x1] }
 0x1de   : > { %v2002_v28 = vsub.f32 %v1933_v38, %v929_v36  ;;  %v960_v43 = vmul.f32 %v1999_v39, %v1999_v39 }
 0x1e0   : > { %980 = vadd.xlane.f32.xlu0 %v960_v43  ;;  %v961_v38 = vmul.f32 %v2002_v28, %v2002_v28 }
 0x1e1   : > { %v904_v40 = vpop.xlane.xlu0 %903 }
 0x1e2   : > { %v930_v42 = vmul.f32 0.0078125, %v904_v40  ;;  %982 = vadd.xlane.f32.xlu1 %v961_v38 }
 0x1e3   : > { %v906_v41 = vpop.xlane.xlu1 %905 }
 0x1e4   : > { %v931_v45 = vmul.f32 0.0078125, %v906_v41  ;;  %v2009_v47 = vsub.f32 %v1937_v44, %v930_v42  ;;  %v1069_v41 = vunpack.c.l.bf16 %v1068_v34 }
 0x1e5   : > { %v908_v48 = vpop.xlane.xlu0 %907 }
 0x1e6   : > { %v2012_v37 = vsub.f32 %v1941_v46, %v931_v45  ;;  %v932_v50 = vmul.f32 0.0078125, %v908_v48  ;;  %v962_v51 = vmul.f32 %v2009_v47, %v2009_v47  ;;  %v1090_v45 = vld [vmem:[%s2154_s5] sm:$0x1] }
 0x1e7   : > { %v910_v49 = vpop.xlane.xlu1 %909 }
 0x1e8   : > { %v933_v52 = vmul.f32 0.0078125, %v910_v49  ;;  %v2019_v53 = vsub.f32 %v1949_v55, %v932_v50  ;;  %984 = vadd.xlane.f32.xlu0 %v962_v51  ;;  %v963_v46 = vmul.f32 %v2012_v37, %v2012_v37 }
 0x1e9   : > { %v912_v54 = vpop.xlane.xlu0 %911 }
 0x1ea   : > { %v2022_v44 = vsub.f32 %v1951_v56, %v933_v52  ;;  %v934_v58 = vmul.f32 0.0078125, %v912_v54  ;;  %v964_v59 = vmul.f32 %v2019_v53, %v2019_v53  ;;  %986 = vadd.xlane.f32.xlu1 %v963_v46  ;;  %v2067_v52 = vrot.slane %v1069_v41, %v1905_v8 }
 0x1eb   : > { %v914_v57 = vpop.xlane.xlu1 %913  ;;  %v1091_v46 = vunpack.c.l.bf16 %v1090_v45 }
 0x1ec   : > { %v935_v60 = vmul.f32 0.0078125, %v914_v57  ;;  %v2029_v61 = vsub.f32 %v1958_v0, %v934_v58  ;;  %988 = vadd.xlane.f32.xlu0 %v964_v59  ;;  %v965_v56 = vmul.f32 %v2022_v44, %v2022_v44 }
 0x1ed   : > { %v916_v62 = vpop.xlane.xlu0 %915 }
 0x1ee   : > { %v2032_v55 = vsub.f32 %v1960_v1, %v935_v60  ;;  %v936_v2 = vmul.f32 0.0078125, %v916_v62  ;;  %v966_v3 = vmul.f32 %v2029_v61, %v2029_v61  ;;  %990 = vadd.xlane.f32.xlu1 %v965_v56 }
 0x1ef   : > { %v918_v63 = vpop.xlane.xlu1 %917 }
 0x1f0   : > { %v937_v4 = vmul.f32 0.0078125, %v918_v63  ;;  %v2039_v5 = vsub.f32 %v1967_v10, %v936_v2  ;;  %992 = vadd.xlane.f32.xlu0 %v966_v3  ;;  %v967_v1 = vmul.f32 %v2032_v55, %v2032_v55  ;;  %v2071_v3 = vrot.slane %v1091_v46, %v1905_v8 }
 0x1f1   : > { %v920_v6 = vpop.xlane.xlu0 %919 }
 0x1f2   : > { %v2042_v0 = vsub.f32 %v1969_v11, %v937_v4  ;;  %v938_v9 = vmul.f32 0.0078125, %v920_v6  ;;  %v968_v13 = vmul.f32 %v2039_v5, %v2039_v5  ;;  %994 = vadd.xlane.f32.xlu1 %v967_v1 }
 0x1f3   : > { %v922_v7 = vpop.xlane.xlu1 %921 }
 0x1f4   : > { %v939_v14 = vmul.f32 0.0078125, %v922_v7  ;;  %v2049_v17 = vsub.f32 %v1974_v15, %v938_v9  ;;  %996 = vadd.xlane.f32.xlu0 %v968_v13  ;;  %v969_v11 = vmul.f32 %v2042_v0, %v2042_v0 }
 0x1f6   : > { %v2052_v10 = vsub.f32 %v1976_v16, %v939_v14  ;;  %v970_v18 = vmul.f32 %v2049_v17, %v2049_v17  ;;  %998 = vadd.xlane.f32.xlu1 %v969_v11 }
 0x1f8   : > { %1000 = vadd.xlane.f32.xlu0 %v970_v18  ;;  %v971_v19 = vmul.f32 %v2052_v10, %v2052_v10 }
 0x1fa   : > { %1002 = vadd.xlane.f32.xlu1 %v971_v19 }
 0x25e   : > { %v973_v20 = vpop.xlane.xlu0 %972 }
 0x25f   : > { %v1004_v15 = vmul.f32 0.0078125, %v973_v20 }
 0x261   : > { %v1020_v22 = vadd.f32 1e-12, %v1004_v15 }
 0x262   : > { %v975_v23 = vpop.xlane.xlu1 %974 }
 0x263   : > { %1642 = vrsqrt.f32 %v1020_v22  ;;  %v1005_v16 = vmul.f32 0.0078125, %v975_v23 }
 0x265   : > { %v977_v26 = vpop.xlane.xlu0 %976  ;;  %v1021_v30 = vadd.f32 1e-12, %v1005_v16 }
 0x266   : > { %v1006_v27 = vmul.f32 0.0078125, %v977_v26 }
 0x267   : > { %1644 = vrsqrt.f32 %v1021_v30 }
 0x268   : > { %v1022_v24 = vadd.f32 1e-12, %v1006_v27 }
 0x269   : > { %v979_v33 = vpop.xlane.xlu1 %978 }
 0x26a   : > { %v1007_v35 = vmul.f32 0.0078125, %v979_v33  ;;  %1646 = vrsqrt.f32 %v1022_v24 }
 0x26c   : > { %v1023_v29 = vadd.f32 1e-12, %v1007_v35 }
 0x26d   : > { %v981_v25 = vpop.xlane.xlu0 %980  ;;  %v1643_v49 = vpop.eup %1642 }
 0x26e   : > { %v1008_v36 = vmul.f32 0.0078125, %v981_v25  ;;  %1648 = vrsqrt.f32 %v1023_v29  ;;  %v1052_v54 = vmul.f32 %v1643_v49, %v1981_v21 }
 0x26f   : > { %v983_v42 = vpop.xlane.xlu1 %982 }
 0x270   : > { %v1024_v40 = vadd.f32 1e-12, %v1008_v36  ;;  %v1009_v38 = vmul.f32 0.0078125, %v983_v42  ;;  %v1074_v4 = vmul.f32 %v2067_v52, %v1052_v54 }
 0x271   : > { %v1645_v56 = vpop.eup %1644 }
 0x272   : > { %1650 = vrsqrt.f32 %v1024_v40  ;;  %v1025_v50 = vadd.f32 1e-12, %v1009_v38  ;;  %v1053_v1 = vmul.f32 %v1645_v56, %v1989_v31  ;;  %v1096_v8 = vadd.f32 %v2071_v3, %v1074_v4 }
 0x274   : > { %1652 = vrsqrt.f32 %v1025_v50  ;;  %v1647_v2 = vpop.eup %1646  ;;  %v1075_v14 = vmul.f32 %v2067_v52, %v1053_v1 }
 0x275   : > { %v985_v43 = vpop.xlane.xlu0 %984  ;;  %v1054_v21 = vmul.f32 %v1647_v2, %v1984_v12 }
 0x276   : > { %v1010_v48 = vmul.f32 0.0078125, %v985_v43  ;;  %v1097_v15 = vadd.f32 %v2071_v3, %v1075_v14 }
 0x277   : > { %v987_v57 = vpop.xlane.xlu1 %986  ;;  %v1076_v31 = vmul.f32 %v2067_v52, %v1054_v21 }
 0x278   : > { %v1026_v51 = vadd.f32 1e-12, %v1010_v48  ;;  %v1011_v59 = vmul.f32 0.0078125, %v987_v57  ;;  %v1649_v11 = vpop.eup %1648  ;;  %v1414_v27 = vpack.c.bf16 %v1097_v15, %v1096_v8 }
 0x279   : > { %v989_v58 = vpop.xlane.xlu0 %988  ;;  %v1055_v22 = vmul.f32 %v1649_v11, %v1992_v32  ;;  %v1098_v36 = vadd.f32 %v2071_v3, %v1076_v31 }
 0x27a   : > { %v1012_v60 = vmul.f32 0.0078125, %v989_v58  ;;  %1654 = vrsqrt.f32 %v1026_v51  ;;  %v1027_v62 = vadd.f32 1e-12, %v1011_v59  ;;  %1415 = vst [vmem:[%s1862_s20] sm:$0xff] %v1414_v27  }
 0x27b   : > { %v991_v6 = vpop.xlane.xlu1 %990  ;;  %v1077_v30 = vmul.f32 %v2067_v52, %v1055_v22 }
 0x27c   : > { %v1028_v63 = vadd.f32 1e-12, %v1012_v60  ;;  %1656 = vrsqrt.f32 %v1027_v62  ;;  %v1013_v9 = vmul.f32 0.0078125, %v991_v6  ;;  %v1651_v20 = vpop.eup %1650 }
 0x27d   : > { %v993_v7 = vpop.xlane.xlu0 %992  ;;  %v1056_v26 = vmul.f32 %v1651_v20, %v1999_v39  ;;  %v1099_v32 = vadd.f32 %v2071_v3, %v1077_v30 }
 0x27e   : > { %v1014_v13 = vmul.f32 0.0078125, %v993_v7  ;;  %1658 = vrsqrt.f32 %v1028_v63  ;;  %v1029_v18 = vadd.f32 1e-12, %v1013_v9  ;;  %v1653_v33 = vpop.eup %1652 }
 0x27f   : > { %v995_v12 = vpop.xlane.xlu1 %994  ;;  %v1078_v25 = vmul.f32 %v2067_v52, %v1056_v26  ;;  %v1057_v39 = vmul.f32 %v1653_v33, %v2002_v28  ;;  %v1419_v45 = vpack.c.bf16 %v1099_v32, %v1098_v36 }
 0x280   : > { %v1030_v19 = vadd.f32 1e-12, %v1014_v13  ;;  %1660 = vrsqrt.f32 %v1029_v18  ;;  %v1015_v16 = vmul.f32 0.0078125, %v995_v12 }
 0x281   : > { %v997_v23 = vpop.xlane.xlu0 %996  ;;  %v1079_v38 = vmul.f32 %v2067_v52, %v1057_v39  ;;  %v1100_v50 = vadd.f32 %v2071_v3, %v1078_v25  ;;  %1458 = vst [vmem:[%s1862_s20 + $0x8] sm:$0xff] %v1419_v45  }
 0x282   : > { %1662 = vrsqrt.f32 %v1030_v19  ;;  %v1016_v24 = vmul.f32 0.0078125, %v997_v23  ;;  %v1031_v34 = vadd.f32 1e-12, %v1015_v16 }
 0x283   : > { %v999_v40 = vpop.xlane.xlu1 %998  ;;  %v1101_v28 = vadd.f32 %v2071_v3, %v1079_v38 }
 0x284   : > { %v1655_v35 = vpop.eup %1654  ;;  %v1032_v29 = vadd.f32 1e-12, %v1016_v24  ;;  %1664 = vrsqrt.f32 %v1031_v34  ;;  %v1017_v43 = vmul.f32 0.0078125, %v999_v40 }
 0x285   : > { %v1001_v41 = vpop.xlane.xlu0 %1000  ;;  %v1058_v42 = vmul.f32 %v1655_v35, %v2009_v47  ;;  %v1424_v56 = vpack.c.bf16 %v1101_v28, %v1100_v50 }
 0x286   : > { %1666 = vrsqrt.f32 %v1032_v29  ;;  %v1018_v48 = vmul.f32 0.0078125, %v1001_v41  ;;  %v1657_v49 = vpop.eup %1656  ;;  %v1033_v51 = vadd.f32 1e-12, %v1017_v43 }
 0x287   : > { %v1080_v54 = vmul.f32 %v2067_v52, %v1058_v42  ;;  %v1059_v47 = vmul.f32 %v1657_v49, %v2012_v37  ;;  %v1003_v58 = vpop.xlane.xlu1 %1002  ;;  %1459 = vst [vmem:[%s1862_s20 + $0x10] sm:$0xff] %v1424_v56  }
 0x288   : > { %v1659_v46 = vpop.eup %1658  ;;  %v1034_v57 = vadd.f32 1e-12, %v1018_v48  ;;  %1668 = vrsqrt.f32 %v1033_v51  ;;  %v1019_v60 = vmul.f32 0.0078125, %v1003_v58 }
 0x289   : > { %v1060_v59 = vmul.f32 %v1659_v46, %v2019_v53  ;;  %v1081_v62 = vmul.f32 %v2067_v52, %v1059_v47  ;;  %v1102_v1 = vadd.f32 %v2071_v3, %v1080_v54 }
 0x28a   : > { %1670 = vrsqrt.f32 %v1034_v57  ;;  %v1661_v63 = vpop.eup %1660  ;;  %v1035_v2 = vadd.f32 1e-12, %v1019_v60 }
 0x28b   : > { %v1103_v6 = vadd.f32 %v2071_v3, %v1081_v62  ;;  %v1082_v37 = vmul.f32 %v2067_v52, %v1060_v59  ;;  %v1061_v7 = vmul.f32 %v1661_v63, %v2022_v44 }
 0x28c   : > { %v1663_v4 = vpop.eup %1662  ;;  %1672 = vrsqrt.f32 %v1035_v2 }
 0x28d   : > { %v1062_v53 = vmul.f32 %v1663_v4, %v2029_v61  ;;  %v1429_v21 = vpack.c.bf16 %v1103_v6, %v1102_v1  ;;  %v1083_v9 = vmul.f32 %v2067_v52, %v1061_v7  ;;  %v1104_v11 = vadd.f32 %v2071_v3, %v1082_v37 }
 0x28e   : > { %v1665_v13 = vpop.eup %1664 }
 0x28f   : > { %1460 = vst [vmem:[%s1862_s20 + $0x18] sm:$0xff] %v1429_v21   ;;  %v1105_v18 = vadd.f32 %v2071_v3, %v1083_v9  ;;  %v1084_v19 = vmul.f32 %v2067_v52, %v1062_v53  ;;  %v1063_v20 = vmul.f32 %v1665_v13, %v2032_v55 }
 0x290   : > { %v1667_v14 = vpop.eup %1666 }
 0x291   : > { %v1064_v44 = vmul.f32 %v1667_v14, %v2039_v5  ;;  %v1434_v61 = vpack.c.bf16 %v1105_v18, %v1104_v11  ;;  %v1085_v8 = vmul.f32 %v2067_v52, %v1063_v20  ;;  %v1106_v22 = vadd.f32 %v2071_v3, %v1084_v19 }
 0x292   : > { %v1669_v15 = vpop.eup %1668 }
 0x293   : > { %1461 = vst [vmem:[%s1862_s20 + $0x20] sm:$0xff] %v1434_v61   ;;  %v1107_v12 = vadd.f32 %v2071_v3, %v1085_v8  ;;  %v1086_v23 = vmul.f32 %v2067_v52, %v1064_v44  ;;  %v1065_v26 = vmul.f32 %v1669_v15, %v2042_v0 }
 0x294   : > { %v1671_v31 = vpop.eup %1670 }
 0x295   : > { %v1066_v55 = vmul.f32 %v1671_v31, %v2049_v17  ;;  %v1439_v16 = vpack.c.bf16 %v1107_v12, %v1106_v22  ;;  %v1087_v5 = vmul.f32 %v2067_v52, %v1065_v26  ;;  %v1108_v30 = vadd.f32 %v2071_v3, %v1086_v23 }
 0x296   : > { %v1673_v27 = vpop.eup %1672 }
 0x297   : > { %1462 = vst [vmem:[%s1862_s20 + $0x28] sm:$0xff] %v1439_v16   ;;  %v1109_v24 = vadd.f32 %v2071_v3, %v1087_v5  ;;  %v1088_v33 = vmul.f32 %v2067_v52, %v1066_v55  ;;  %v1067_v25 = vmul.f32 %v1673_v27, %v2052_v10 }
 0x299   : > { %v1444_v34 = vpack.c.bf16 %v1109_v24, %v1108_v30  ;;  %v1089_v35 = vmul.f32 %v2067_v52, %v1067_v25  ;;  %v1110_v0 = vadd.f32 %v2071_v3, %v1088_v33 }
 0x29b   : > { %1463 = vst [vmem:[%s1862_s20 + $0x30] sm:$0xff] %v1444_v34   ;;  %v1111_v17 = vadd.f32 %v2071_v3, %v1089_v35 }
 0x29d   : > { %v1449_v36 = vpack.c.bf16 %v1111_v17, %v1110_v0 }
 0x29f   : > { %1464 = vst [vmem:[%s1862_s20 + $0x38] sm:$0xff] %v1449_v36  }
 0x2a0 PF: > { %s16_s27 = sadd.s32 1, %s1728_s27   ;;  %s2156_s21 = smov %s1708_s22 }
 0x2a1   : > { %p13_p0 = scmp.ge.s32.totalorder %s16_s27, 6   ;;  %s2157_s22 = smov %s1817_s10 }
 0x2a2   : > { %s2158_s23 = smov %s1720_s25  ;;  %s2159_s24 = smov %s1724_s26 }
 0x2a3   : > { %s2160_s25 = smov %s2163_s28  ;;  %s2161_s26 = smov %s2167_s29 }
 0x2a4   :  { %15 = sbr.rel (!%p13_p0) target bundleno = 4 (0x4), region = 131 }

</bundles_post_ra>
